<compile_context>
chip_gen: v5e
topology: v5e:2x2
jax: 0.10.0
libtpu: 0.0.40
codegen_flags: <defaults>
</compile_context>

<pallas_src>
import math

import jax
import jax.numpy as jnp
from jax.experimental import pallas as pl
from jax.experimental.pallas import tpu as pltpu

# ----- small, deterministic model config (shapes implied by the module) -----
IMG_SIZE = 16
PATCH_SIZE = 4
IN_CHANS = 3
EMBED_DIM = 32
DEPTH = 2
NUM_HEADS = 4
MLP_RATIO = 4.0
NUM_CLASSES = 10
ADAPTER_DOWN = EMBED_DIM // 8          # Adapter default: input_size // 8
LN_EPS = 1e-6                          # norm_layer = partial(nn.LayerNorm, eps=1e-6)
HEAD_DIM = EMBED_DIM // NUM_HEADS
NUM_PATCHES = (IMG_SIZE // PATCH_SIZE) ** 2
SEQ_LEN = NUM_PATCHES + 1              # +1 cls token
MLP_HIDDEN = int(EMBED_DIM * MLP_RATIO)
PATCH_DIM = IN_CHANS * PATCH_SIZE * PATCH_SIZE
ATTN_SCALE = HEAD_DIM ** -0.5


# ---------------------------- fused Pallas kernel ----------------------------

def _make_fused_kernel(treedef, n_params):
    """Single fused kernel: patch-embed -> 2 blocks -> final LN (cls only) -> head."""

    def kernel(*refs):
        patches_ref = refs[0]
        p = jax.tree_util.tree_unflatten(treedef, refs[1:1 + n_params])
        out_ref = refs[1 + n_params]

        def mm(a, b):                       # a @ b           (MXU, f32 accumulation)
            return jax.lax.dot_general(a, b, (((1,), (0,)), ((), ())),
                                       preferred_element_type=jnp.float32)

        def mm_t(a, b):                     # a @ b.T
            return jax.lax.dot_general(a, b, (((1,), (1,)), ((), ())),
                                       preferred_element_type=jnp.float32)

        def layernorm(x, g, b):             # biased variance == torch LayerNorm
            mean = jnp.mean(x, axis=-1, keepdims=True)
            xc = x - mean
            var = jnp.mean(xc * xc, axis=-1, keepdims=True)
            return xc * jax.lax.rsqrt(var + LN_EPS) * g + b

        def erf(x):
            # TODO(synk): lax.erf has no guaranteed Mosaic lowering; Abramowitz-Stegun
            # 7.1.26 polynomial (|err| < 1.5e-7 ~ f32 eps) stands in for exact erf.
            t = 1.0 / (1.0 + 0.3275911 * jnp.abs(x))
            poly = t * (0.254829592 + t * (-0.284496736 + t * (1.421413741
                        + t * (-1.453152027 + t * 1.061405429))))
            y = 1.0 - poly * jnp.exp(-x * x)
            return jnp.where(x < 0.0, -y, y)

        def gelu(x):                        # exact (erf-based) nn.GELU
            return 0.5 * x * (1.0 + erf(x * (1.0 / math.sqrt(2.0))))

        # --- patch embedding; cls token, pos embed and conv bias folded into add_term ---
        x = mm(patches_ref[...], p["patch_w"][...]) + p["add_term"][...]     # (B*N, C)

        attn_bias = p["attn_bias"][...]   # (B*N, B*N): 0 within a batch, -1e30 across

        # --- transformer blocks (Python-unrolled; weights stay resident in VMEM) ---
        for bp in p["blocks"]:
            # attention branch: x = x + adapter1(proj(attn(norm1(x))))
            h = layernorm(x, bp["ln1_g"][...], bp["ln1_b"][...])
            acc = None
            for hd in range(NUM_HEADS):   # unrolled; per-head weights via ref[hd] loads
                q = mm(h, bp["wq"][hd]) + bp["bq"][hd]          # (B*N, D)
                k = mm(h, bp["wk"][hd]) + bp["bk"][hd]
                v = mm(h, bp["wv"][hd]) + bp["bv"][hd]
                s = mm_t(q, k) * ATTN_SCALE + attn_bias          # (B*N, B*N)
                s = s - jnp.max(s, axis=-1, keepdims=True)
                pr = jnp.exp(s)
                pr = pr * pl.reciprocal(jnp.sum(pr, axis=-1, keepdims=True), approx=True)
                ctx = mm(pr, v)                                  # (B*N, D)
                # fold output projection: ctx_full @ Wp == sum_h ctx_h @ Wp[h*D:(h+1)*D]
                contrib = mm(ctx, bp["wproj"][hd])               # (B*N, C)
                acc = contrib if acc is None else acc + contrib
            proj = acc + bp["b_proj"][...]
            d1 = jnp.maximum(mm(proj, bp["a1_wd"][...]) + bp["a1_bd"][...], 0.0)
            x = x + proj + (mm(d1, bp["a1_wu"][...]) + bp["a1_bu"][...])

            # MLP branch: x = x + adapter2(fc2(gelu(fc1(norm2(x)))))
            h2 = layernorm(x, bp["ln2_g"][...], bp["ln2_b"][...])
            m = gelu(mm(h2, bp["w_fc1"][...]) + bp["b_fc1"][...])
            m = mm(m, bp["w_fc2"][...]) + bp["b_fc2"][...]
            d2 = jnp.maximum(mm(m, bp["a2_wd"][...]) + bp["a2_bd"][...], 0.0)
            x = x + m + (mm(d2, bp["a2_wu"][...]) + bp["a2_bu"][...])

        # --- final LayerNorm on cls tokens only (one-hot matmul gather) + head ---
        cls_tok = mm(p["cls_select"][...], x)                    # (B, C)
        cls_tok = layernorm(cls_tok, p["norm_g"][...], p["norm_b"][...])
        out_ref[...] = (mm(cls_tok, p["head_w"][...]) + p["head_b"][...]).astype(out_ref.dtype)

    return kernel


# ---------------------------- one-time parameter repack ----------------------------

def prepare_params(params, batch_size):
    """Repack PyTorch-style parameters into the layout the fused kernel consumes:
    per-head QKV/proj slabs, 2-D biases, folded cls/pos/conv-bias additive term,
    block-diagonal attention bias, one-hot cls gather.  Run once, outside jit."""
    B = batch_size
    TOT = B * SEQ_LEN
    C, H, D = EMBED_DIM, NUM_HEADS, HEAD_DIM

    def row(v):
        return jnp.asarray(v, jnp.float32).reshape(1, -1)

    pos = params["pos_embed"][0]                     # (SEQ, C)
    cls = params["cls_token"].reshape(1, C)
    pb = params["patch_b"].reshape(1, C)
    # per-token additive term: cls rows -> cls + pos[0]; patch rows -> conv bias + pos[r]
    add_one = jnp.concatenate([cls + pos[0:1], pb + pos[1:SEQ_LEN]], axis=0)    # (SEQ, C)
    add_term = jnp.tile(add_one, (B, 1))                                         # (TOT, C)

    cls_select = (jnp.arange(TOT)[None, :] ==
                  (jnp.arange(B) * SEQ_LEN)[:, None]).astype(jnp.float32)        # (B, TOT)

    tok_batch = jnp.repeat(jnp.arange(B), SEQ_LEN)
    attn_bias = jnp.where(tok_batch[:, None] == tok_batch[None, :],
                          0.0, -1e30).astype(jnp.float32)                        # (TOT, TOT)

    def per_head_w(w):    # (C, H*D) columns ordered (head, dim)  ->  (H, C, D)
        return w.reshape(C, H, D).transpose(1, 0, 2)

    def per_head_b(b):    # (H*D,) -> (H, 1, D)
        return b.reshape(H, 1, D)

    blocks = []
    for bp in params["blocks"]:
        wqkv, bqkv = bp["w_qkv"], bp["b_qkv"]
        blocks.append({
            "ln1_g": row(bp["ln1_g"]), "ln1_b": row(bp["ln1_b"]),
            "wq": per_head_w(wqkv[:, 0:C]),
            "wk": per_head_w(wqkv[:, C:2 * C]),
            "wv": per_head_w(wqkv[:, 2 * C:3 * C]),
            "bq": per_head_b(bqkv[0:C]),
            "bk": per_head_b(bqkv[C:2 * C]),
            "bv": per_head_b(bqkv[2 * C:3 * C]),
            "wproj": bp["w_proj"].reshape(H, D, C),          # rows grouped by head
            "b_proj": row(bp["b_proj"]),
            "a1_wd": bp["a1_wd"], "a1_bd": row(bp["a1_bd"]),
            "a1_wu": bp["a1_wu"], "a1_bu": row(bp["a1_bu"]),
            "ln2_g": row(bp["ln2_g"]), "ln2_b": row(bp["ln2_b"]),
            "w_fc1": bp["w_fc1"], "b_fc1": row(bp["b_fc1"]),
            "w_fc2": bp["w_fc2"], "b_fc2": row(bp["b_fc2"]),
            "a2_wd": bp["a2_wd"], "a2_bd": row(bp["a2_bd"]),
            "a2_wu": bp["a2_wu"], "a2_bu": row(bp["a2_bu"]),
        })

    return {
        "patch_w": params["patch_w"],
        "add_term": add_term,
        "cls_select": cls_select,
        "attn_bias": attn_bias,
        "norm_g": row(params["norm_g"]), "norm_b": row(params["norm_b"]),
        "head_w": params["head_w"], "head_b": row(params["head_b"]),
        "blocks": blocks,
    }


# ---------------------------- model forward ----------------------------

def vit_forward(x_nchw, prepared):
    """Patch extraction (pure layout glue) + ONE fused Pallas kernel for everything else."""
    B = x_nchw.shape[0]
    TOT = B * SEQ_LEN
    gh = gw = IMG_SIZE // PATCH_SIZE

    # Non-overlapping patch extraction; each patch flattened as (C, ph, pw) to match the
    # Conv2d(kernel=stride=patch) weight layout.  A zero row is inserted at every cls
    # position so the kernel's single patch-projection matmul covers all B*N token rows.
    patches = x_nchw.reshape(B, IN_CHANS, gh, PATCH_SIZE, gw, PATCH_SIZE)
    patches = jnp.transpose(patches, (0, 2, 4, 1, 3, 5)).reshape(B, NUM_PATCHES, PATCH_DIM)
    patches = jnp.concatenate([jnp.zeros((B, 1, PATCH_DIM), patches.dtype), patches], axis=1)
    patches = patches.reshape(TOT, PATCH_DIM)

    flat, treedef = jax.tree_util.tree_flatten(prepared)
    kernel = _make_fused_kernel(treedef, len(flat))
    vmem = pl.BlockSpec(memory_space=pltpu.MemorySpace.VMEM)

    return pl.pallas_call(
        kernel,
        out_shape=jax.ShapeDtypeStruct((B, NUM_CLASSES), jnp.float32),
        in_specs=[vmem] * (1 + len(flat)),
        out_specs=vmem,
    )(patches, *flat)


# ---------------------------- deterministic init ----------------------------

class _KeyGen:
    def __init__(self, seed):
        self.key = jax.random.PRNGKey(seed)

    def __call__(self):
        self.key, sub = jax.random.split(self.key)
        return sub


def init_params(seed=0):
    kg = _KeyGen(seed)

    def nrm(shape, std=0.02):
        return std * jax.random.normal(kg(), shape, dtype=jnp.float32)

    def xavier(shape):
        fan_in, fan_out = shape
        return nrm(shape, math.sqrt(2.0 / (fan_in + fan_out)))

    params = {
        "patch_w": nrm((PATCH_DIM, EMBED_DIM), 1.0 / math.sqrt(PATCH_DIM)),
        "patch_b": jnp.zeros((EMBED_DIM,), jnp.float32),
        "cls_token": nrm((1, 1, EMBED_DIM), 1e-6),
        "pos_embed": nrm((1, SEQ_LEN, EMBED_DIM), 0.02),
        "norm_g": jnp.ones((EMBED_DIM,), jnp.float32),
        "norm_b": jnp.zeros((EMBED_DIM,), jnp.float32),
        "head_w": nrm((EMBED_DIM, NUM_CLASSES), 0.02),
        "head_b": jnp.zeros((NUM_CLASSES,), jnp.float32),
        "blocks": [],
    }
    for _ in range(DEPTH):
        params["blocks"].append({
            "ln1_g": jnp.ones((EMBED_DIM,), jnp.float32),
            "ln1_b": jnp.zeros((EMBED_DIM,), jnp.float32),
            "w_qkv": xavier((EMBED_DIM, 3 * EMBED_DIM)),
            "b_qkv": jnp.zeros((3 * EMBED_DIM,), jnp.float32),     # qkv_bias=True
            "w_proj": xavier((EMBED_DIM, EMBED_DIM)),
            "b_proj": jnp.zeros((EMBED_DIM,), jnp.float32),
            "a1_wd": nrm((EMBED_DIM, ADAPTER_DOWN), 0.02),
            "a1_bd": jnp.zeros((ADAPTER_DOWN,), jnp.float32),
            "a1_wu": nrm((ADAPTER_DOWN, EMBED_DIM), 0.02),
            "a1_bu": jnp.zeros((EMBED_DIM,), jnp.float32),
            "ln2_g": jnp.ones((EMBED_DIM,), jnp.float32),
            "ln2_b": jnp.zeros((EMBED_DIM,), jnp.float32),
            "w_fc1": xavier((EMBED_DIM, MLP_HIDDEN)),
            "b_fc1": nrm((MLP_HIDDEN,), 1e-6),
            "w_fc2": xavier((MLP_HIDDEN, EMBED_DIM)),
            "b_fc2": nrm((EMBED_DIM,), 1e-6),
            "a2_wd": nrm((EMBED_DIM, ADAPTER_DOWN), 0.02),
            "a2_bd": jnp.zeros((ADAPTER_DOWN,), jnp.float32),
            "a2_wu": nrm((ADAPTER_DOWN, EMBED_DIM), 0.02),
            "a2_bu": jnp.zeros((EMBED_DIM,), jnp.float32),
        })
    return params


# ---------------------------- main ----------------------------

if __name__ == "__main__":
    params = init_params(seed=0)
    x = jax.random.normal(jax.random.PRNGKey(0),
                          (2, IN_CHANS, IMG_SIZE, IMG_SIZE), dtype=jnp.float32)

    prepared = prepare_params(params, batch_size=x.shape[0])   # one-time repack
    fwd = jax.jit(vit_forward)
    logits = jax.block_until_ready(fwd(x, prepared))

    assert logits.shape == (2, NUM_CLASSES), logits.shape
    assert bool(jnp.all(jnp.isfinite(logits)))
    print("KERNEL_OK")
</pallas_src>

<mosaic_0001>
module attributes {stable_mosaic.version = 11 : i64} {
  func.func @kernel(%arg0: memref<34x48xf32, #tpu.memory_space<vmem>>, %arg1: memref<34x32xf32, #tpu.memory_space<vmem>>, %arg2: memref<34x34xf32, #tpu.memory_space<vmem>>, %arg3: memref<1x4xf32, #tpu.memory_space<vmem>>, %arg4: memref<1x32xf32, #tpu.memory_space<vmem>>, %arg5: memref<32x4xf32, #tpu.memory_space<vmem>>, %arg6: memref<4x32xf32, #tpu.memory_space<vmem>>, %arg7: memref<1x4xf32, #tpu.memory_space<vmem>>, %arg8: memref<1x32xf32, #tpu.memory_space<vmem>>, %arg9: memref<32x4xf32, #tpu.memory_space<vmem>>, %arg10: memref<4x32xf32, #tpu.memory_space<vmem>>, %arg11: memref<1x128xf32, #tpu.memory_space<vmem>>, %arg12: memref<1x32xf32, #tpu.memory_space<vmem>>, %arg13: memref<1x32xf32, #tpu.memory_space<vmem>>, %arg14: memref<4x1x8xf32, #tpu.memory_space<vmem>>, %arg15: memref<4x1x8xf32, #tpu.memory_space<vmem>>, %arg16: memref<4x1x8xf32, #tpu.memory_space<vmem>>, %arg17: memref<1x32xf32, #tpu.memory_space<vmem>>, %arg18: memref<1x32xf32, #tpu.memory_space<vmem>>, %arg19: memref<1x32xf32, #tpu.memory_space<vmem>>, %arg20: memref<1x32xf32, #tpu.memory_space<vmem>>, %arg21: memref<32x128xf32, #tpu.memory_space<vmem>>, %arg22: memref<128x32xf32, #tpu.memory_space<vmem>>, %arg23: memref<4x32x8xf32, #tpu.memory_space<vmem>>, %arg24: memref<4x8x32xf32, #tpu.memory_space<vmem>>, %arg25: memref<4x32x8xf32, #tpu.memory_space<vmem>>, %arg26: memref<4x32x8xf32, #tpu.memory_space<vmem>>, %arg27: memref<1x4xf32, #tpu.memory_space<vmem>>, %arg28: memref<1x32xf32, #tpu.memory_space<vmem>>, %arg29: memref<32x4xf32, #tpu.memory_space<vmem>>, %arg30: memref<4x32xf32, #tpu.memory_space<vmem>>, %arg31: memref<1x4xf32, #tpu.memory_space<vmem>>, %arg32: memref<1x32xf32, #tpu.memory_space<vmem>>, %arg33: memref<32x4xf32, #tpu.memory_space<vmem>>, %arg34: memref<4x32xf32, #tpu.memory_space<vmem>>, %arg35: memref<1x128xf32, #tpu.memory_space<vmem>>, %arg36: memref<1x32xf32, #tpu.memory_space<vmem>>, %arg37: memref<1x32xf32, #tpu.memory_space<vmem>>, %arg38: memref<4x1x8xf32, #tpu.memory_space<vmem>>, %arg39: memref<4x1x8xf32, #tpu.memory_space<vmem>>, %arg40: memref<4x1x8xf32, #tpu.memory_space<vmem>>, %arg41: memref<1x32xf32, #tpu.memory_space<vmem>>, %arg42: memref<1x32xf32, #tpu.memory_space<vmem>>, %arg43: memref<1x32xf32, #tpu.memory_space<vmem>>, %arg44: memref<1x32xf32, #tpu.memory_space<vmem>>, %arg45: memref<32x128xf32, #tpu.memory_space<vmem>>, %arg46: memref<128x32xf32, #tpu.memory_space<vmem>>, %arg47: memref<4x32x8xf32, #tpu.memory_space<vmem>>, %arg48: memref<4x8x32xf32, #tpu.memory_space<vmem>>, %arg49: memref<4x32x8xf32, #tpu.memory_space<vmem>>, %arg50: memref<4x32x8xf32, #tpu.memory_space<vmem>>, %arg51: memref<2x34xf32, #tpu.memory_space<vmem>>, %arg52: memref<1x10xf32, #tpu.memory_space<vmem>>, %arg53: memref<32x10xf32, #tpu.memory_space<vmem>>, %arg54: memref<1x32xf32, #tpu.memory_space<vmem>>, %arg55: memref<1x32xf32, #tpu.memory_space<vmem>>, %arg56: memref<48x32xf32, #tpu.memory_space<vmem>>, %arg57: memref<2x10xf32, #tpu.memory_space<vmem>>) attributes {dimension_semantics = [], scalar_prefetch = 0 : i64, scratch_operands = 0 : i64, tpu.core_type = #tpu.core_type<tc>} {
    %c0 = arith.constant 0 : index
    %c0_0 = arith.constant 0 : index
    %0 = vector.load %arg0[%c0, %c0_0] : memref<34x48xf32, #tpu.memory_space<vmem>>, vector<34x48xf32>
    %c0_1 = arith.constant 0 : index
    %c0_2 = arith.constant 0 : index
    %1 = vector.load %arg56[%c0_1, %c0_2] : memref<48x32xf32, #tpu.memory_space<vmem>>, vector<48x32xf32>
    %cst = arith.constant dense<0.000000e+00> : vector<34x32xf32>
    %2 = tpu.matmul %0, %1, %cst {dimension_numbers = #tpu.dot_dimension_numbers<[1], [0], [0], [1], [0, 0, 1, 1], [], []>} : vector<34x48xf32>, vector<48x32xf32>, vector<34x32xf32> -> vector<34x32xf32>
    %c0_3 = arith.constant 0 : index
    %c0_4 = arith.constant 0 : index
    %3 = vector.load %arg1[%c0_3, %c0_4] : memref<34x32xf32, #tpu.memory_space<vmem>>, vector<34x32xf32>
    %4 = arith.addf %2, %3 : vector<34x32xf32>
    %c0_5 = arith.constant 0 : index
    %c0_6 = arith.constant 0 : index
    %5 = vector.load %arg2[%c0_5, %c0_6] : memref<34x34xf32, #tpu.memory_space<vmem>>, vector<34x34xf32>
    %c0_7 = arith.constant 0 : index
    %c0_8 = arith.constant 0 : index
    %6 = vector.load %arg18[%c0_7, %c0_8] : memref<1x32xf32, #tpu.memory_space<vmem>>, vector<1x32xf32>
    %c0_9 = arith.constant 0 : index
    %c0_10 = arith.constant 0 : index
    %7 = vector.load %arg17[%c0_9, %c0_10] : memref<1x32xf32, #tpu.memory_space<vmem>>, vector<1x32xf32>
    %cst_11 = arith.constant dense<0.000000e+00> : vector<34xf32>
    %8 = vector.multi_reduction <add>, %4, %cst_11 [1] : vector<34x32xf32> to vector<34xf32>
    %9 = vector.shape_cast %8 : vector<34xf32> to vector<34x1xf32>
    %cst_12 = arith.constant 3.200000e+01 : f32
    %10 = vector.broadcast %cst_12 : f32 to vector<34x1xf32>
    %11 = arith.divf %9, %10 : vector<34x1xf32>
    %12 = vector.broadcast %11 : vector<34x1xf32> to vector<34x32xf32>
    %13 = arith.subf %4, %12 : vector<34x32xf32>
    %14 = arith.mulf %13, %13 : vector<34x32xf32>
    %cst_13 = arith.constant dense<0.000000e+00> : vector<34xf32>
    %15 = vector.multi_reduction <add>, %14, %cst_13 [1] : vector<34x32xf32> to vector<34xf32>
    %16 = vector.shape_cast %15 : vector<34xf32> to vector<34x1xf32>
    %cst_14 = arith.constant 3.200000e+01 : f32
    %17 = vector.broadcast %cst_14 : f32 to vector<34x1xf32>
    %18 = arith.divf %16, %17 : vector<34x1xf32>
    %cst_15 = arith.constant 9.99999997E-7 : f32
    %19 = vector.broadcast %cst_15 : f32 to vector<34x1xf32>
    %20 = arith.addf %18, %19 : vector<34x1xf32>
    %21 = math.rsqrt %20 : vector<34x1xf32>
    %22 = vector.broadcast %21 : vector<34x1xf32> to vector<34x32xf32>
    %23 = arith.mulf %13, %22 : vector<34x32xf32>
    %24 = vector.broadcast %6 : vector<1x32xf32> to vector<34x32xf32>
    %25 = arith.mulf %23, %24 : vector<34x32xf32>
    %26 = vector.broadcast %7 : vector<1x32xf32> to vector<34x32xf32>
    %27 = arith.addf %25, %26 : vector<34x32xf32>
    %c0_16 = arith.constant 0 : index
    %c0_17 = arith.constant 0 : index
    %c0_18 = arith.constant 0 : index
    %28 = vector.load %arg25[%c0_16, %c0_17, %c0_18] : memref<4x32x8xf32, #tpu.memory_space<vmem>>, vector<1x32x8xf32>
    %29 = vector.shape_cast %28 : vector<1x32x8xf32> to vector<32x8xf32>
    %cst_19 = arith.constant dense<0.000000e+00> : vector<34x8xf32>
    %30 = tpu.matmul %27, %29, %cst_19 {dimension_numbers = #tpu.dot_dimension_numbers<[1], [0], [0], [1], [0, 0, 1, 1], [], []>} : vector<34x32xf32>, vector<32x8xf32>, vector<34x8xf32> -> vector<34x8xf32>
    %c0_20 = arith.constant 0 : index
    %c0_21 = arith.constant 0 : index
    %c0_22 = arith.constant 0 : index
    %31 = vector.load %arg15[%c0_20, %c0_21, %c0_22] : memref<4x1x8xf32, #tpu.memory_space<vmem>>, vector<1x1x8xf32>
    %32 = vector.shape_cast %31 : vector<1x1x8xf32> to vector<1x8xf32>
    %33 = vector.broadcast %32 : vector<1x8xf32> to vector<34x8xf32>
    %34 = arith.addf %30, %33 : vector<34x8xf32>
    %c0_23 = arith.constant 0 : index
    %c0_24 = arith.constant 0 : index
    %c0_25 = arith.constant 0 : index
    %35 = vector.load %arg23[%c0_23, %c0_24, %c0_25] : memref<4x32x8xf32, #tpu.memory_space<vmem>>, vector<1x32x8xf32>
    %36 = vector.shape_cast %35 : vector<1x32x8xf32> to vector<32x8xf32>
    %cst_26 = arith.constant dense<0.000000e+00> : vector<34x8xf32>
    %37 = tpu.matmul %27, %36, %cst_26 {dimension_numbers = #tpu.dot_dimension_numbers<[1], [0], [0], [1], [0, 0, 1, 1], [], []>} : vector<34x32xf32>, vector<32x8xf32>, vector<34x8xf32> -> vector<34x8xf32>
    %c0_27 = arith.constant 0 : index
    %c0_28 = arith.constant 0 : index
    %c0_29 = arith.constant 0 : index
    %38 = vector.load %arg14[%c0_27, %c0_28, %c0_29] : memref<4x1x8xf32, #tpu.memory_space<vmem>>, vector<1x1x8xf32>
    %39 = vector.shape_cast %38 : vector<1x1x8xf32> to vector<1x8xf32>
    %40 = vector.broadcast %39 : vector<1x8xf32> to vector<34x8xf32>
    %41 = arith.addf %37, %40 : vector<34x8xf32>
    %c0_30 = arith.constant 0 : index
    %c0_31 = arith.constant 0 : index
    %c0_32 = arith.constant 0 : index
    %42 = vector.load %arg26[%c0_30, %c0_31, %c0_32] : memref<4x32x8xf32, #tpu.memory_space<vmem>>, vector<1x32x8xf32>
    %43 = vector.shape_cast %42 : vector<1x32x8xf32> to vector<32x8xf32>
    %cst_33 = arith.constant dense<0.000000e+00> : vector<34x8xf32>
    %44 = tpu.matmul %27, %43, %cst_33 {dimension_numbers = #tpu.dot_dimension_numbers<[1], [0], [0], [1], [0, 0, 1, 1], [], []>} : vector<34x32xf32>, vector<32x8xf32>, vector<34x8xf32> -> vector<34x8xf32>
    %c0_34 = arith.constant 0 : index
    %c0_35 = arith.constant 0 : index
    %c0_36 = arith.constant 0 : index
    %45 = vector.load %arg16[%c0_34, %c0_35, %c0_36] : memref<4x1x8xf32, #tpu.memory_space<vmem>>, vector<1x1x8xf32>
    %46 = vector.shape_cast %45 : vector<1x1x8xf32> to vector<1x8xf32>
    %47 = vector.broadcast %46 : vector<1x8xf32> to vector<34x8xf32>
    %48 = arith.addf %44, %47 : vector<34x8xf32>
    %cst_37 = arith.constant dense<0.000000e+00> : vector<34x34xf32>
    %49 = tpu.matmul %34, %41, %cst_37 {dimension_numbers = #tpu.dot_dimension_numbers<[1], [1], [0], [0], [0, 0, 1, 0], [], []>} : vector<34x8xf32>, vector<34x8xf32>, vector<34x34xf32> -> vector<34x34xf32>
    %cst_38 = arith.constant 0.353553385 : f32
    %50 = vector.broadcast %cst_38 : f32 to vector<34x34xf32>
    %51 = arith.mulf %49, %50 : vector<34x34xf32>
    %52 = arith.addf %51, %5 : vector<34x34xf32>
    %cst_39 = arith.constant dense<0xFF800000> : vector<34xf32>
    %53 = vector.multi_reduction <maximumf>, %52, %cst_39 [1] : vector<34x34xf32> to vector<34xf32>
    %54 = vector.shape_cast %53 : vector<34xf32> to vector<34x1xf32>
    %55 = vector.broadcast %54 : vector<34x1xf32> to vector<34x34xf32>
    %56 = arith.subf %52, %55 : vector<34x34xf32>
    %57 = math.exp %56 : vector<34x34xf32>
    %cst_40 = arith.constant dense<0.000000e+00> : vector<34xf32>
    %58 = vector.multi_reduction <add>, %57, %cst_40 [1] : vector<34x34xf32> to vector<34xf32>
    %59 = vector.shape_cast %58 : vector<34xf32> to vector<34x1xf32>
    %60 = tpu.reciprocal %59 {approx = true} : vector<34x1xf32> -> vector<34x1xf32>
    %61 = vector.broadcast %60 : vector<34x1xf32> to vector<34x34xf32>
    %62 = arith.mulf %57, %61 : vector<34x34xf32>
    %cst_41 = arith.constant dense<0.000000e+00> : vector<34x8xf32>
    %63 = tpu.matmul %62, %48, %cst_41 {dimension_numbers = #tpu.dot_dimension_numbers<[1], [0], [0], [1], [0, 0, 1, 1], [], []>} : vector<34x34xf32>, vector<34x8xf32>, vector<34x8xf32> -> vector<34x8xf32>
    %c0_42 = arith.constant 0 : index
    %c0_43 = arith.constant 0 : index
    %c0_44 = arith.constant 0 : index
    %64 = vector.load %arg24[%c0_42, %c0_43, %c0_44] : memref<4x8x32xf32, #tpu.memory_space<vmem>>, vector<1x8x32xf32>
    %65 = vector.shape_cast %64 : vector<1x8x32xf32> to vector<8x32xf32>
    %cst_45 = arith.constant dense<0.000000e+00> : vector<34x32xf32>
    %66 = tpu.matmul %63, %65, %cst_45 {dimension_numbers = #tpu.dot_dimension_numbers<[1], [0], [0], [1], [0, 0, 1, 1], [], []>} : vector<34x8xf32>, vector<8x32xf32>, vector<34x32xf32> -> vector<34x32xf32>
    %c1 = arith.constant 1 : index
    %c0_46 = arith.constant 0 : index
    %c0_47 = arith.constant 0 : index
    %67 = vector.load %arg25[%c1, %c0_46, %c0_47] : memref<4x32x8xf32, #tpu.memory_space<vmem>>, vector<1x32x8xf32>
    %68 = vector.shape_cast %67 : vector<1x32x8xf32> to vector<32x8xf32>
    %cst_48 = arith.constant dense<0.000000e+00> : vector<34x8xf32>
    %69 = tpu.matmul %27, %68, %cst_48 {dimension_numbers = #tpu.dot_dimension_numbers<[1], [0], [0], [1], [0, 0, 1, 1], [], []>} : vector<34x32xf32>, vector<32x8xf32>, vector<34x8xf32> -> vector<34x8xf32>
    %c1_49 = arith.constant 1 : index
    %c0_50 = arith.constant 0 : index
    %c0_51 = arith.constant 0 : index
    %70 = vector.load %arg15[%c1_49, %c0_50, %c0_51] : memref<4x1x8xf32, #tpu.memory_space<vmem>>, vector<1x1x8xf32>
    %71 = vector.shape_cast %70 : vector<1x1x8xf32> to vector<1x8xf32>
    %72 = vector.broadcast %71 : vector<1x8xf32> to vector<34x8xf32>
    %73 = arith.addf %69, %72 : vector<34x8xf32>
    %c1_52 = arith.constant 1 : index
    %c0_53 = arith.constant 0 : index
    %c0_54 = arith.constant 0 : index
    %74 = vector.load %arg23[%c1_52, %c0_53, %c0_54] : memref<4x32x8xf32, #tpu.memory_space<vmem>>, vector<1x32x8xf32>
    %75 = vector.shape_cast %74 : vector<1x32x8xf32> to vector<32x8xf32>
    %cst_55 = arith.constant dense<0.000000e+00> : vector<34x8xf32>
    %76 = tpu.matmul %27, %75, %cst_55 {dimension_numbers = #tpu.dot_dimension_numbers<[1], [0], [0], [1], [0, 0, 1, 1], [], []>} : vector<34x32xf32>, vector<32x8xf32>, vector<34x8xf32> -> vector<34x8xf32>
    %c1_56 = arith.constant 1 : index
    %c0_57 = arith.constant 0 : index
    %c0_58 = arith.constant 0 : index
    %77 = vector.load %arg14[%c1_56, %c0_57, %c0_58] : memref<4x1x8xf32, #tpu.memory_space<vmem>>, vector<1x1x8xf32>
    %78 = vector.shape_cast %77 : vector<1x1x8xf32> to vector<1x8xf32>
    %79 = vector.broadcast %78 : vector<1x8xf32> to vector<34x8xf32>
    %80 = arith.addf %76, %79 : vector<34x8xf32>
    %c1_59 = arith.constant 1 : index
    %c0_60 = arith.constant 0 : index
    %c0_61 = arith.constant 0 : index
    %81 = vector.load %arg26[%c1_59, %c0_60, %c0_61] : memref<4x32x8xf32, #tpu.memory_space<vmem>>, vector<1x32x8xf32>
    %82 = vector.shape_cast %81 : vector<1x32x8xf32> to vector<32x8xf32>
    %cst_62 = arith.constant dense<0.000000e+00> : vector<34x8xf32>
    %83 = tpu.matmul %27, %82, %cst_62 {dimension_numbers = #tpu.dot_dimension_numbers<[1], [0], [0], [1], [0, 0, 1, 1], [], []>} : vector<34x32xf32>, vector<32x8xf32>, vector<34x8xf32> -> vector<34x8xf32>
    %c1_63 = arith.constant 1 : index
    %c0_64 = arith.constant 0 : index
    %c0_65 = arith.constant 0 : index
    %84 = vector.load %arg16[%c1_63, %c0_64, %c0_65] : memref<4x1x8xf32, #tpu.memory_space<vmem>>, vector<1x1x8xf32>
    %85 = vector.shape_cast %84 : vector<1x1x8xf32> to vector<1x8xf32>
    %86 = vector.broadcast %85 : vector<1x8xf32> to vector<34x8xf32>
    %87 = arith.addf %83, %86 : vector<34x8xf32>
    %cst_66 = arith.constant dense<0.000000e+00> : vector<34x34xf32>
    %88 = tpu.matmul %73, %80, %cst_66 {dimension_numbers = #tpu.dot_dimension_numbers<[1], [1], [0], [0], [0, 0, 1, 0], [], []>} : vector<34x8xf32>, vector<34x8xf32>, vector<34x34xf32> -> vector<34x34xf32>
    %cst_67 = arith.constant 0.353553385 : f32
    %89 = vector.broadcast %cst_67 : f32 to vector<34x34xf32>
    %90 = arith.mulf %88, %89 : vector<34x34xf32>
    %91 = arith.addf %90, %5 : vector<34x34xf32>
    %cst_68 = arith.constant dense<0xFF800000> : vector<34xf32>
    %92 = vector.multi_reduction <maximumf>, %91, %cst_68 [1] : vector<34x34xf32> to vector<34xf32>
    %93 = vector.shape_cast %92 : vector<34xf32> to vector<34x1xf32>
    %94 = vector.broadcast %93 : vector<34x1xf32> to vector<34x34xf32>
    %95 = arith.subf %91, %94 : vector<34x34xf32>
    %96 = math.exp %95 : vector<34x34xf32>
    %cst_69 = arith.constant dense<0.000000e+00> : vector<34xf32>
    %97 = vector.multi_reduction <add>, %96, %cst_69 [1] : vector<34x34xf32> to vector<34xf32>
    %98 = vector.shape_cast %97 : vector<34xf32> to vector<34x1xf32>
    %99 = tpu.reciprocal %98 {approx = true} : vector<34x1xf32> -> vector<34x1xf32>
    %100 = vector.broadcast %99 : vector<34x1xf32> to vector<34x34xf32>
    %101 = arith.mulf %96, %100 : vector<34x34xf32>
    %cst_70 = arith.constant dense<0.000000e+00> : vector<34x8xf32>
    %102 = tpu.matmul %101, %87, %cst_70 {dimension_numbers = #tpu.dot_dimension_numbers<[1], [0], [0], [1], [0, 0, 1, 1], [], []>} : vector<34x34xf32>, vector<34x8xf32>, vector<34x8xf32> -> vector<34x8xf32>
    %c1_71 = arith.constant 1 : index
    %c0_72 = arith.constant 0 : index
    %c0_73 = arith.constant 0 : index
    %103 = vector.load %arg24[%c1_71, %c0_72, %c0_73] : memref<4x8x32xf32, #tpu.memory_space<vmem>>, vector<1x8x32xf32>
    %104 = vector.shape_cast %103 : vector<1x8x32xf32> to vector<8x32xf32>
    %cst_74 = arith.constant dense<0.000000e+00> : vector<34x32xf32>
    %105 = tpu.matmul %102, %104, %cst_74 {dimension_numbers = #tpu.dot_dimension_numbers<[1], [0], [0], [1], [0, 0, 1, 1], [], []>} : vector<34x8xf32>, vector<8x32xf32>, vector<34x32xf32> -> vector<34x32xf32>
    %106 = arith.addf %66, %105 : vector<34x32xf32>
    %c2 = arith.constant 2 : index
    %c0_75 = arith.constant 0 : index
    %c0_76 = arith.constant 0 : index
    %107 = vector.load %arg25[%c2, %c0_75, %c0_76] : memref<4x32x8xf32, #tpu.memory_space<vmem>>, vector<1x32x8xf32>
    %108 = vector.shape_cast %107 : vector<1x32x8xf32> to vector<32x8xf32>
    %cst_77 = arith.constant dense<0.000000e+00> : vector<34x8xf32>
    %109 = tpu.matmul %27, %108, %cst_77 {dimension_numbers = #tpu.dot_dimension_numbers<[1], [0], [0], [1], [0, 0, 1, 1], [], []>} : vector<34x32xf32>, vector<32x8xf32>, vector<34x8xf32> -> vector<34x8xf32>
    %c2_78 = arith.constant 2 : index
    %c0_79 = arith.constant 0 : index
    %c0_80 = arith.constant 0 : index
    %110 = vector.load %arg15[%c2_78, %c0_79, %c0_80] : memref<4x1x8xf32, #tpu.memory_space<vmem>>, vector<1x1x8xf32>
    %111 = vector.shape_cast %110 : vector<1x1x8xf32> to vector<1x8xf32>
    %112 = vector.broadcast %111 : vector<1x8xf32> to vector<34x8xf32>
    %113 = arith.addf %109, %112 : vector<34x8xf32>
    %c2_81 = arith.constant 2 : index
    %c0_82 = arith.constant 0 : index
    %c0_83 = arith.constant 0 : index
    %114 = vector.load %arg23[%c2_81, %c0_82, %c0_83] : memref<4x32x8xf32, #tpu.memory_space<vmem>>, vector<1x32x8xf32>
    %115 = vector.shape_cast %114 : vector<1x32x8xf32> to vector<32x8xf32>
    %cst_84 = arith.constant dense<0.000000e+00> : vector<34x8xf32>
    %116 = tpu.matmul %27, %115, %cst_84 {dimension_numbers = #tpu.dot_dimension_numbers<[1], [0], [0], [1], [0, 0, 1, 1], [], []>} : vector<34x32xf32>, vector<32x8xf32>, vector<34x8xf32> -> vector<34x8xf32>
    %c2_85 = arith.constant 2 : index
    %c0_86 = arith.constant 0 : index
    %c0_87 = arith.constant 0 : index
    %117 = vector.load %arg14[%c2_85, %c0_86, %c0_87] : memref<4x1x8xf32, #tpu.memory_space<vmem>>, vector<1x1x8xf32>
    %118 = vector.shape_cast %117 : vector<1x1x8xf32> to vector<1x8xf32>
    %119 = vector.broadcast %118 : vector<1x8xf32> to vector<34x8xf32>
    %120 = arith.addf %116, %119 : vector<34x8xf32>
    %c2_88 = arith.constant 2 : index
    %c0_89 = arith.constant 0 : index
    %c0_90 = arith.constant 0 : index
    %121 = vector.load %arg26[%c2_88, %c0_89, %c0_90] : memref<4x32x8xf32, #tpu.memory_space<vmem>>, vector<1x32x8xf32>
    %122 = vector.shape_cast %121 : vector<1x32x8xf32> to vector<32x8xf32>
    %cst_91 = arith.constant dense<0.000000e+00> : vector<34x8xf32>
    %123 = tpu.matmul %27, %122, %cst_91 {dimension_numbers = #tpu.dot_dimension_numbers<[1], [0], [0], [1], [0, 0, 1, 1], [], []>} : vector<34x32xf32>, vector<32x8xf32>, vector<34x8xf32> -> vector<34x8xf32>
    %c2_92 = arith.constant 2 : index
    %c0_93 = arith.constant 0 : index
    %c0_94 = arith.constant 0 : index
    %124 = vector.load %arg16[%c2_92, %c0_93, %c0_94] : memref<4x1x8xf32, #tpu.memory_space<vmem>>, vector<1x1x8xf32>
    %125 = vector.shape_cast %124 : vector<1x1x8xf32> to vector<1x8xf32>
    %126 = vector.broadcast %125 : vector<1x8xf32> to vector<34x8xf32>
    %127 = arith.addf %123, %126 : vector<34x8xf32>
    %cst_95 = arith.constant dense<0.000000e+00> : vector<34x34xf32>
    %128 = tpu.matmul %113, %120, %cst_95 {dimension_numbers = #tpu.dot_dimension_numbers<[1], [1], [0], [0], [0, 0, 1, 0], [], []>} : vector<34x8xf32>, vector<34x8xf32>, vector<34x34xf32> -> vector<34x34xf32>
    %cst_96 = arith.constant 0.353553385 : f32
    %129 = vector.broadcast %cst_96 : f32 to vector<34x34xf32>
    %130 = arith.mulf %128, %129 : vector<34x34xf32>
    %131 = arith.addf %130, %5 : vector<34x34xf32>
    %cst_97 = arith.constant dense<0xFF800000> : vector<34xf32>
    %132 = vector.multi_reduction <maximumf>, %131, %cst_97 [1] : vector<34x34xf32> to vector<34xf32>
    %133 = vector.shape_cast %132 : vector<34xf32> to vector<34x1xf32>
    %134 = vector.broadcast %133 : vector<34x1xf32> to vector<34x34xf32>
    %135 = arith.subf %131, %134 : vector<34x34xf32>
    %136 = math.exp %135 : vector<34x34xf32>
    %cst_98 = arith.constant dense<0.000000e+00> : vector<34xf32>
    %137 = vector.multi_reduction <add>, %136, %cst_98 [1] : vector<34x34xf32> to vector<34xf32>
    %138 = vector.shape_cast %137 : vector<34xf32> to vector<34x1xf32>
    %139 = tpu.reciprocal %138 {approx = true} : vector<34x1xf32> -> vector<34x1xf32>
    %140 = vector.broadcast %139 : vector<34x1xf32> to vector<34x34xf32>
    %141 = arith.mulf %136, %140 : vector<34x34xf32>
    %cst_99 = arith.constant dense<0.000000e+00> : vector<34x8xf32>
    %142 = tpu.matmul %141, %127, %cst_99 {dimension_numbers = #tpu.dot_dimension_numbers<[1], [0], [0], [1], [0, 0, 1, 1], [], []>} : vector<34x34xf32>, vector<34x8xf32>, vector<34x8xf32> -> vector<34x8xf32>
    %c2_100 = arith.constant 2 : index
    %c0_101 = arith.constant 0 : index
    %c0_102 = arith.constant 0 : index
    %143 = vector.load %arg24[%c2_100, %c0_101, %c0_102] : memref<4x8x32xf32, #tpu.memory_space<vmem>>, vector<1x8x32xf32>
    %144 = vector.shape_cast %143 : vector<1x8x32xf32> to vector<8x32xf32>
    %cst_103 = arith.constant dense<0.000000e+00> : vector<34x32xf32>
    %145 = tpu.matmul %142, %144, %cst_103 {dimension_numbers = #tpu.dot_dimension_numbers<[1], [0], [0], [1], [0, 0, 1, 1], [], []>} : vector<34x8xf32>, vector<8x32xf32>, vector<34x32xf32> -> vector<34x32xf32>
    %146 = arith.addf %106, %145 : vector<34x32xf32>
    %c3 = arith.constant 3 : index
    %c0_104 = arith.constant 0 : index
    %c0_105 = arith.constant 0 : index
    %147 = vector.load %arg25[%c3, %c0_104, %c0_105] : memref<4x32x8xf32, #tpu.memory_space<vmem>>, vector<1x32x8xf32>
    %148 = vector.shape_cast %147 : vector<1x32x8xf32> to vector<32x8xf32>
    %cst_106 = arith.constant dense<0.000000e+00> : vector<34x8xf32>
    %149 = tpu.matmul %27, %148, %cst_106 {dimension_numbers = #tpu.dot_dimension_numbers<[1], [0], [0], [1], [0, 0, 1, 1], [], []>} : vector<34x32xf32>, vector<32x8xf32>, vector<34x8xf32> -> vector<34x8xf32>
    %c3_107 = arith.constant 3 : index
    %c0_108 = arith.constant 0 : index
    %c0_109 = arith.constant 0 : index
    %150 = vector.load %arg15[%c3_107, %c0_108, %c0_109] : memref<4x1x8xf32, #tpu.memory_space<vmem>>, vector<1x1x8xf32>
    %151 = vector.shape_cast %150 : vector<1x1x8xf32> to vector<1x8xf32>
    %152 = vector.broadcast %151 : vector<1x8xf32> to vector<34x8xf32>
    %153 = arith.addf %149, %152 : vector<34x8xf32>
    %c3_110 = arith.constant 3 : index
    %c0_111 = arith.constant 0 : index
    %c0_112 = arith.constant 0 : index
    %154 = vector.load %arg23[%c3_110, %c0_111, %c0_112] : memref<4x32x8xf32, #tpu.memory_space<vmem>>, vector<1x32x8xf32>
    %155 = vector.shape_cast %154 : vector<1x32x8xf32> to vector<32x8xf32>
    %cst_113 = arith.constant dense<0.000000e+00> : vector<34x8xf32>
    %156 = tpu.matmul %27, %155, %cst_113 {dimension_numbers = #tpu.dot_dimension_numbers<[1], [0], [0], [1], [0, 0, 1, 1], [], []>} : vector<34x32xf32>, vector<32x8xf32>, vector<34x8xf32> -> vector<34x8xf32>
    %c3_114 = arith.constant 3 : index
    %c0_115 = arith.constant 0 : index
    %c0_116 = arith.constant 0 : index
    %157 = vector.load %arg14[%c3_114, %c0_115, %c0_116] : memref<4x1x8xf32, #tpu.memory_space<vmem>>, vector<1x1x8xf32>
    %158 = vector.shape_cast %157 : vector<1x1x8xf32> to vector<1x8xf32>
    %159 = vector.broadcast %158 : vector<1x8xf32> to vector<34x8xf32>
    %160 = arith.addf %156, %159 : vector<34x8xf32>
    %c3_117 = arith.constant 3 : index
    %c0_118 = arith.constant 0 : index
    %c0_119 = arith.constant 0 : index
    %161 = vector.load %arg26[%c3_117, %c0_118, %c0_119] : memref<4x32x8xf32, #tpu.memory_space<vmem>>, vector<1x32x8xf32>
    %162 = vector.shape_cast %161 : vector<1x32x8xf32> to vector<32x8xf32>
    %cst_120 = arith.constant dense<0.000000e+00> : vector<34x8xf32>
    %163 = tpu.matmul %27, %162, %cst_120 {dimension_numbers = #tpu.dot_dimension_numbers<[1], [0], [0], [1], [0, 0, 1, 1], [], []>} : vector<34x32xf32>, vector<32x8xf32>, vector<34x8xf32> -> vector<34x8xf32>
    %c3_121 = arith.constant 3 : index
    %c0_122 = arith.constant 0 : index
    %c0_123 = arith.constant 0 : index
    %164 = vector.load %arg16[%c3_121, %c0_122, %c0_123] : memref<4x1x8xf32, #tpu.memory_space<vmem>>, vector<1x1x8xf32>
    %165 = vector.shape_cast %164 : vector<1x1x8xf32> to vector<1x8xf32>
    %166 = vector.broadcast %165 : vector<1x8xf32> to vector<34x8xf32>
    %167 = arith.addf %163, %166 : vector<34x8xf32>
    %cst_124 = arith.constant dense<0.000000e+00> : vector<34x34xf32>
    %168 = tpu.matmul %153, %160, %cst_124 {dimension_numbers = #tpu.dot_dimension_numbers<[1], [1], [0], [0], [0, 0, 1, 0], [], []>} : vector<34x8xf32>, vector<34x8xf32>, vector<34x34xf32> -> vector<34x34xf32>
    %cst_125 = arith.constant 0.353553385 : f32
    %169 = vector.broadcast %cst_125 : f32 to vector<34x34xf32>
    %170 = arith.mulf %168, %169 : vector<34x34xf32>
    %171 = arith.addf %170, %5 : vector<34x34xf32>
    %cst_126 = arith.constant dense<0xFF800000> : vector<34xf32>
    %172 = vector.multi_reduction <maximumf>, %171, %cst_126 [1] : vector<34x34xf32> to vector<34xf32>
    %173 = vector.shape_cast %172 : vector<34xf32> to vector<34x1xf32>
    %174 = vector.broadcast %173 : vector<34x1xf32> to vector<34x34xf32>
    %175 = arith.subf %171, %174 : vector<34x34xf32>
    %176 = math.exp %175 : vector<34x34xf32>
    %cst_127 = arith.constant dense<0.000000e+00> : vector<34xf32>
    %177 = vector.multi_reduction <add>, %176, %cst_127 [1] : vector<34x34xf32> to vector<34xf32>
    %178 = vector.shape_cast %177 : vector<34xf32> to vector<34x1xf32>
    %179 = tpu.reciprocal %178 {approx = true} : vector<34x1xf32> -> vector<34x1xf32>
    %180 = vector.broadcast %179 : vector<34x1xf32> to vector<34x34xf32>
    %181 = arith.mulf %176, %180 : vector<34x34xf32>
    %cst_128 = arith.constant dense<0.000000e+00> : vector<34x8xf32>
    %182 = tpu.matmul %181, %167, %cst_128 {dimension_numbers = #tpu.dot_dimension_numbers<[1], [0], [0], [1], [0, 0, 1, 1], [], []>} : vector<34x34xf32>, vector<34x8xf32>, vector<34x8xf32> -> vector<34x8xf32>
    %c3_129 = arith.constant 3 : index
    %c0_130 = arith.constant 0 : index
    %c0_131 = arith.constant 0 : index
    %183 = vector.load %arg24[%c3_129, %c0_130, %c0_131] : memref<4x8x32xf32, #tpu.memory_space<vmem>>, vector<1x8x32xf32>
    %184 = vector.shape_cast %183 : vector<1x8x32xf32> to vector<8x32xf32>
    %cst_132 = arith.constant dense<0.000000e+00> : vector<34x32xf32>
    %185 = tpu.matmul %182, %184, %cst_132 {dimension_numbers = #tpu.dot_dimension_numbers<[1], [0], [0], [1], [0, 0, 1, 1], [], []>} : vector<34x8xf32>, vector<8x32xf32>, vector<34x32xf32> -> vector<34x32xf32>
    %186 = arith.addf %146, %185 : vector<34x32xf32>
    %c0_133 = arith.constant 0 : index
    %c0_134 = arith.constant 0 : index
    %187 = vector.load %arg13[%c0_133, %c0_134] : memref<1x32xf32, #tpu.memory_space<vmem>>, vector<1x32xf32>
    %188 = vector.broadcast %187 : vector<1x32xf32> to vector<34x32xf32>
    %189 = arith.addf %186, %188 : vector<34x32xf32>
    %c0_135 = arith.constant 0 : index
    %c0_136 = arith.constant 0 : index
    %190 = vector.load %arg5[%c0_135, %c0_136] : memref<32x4xf32, #tpu.memory_space<vmem>>, vector<32x4xf32>
    %cst_137 = arith.constant dense<0.000000e+00> : vector<34x4xf32>
    %191 = tpu.matmul %189, %190, %cst_137 {dimension_numbers = #tpu.dot_dimension_numbers<[1], [0], [0], [1], [0, 0, 1, 1], [], []>} : vector<34x32xf32>, vector<32x4xf32>, vector<34x4xf32> -> vector<34x4xf32>
    %c0_138 = arith.constant 0 : index
    %c0_139 = arith.constant 0 : index
    %192 = vector.load %arg3[%c0_138, %c0_139] : memref<1x4xf32, #tpu.memory_space<vmem>>, vector<1x4xf32>
    %193 = vector.broadcast %192 : vector<1x4xf32> to vector<34x4xf32>
    %194 = arith.addf %191, %193 : vector<34x4xf32>
    %cst_140 = arith.constant 0.000000e+00 : f32
    %195 = vector.broadcast %cst_140 : f32 to vector<34x4xf32>
    %196 = arith.maximumf %194, %195 : vector<34x4xf32>
    %197 = arith.addf %4, %189 : vector<34x32xf32>
    %c0_141 = arith.constant 0 : index
    %c0_142 = arith.constant 0 : index
    %198 = vector.load %arg6[%c0_141, %c0_142] : memref<4x32xf32, #tpu.memory_space<vmem>>, vector<4x32xf32>
    %cst_143 = arith.constant dense<0.000000e+00> : vector<34x32xf32>
    %199 = tpu.matmul %196, %198, %cst_143 {dimension_numbers = #tpu.dot_dimension_numbers<[1], [0], [0], [1], [0, 0, 1, 1], [], []>} : vector<34x4xf32>, vector<4x32xf32>, vector<34x32xf32> -> vector<34x32xf32>
    %c0_144 = arith.constant 0 : index
    %c0_145 = arith.constant 0 : index
    %200 = vector.load %arg4[%c0_144, %c0_145] : memref<1x32xf32, #tpu.memory_space<vmem>>, vector<1x32xf32>
    %201 = vector.broadcast %200 : vector<1x32xf32> to vector<34x32xf32>
    %202 = arith.addf %199, %201 : vector<34x32xf32>
    %203 = arith.addf %197, %202 : vector<34x32xf32>
    %c0_146 = arith.constant 0 : index
    %c0_147 = arith.constant 0 : index
    %204 = vector.load %arg20[%c0_146, %c0_147] : memref<1x32xf32, #tpu.memory_space<vmem>>, vector<1x32xf32>
    %c0_148 = arith.constant 0 : index
    %c0_149 = arith.constant 0 : index
    %205 = vector.load %arg19[%c0_148, %c0_149] : memref<1x32xf32, #tpu.memory_space<vmem>>, vector<1x32xf32>
    %cst_150 = arith.constant dense<0.000000e+00> : vector<34xf32>
    %206 = vector.multi_reduction <add>, %203, %cst_150 [1] : vector<34x32xf32> to vector<34xf32>
    %207 = vector.shape_cast %206 : vector<34xf32> to vector<34x1xf32>
    %cst_151 = arith.constant 3.200000e+01 : f32
    %208 = vector.broadcast %cst_151 : f32 to vector<34x1xf32>
    %209 = arith.divf %207, %208 : vector<34x1xf32>
    %210 = vector.broadcast %209 : vector<34x1xf32> to vector<34x32xf32>
    %211 = arith.subf %203, %210 : vector<34x32xf32>
    %212 = arith.mulf %211, %211 : vector<34x32xf32>
    %cst_152 = arith.constant dense<0.000000e+00> : vector<34xf32>
    %213 = vector.multi_reduction <add>, %212, %cst_152 [1] : vector<34x32xf32> to vector<34xf32>
    %214 = vector.shape_cast %213 : vector<34xf32> to vector<34x1xf32>
    %cst_153 = arith.constant 3.200000e+01 : f32
    %215 = vector.broadcast %cst_153 : f32 to vector<34x1xf32>
    %216 = arith.divf %214, %215 : vector<34x1xf32>
    %cst_154 = arith.constant 9.99999997E-7 : f32
    %217 = vector.broadcast %cst_154 : f32 to vector<34x1xf32>
    %218 = arith.addf %216, %217 : vector<34x1xf32>
    %219 = math.rsqrt %218 : vector<34x1xf32>
    %220 = vector.broadcast %219 : vector<34x1xf32> to vector<34x32xf32>
    %221 = arith.mulf %211, %220 : vector<34x32xf32>
    %222 = vector.broadcast %204 : vector<1x32xf32> to vector<34x32xf32>
    %223 = arith.mulf %221, %222 : vector<34x32xf32>
    %224 = vector.broadcast %205 : vector<1x32xf32> to vector<34x32xf32>
    %225 = arith.addf %223, %224 : vector<34x32xf32>
    %c0_155 = arith.constant 0 : index
    %c0_156 = arith.constant 0 : index
    %226 = vector.load %arg21[%c0_155, %c0_156] : memref<32x128xf32, #tpu.memory_space<vmem>>, vector<32x128xf32>
    %cst_157 = arith.constant dense<0.000000e+00> : vector<34x128xf32>
    %227 = tpu.matmul %225, %226, %cst_157 {dimension_numbers = #tpu.dot_dimension_numbers<[1], [0], [0], [1], [0, 0, 1, 1], [], []>} : vector<34x32xf32>, vector<32x128xf32>, vector<34x128xf32> -> vector<34x128xf32>
    %c0_158 = arith.constant 0 : index
    %c0_159 = arith.constant 0 : index
    %228 = vector.load %arg11[%c0_158, %c0_159] : memref<1x128xf32, #tpu.memory_space<vmem>>, vector<1x128xf32>
    %229 = vector.broadcast %228 : vector<1x128xf32> to vector<34x128xf32>
    %230 = arith.addf %227, %229 : vector<34x128xf32>
    %cst_160 = arith.constant 5.000000e-01 : f32
    %231 = vector.broadcast %cst_160 : f32 to vector<34x128xf32>
    %232 = arith.mulf %231, %230 : vector<34x128xf32>
    %cst_161 = arith.constant 0.707106769 : f32
    %233 = vector.broadcast %cst_161 : f32 to vector<34x128xf32>
    %234 = arith.mulf %230, %233 : vector<34x128xf32>
    %235 = math.absf %234 : vector<34x128xf32>
    %cst_162 = arith.constant 0.327591091 : f32
    %236 = vector.broadcast %cst_162 : f32 to vector<34x128xf32>
    %237 = arith.mulf %236, %235 : vector<34x128xf32>
    %cst_163 = arith.constant 1.000000e+00 : f32
    %238 = vector.broadcast %cst_163 : f32 to vector<34x128xf32>
    %239 = arith.addf %238, %237 : vector<34x128xf32>
    %cst_164 = arith.constant 1.000000e+00 : f32
    %240 = vector.broadcast %cst_164 : f32 to vector<34x128xf32>
    %241 = arith.divf %240, %239 : vector<34x128xf32>
    %cst_165 = arith.constant 1.06140542 : f32
    %242 = vector.broadcast %cst_165 : f32 to vector<34x128xf32>
    %243 = arith.mulf %241, %242 : vector<34x128xf32>
    %cst_166 = arith.constant -1.45315206 : f32
    %244 = vector.broadcast %cst_166 : f32 to vector<34x128xf32>
    %245 = arith.addf %244, %243 : vector<34x128xf32>
    %246 = arith.mulf %241, %245 : vector<34x128xf32>
    %cst_167 = arith.constant 1.42141378 : f32
    %247 = vector.broadcast %cst_167 : f32 to vector<34x128xf32>
    %248 = arith.addf %247, %246 : vector<34x128xf32>
    %249 = arith.mulf %241, %248 : vector<34x128xf32>
    %cst_168 = arith.constant -0.284496725 : f32
    %250 = vector.broadcast %cst_168 : f32 to vector<34x128xf32>
    %251 = arith.addf %250, %249 : vector<34x128xf32>
    %252 = arith.mulf %241, %251 : vector<34x128xf32>
    %cst_169 = arith.constant 0.254829586 : f32
    %253 = vector.broadcast %cst_169 : f32 to vector<34x128xf32>
    %254 = arith.addf %253, %252 : vector<34x128xf32>
    %255 = arith.mulf %241, %254 : vector<34x128xf32>
    %cst_170 = arith.constant 0.000000e+00 : f32
    %256 = vector.broadcast %cst_170 : f32 to vector<34x128xf32>
    %257 = arith.subf %256, %234 : vector<34x128xf32>
    %258 = arith.mulf %257, %234 : vector<34x128xf32>
    %259 = math.exp %258 : vector<34x128xf32>
    %260 = arith.mulf %255, %259 : vector<34x128xf32>
    %cst_171 = arith.constant 1.000000e+00 : f32
    %261 = vector.broadcast %cst_171 : f32 to vector<34x128xf32>
    %262 = arith.subf %261, %260 : vector<34x128xf32>
    %cst_172 = arith.constant 0.000000e+00 : f32
    %263 = vector.broadcast %cst_172 : f32 to vector<34x128xf32>
    %264 = arith.cmpf olt, %234, %263 : vector<34x128xf32>
    %cst_173 = arith.constant 0.000000e+00 : f32
    %265 = vector.broadcast %cst_173 : f32 to vector<34x128xf32>
    %266 = arith.subf %265, %262 : vector<34x128xf32>
    %267 = arith.select %264, %266, %262 : vector<34x128xi1>, vector<34x128xf32>
    %cst_174 = arith.constant 1.000000e+00 : f32
    %268 = vector.broadcast %cst_174 : f32 to vector<34x128xf32>
    %269 = arith.addf %268, %267 : vector<34x128xf32>
    %270 = arith.mulf %232, %269 : vector<34x128xf32>
    %c0_175 = arith.constant 0 : index
    %c0_176 = arith.constant 0 : index
    %271 = vector.load %arg22[%c0_175, %c0_176] : memref<128x32xf32, #tpu.memory_space<vmem>>, vector<128x32xf32>
    %cst_177 = arith.constant dense<0.000000e+00> : vector<34x32xf32>
    %272 = tpu.matmul %270, %271, %cst_177 {dimension_numbers = #tpu.dot_dimension_numbers<[1], [0], [0], [1], [0, 0, 1, 1], [], []>} : vector<34x128xf32>, vector<128x32xf32>, vector<34x32xf32> -> vector<34x32xf32>
    %c0_178 = arith.constant 0 : index
    %c0_179 = arith.constant 0 : index
    %273 = vector.load %arg12[%c0_178, %c0_179] : memref<1x32xf32, #tpu.memory_space<vmem>>, vector<1x32xf32>
    %274 = vector.broadcast %273 : vector<1x32xf32> to vector<34x32xf32>
    %275 = arith.addf %272, %274 : vector<34x32xf32>
    %c0_180 = arith.constant 0 : index
    %c0_181 = arith.constant 0 : index
    %276 = vector.load %arg9[%c0_180, %c0_181] : memref<32x4xf32, #tpu.memory_space<vmem>>, vector<32x4xf32>
    %cst_182 = arith.constant dense<0.000000e+00> : vector<34x4xf32>
    %277 = tpu.matmul %275, %276, %cst_182 {dimension_numbers = #tpu.dot_dimension_numbers<[1], [0], [0], [1], [0, 0, 1, 1], [], []>} : vector<34x32xf32>, vector<32x4xf32>, vector<34x4xf32> -> vector<34x4xf32>
    %c0_183 = arith.constant 0 : index
    %c0_184 = arith.constant 0 : index
    %278 = vector.load %arg7[%c0_183, %c0_184] : memref<1x4xf32, #tpu.memory_space<vmem>>, vector<1x4xf32>
    %279 = vector.broadcast %278 : vector<1x4xf32> to vector<34x4xf32>
    %280 = arith.addf %277, %279 : vector<34x4xf32>
    %cst_185 = arith.constant 0.000000e+00 : f32
    %281 = vector.broadcast %cst_185 : f32 to vector<34x4xf32>
    %282 = arith.maximumf %280, %281 : vector<34x4xf32>
    %283 = arith.addf %203, %275 : vector<34x32xf32>
    %c0_186 = arith.constant 0 : index
    %c0_187 = arith.constant 0 : index
    %284 = vector.load %arg10[%c0_186, %c0_187] : memref<4x32xf32, #tpu.memory_space<vmem>>, vector<4x32xf32>
    %cst_188 = arith.constant dense<0.000000e+00> : vector<34x32xf32>
    %285 = tpu.matmul %282, %284, %cst_188 {dimension_numbers = #tpu.dot_dimension_numbers<[1], [0], [0], [1], [0, 0, 1, 1], [], []>} : vector<34x4xf32>, vector<4x32xf32>, vector<34x32xf32> -> vector<34x32xf32>
    %c0_189 = arith.constant 0 : index
    %c0_190 = arith.constant 0 : index
    %286 = vector.load %arg8[%c0_189, %c0_190] : memref<1x32xf32, #tpu.memory_space<vmem>>, vector<1x32xf32>
    %287 = vector.broadcast %286 : vector<1x32xf32> to vector<34x32xf32>
    %288 = arith.addf %285, %287 : vector<34x32xf32>
    %289 = arith.addf %283, %288 : vector<34x32xf32>
    %c0_191 = arith.constant 0 : index
    %c0_192 = arith.constant 0 : index
    %290 = vector.load %arg42[%c0_191, %c0_192] : memref<1x32xf32, #tpu.memory_space<vmem>>, vector<1x32xf32>
    %c0_193 = arith.constant 0 : index
    %c0_194 = arith.constant 0 : index
    %291 = vector.load %arg41[%c0_193, %c0_194] : memref<1x32xf32, #tpu.memory_space<vmem>>, vector<1x32xf32>
    %cst_195 = arith.constant dense<0.000000e+00> : vector<34xf32>
    %292 = vector.multi_reduction <add>, %289, %cst_195 [1] : vector<34x32xf32> to vector<34xf32>
    %293 = vector.shape_cast %292 : vector<34xf32> to vector<34x1xf32>
    %cst_196 = arith.constant 3.200000e+01 : f32
    %294 = vector.broadcast %cst_196 : f32 to vector<34x1xf32>
    %295 = arith.divf %293, %294 : vector<34x1xf32>
    %296 = vector.broadcast %295 : vector<34x1xf32> to vector<34x32xf32>
    %297 = arith.subf %289, %296 : vector<34x32xf32>
    %298 = arith.mulf %297, %297 : vector<34x32xf32>
    %cst_197 = arith.constant dense<0.000000e+00> : vector<34xf32>
    %299 = vector.multi_reduction <add>, %298, %cst_197 [1] : vector<34x32xf32> to vector<34xf32>
    %300 = vector.shape_cast %299 : vector<34xf32> to vector<34x1xf32>
    %cst_198 = arith.constant 3.200000e+01 : f32
    %301 = vector.broadcast %cst_198 : f32 to vector<34x1xf32>
    %302 = arith.divf %300, %301 : vector<34x1xf32>
    %cst_199 = arith.constant 9.99999997E-7 : f32
    %303 = vector.broadcast %cst_199 : f32 to vector<34x1xf32>
    %304 = arith.addf %302, %303 : vector<34x1xf32>
    %305 = math.rsqrt %304 : vector<34x1xf32>
    %306 = vector.broadcast %305 : vector<34x1xf32> to vector<34x32xf32>
    %307 = arith.mulf %297, %306 : vector<34x32xf32>
    %308 = vector.broadcast %290 : vector<1x32xf32> to vector<34x32xf32>
    %309 = arith.mulf %307, %308 : vector<34x32xf32>
    %310 = vector.broadcast %291 : vector<1x32xf32> to vector<34x32xf32>
    %311 = arith.addf %309, %310 : vector<34x32xf32>
    %c0_200 = arith.constant 0 : index
    %c0_201 = arith.constant 0 : index
    %c0_202 = arith.constant 0 : index
    %312 = vector.load %arg49[%c0_200, %c0_201, %c0_202] : memref<4x32x8xf32, #tpu.memory_space<vmem>>, vector<1x32x8xf32>
    %313 = vector.shape_cast %312 : vector<1x32x8xf32> to vector<32x8xf32>
    %cst_203 = arith.constant dense<0.000000e+00> : vector<34x8xf32>
    %314 = tpu.matmul %311, %313, %cst_203 {dimension_numbers = #tpu.dot_dimension_numbers<[1], [0], [0], [1], [0, 0, 1, 1], [], []>} : vector<34x32xf32>, vector<32x8xf32>, vector<34x8xf32> -> vector<34x8xf32>
    %c0_204 = arith.constant 0 : index
    %c0_205 = arith.constant 0 : index
    %c0_206 = arith.constant 0 : index
    %315 = vector.load %arg39[%c0_204, %c0_205, %c0_206] : memref<4x1x8xf32, #tpu.memory_space<vmem>>, vector<1x1x8xf32>
    %316 = vector.shape_cast %315 : vector<1x1x8xf32> to vector<1x8xf32>
    %317 = vector.broadcast %316 : vector<1x8xf32> to vector<34x8xf32>
    %318 = arith.addf %314, %317 : vector<34x8xf32>
    %c0_207 = arith.constant 0 : index
    %c0_208 = arith.constant 0 : index
    %c0_209 = arith.constant 0 : index
    %319 = vector.load %arg47[%c0_207, %c0_208, %c0_209] : memref<4x32x8xf32, #tpu.memory_space<vmem>>, vector<1x32x8xf32>
    %320 = vector.shape_cast %319 : vector<1x32x8xf32> to vector<32x8xf32>
    %cst_210 = arith.constant dense<0.000000e+00> : vector<34x8xf32>
    %321 = tpu.matmul %311, %320, %cst_210 {dimension_numbers = #tpu.dot_dimension_numbers<[1], [0], [0], [1], [0, 0, 1, 1], [], []>} : vector<34x32xf32>, vector<32x8xf32>, vector<34x8xf32> -> vector<34x8xf32>
    %c0_211 = arith.constant 0 : index
    %c0_212 = arith.constant 0 : index
    %c0_213 = arith.constant 0 : index
    %322 = vector.load %arg38[%c0_211, %c0_212, %c0_213] : memref<4x1x8xf32, #tpu.memory_space<vmem>>, vector<1x1x8xf32>
    %323 = vector.shape_cast %322 : vector<1x1x8xf32> to vector<1x8xf32>
    %324 = vector.broadcast %323 : vector<1x8xf32> to vector<34x8xf32>
    %325 = arith.addf %321, %324 : vector<34x8xf32>
    %c0_214 = arith.constant 0 : index
    %c0_215 = arith.constant 0 : index
    %c0_216 = arith.constant 0 : index
    %326 = vector.load %arg50[%c0_214, %c0_215, %c0_216] : memref<4x32x8xf32, #tpu.memory_space<vmem>>, vector<1x32x8xf32>
    %327 = vector.shape_cast %326 : vector<1x32x8xf32> to vector<32x8xf32>
    %cst_217 = arith.constant dense<0.000000e+00> : vector<34x8xf32>
    %328 = tpu.matmul %311, %327, %cst_217 {dimension_numbers = #tpu.dot_dimension_numbers<[1], [0], [0], [1], [0, 0, 1, 1], [], []>} : vector<34x32xf32>, vector<32x8xf32>, vector<34x8xf32> -> vector<34x8xf32>
    %c0_218 = arith.constant 0 : index
    %c0_219 = arith.constant 0 : index
    %c0_220 = arith.constant 0 : index
    %329 = vector.load %arg40[%c0_218, %c0_219, %c0_220] : memref<4x1x8xf32, #tpu.memory_space<vmem>>, vector<1x1x8xf32>
    %330 = vector.shape_cast %329 : vector<1x1x8xf32> to vector<1x8xf32>
    %331 = vector.broadcast %330 : vector<1x8xf32> to vector<34x8xf32>
    %332 = arith.addf %328, %331 : vector<34x8xf32>
    %cst_221 = arith.constant dense<0.000000e+00> : vector<34x34xf32>
    %333 = tpu.matmul %318, %325, %cst_221 {dimension_numbers = #tpu.dot_dimension_numbers<[1], [1], [0], [0], [0, 0, 1, 0], [], []>} : vector<34x8xf32>, vector<34x8xf32>, vector<34x34xf32> -> vector<34x34xf32>
    %cst_222 = arith.constant 0.353553385 : f32
    %334 = vector.broadcast %cst_222 : f32 to vector<34x34xf32>
    %335 = arith.mulf %333, %334 : vector<34x34xf32>
    %336 = arith.addf %335, %5 : vector<34x34xf32>
    %cst_223 = arith.constant dense<0xFF800000> : vector<34xf32>
    %337 = vector.multi_reduction <maximumf>, %336, %cst_223 [1] : vector<34x34xf32> to vector<34xf32>
    %338 = vector.shape_cast %337 : vector<34xf32> to vector<34x1xf32>
    %339 = vector.broadcast %338 : vector<34x1xf32> to vector<34x34xf32>
    %340 = arith.subf %336, %339 : vector<34x34xf32>
    %341 = math.exp %340 : vector<34x34xf32>
    %cst_224 = arith.constant dense<0.000000e+00> : vector<34xf32>
    %342 = vector.multi_reduction <add>, %341, %cst_224 [1] : vector<34x34xf32> to vector<34xf32>
    %343 = vector.shape_cast %342 : vector<34xf32> to vector<34x1xf32>
    %344 = tpu.reciprocal %343 {approx = true} : vector<34x1xf32> -> vector<34x1xf32>
    %345 = vector.broadcast %344 : vector<34x1xf32> to vector<34x34xf32>
    %346 = arith.mulf %341, %345 : vector<34x34xf32>
    %cst_225 = arith.constant dense<0.000000e+00> : vector<34x8xf32>
    %347 = tpu.matmul %346, %332, %cst_225 {dimension_numbers = #tpu.dot_dimension_numbers<[1], [0], [0], [1], [0, 0, 1, 1], [], []>} : vector<34x34xf32>, vector<34x8xf32>, vector<34x8xf32> -> vector<34x8xf32>
    %c0_226 = arith.constant 0 : index
    %c0_227 = arith.constant 0 : index
    %c0_228 = arith.constant 0 : index
    %348 = vector.load %arg48[%c0_226, %c0_227, %c0_228] : memref<4x8x32xf32, #tpu.memory_space<vmem>>, vector<1x8x32xf32>
    %349 = vector.shape_cast %348 : vector<1x8x32xf32> to vector<8x32xf32>
    %cst_229 = arith.constant dense<0.000000e+00> : vector<34x32xf32>
    %350 = tpu.matmul %347, %349, %cst_229 {dimension_numbers = #tpu.dot_dimension_numbers<[1], [0], [0], [1], [0, 0, 1, 1], [], []>} : vector<34x8xf32>, vector<8x32xf32>, vector<34x32xf32> -> vector<34x32xf32>
    %c1_230 = arith.constant 1 : index
    %c0_231 = arith.constant 0 : index
    %c0_232 = arith.constant 0 : index
    %351 = vector.load %arg49[%c1_230, %c0_231, %c0_232] : memref<4x32x8xf32, #tpu.memory_space<vmem>>, vector<1x32x8xf32>
    %352 = vector.shape_cast %351 : vector<1x32x8xf32> to vector<32x8xf32>
    %cst_233 = arith.constant dense<0.000000e+00> : vector<34x8xf32>
    %353 = tpu.matmul %311, %352, %cst_233 {dimension_numbers = #tpu.dot_dimension_numbers<[1], [0], [0], [1], [0, 0, 1, 1], [], []>} : vector<34x32xf32>, vector<32x8xf32>, vector<34x8xf32> -> vector<34x8xf32>
    %c1_234 = arith.constant 1 : index
    %c0_235 = arith.constant 0 : index
    %c0_236 = arith.constant 0 : index
    %354 = vector.load %arg39[%c1_234, %c0_235, %c0_236] : memref<4x1x8xf32, #tpu.memory_space<vmem>>, vector<1x1x8xf32>
    %355 = vector.shape_cast %354 : vector<1x1x8xf32> to vector<1x8xf32>
    %356 = vector.broadcast %355 : vector<1x8xf32> to vector<34x8xf32>
    %357 = arith.addf %353, %356 : vector<34x8xf32>
    %c1_237 = arith.constant 1 : index
    %c0_238 = arith.constant 0 : index
    %c0_239 = arith.constant 0 : index
    %358 = vector.load %arg47[%c1_237, %c0_238, %c0_239] : memref<4x32x8xf32, #tpu.memory_space<vmem>>, vector<1x32x8xf32>
    %359 = vector.shape_cast %358 : vector<1x32x8xf32> to vector<32x8xf32>
    %cst_240 = arith.constant dense<0.000000e+00> : vector<34x8xf32>
    %360 = tpu.matmul %311, %359, %cst_240 {dimension_numbers = #tpu.dot_dimension_numbers<[1], [0], [0], [1], [0, 0, 1, 1], [], []>} : vector<34x32xf32>, vector<32x8xf32>, vector<34x8xf32> -> vector<34x8xf32>
    %c1_241 = arith.constant 1 : index
    %c0_242 = arith.constant 0 : index
    %c0_243 = arith.constant 0 : index
    %361 = vector.load %arg38[%c1_241, %c0_242, %c0_243] : memref<4x1x8xf32, #tpu.memory_space<vmem>>, vector<1x1x8xf32>
    %362 = vector.shape_cast %361 : vector<1x1x8xf32> to vector<1x8xf32>
    %363 = vector.broadcast %362 : vector<1x8xf32> to vector<34x8xf32>
    %364 = arith.addf %360, %363 : vector<34x8xf32>
    %c1_244 = arith.constant 1 : index
    %c0_245 = arith.constant 0 : index
    %c0_246 = arith.constant 0 : index
    %365 = vector.load %arg50[%c1_244, %c0_245, %c0_246] : memref<4x32x8xf32, #tpu.memory_space<vmem>>, vector<1x32x8xf32>
    %366 = vector.shape_cast %365 : vector<1x32x8xf32> to vector<32x8xf32>
    %cst_247 = arith.constant dense<0.000000e+00> : vector<34x8xf32>
    %367 = tpu.matmul %311, %366, %cst_247 {dimension_numbers = #tpu.dot_dimension_numbers<[1], [0], [0], [1], [0, 0, 1, 1], [], []>} : vector<34x32xf32>, vector<32x8xf32>, vector<34x8xf32> -> vector<34x8xf32>
    %c1_248 = arith.constant 1 : index
    %c0_249 = arith.constant 0 : index
    %c0_250 = arith.constant 0 : index
    %368 = vector.load %arg40[%c1_248, %c0_249, %c0_250] : memref<4x1x8xf32, #tpu.memory_space<vmem>>, vector<1x1x8xf32>
    %369 = vector.shape_cast %368 : vector<1x1x8xf32> to vector<1x8xf32>
    %370 = vector.broadcast %369 : vector<1x8xf32> to vector<34x8xf32>
    %371 = arith.addf %367, %370 : vector<34x8xf32>
    %cst_251 = arith.constant dense<0.000000e+00> : vector<34x34xf32>
    %372 = tpu.matmul %357, %364, %cst_251 {dimension_numbers = #tpu.dot_dimension_numbers<[1], [1], [0], [0], [0, 0, 1, 0], [], []>} : vector<34x8xf32>, vector<34x8xf32>, vector<34x34xf32> -> vector<34x34xf32>
    %cst_252 = arith.constant 0.353553385 : f32
    %373 = vector.broadcast %cst_252 : f32 to vector<34x34xf32>
    %374 = arith.mulf %372, %373 : vector<34x34xf32>
    %375 = arith.addf %374, %5 : vector<34x34xf32>
    %cst_253 = arith.constant dense<0xFF800000> : vector<34xf32>
    %376 = vector.multi_reduction <maximumf>, %375, %cst_253 [1] : vector<34x34xf32> to vector<34xf32>
    %377 = vector.shape_cast %376 : vector<34xf32> to vector<34x1xf32>
    %378 = vector.broadcast %377 : vector<34x1xf32> to vector<34x34xf32>
    %379 = arith.subf %375, %378 : vector<34x34xf32>
    %380 = math.exp %379 : vector<34x34xf32>
    %cst_254 = arith.constant dense<0.000000e+00> : vector<34xf32>
    %381 = vector.multi_reduction <add>, %380, %cst_254 [1] : vector<34x34xf32> to vector<34xf32>
    %382 = vector.shape_cast %381 : vector<34xf32> to vector<34x1xf32>
    %383 = tpu.reciprocal %382 {approx = true} : vector<34x1xf32> -> vector<34x1xf32>
    %384 = vector.broadcast %383 : vector<34x1xf32> to vector<34x34xf32>
    %385 = arith.mulf %380, %384 : vector<34x34xf32>
    %cst_255 = arith.constant dense<0.000000e+00> : vector<34x8xf32>
    %386 = tpu.matmul %385, %371, %cst_255 {dimension_numbers = #tpu.dot_dimension_numbers<[1], [0], [0], [1], [0, 0, 1, 1], [], []>} : vector<34x34xf32>, vector<34x8xf32>, vector<34x8xf32> -> vector<34x8xf32>
    %c1_256 = arith.constant 1 : index
    %c0_257 = arith.constant 0 : index
    %c0_258 = arith.constant 0 : index
    %387 = vector.load %arg48[%c1_256, %c0_257, %c0_258] : memref<4x8x32xf32, #tpu.memory_space<vmem>>, vector<1x8x32xf32>
    %388 = vector.shape_cast %387 : vector<1x8x32xf32> to vector<8x32xf32>
    %cst_259 = arith.constant dense<0.000000e+00> : vector<34x32xf32>
    %389 = tpu.matmul %386, %388, %cst_259 {dimension_numbers = #tpu.dot_dimension_numbers<[1], [0], [0], [1], [0, 0, 1, 1], [], []>} : vector<34x8xf32>, vector<8x32xf32>, vector<34x32xf32> -> vector<34x32xf32>
    %390 = arith.addf %350, %389 : vector<34x32xf32>
    %c2_260 = arith.constant 2 : index
    %c0_261 = arith.constant 0 : index
    %c0_262 = arith.constant 0 : index
    %391 = vector.load %arg49[%c2_260, %c0_261, %c0_262] : memref<4x32x8xf32, #tpu.memory_space<vmem>>, vector<1x32x8xf32>
    %392 = vector.shape_cast %391 : vector<1x32x8xf32> to vector<32x8xf32>
    %cst_263 = arith.constant dense<0.000000e+00> : vector<34x8xf32>
    %393 = tpu.matmul %311, %392, %cst_263 {dimension_numbers = #tpu.dot_dimension_numbers<[1], [0], [0], [1], [0, 0, 1, 1], [], []>} : vector<34x32xf32>, vector<32x8xf32>, vector<34x8xf32> -> vector<34x8xf32>
    %c2_264 = arith.constant 2 : index
    %c0_265 = arith.constant 0 : index
    %c0_266 = arith.constant 0 : index
    %394 = vector.load %arg39[%c2_264, %c0_265, %c0_266] : memref<4x1x8xf32, #tpu.memory_space<vmem>>, vector<1x1x8xf32>
    %395 = vector.shape_cast %394 : vector<1x1x8xf32> to vector<1x8xf32>
    %396 = vector.broadcast %395 : vector<1x8xf32> to vector<34x8xf32>
    %397 = arith.addf %393, %396 : vector<34x8xf32>
    %c2_267 = arith.constant 2 : index
    %c0_268 = arith.constant 0 : index
    %c0_269 = arith.constant 0 : index
    %398 = vector.load %arg47[%c2_267, %c0_268, %c0_269] : memref<4x32x8xf32, #tpu.memory_space<vmem>>, vector<1x32x8xf32>
    %399 = vector.shape_cast %398 : vector<1x32x8xf32> to vector<32x8xf32>
    %cst_270 = arith.constant dense<0.000000e+00> : vector<34x8xf32>
    %400 = tpu.matmul %311, %399, %cst_270 {dimension_numbers = #tpu.dot_dimension_numbers<[1], [0], [0], [1], [0, 0, 1, 1], [], []>} : vector<34x32xf32>, vector<32x8xf32>, vector<34x8xf32> -> vector<34x8xf32>
    %c2_271 = arith.constant 2 : index
    %c0_272 = arith.constant 0 : index
    %c0_273 = arith.constant 0 : index
    %401 = vector.load %arg38[%c2_271, %c0_272, %c0_273] : memref<4x1x8xf32, #tpu.memory_space<vmem>>, vector<1x1x8xf32>
    %402 = vector.shape_cast %401 : vector<1x1x8xf32> to vector<1x8xf32>
    %403 = vector.broadcast %402 : vector<1x8xf32> to vector<34x8xf32>
    %404 = arith.addf %400, %403 : vector<34x8xf32>
    %c2_274 = arith.constant 2 : index
    %c0_275 = arith.constant 0 : index
    %c0_276 = arith.constant 0 : index
    %405 = vector.load %arg50[%c2_274, %c0_275, %c0_276] : memref<4x32x8xf32, #tpu.memory_space<vmem>>, vector<1x32x8xf32>
    %406 = vector.shape_cast %405 : vector<1x32x8xf32> to vector<32x8xf32>
    %cst_277 = arith.constant dense<0.000000e+00> : vector<34x8xf32>
    %407 = tpu.matmul %311, %406, %cst_277 {dimension_numbers = #tpu.dot_dimension_numbers<[1], [0], [0], [1], [0, 0, 1, 1], [], []>} : vector<34x32xf32>, vector<32x8xf32>, vector<34x8xf32> -> vector<34x8xf32>
    %c2_278 = arith.constant 2 : index
    %c0_279 = arith.constant 0 : index
    %c0_280 = arith.constant 0 : index
    %408 = vector.load %arg40[%c2_278, %c0_279, %c0_280] : memref<4x1x8xf32, #tpu.memory_space<vmem>>, vector<1x1x8xf32>
    %409 = vector.shape_cast %408 : vector<1x1x8xf32> to vector<1x8xf32>
    %410 = vector.broadcast %409 : vector<1x8xf32> to vector<34x8xf32>
    %411 = arith.addf %407, %410 : vector<34x8xf32>
    %cst_281 = arith.constant dense<0.000000e+00> : vector<34x34xf32>
    %412 = tpu.matmul %397, %404, %cst_281 {dimension_numbers = #tpu.dot_dimension_numbers<[1], [1], [0], [0], [0, 0, 1, 0], [], []>} : vector<34x8xf32>, vector<34x8xf32>, vector<34x34xf32> -> vector<34x34xf32>
    %cst_282 = arith.constant 0.353553385 : f32
    %413 = vector.broadcast %cst_282 : f32 to vector<34x34xf32>
    %414 = arith.mulf %412, %413 : vector<34x34xf32>
    %415 = arith.addf %414, %5 : vector<34x34xf32>
    %cst_283 = arith.constant dense<0xFF800000> : vector<34xf32>
    %416 = vector.multi_reduction <maximumf>, %415, %cst_283 [1] : vector<34x34xf32> to vector<34xf32>
    %417 = vector.shape_cast %416 : vector<34xf32> to vector<34x1xf32>
    %418 = vector.broadcast %417 : vector<34x1xf32> to vector<34x34xf32>
    %419 = arith.subf %415, %418 : vector<34x34xf32>
    %420 = math.exp %419 : vector<34x34xf32>
    %cst_284 = arith.constant dense<0.000000e+00> : vector<34xf32>
    %421 = vector.multi_reduction <add>, %420, %cst_284 [1] : vector<34x34xf32> to vector<34xf32>
    %422 = vector.shape_cast %421 : vector<34xf32> to vector<34x1xf32>
    %423 = tpu.reciprocal %422 {approx = true} : vector<34x1xf32> -> vector<34x1xf32>
    %424 = vector.broadcast %423 : vector<34x1xf32> to vector<34x34xf32>
    %425 = arith.mulf %420, %424 : vector<34x34xf32>
    %cst_285 = arith.constant dense<0.000000e+00> : vector<34x8xf32>
    %426 = tpu.matmul %425, %411, %cst_285 {dimension_numbers = #tpu.dot_dimension_numbers<[1], [0], [0], [1], [0, 0, 1, 1], [], []>} : vector<34x34xf32>, vector<34x8xf32>, vector<34x8xf32> -> vector<34x8xf32>
    %c2_286 = arith.constant 2 : index
    %c0_287 = arith.constant 0 : index
    %c0_288 = arith.constant 0 : index
    %427 = vector.load %arg48[%c2_286, %c0_287, %c0_288] : memref<4x8x32xf32, #tpu.memory_space<vmem>>, vector<1x8x32xf32>
    %428 = vector.shape_cast %427 : vector<1x8x32xf32> to vector<8x32xf32>
    %cst_289 = arith.constant dense<0.000000e+00> : vector<34x32xf32>
    %429 = tpu.matmul %426, %428, %cst_289 {dimension_numbers = #tpu.dot_dimension_numbers<[1], [0], [0], [1], [0, 0, 1, 1], [], []>} : vector<34x8xf32>, vector<8x32xf32>, vector<34x32xf32> -> vector<34x32xf32>
    %430 = arith.addf %390, %429 : vector<34x32xf32>
    %c3_290 = arith.constant 3 : index
    %c0_291 = arith.constant 0 : index
    %c0_292 = arith.constant 0 : index
    %431 = vector.load %arg49[%c3_290, %c0_291, %c0_292] : memref<4x32x8xf32, #tpu.memory_space<vmem>>, vector<1x32x8xf32>
    %432 = vector.shape_cast %431 : vector<1x32x8xf32> to vector<32x8xf32>
    %cst_293 = arith.constant dense<0.000000e+00> : vector<34x8xf32>
    %433 = tpu.matmul %311, %432, %cst_293 {dimension_numbers = #tpu.dot_dimension_numbers<[1], [0], [0], [1], [0, 0, 1, 1], [], []>} : vector<34x32xf32>, vector<32x8xf32>, vector<34x8xf32> -> vector<34x8xf32>
    %c3_294 = arith.constant 3 : index
    %c0_295 = arith.constant 0 : index
    %c0_296 = arith.constant 0 : index
    %434 = vector.load %arg39[%c3_294, %c0_295, %c0_296] : memref<4x1x8xf32, #tpu.memory_space<vmem>>, vector<1x1x8xf32>
    %435 = vector.shape_cast %434 : vector<1x1x8xf32> to vector<1x8xf32>
    %436 = vector.broadcast %435 : vector<1x8xf32> to vector<34x8xf32>
    %437 = arith.addf %433, %436 : vector<34x8xf32>
    %c3_297 = arith.constant 3 : index
    %c0_298 = arith.constant 0 : index
    %c0_299 = arith.constant 0 : index
    %438 = vector.load %arg47[%c3_297, %c0_298, %c0_299] : memref<4x32x8xf32, #tpu.memory_space<vmem>>, vector<1x32x8xf32>
    %439 = vector.shape_cast %438 : vector<1x32x8xf32> to vector<32x8xf32>
    %cst_300 = arith.constant dense<0.000000e+00> : vector<34x8xf32>
    %440 = tpu.matmul %311, %439, %cst_300 {dimension_numbers = #tpu.dot_dimension_numbers<[1], [0], [0], [1], [0, 0, 1, 1], [], []>} : vector<34x32xf32>, vector<32x8xf32>, vector<34x8xf32> -> vector<34x8xf32>
    %c3_301 = arith.constant 3 : index
    %c0_302 = arith.constant 0 : index
    %c0_303 = arith.constant 0 : index
    %441 = vector.load %arg38[%c3_301, %c0_302, %c0_303] : memref<4x1x8xf32, #tpu.memory_space<vmem>>, vector<1x1x8xf32>
    %442 = vector.shape_cast %441 : vector<1x1x8xf32> to vector<1x8xf32>
    %443 = vector.broadcast %442 : vector<1x8xf32> to vector<34x8xf32>
    %444 = arith.addf %440, %443 : vector<34x8xf32>
    %c3_304 = arith.constant 3 : index
    %c0_305 = arith.constant 0 : index
    %c0_306 = arith.constant 0 : index
    %445 = vector.load %arg50[%c3_304, %c0_305, %c0_306] : memref<4x32x8xf32, #tpu.memory_space<vmem>>, vector<1x32x8xf32>
    %446 = vector.shape_cast %445 : vector<1x32x8xf32> to vector<32x8xf32>
    %cst_307 = arith.constant dense<0.000000e+00> : vector<34x8xf32>
    %447 = tpu.matmul %311, %446, %cst_307 {dimension_numbers = #tpu.dot_dimension_numbers<[1], [0], [0], [1], [0, 0, 1, 1], [], []>} : vector<34x32xf32>, vector<32x8xf32>, vector<34x8xf32> -> vector<34x8xf32>
    %c3_308 = arith.constant 3 : index
    %c0_309 = arith.constant 0 : index
    %c0_310 = arith.constant 0 : index
    %448 = vector.load %arg40[%c3_308, %c0_309, %c0_310] : memref<4x1x8xf32, #tpu.memory_space<vmem>>, vector<1x1x8xf32>
    %449 = vector.shape_cast %448 : vector<1x1x8xf32> to vector<1x8xf32>
    %450 = vector.broadcast %449 : vector<1x8xf32> to vector<34x8xf32>
    %451 = arith.addf %447, %450 : vector<34x8xf32>
    %cst_311 = arith.constant dense<0.000000e+00> : vector<34x34xf32>
    %452 = tpu.matmul %437, %444, %cst_311 {dimension_numbers = #tpu.dot_dimension_numbers<[1], [1], [0], [0], [0, 0, 1, 0], [], []>} : vector<34x8xf32>, vector<34x8xf32>, vector<34x34xf32> -> vector<34x34xf32>
    %cst_312 = arith.constant 0.353553385 : f32
    %453 = vector.broadcast %cst_312 : f32 to vector<34x34xf32>
    %454 = arith.mulf %452, %453 : vector<34x34xf32>
    %455 = arith.addf %454, %5 : vector<34x34xf32>
    %cst_313 = arith.constant dense<0xFF800000> : vector<34xf32>
    %456 = vector.multi_reduction <maximumf>, %455, %cst_313 [1] : vector<34x34xf32> to vector<34xf32>
    %457 = vector.shape_cast %456 : vector<34xf32> to vector<34x1xf32>
    %458 = vector.broadcast %457 : vector<34x1xf32> to vector<34x34xf32>
    %459 = arith.subf %455, %458 : vector<34x34xf32>
    %460 = math.exp %459 : vector<34x34xf32>
    %cst_314 = arith.constant dense<0.000000e+00> : vector<34xf32>
    %461 = vector.multi_reduction <add>, %460, %cst_314 [1] : vector<34x34xf32> to vector<34xf32>
    %462 = vector.shape_cast %461 : vector<34xf32> to vector<34x1xf32>
    %463 = tpu.reciprocal %462 {approx = true} : vector<34x1xf32> -> vector<34x1xf32>
    %464 = vector.broadcast %463 : vector<34x1xf32> to vector<34x34xf32>
    %465 = arith.mulf %460, %464 : vector<34x34xf32>
    %cst_315 = arith.constant dense<0.000000e+00> : vector<34x8xf32>
    %466 = tpu.matmul %465, %451, %cst_315 {dimension_numbers = #tpu.dot_dimension_numbers<[1], [0], [0], [1], [0, 0, 1, 1], [], []>} : vector<34x34xf32>, vector<34x8xf32>, vector<34x8xf32> -> vector<34x8xf32>
    %c3_316 = arith.constant 3 : index
    %c0_317 = arith.constant 0 : index
    %c0_318 = arith.constant 0 : index
    %467 = vector.load %arg48[%c3_316, %c0_317, %c0_318] : memref<4x8x32xf32, #tpu.memory_space<vmem>>, vector<1x8x32xf32>
    %468 = vector.shape_cast %467 : vector<1x8x32xf32> to vector<8x32xf32>
    %cst_319 = arith.constant dense<0.000000e+00> : vector<34x32xf32>
    %469 = tpu.matmul %466, %468, %cst_319 {dimension_numbers = #tpu.dot_dimension_numbers<[1], [0], [0], [1], [0, 0, 1, 1], [], []>} : vector<34x8xf32>, vector<8x32xf32>, vector<34x32xf32> -> vector<34x32xf32>
    %470 = arith.addf %430, %469 : vector<34x32xf32>
    %c0_320 = arith.constant 0 : index
    %c0_321 = arith.constant 0 : index
    %471 = vector.load %arg37[%c0_320, %c0_321] : memref<1x32xf32, #tpu.memory_space<vmem>>, vector<1x32xf32>
    %472 = vector.broadcast %471 : vector<1x32xf32> to vector<34x32xf32>
    %473 = arith.addf %470, %472 : vector<34x32xf32>
    %c0_322 = arith.constant 0 : index
    %c0_323 = arith.constant 0 : index
    %474 = vector.load %arg29[%c0_322, %c0_323] : memref<32x4xf32, #tpu.memory_space<vmem>>, vector<32x4xf32>
    %cst_324 = arith.constant dense<0.000000e+00> : vector<34x4xf32>
    %475 = tpu.matmul %473, %474, %cst_324 {dimension_numbers = #tpu.dot_dimension_numbers<[1], [0], [0], [1], [0, 0, 1, 1], [], []>} : vector<34x32xf32>, vector<32x4xf32>, vector<34x4xf32> -> vector<34x4xf32>
    %c0_325 = arith.constant 0 : index
    %c0_326 = arith.constant 0 : index
    %476 = vector.load %arg27[%c0_325, %c0_326] : memref<1x4xf32, #tpu.memory_space<vmem>>, vector<1x4xf32>
    %477 = vector.broadcast %476 : vector<1x4xf32> to vector<34x4xf32>
    %478 = arith.addf %475, %477 : vector<34x4xf32>
    %cst_327 = arith.constant 0.000000e+00 : f32
    %479 = vector.broadcast %cst_327 : f32 to vector<34x4xf32>
    %480 = arith.maximumf %478, %479 : vector<34x4xf32>
    %481 = arith.addf %289, %473 : vector<34x32xf32>
    %c0_328 = arith.constant 0 : index
    %c0_329 = arith.constant 0 : index
    %482 = vector.load %arg30[%c0_328, %c0_329] : memref<4x32xf32, #tpu.memory_space<vmem>>, vector<4x32xf32>
    %cst_330 = arith.constant dense<0.000000e+00> : vector<34x32xf32>
    %483 = tpu.matmul %480, %482, %cst_330 {dimension_numbers = #tpu.dot_dimension_numbers<[1], [0], [0], [1], [0, 0, 1, 1], [], []>} : vector<34x4xf32>, vector<4x32xf32>, vector<34x32xf32> -> vector<34x32xf32>
    %c0_331 = arith.constant 0 : index
    %c0_332 = arith.constant 0 : index
    %484 = vector.load %arg28[%c0_331, %c0_332] : memref<1x32xf32, #tpu.memory_space<vmem>>, vector<1x32xf32>
    %485 = vector.broadcast %484 : vector<1x32xf32> to vector<34x32xf32>
    %486 = arith.addf %483, %485 : vector<34x32xf32>
    %487 = arith.addf %481, %486 : vector<34x32xf32>
    %c0_333 = arith.constant 0 : index
    %c0_334 = arith.constant 0 : index
    %488 = vector.load %arg44[%c0_333, %c0_334] : memref<1x32xf32, #tpu.memory_space<vmem>>, vector<1x32xf32>
    %c0_335 = arith.constant 0 : index
    %c0_336 = arith.constant 0 : index
    %489 = vector.load %arg43[%c0_335, %c0_336] : memref<1x32xf32, #tpu.memory_space<vmem>>, vector<1x32xf32>
    %cst_337 = arith.constant dense<0.000000e+00> : vector<34xf32>
    %490 = vector.multi_reduction <add>, %487, %cst_337 [1] : vector<34x32xf32> to vector<34xf32>
    %491 = vector.shape_cast %490 : vector<34xf32> to vector<34x1xf32>
    %cst_338 = arith.constant 3.200000e+01 : f32
    %492 = vector.broadcast %cst_338 : f32 to vector<34x1xf32>
    %493 = arith.divf %491, %492 : vector<34x1xf32>
    %494 = vector.broadcast %493 : vector<34x1xf32> to vector<34x32xf32>
    %495 = arith.subf %487, %494 : vector<34x32xf32>
    %496 = arith.mulf %495, %495 : vector<34x32xf32>
    %cst_339 = arith.constant dense<0.000000e+00> : vector<34xf32>
    %497 = vector.multi_reduction <add>, %496, %cst_339 [1] : vector<34x32xf32> to vector<34xf32>
    %498 = vector.shape_cast %497 : vector<34xf32> to vector<34x1xf32>
    %cst_340 = arith.constant 3.200000e+01 : f32
    %499 = vector.broadcast %cst_340 : f32 to vector<34x1xf32>
    %500 = arith.divf %498, %499 : vector<34x1xf32>
    %cst_341 = arith.constant 9.99999997E-7 : f32
    %501 = vector.broadcast %cst_341 : f32 to vector<34x1xf32>
    %502 = arith.addf %500, %501 : vector<34x1xf32>
    %503 = math.rsqrt %502 : vector<34x1xf32>
    %504 = vector.broadcast %503 : vector<34x1xf32> to vector<34x32xf32>
    %505 = arith.mulf %495, %504 : vector<34x32xf32>
    %506 = vector.broadcast %488 : vector<1x32xf32> to vector<34x32xf32>
    %507 = arith.mulf %505, %506 : vector<34x32xf32>
    %508 = vector.broadcast %489 : vector<1x32xf32> to vector<34x32xf32>
    %509 = arith.addf %507, %508 : vector<34x32xf32>
    %c0_342 = arith.constant 0 : index
    %c0_343 = arith.constant 0 : index
    %510 = vector.load %arg45[%c0_342, %c0_343] : memref<32x128xf32, #tpu.memory_space<vmem>>, vector<32x128xf32>
    %cst_344 = arith.constant dense<0.000000e+00> : vector<34x128xf32>
    %511 = tpu.matmul %509, %510, %cst_344 {dimension_numbers = #tpu.dot_dimension_numbers<[1], [0], [0], [1], [0, 0, 1, 1], [], []>} : vector<34x32xf32>, vector<32x128xf32>, vector<34x128xf32> -> vector<34x128xf32>
    %c0_345 = arith.constant 0 : index
    %c0_346 = arith.constant 0 : index
    %512 = vector.load %arg35[%c0_345, %c0_346] : memref<1x128xf32, #tpu.memory_space<vmem>>, vector<1x128xf32>
    %513 = vector.broadcast %512 : vector<1x128xf32> to vector<34x128xf32>
    %514 = arith.addf %511, %513 : vector<34x128xf32>
    %cst_347 = arith.constant 5.000000e-01 : f32
    %515 = vector.broadcast %cst_347 : f32 to vector<34x128xf32>
    %516 = arith.mulf %515, %514 : vector<34x128xf32>
    %cst_348 = arith.constant 0.707106769 : f32
    %517 = vector.broadcast %cst_348 : f32 to vector<34x128xf32>
    %518 = arith.mulf %514, %517 : vector<34x128xf32>
    %519 = math.absf %518 : vector<34x128xf32>
    %cst_349 = arith.constant 0.327591091 : f32
    %520 = vector.broadcast %cst_349 : f32 to vector<34x128xf32>
    %521 = arith.mulf %520, %519 : vector<34x128xf32>
    %cst_350 = arith.constant 1.000000e+00 : f32
    %522 = vector.broadcast %cst_350 : f32 to vector<34x128xf32>
    %523 = arith.addf %522, %521 : vector<34x128xf32>
    %cst_351 = arith.constant 1.000000e+00 : f32
    %524 = vector.broadcast %cst_351 : f32 to vector<34x128xf32>
    %525 = arith.divf %524, %523 : vector<34x128xf32>
    %cst_352 = arith.constant 1.06140542 : f32
    %526 = vector.broadcast %cst_352 : f32 to vector<34x128xf32>
    %527 = arith.mulf %525, %526 : vector<34x128xf32>
    %cst_353 = arith.constant -1.45315206 : f32
    %528 = vector.broadcast %cst_353 : f32 to vector<34x128xf32>
    %529 = arith.addf %528, %527 : vector<34x128xf32>
    %530 = arith.mulf %525, %529 : vector<34x128xf32>
    %cst_354 = arith.constant 1.42141378 : f32
    %531 = vector.broadcast %cst_354 : f32 to vector<34x128xf32>
    %532 = arith.addf %531, %530 : vector<34x128xf32>
    %533 = arith.mulf %525, %532 : vector<34x128xf32>
    %cst_355 = arith.constant -0.284496725 : f32
    %534 = vector.broadcast %cst_355 : f32 to vector<34x128xf32>
    %535 = arith.addf %534, %533 : vector<34x128xf32>
    %536 = arith.mulf %525, %535 : vector<34x128xf32>
    %cst_356 = arith.constant 0.254829586 : f32
    %537 = vector.broadcast %cst_356 : f32 to vector<34x128xf32>
    %538 = arith.addf %537, %536 : vector<34x128xf32>
    %539 = arith.mulf %525, %538 : vector<34x128xf32>
    %cst_357 = arith.constant 0.000000e+00 : f32
    %540 = vector.broadcast %cst_357 : f32 to vector<34x128xf32>
    %541 = arith.subf %540, %518 : vector<34x128xf32>
    %542 = arith.mulf %541, %518 : vector<34x128xf32>
    %543 = math.exp %542 : vector<34x128xf32>
    %544 = arith.mulf %539, %543 : vector<34x128xf32>
    %cst_358 = arith.constant 1.000000e+00 : f32
    %545 = vector.broadcast %cst_358 : f32 to vector<34x128xf32>
    %546 = arith.subf %545, %544 : vector<34x128xf32>
    %cst_359 = arith.constant 0.000000e+00 : f32
    %547 = vector.broadcast %cst_359 : f32 to vector<34x128xf32>
    %548 = arith.cmpf olt, %518, %547 : vector<34x128xf32>
    %cst_360 = arith.constant 0.000000e+00 : f32
    %549 = vector.broadcast %cst_360 : f32 to vector<34x128xf32>
    %550 = arith.subf %549, %546 : vector<34x128xf32>
    %551 = arith.select %548, %550, %546 : vector<34x128xi1>, vector<34x128xf32>
    %cst_361 = arith.constant 1.000000e+00 : f32
    %552 = vector.broadcast %cst_361 : f32 to vector<34x128xf32>
    %553 = arith.addf %552, %551 : vector<34x128xf32>
    %554 = arith.mulf %516, %553 : vector<34x128xf32>
    %c0_362 = arith.constant 0 : index
    %c0_363 = arith.constant 0 : index
    %555 = vector.load %arg46[%c0_362, %c0_363] : memref<128x32xf32, #tpu.memory_space<vmem>>, vector<128x32xf32>
    %cst_364 = arith.constant dense<0.000000e+00> : vector<34x32xf32>
    %556 = tpu.matmul %554, %555, %cst_364 {dimension_numbers = #tpu.dot_dimension_numbers<[1], [0], [0], [1], [0, 0, 1, 1], [], []>} : vector<34x128xf32>, vector<128x32xf32>, vector<34x32xf32> -> vector<34x32xf32>
    %c0_365 = arith.constant 0 : index
    %c0_366 = arith.constant 0 : index
    %557 = vector.load %arg36[%c0_365, %c0_366] : memref<1x32xf32, #tpu.memory_space<vmem>>, vector<1x32xf32>
    %558 = vector.broadcast %557 : vector<1x32xf32> to vector<34x32xf32>
    %559 = arith.addf %556, %558 : vector<34x32xf32>
    %c0_367 = arith.constant 0 : index
    %c0_368 = arith.constant 0 : index
    %560 = vector.load %arg33[%c0_367, %c0_368] : memref<32x4xf32, #tpu.memory_space<vmem>>, vector<32x4xf32>
    %cst_369 = arith.constant dense<0.000000e+00> : vector<34x4xf32>
    %561 = tpu.matmul %559, %560, %cst_369 {dimension_numbers = #tpu.dot_dimension_numbers<[1], [0], [0], [1], [0, 0, 1, 1], [], []>} : vector<34x32xf32>, vector<32x4xf32>, vector<34x4xf32> -> vector<34x4xf32>
    %c0_370 = arith.constant 0 : index
    %c0_371 = arith.constant 0 : index
    %562 = vector.load %arg31[%c0_370, %c0_371] : memref<1x4xf32, #tpu.memory_space<vmem>>, vector<1x4xf32>
    %563 = vector.broadcast %562 : vector<1x4xf32> to vector<34x4xf32>
    %564 = arith.addf %561, %563 : vector<34x4xf32>
    %cst_372 = arith.constant 0.000000e+00 : f32
    %565 = vector.broadcast %cst_372 : f32 to vector<34x4xf32>
    %566 = arith.maximumf %564, %565 : vector<34x4xf32>
    %567 = arith.addf %487, %559 : vector<34x32xf32>
    %c0_373 = arith.constant 0 : index
    %c0_374 = arith.constant 0 : index
    %568 = vector.load %arg34[%c0_373, %c0_374] : memref<4x32xf32, #tpu.memory_space<vmem>>, vector<4x32xf32>
    %cst_375 = arith.constant dense<0.000000e+00> : vector<34x32xf32>
    %569 = tpu.matmul %566, %568, %cst_375 {dimension_numbers = #tpu.dot_dimension_numbers<[1], [0], [0], [1], [0, 0, 1, 1], [], []>} : vector<34x4xf32>, vector<4x32xf32>, vector<34x32xf32> -> vector<34x32xf32>
    %c0_376 = arith.constant 0 : index
    %c0_377 = arith.constant 0 : index
    %570 = vector.load %arg32[%c0_376, %c0_377] : memref<1x32xf32, #tpu.memory_space<vmem>>, vector<1x32xf32>
    %571 = vector.broadcast %570 : vector<1x32xf32> to vector<34x32xf32>
    %572 = arith.addf %569, %571 : vector<34x32xf32>
    %573 = arith.addf %567, %572 : vector<34x32xf32>
    %c0_378 = arith.constant 0 : index
    %c0_379 = arith.constant 0 : index
    %574 = vector.load %arg51[%c0_378, %c0_379] : memref<2x34xf32, #tpu.memory_space<vmem>>, vector<2x34xf32>
    %cst_380 = arith.constant dense<0.000000e+00> : vector<2x32xf32>
    %575 = tpu.matmul %574, %573, %cst_380 {dimension_numbers = #tpu.dot_dimension_numbers<[1], [0], [0], [1], [0, 0, 1, 1], [], []>} : vector<2x34xf32>, vector<34x32xf32>, vector<2x32xf32> -> vector<2x32xf32>
    %c0_381 = arith.constant 0 : index
    %c0_382 = arith.constant 0 : index
    %576 = vector.load %arg55[%c0_381, %c0_382] : memref<1x32xf32, #tpu.memory_space<vmem>>, vector<1x32xf32>
    %c0_383 = arith.constant 0 : index
    %c0_384 = arith.constant 0 : index
    %577 = vector.load %arg54[%c0_383, %c0_384] : memref<1x32xf32, #tpu.memory_space<vmem>>, vector<1x32xf32>
    %cst_385 = arith.constant dense<0.000000e+00> : vector<2xf32>
    %578 = vector.multi_reduction <add>, %575, %cst_385 [1] : vector<2x32xf32> to vector<2xf32>
    %579 = vector.shape_cast %578 : vector<2xf32> to vector<2x1xf32>
    %cst_386 = arith.constant 3.200000e+01 : f32
    %580 = vector.broadcast %cst_386 : f32 to vector<2x1xf32>
    %581 = arith.divf %579, %580 : vector<2x1xf32>
    %582 = vector.broadcast %581 : vector<2x1xf32> to vector<2x32xf32>
    %583 = arith.subf %575, %582 : vector<2x32xf32>
    %584 = arith.mulf %583, %583 : vector<2x32xf32>
    %cst_387 = arith.constant dense<0.000000e+00> : vector<2xf32>
    %585 = vector.multi_reduction <add>, %584, %cst_387 [1] : vector<2x32xf32> to vector<2xf32>
    %586 = vector.shape_cast %585 : vector<2xf32> to vector<2x1xf32>
    %cst_388 = arith.constant 3.200000e+01 : f32
    %587 = vector.broadcast %cst_388 : f32 to vector<2x1xf32>
    %588 = arith.divf %586, %587 : vector<2x1xf32>
    %cst_389 = arith.constant 9.99999997E-7 : f32
    %589 = vector.broadcast %cst_389 : f32 to vector<2x1xf32>
    %590 = arith.addf %588, %589 : vector<2x1xf32>
    %591 = math.rsqrt %590 : vector<2x1xf32>
    %592 = vector.broadcast %591 : vector<2x1xf32> to vector<2x32xf32>
    %593 = arith.mulf %583, %592 : vector<2x32xf32>
    %594 = vector.broadcast %576 : vector<1x32xf32> to vector<2x32xf32>
    %595 = arith.mulf %593, %594 : vector<2x32xf32>
    %596 = vector.broadcast %577 : vector<1x32xf32> to vector<2x32xf32>
    %597 = arith.addf %595, %596 : vector<2x32xf32>
    %c0_390 = arith.constant 0 : index
    %c0_391 = arith.constant 0 : index
    %598 = vector.load %arg53[%c0_390, %c0_391] : memref<32x10xf32, #tpu.memory_space<vmem>>, vector<32x10xf32>
    %cst_392 = arith.constant dense<0.000000e+00> : vector<2x10xf32>
    %599 = tpu.matmul %597, %598, %cst_392 {dimension_numbers = #tpu.dot_dimension_numbers<[1], [0], [0], [1], [0, 0, 1, 1], [], []>} : vector<2x32xf32>, vector<32x10xf32>, vector<2x10xf32> -> vector<2x10xf32>
    %c0_393 = arith.constant 0 : index
    %c0_394 = arith.constant 0 : index
    %600 = vector.load %arg52[%c0_393, %c0_394] : memref<1x10xf32, #tpu.memory_space<vmem>>, vector<1x10xf32>
    %601 = vector.broadcast %600 : vector<1x10xf32> to vector<2x10xf32>
    %602 = arith.addf %599, %601 : vector<2x10xf32>
    %c0_395 = arith.constant 0 : index
    %c0_396 = arith.constant 0 : index
    %603 = vector.load %arg57[%c0_395, %c0_396] : memref<2x10xf32, #tpu.memory_space<vmem>>, vector<2x10xf32>
    tpu.vector_store %arg57[%c0_395, %c0_396], %602 {strides = array<i32>} : memref<2x10xf32, #tpu.memory_space<vmem>>, vector<2x10xf32>,
    return
  }
}

</mosaic_0001>

<bundles_post_ra>
// kernel: vit_forward.1
= control target key start
LH: loop header
LB: loop body
LE: loop exit
PB: predicated region body
PF: predicated region fallthrough
CT: control target
= control target key end

     0   :  { %s6152_s6 = smov 1   ;;  %s6153_s10 = smov 2   ;;  %s8032_s0 = inlined_call_operand.smem [shape: u32[58], index: -1, kind: input, shape index: {}] }
   0x1   :  { %s6227_s5 = sld [smem:[%s8032_s0]]   ;;  %s6154_s14 = smov 3  }
   0x2   :  { %s6232_s9 = sld [smem:[%s8032_s0 + %s6152_s6]]   ;;  %s6155_s18 = smov 4  }
   0x3   :  { %s6237_s13 = sld [smem:[%s8032_s0 + %s6153_s10]]   ;;  %s6156_s22 = smov 5  }
   0x4   :  { %s6242_s17 = sld [smem:[%s8032_s0 + %s6154_s14]]   ;;  %s6157_s26 = smov 6  }
   0x5   :  { %s6247_s21 = sld [smem:[%s8032_s0 + %s6155_s18]]   ;;  %s6158_s30 = smov 7  }
   0x6   :  { %s6252_s25 = sld [smem:[%s8032_s0 + %s6156_s22]]   ;;  %s6159_s4 = smov 8  }
   0x7   :  { %s6257_s29 = sld [smem:[%s8032_s0 + %s6157_s26]]   ;;  %s6160_s10 = smov 9  }
   0x8   :  { %s6262_s3 = sld [smem:[%s8032_s0 + %s6158_s30]]   ;;  %s6161_s15 = smov 10  }
   0x9   :  { %8053 = sst [smem:[#allocation23_spill]] %s6237_s13  ;;  %s6162_s20 = smov 11  }
   0xa   :  { %8054 = sst [smem:[#allocation24_spill]] %s6242_s17  ;;  %s6163_s26 = smov 12  }
   0xb   :  { %8055 = sst [smem:[#allocation25_spill]] %s6247_s21  ;;  %s6164_s1 = smov 13  }
   0xc   :  { %8056 = sst [smem:[#allocation26_spill]] %s6252_s25  ;;  %s6165_s7 = smov 14  }
   0xd   :  { %8057 = sst [smem:[#allocation27_spill]] %s6257_s29  ;;  %s6167_s22 = smov 16  }
   0xe   :  { %8058 = sst [smem:[#allocation28_spill]] %s6262_s3  ;;  %s6168_s28 = smov 17  }
   0xf   :  { %s6267_s8 = sld [smem:[%s8032_s0 + %s6159_s4]]  }
  0x10   :  { %s6272_s14 = sld [smem:[%s8032_s0 + %s6160_s10]]  }
  0x11   :  { %s6277_s19 = sld [smem:[%s8032_s0 + %s6161_s15]]   ;;  %s6166_s15 = smov 15  }
  0x12   :  { %s6282_s24 = sld [smem:[%s8032_s0 + %s6162_s20]]  }
  0x13   :  { %s6287_s30 = sld [smem:[%s8032_s0 + %s6163_s26]]  }
  0x14   :  { %s6292_s6 = sld [smem:[%s8032_s0 + %s6164_s1]]  }
  0x15   :  { %8059 = sst [smem:[#allocation29_spill]] %s6267_s8 }
  0x16   :  { %8060 = sst [smem:[#allocation30_spill]] %s6272_s14 }
  0x17   :  { %8061 = sst [smem:[#allocation31_spill]] %s6277_s19 }
  0x18   :  { %8062 = sst [smem:[#allocation32_spill]] %s6282_s24 }
  0x19   :  { %8063 = sst [smem:[#allocation33_spill]] %s6287_s30 }
  0x1a   :  { %8064 = sst [smem:[#allocation34_spill]] %s6292_s6 }
  0x1b   :  { %s6297_s12 = sld [smem:[%s8032_s0 + %s6165_s7]]   ;;  %s6169_s7 = smov 18  }
  0x1c   :  { %s6302_s20 = sld [smem:[%s8032_s0 + %s6166_s15]]   ;;  %s6170_s15 = smov 19  }
  0x1d   :  { %s6307_s27 = sld [smem:[%s8032_s0 + %s6167_s22]]   ;;  %s6171_s22 = smov 20  }
  0x1e   :  { %s6312_s4 = sld [smem:[%s8032_s0 + %s6168_s28]]   ;;  %s6172_s28 = smov 21  }
  0x1f   :  { %s6317_s8 = sld [smem:[%s8032_s0 + %s6169_s7]]   ;;  %s6173_s7 = smov 22  }
  0x20   :  { %s6322_s3 = sld [smem:[%s8032_s0 + %s6170_s15]]   ;;  %s6174_s15 = smov 23  }
  0x21   :  { %s6327_s19 = sld [smem:[%s8032_s0 + %s6171_s22]]   ;;  %s6175_s22 = smov 24  }
  0x22   :  { %8065 = sst [smem:[#allocation35_spill]] %s6302_s20 }
  0x23   :  { %8066 = sst [smem:[#allocation36_spill]] %s6307_s27 }
  0x24   :  { %s6332_s30 = sld [smem:[%s8032_s0 + %s6172_s28]]   ;;  %s6176_s28 = smov 25  }
  0x25   :  { %s6337_s14 = sld [smem:[%s8032_s0 + %s6173_s7]]   ;;  %s6177_s7 = smov 26  }
  0x26   :  { %8067 = sst [smem:[#allocation37_spill]] %s6322_s3 }
  0x27   :  { %8068 = sst [smem:[#allocation38_spill]] %s6327_s19 }
  0x28   :  { %s6342_s24 = sld [smem:[%s8032_s0 + %s6174_s15]]   ;;  %s6178_s15 = smov 27  }
  0x29   :  { %s6347_s3 = sld [smem:[%s8032_s0 + %s6175_s22]]   ;;  %s6179_s22 = smov 28  }
  0x2a   :  { %8069 = sst [smem:[#allocation39_spill]] %s6332_s30 }
  0x2b   :  { %8070 = sst [smem:[#allocation40_spill]] %s6337_s14 }
  0x2c   :  { %s6352_s19 = sld [smem:[%s8032_s0 + %s6176_s28]]   ;;  %s6180_s28 = smov 29  }
  0x2d   :  { %s6357_s14 = sld [smem:[%s8032_s0 + %s6177_s7]]   ;;  %s6181_s7 = smov 30  }
  0x2e   :  { %s6362_s30 = sld [smem:[%s8032_s0 + %s6178_s15]]   ;;  %s6182_s15 = smov 31  }
  0x2f   :  { %8071 = sst [smem:[#allocation41_spill]] %s6347_s3 }
  0x30   :  { %s6367_s21 = sld [smem:[%s8032_s0 + %s6179_s22]]   ;;  %s6183_s22 = smov 32  }
  0x31   :  { %s6372_s17 = sld [smem:[%s8032_s0 + %s6180_s28]]   ;;  %s6184_s28 = smov 33  }
  0x32   :  { %s6377_s29 = sld [smem:[%s8032_s0 + %s6181_s7]]   ;;  %s6185_s7 = smov 34  }
  0x34   :  { %8072 = sst [smem:[#allocation42_spill]] %s6362_s30 }
  0x35   :  { %s6382_s30 = sld [smem:[%s8032_s0 + %s6182_s15]]   ;;  %s6186_s15 = smov 35  }
  0x36   :  { %8073 = sst [smem:[#allocation43_spill]] %s6367_s21 }
  0x37   :  { %8074 = sst [smem:[#allocation44_spill]] %s6372_s17 }
  0x38   :  { %8075 = sst [smem:[#allocation45_spill]] %s6377_s29 }
  0x39   :  { %s6387_s21 = sld [smem:[%s8032_s0 + %s6183_s22]]   ;;  %s6187_s22 = smov 36  }
  0x3a   :  { %s6392_s17 = sld [smem:[%s8032_s0 + %s6184_s28]]   ;;  %s6188_s28 = smov 37  }
  0x3b   :  { %8076 = sst [smem:[#allocation46_spill]] %s6382_s30 }
  0x3c   :  { %s6397_s29 = sld [smem:[%s8032_s0 + %s6185_s7]]   ;;  %s6189_s7 = smov 38  }
  0x3d   :  { %s6402_s30 = sld [smem:[%s8032_s0 + %s6186_s15]]   ;;  %s6190_s15 = smov 39  }
  0x3f   :  { %8077 = sst [smem:[#allocation47_spill]] %s6387_s21 }
  0x40   :  { %8078 = sst [smem:[#allocation48_spill]] %s6392_s17 }
  0x41   :  { %s6407_s21 = sld [smem:[%s8032_s0 + %s6187_s22]]   ;;  %s6191_s22 = smov 40  }
  0x42   :  { %8079 = sst [smem:[#allocation49_spill]] %s6397_s29 }
  0x43   :  { %8080 = sst [smem:[#allocation50_spill]] %s6402_s30 }
  0x44   :  { %s6412_s17 = sld [smem:[%s8032_s0 + %s6188_s28]]   ;;  %s6192_s28 = smov 41  }
  0x45   :  { %s6417_s29 = sld [smem:[%s8032_s0 + %s6189_s7]]   ;;  %s6193_s7 = smov 42  }
  0x46   :  { %s6422_s30 = sld [smem:[%s8032_s0 + %s6190_s15]]   ;;  %s6194_s15 = smov 43  }
  0x47   :  { %8081 = sst [smem:[#allocation51_spill]] %s6407_s21 }
  0x48   :  { %s6427_s21 = sld [smem:[%s8032_s0 + %s6191_s22]]   ;;  %s6195_s22 = smov 44  }
  0x49   :  { %s6432_s6 = sld [smem:[%s8032_s0 + %s6192_s28]]   ;;  %s6196_s28 = smov 45  }
  0x4a   :  { %s6452_s25 = sld [smem:[%s8032_s0 + %s6196_s28]]   ;;  %s6200_s28 = smov 49  }
  0x4b   :  { %8082 = sst [smem:[#allocation52_spill]] %s6417_s29 }
  0x4c   :  { %8083 = sst [smem:[#allocation53_spill]] %s6422_s30 }
  0x4d   :  { %s6437_s29 = sld [smem:[%s8032_s0 + %s6193_s7]]   ;;  %s6197_s7 = smov 46  }
  0x4e   :  { %8084 = sst [smem:[#allocation54_spill]] %s6427_s21 }
  0x4f   :  { %s6442_s30 = sld [smem:[%s8032_s0 + %s6194_s15]]   ;;  %s6198_s15 = smov 47  }
  0x50   :  { %s6447_s21 = sld [smem:[%s8032_s0 + %s6195_s22]]   ;;  %s6199_s22 = smov 48  }
  0x51   :  { %8085 = sst [smem:[#allocation55_spill]] %s6452_s25 }
  0x52   :  { %s6457_s3 = sld [smem:[%s8032_s0 + %s6197_s7]]   ;;  %s6201_s7 = smov 50  }
  0x53   :  { %s6462_s13 = sld [smem:[%s8032_s0 + %s6198_s15]]   ;;  %s6202_s15 = smov 51  }
  0x54   :  { %s6467_s27 = sld [smem:[%s8032_s0 + %s6199_s22]]   ;;  %s6203_s22 = smov 52  }
  0x55   :  { %s6472_s25 = sld [smem:[%s8032_s0 + %s6200_s28]]   ;;  %s6204_s28 = smov 53  }
  0x58   :  { %8086 = sst [smem:[#allocation56_spill]] %s6457_s3 }
  0x59   :  { %8087 = sst [smem:[#allocation57_spill]] %s6462_s13 }
  0x5a   :  { %8088 = sst [smem:[#allocation58_spill]] %s6467_s27 }
  0x5b   :  { %8089 = sst [smem:[#allocation59_spill]] %s6472_s25 }
  0x5c   :  { %s6477_s3 = sld [smem:[%s8032_s0 + %s6201_s7]]   ;;  %s6205_s7 = smov 54  }
  0x5d   :  { %s6482_s13 = sld [smem:[%s8032_s0 + %s6202_s15]]   ;;  %s6206_s15 = smov 55  }
  0x5e   :  { %s6487_s27 = sld [smem:[%s8032_s0 + %s6203_s22]]   ;;  %s6207_s22 = smov 56  }
  0x5f   :  { %s6492_s25 = sld [smem:[%s8032_s0 + %s6204_s28]]   ;;  %s6208_s28 = smov 57  }
  0x60   :  { %s6507_s20 = sld [smem:[%s8032_s0 + %s6207_s22]]  }
  0x62   :  { %8090 = sst [smem:[#allocation60_spill]] %s6477_s3 }
  0x63   :  { %8091 = sst [smem:[#allocation61_spill]] %s6482_s13 }
  0x64   :  { %s6497_s3 = sld [smem:[%s8032_s0 + %s6205_s7]]  }
  0x65   :  { %8092 = sst [smem:[#allocation62_spill]] %s6492_s25 }
  0x66   :  { %s6502_s13 = sld [smem:[%s8032_s0 + %s6206_s15]]  }
  0x67   :  { %s6512_s25 = sld [smem:[%s8032_s0 + %s6208_s28]]  }
  0x68   :  { %120 = vsyncpa [#allocation3], 0 }
  0x69   :  { %121 = vsyncpa [#allocation6], 0 }
  0x6a   :  { %122 = vsyncpa [#allocation9], 0 }
  0x6b   :  { %123 = vsyncpa [#allocation12], 0 }
  0x6c   :  { %124 = vsyncpa [#allocation15], 0  ;;  %s222_s7 = sshll.u32 %s6432_s6, 4  ;;  %s223_s7 = int_to_ptr.hbm [resolvable:$true] %s222_s7 }
  0x6d   :  { %125 = vsyncpa [#allocation4], 0  ;;  %s6209_s10 = smov [#allocation5]   ;;  %s244_s15 = sshll.u32 %s6442_s30, 4  ;;  %s245_s15 = int_to_ptr.hbm [resolvable:$true] %s244_s15 }
  0x6e   :  { %s224_s11 = sshll.u32 %s6209_s10, 4  ;;  %s5924_s16 = sshra.s32 %s223_s7, 4  ;;  %s225_s11 = int_to_ptr.vmem [resolvable:$true] %s224_s11  ;;  %s5925_s16 = int_to_ptr.hbm [resolvable:$true] %s5924_s16 }
  0x6f   :  { %s5926_s0 = scalar_lea.hbm %s5925_s16, 1  ;;  %s5928_s18 = scalar_lea.hbm %s6432_s6, 1 }
  0x70   :  { %p5927_p0 = scmp.ne.s32.totalorder %s5925_s16, %s5926_s0  ;;  %p5929_p1 = scmp.lt.s32.totalorder %s5925_s16, %s6432_s6 }
  0x71   :  { %p5930_p2 = scmp.lt.s32.totalorder %s5928_s18, %s5926_s0 }
  0x73   :  { %p5931_p3 = por %p5930_p2, %p5929_p1 }
  0x75   :  { %p5932_p4 = pnand %p5931_p3, %p5927_p0 }
  0x77   :  { %5935 = shalt.err (!%p5932_p4)
}
  0x78   :  { %227 = dma.hbm_to_vmem [thread:$0]  %s223_s7, 16, %s225_s11, [#allocation6]  }
  0x79   :  { %s6210_s22 = smov [#allocation8]   ;;  %s280_s26 = sshll.u32 %s6487_s27, 4  ;;  %s281_s26 = int_to_ptr.hbm [resolvable:$true] %s280_s26 }
  0x7a   :  { %s246_s23 = sshll.u32 %s6210_s22, 4  ;;  %s5948_s28 = sshra.s32 %s245_s15, 4  ;;  %s247_s23 = int_to_ptr.vmem [resolvable:$true] %s246_s23  ;;  %s5949_s28 = int_to_ptr.hbm [resolvable:$true] %s5948_s28 }
  0x7b   :  { %s5950_s1 = scalar_lea.hbm %s5949_s28, 1  ;;  %s5952_s2 = scalar_lea.hbm %s6442_s30, 1 }
  0x7c   :  { %p5951_p5 = scmp.ne.s32.totalorder %s5949_s28, %s5950_s1  ;;  %p5953_p6 = scmp.lt.s32.totalorder %s5949_s28, %s6442_s30 }
  0x7d   :  { %p5954_p7 = scmp.lt.s32.totalorder %s5952_s2, %s5950_s1 }
  0x7f   :  { %p5955_p8 = por %p5954_p7, %p5953_p6 }
  0x81   :  { %p5956_p9 = pnand %p5955_p8, %p5951_p5 }
  0x83   :  { %5959 = shalt.err (!%p5956_p9)
}
  0x84   :  { %249 = dma.hbm_to_vmem [thread:$0]  %s245_s15, 16, %s247_s23, [#allocation9]  }
  0x85   :  { %s205_s6 = sshll.u32 %s6412_s17, 4  ;;  %s6211_s7 = smov [#allocation11]   ;;  %s206_s6 = int_to_ptr.hbm [resolvable:$true] %s205_s6 }
  0x86   :  { %s282_s10 = sshll.u32 %s6211_s7, 4  ;;  %s5972_s11 = sshra.s32 %s281_s26, 4  ;;  %s283_s10 = int_to_ptr.vmem [resolvable:$true] %s282_s10  ;;  %s5973_s11 = int_to_ptr.hbm [resolvable:$true] %s5972_s11 }
  0x87   :  { %s5974_s16 = scalar_lea.hbm %s5973_s11, 1  ;;  %s5976_s0 = scalar_lea.hbm %s6487_s27, 1 }
  0x88   :  { %p5975_p10 = scmp.ne.s32.totalorder %s5973_s11, %s5974_s16  ;;  %p5977_p11 = scmp.lt.s32.totalorder %s5973_s11, %s6487_s27 }
  0x89   :  { %p5978_p12 = scmp.lt.s32.totalorder %s5976_s0, %s5974_s16 }
  0x8b   :  { %p5979_p13 = por %p5978_p12, %p5977_p11 }
  0x8d   :  { %p5980_p0 = pnand %p5979_p13, %p5975_p10 }
  0x8f   :  { %5983 = shalt.err (!%p5980_p0)
}
  0x90   :  { %285 = dma.hbm_to_vmem [thread:$0]  %s281_s26, 16, %s283_s10, [#allocation12]  }
  0x91   :  { %s6212_s30 = smov [#allocation2]   ;;  %s233_s18 = sshll.u32 %s6437_s29, 4  ;;  %s234_s18 = int_to_ptr.hbm [resolvable:$true] %s233_s18 }
  0x92   :  { %s207_s15 = sshll.u32 %s6212_s30, 4  ;;  %s5996_s22 = sshra.s32 %s206_s6, 4  ;;  %s208_s15 = int_to_ptr.vmem [resolvable:$true] %s207_s15  ;;  %s5997_s22 = int_to_ptr.hbm [resolvable:$true] %s5996_s22 }
  0x93   :  { %s5998_s23 = scalar_lea.hbm %s5997_s22, 1  ;;  %s6000_s28 = scalar_lea.hbm %s6412_s17, 1 }
  0x94   :  { %p5999_p1 = scmp.ne.s32.totalorder %s5997_s22, %s5998_s23  ;;  %p6001_p2 = scmp.lt.s32.totalorder %s5997_s22, %s6412_s17 }
  0x95   :  { %p6002_p3 = scmp.lt.s32.totalorder %s6000_s28, %s5998_s23 }
  0x97   :  { %p6003_p4 = por %p6002_p3, %p6001_p2 }
  0x99   :  { %p6004_p5 = pnand %p6003_p4, %p5999_p1 }
  0x9b   :  { %6007 = shalt.err (!%p6004_p5)
}
  0x9c   :  { %210 = dma.hbm_to_vmem [thread:$0]  %s206_s6, 16, %s208_s15, [#allocation3]  }
  0x9d   :  { %s255_s27 = sshll.u32 %s6447_s21, 4  ;;  %s6213_s26 = smov [#allocation7]   ;;  %s256_s27 = int_to_ptr.hbm [resolvable:$true] %s255_s27 }
  0x9e   :  { %s235_s1 = sshll.u32 %s6213_s26, 4  ;;  %s6020_s2 = sshra.s32 %s234_s18, 4  ;;  %s236_s1 = int_to_ptr.vmem [resolvable:$true] %s235_s1  ;;  %s6021_s2 = int_to_ptr.hbm [resolvable:$true] %s6020_s2 }
  0x9f   :  { %s6022_s7 = scalar_lea.hbm %s6021_s2, 1  ;;  %s6024_s10 = scalar_lea.hbm %s6437_s29, 1 }
  0xa0   :  { %p6023_p6 = scmp.ne.s32.totalorder %s6021_s2, %s6022_s7  ;;  %p6025_p7 = scmp.lt.s32.totalorder %s6021_s2, %s6437_s29 }
  0xa1   :  { %p6026_p8 = scmp.lt.s32.totalorder %s6024_s10, %s6022_s7 }
  0xa3   :  { %p6027_p9 = por %p6026_p8, %p6025_p7 }
  0xa5   :  { %p6028_p10 = pnand %p6027_p9, %p6023_p6 }
  0xa7   :  { %6031 = shalt.err (!%p6028_p10)
}
  0xa8   :  { %238 = dma.hbm_to_vmem [thread:$0]  %s234_s18, 16, %s236_s1, [#allocation6]  }
  0xa9   :  { %s6214_s17 = smov [#allocation10]   ;;  %s293_s11 = sshll.u32 %s6497_s3, 4  ;;  %s294_s11 = int_to_ptr.hbm [resolvable:$true] %s293_s11 }
  0xaa   :  { %s257_s6 = sshll.u32 %s6214_s17, 4  ;;  %s6044_s16 = sshra.s32 %s256_s27, 4  ;;  %s258_s6 = int_to_ptr.vmem [resolvable:$true] %s257_s6  ;;  %s6045_s16 = int_to_ptr.hbm [resolvable:$true] %s6044_s16 }
  0xab   :  { %s6046_s0 = scalar_lea.hbm %s6045_s16, 1  ;;  %s6048_s30 = scalar_lea.hbm %s6447_s21, 1 }
  0xac   :  { %p6047_p11 = scmp.ne.s32.totalorder %s6045_s16, %s6046_s0  ;;  %p6049_p12 = scmp.lt.s32.totalorder %s6045_s16, %s6447_s21 }
  0xad   :  { %p6050_p13 = scmp.lt.s32.totalorder %s6048_s30, %s6046_s0 }
  0xaf   :  { %p6051_p0 = por %p6050_p13, %p6049_p12 }
  0xb1   :  { %p6052_p1 = pnand %p6051_p0, %p6047_p11 }
  0xb3   :  { %6055 = shalt.err (!%p6052_p1)
}
  0xb4   :  { %260 = dma.hbm_to_vmem [thread:$0]  %s256_s27, 16, %s258_s6, [#allocation9]  }
  0xb5   :  { %s304_s29 = sshll.u32 %s6502_s13, 4  ;;  %s6215_s15 = smov [#allocation13]   ;;  %s305_s29 = int_to_ptr.hbm [resolvable:$true] %s304_s29 }
  0xb6   :  { %s295_s18 = sshll.u32 %s6215_s15, 4  ;;  %s6068_s22 = sshra.s32 %s294_s11, 4  ;;  %s296_s18 = int_to_ptr.vmem [resolvable:$true] %s295_s18  ;;  %s6069_s22 = int_to_ptr.hbm [resolvable:$true] %s6068_s22 }
  0xb7   :  { %s6070_s23 = scalar_lea.hbm %s6069_s22, 1  ;;  %s6072_s28 = scalar_lea.hbm %s6497_s3, 1 }
  0xb8   :  { %p6071_p2 = scmp.ne.s32.totalorder %s6069_s22, %s6070_s23  ;;  %p6073_p3 = scmp.lt.s32.totalorder %s6069_s22, %s6497_s3 }
  0xb9   :  { %p6074_p4 = scmp.lt.s32.totalorder %s6072_s28, %s6070_s23 }
  0xbb   :  { %p6075_p5 = por %p6074_p4, %p6073_p3 }
  0xbd   :  { %p6076_p6 = pnand %p6075_p5, %p6071_p2 }
  0xbf   :  { %6079 = shalt.err (!%p6076_p6)
}
  0xc0   :  { %298 = dma.hbm_to_vmem [thread:$0]  %s294_s11, 16, %s296_s18, [#allocation12]  }
  0xc1   :  { %s6216_s21 = smov [#allocation14]   ;;  %s6092_s26 = sshra.s32 %s305_s29, 4  ;;  %s6093_s26 = int_to_ptr.hbm [resolvable:$true] %s6092_s26 }
  0xc2   :  { %s306_s27 = sshll.u32 %s6216_s21, 4  ;;  %s6094_s1 = scalar_lea.hbm %s6093_s26, 1  ;;  %s307_s27 = int_to_ptr.vmem [resolvable:$true] %s306_s27 }
  0xc3   :  { %p6095_p7 = scmp.ne.s32.totalorder %s6093_s26, %s6094_s1  ;;  %s6096_s2 = scalar_lea.hbm %s6502_s13, 1 }
  0xc4   :  { %p6097_p8 = scmp.lt.s32.totalorder %s6093_s26, %s6502_s13  ;;  %p6098_p9 = scmp.lt.s32.totalorder %s6096_s2, %s6094_s1 }
  0xc6   :  { %p6099_p10 = por %p6098_p9, %p6097_p8 }
  0xc8   :  { %p6100_p11 = pnand %p6099_p10, %p6095_p7 }
  0xca   :  { %6103 = shalt.err (!%p6100_p11)
}
  0xcb   :  { %309 = dma.hbm_to_vmem [thread:$0]  %s305_s29, 16, %s307_s27, [#allocation15]  }
  0xcc   :  { %6140 = dma.done.wait [#allocation3], 16  }
  0xcd   :  { %6141 = vsyncadd [#allocation3], 4294967280 }
  0xce   :  { %6142 = dma.done.wait [#allocation6], 32  }
  0xcf   :  { %6143 = vsyncadd [#allocation6], 4294967264 }
  0xd0   :  { %6144 = dma.done.wait [#allocation9], 32  }
  0xd1   :  { %6145 = vsyncadd [#allocation9], 4294967264 }
  0xd2   :  { %6146 = dma.done.wait [#allocation12], 32  }
  0xd3   :  { %6147 = vsyncadd [#allocation12], 4294967264 }
  0xd4   :  { %6148 = dma.done.wait [#allocation15], 16  }
  0xd5   :  { %6149 = vsyncadd [#allocation15], 4294967280  ;;  %v354_v0 = vld [vmem:[%s6507_s20 + $0x28] sm:$0xff]  ;;  %v353_v1 = vld [vmem:[%s6507_s20 + $0x20] sm:$0xff]  ;;  %vm360_vm0 = vcmask 392192   ;;  %vm415_vm1 = vcmask 261120  }
  0xd6   :  { %386 = vmatpush.msra.mxu0 %v354_v0  ;;  %v352_v2 = vld [vmem:[%s6507_s20 + $0x18] sm:$0xff]  ;;  %v351_v3 = vld [vmem:[%s6507_s20 + $0x10] sm:$0xff]  ;;  %v350_v4 = vld [vmem:[%s6507_s20 + $0x8] sm:$0xff]  ;;  %vm428_vm2 = vcmask 254976   ;;  %v6217_v31 = vmov 32.0   ;;  %s8095_s13 = sld [smem:[#allocation23_spill]] }
  0xd7   :  { %v349_v5 = vld [vmem:[%s6507_s20] sm:$0xff]  ;;  %v345_v7 = vld [vmem:[%s6227_s5 + $0x8] sm:$0xff]  ;;  %v346_v8 = vld [vmem:[%s6227_s5 + $0x10] sm:$0xff]  ;;  %5665 = vrcp.f32 %v6217_v31  ;;  %s8096_s3 = sld [smem:[#allocation41_spill]] }
  0xd8   :  { %387 = vmatpush.msra.mxu0 %v353_v1  ;;  %v344_v6 = vld [vmem:[%s6227_s5] sm:$0xff]  ;;  %v347_v9 = vld [vmem:[%s6227_s5 + $0x18] sm:$0xff]  ;;  %v356_v15 = vld [vmem:[%s6232_s9 + $0x8] sm:$0xff]  ;;  %s8102_s20 = sld [smem:[#allocation39_spill]] }
  0xd9   :  { %v348_v10 = vld [vmem:[%s6227_s5 + $0x20] sm:$0x3]  ;;  %v357_v19 = vld [vmem:[%s6232_s9 + $0x10] sm:$0xff]  ;;  %v358_v23 = vld [vmem:[%s6232_s9 + $0x18] sm:$0xff]  ;;  %s8093_s5 = sld [smem:[#allocation35_spill]] }
  0xda   :  { %388 = vmatpush.msra.mxu0 %v352_v2  ;;  %v355_v11 = vld [vmem:[%s6232_s9] sm:$0xff]  ;;  %v553_v63 = vld [vmem:[%s6352_s19 + $0x18] sm:$0xff]  ;;  %v552_v1 = vld [vmem:[%s6352_s19 + $0x10] sm:$0xff]  ;;  %s8104_s7 = sld [smem:[#allocation37_spill]] }
  0xdb   :  { %v359_v27 = vld [vmem:[%s6232_s9 + $0x20] sm:$0x3]  ;;  %v608_v0 = vld [vmem:[%s6342_s24 + $0x18] sm:$0xff]  ;;  %v607_v2 = vld [vmem:[%s6342_s24 + $0x10] sm:$0xff]  ;;  %5540 = vmatpush.msra.mxu1 %v553_v63  ;;  %5541 = vmatpush.msra.mxu3 %v553_v63  ;;  %s8094_s9 = sld [smem:[#allocation36_spill]] }
  0xdc   :  { %389 = vmatpush.msra.mxu0 %v351_v3  ;;  %625 = vmatpush.msra.mxu2 %v608_v0  ;;  %v551_v3 = vld [vmem:[%s6352_s19 + $0x8] sm:$0xff]  ;;  %s8105_s10 = sld [smem:[#allocation40_spill]] }
  0xdd   :  { %v5666_v32 = vpop.eup %5665  ;;  %5542 = vmatpush.msra.mxu1 %v552_v1  ;;  %5543 = vmatpush.msra.mxu3 %v552_v1  ;;  %s8106_s17 = sld [smem:[#allocation32_spill]] }
  0xde   :  { %390 = vmatpush.msra.mxu0 %v350_v4  ;;  %v433_v33 = vmul.f32 32.0, %v5666_v32  ;;  %vm437_vm3 = vweird.f32 %v5666_v32  ;;  %626 = vmatpush.msra.mxu2 %v607_v2  ;;  %v606_v4 = vld [vmem:[%s6342_s24 + $0x8] sm:$0xff]  ;;  %s8107_s6 = sld [smem:[#allocation30_spill]] }
  0xdf   :  { %5544 = vmatpush.msra.mxu1 %v551_v3  ;;  %5545 = vmatpush.msra.mxu3 %v551_v3  ;;  %s8108_s11 = sld [smem:[#allocation33_spill]] }
  0xe0   :  { %391 = vmatpush.msra.mxu0 %v349_v5  ;;  %v434_v34 = vsub.f32 1.0, %v433_v33  ;;  %627 = vmatpush.msra.mxu2 %v606_v4  ;;  %v550_v5 = vld [vmem:[%s6352_s19] sm:$0xff]  ;;  %s8109_s16 = sld [smem:[#allocation31_spill]] }
  0xe1   :  { %5094 = vmatmul.msk.f32.vlgmr.msra.gmra.mxu0 %vm360_vm0, %v344_v6  ;;  %v605_v6 = vld [vmem:[%s6342_s24] sm:$0xff]  ;;  %5546 = vmatpush.msra.mxu1 %v550_v5  ;;  %s8110_s0 = sld [smem:[#allocation28_spill]] }
  0xe2   :  { %v435_v35 = vmul.f32 %v5666_v32, %v434_v34  ;;  %585 = vmatpush.msrb.mxu0 %v553_v63  ;;  %628 = vmatpush.msra.mxu2 %v605_v6  ;;  %v6627_v33 = vld [vmem:[%s6317_s8] ss:$0 sm:$0xff]  ;;  %s8097_s8 = sld [smem:[#allocation26_spill]] }
  0xe3   :  { %5547 = vmatpush.msra.mxu3 %v550_v5  ;;  %s8111_s30 = sld [smem:[#allocation29_spill]] }
  0xe4   :  { %v436_v36 = vadd.f32 %v5666_v32, %v435_v35  ;;  %586 = vmatpush.msrb.mxu0 %v552_v1  ;;  %s8112_s29 = sld [smem:[#allocation57_spill]] }
  0xe5   :  { %s8113_s15 = sld [smem:[#allocation59_spill]] }
  0xe6   :  { %v6574_v37 = vsel %vm437_vm3, %v5666_v32, %v436_v36  ;;  %587 = vmatpush.msrb.mxu0 %v551_v3  ;;  %v6630_v36 = vld [vmem:[%s6312_s4] ss:$0 sm:$0xff]  ;;  %s8103_s4 = sld [smem:[#allocation38_spill]] }
  0xe7   :  { %v645_v3 = vld [vmem:[%s6357_s14] sm:$0xff]  ;;  %s8114_s18 = sld [smem:[#allocation60_spill]] }
  0xe8   :  { %588 = vmatpush.msrb.mxu0 %v550_v5  ;;  %s8115_s22 = sld [smem:[#allocation52_spill]] }
  0xe9   :  { %5095 = vmatmul.msk.f32.gmra.mxu0 %vm360_vm0, %v345_v7  ;;  %v5143_v7 = vld [vmem:[%s6342_s24 + $0x38] sm:$0xff]  ;;  %s8116_s23 = sld [smem:[#allocation54_spill]] }
  0xea   :  { %931 = vmatpush.msra.mxu0 %v5143_v7  ;;  %s8117_s28 = sld [smem:[#allocation53_spill]] }
  0xeb   :  { %s8118_s21 = sld [smem:[#allocation58_spill]] }
  0xec   :  { %s8119_s27 = sld [smem:[#allocation44_spill]] }
  0xed   :  { %s8120_s26 = sld [smem:[#allocation45_spill]] }
  0xee   :  { %s8121_s1 = sld [smem:[#allocation42_spill]] }
  0xef   :  { %s8122_s2 = sld [smem:[#allocation43_spill]] }
  0xf1   :  { %5096 = vmatmul.msk.f32.gmra.mxu0 %vm360_vm0, %v346_v8  ;;  %v5142_v8 = vld [vmem:[%s6342_s24 + $0x30] sm:$0xff] }
  0xf2   :  { %932 = vmatpush.msra.mxu0 %v5142_v8 }
  0xf9   :  { %5097 = vmatmul.msk.f32.gmra.mxu0 %vm360_vm0, %v347_v9 }
 0x101   :  { %5098 = vmatmul.msk.f32.gmra.mxu0 %vm360_vm0, %v348_v10 }
 0x15e   :  { %v393_v12 = vpop.f32.mrf.mxu0 }
 0x15f   :  { %v6550_v13 = vadd.f32 %v393_v12, %v355_v11  ;;  %v5141_v11 = vld [vmem:[%s6342_s24 + $0x28] sm:$0xff] }
 0x160   :  { %933 = vmatpush.msra.mxu0 %v5141_v11 }
 0x161   :  { %v416_v14 = vsel %vm415_vm1, %v6550_v13, 0.0 }
 0x162   :  { %417 = vadd.xlane.f32.xlu0 %v416_v14  ;;  %v5140_v14 = vld [vmem:[%s6342_s24 + $0x20] sm:$0xff] }
 0x163   :  { %934 = vmatpush.msra.mxu0 %v5140_v14 }
 0x166   :  { %v396_v16 = vpop.f32.mrf.mxu0 }
 0x167   :  { %v6555_v17 = vadd.f32 %v396_v16, %v356_v15 }
 0x169   :  { %v419_v18 = vsel %vm415_vm1, %v6555_v17, 0.0 }
 0x16a   :  { %420 = vadd.xlane.f32.xlu0 %v419_v18 }
 0x16e   :  { %v399_v20 = vpop.f32.mrf.mxu0 }
 0x16f   :  { %v6560_v21 = vadd.f32 %v399_v20, %v357_v19 }
 0x171   :  { %v422_v22 = vsel %vm415_vm1, %v6560_v21, 0.0 }
 0x172   :  { %423 = vadd.xlane.f32.xlu1 %v422_v22 }
 0x176   :  { %v402_v24 = vpop.f32.mrf.mxu0 }
 0x177   :  { %v6565_v25 = vadd.f32 %v402_v24, %v358_v23 }
 0x179   :  { %v425_v26 = vsel %vm415_vm1, %v6565_v25, 0.0 }
 0x17a   :  { %426 = vadd.xlane.f32.xlu1 %v425_v26 }
 0x17e   :  { %v405_v28 = vpop.f32.mrf.mxu0 }
 0x17f   :  { %v6570_v29 = vadd.f32 %v405_v28, %v359_v27 }
 0x181   :  { %v429_v30 = vsel %vm428_vm2, %v6570_v29, 0.0 }
 0x182   :  { %430 = vadd.xlane.f32.xlu2 %v429_v30 }
 0x1d5   :  { %v418_v38 = vpop.xlane.xlu0 %417 }
 0x1d6   :  { %v439_v39 = vmul.f32 %v6574_v37, %v418_v38 }
 0x1d8   :  { %v6578_v40 = vsub.f32 %v6550_v13, %v439_v39 }
 0x1da   :  { %v449_v41 = vmul.f32 %v6578_v40, %v6578_v40 }
 0x1dc   :  { %v454_v42 = vsel %vm415_vm1, %v449_v41, 0.0 }
 0x1dd   :  { %455 = vadd.xlane.f32.xlu2 %v454_v42  ;;  %v421_v43 = vpop.xlane.xlu0 %420 }
 0x1de   :  { %v440_v44 = vmul.f32 %v6574_v37, %v421_v43 }
 0x1e0   :  { %v6585_v45 = vsub.f32 %v6555_v17, %v440_v44 }
 0x1e2   :  { %v450_v46 = vmul.f32 %v6585_v45, %v6585_v45 }
 0x1e4   :  { %v457_v47 = vsel %vm415_vm1, %v450_v46, 0.0 }
 0x1e5   :  { %v424_v48 = vpop.xlane.xlu1 %423  ;;  %458 = vadd.xlane.f32.xlu0 %v457_v47 }
 0x1e6   :  { %v441_v49 = vmul.f32 %v6574_v37, %v424_v48 }
 0x1e8   :  { %v6592_v50 = vsub.f32 %v6560_v21, %v441_v49 }
 0x1ea   :  { %v451_v51 = vmul.f32 %v6592_v50, %v6592_v50 }
 0x1ec   :  { %v460_v52 = vsel %vm415_vm1, %v451_v51, 0.0 }
 0x1ed   :  { %461 = vadd.xlane.f32.xlu1 %v460_v52  ;;  %v427_v53 = vpop.xlane.xlu1 %426 }
 0x1ee   :  { %v442_v54 = vmul.f32 %v6574_v37, %v427_v53  ;;  %v648_v53 = vld [vmem:[%s6357_s14 + $0x18] sm:$0xff] }
 0x1ef   :  { %665 = vmatpush.msrb.mxu3 %v648_v53 }
 0x1f0   :  { %v6599_v55 = vsub.f32 %v6565_v25, %v442_v54  ;;  %v647_v54 = vld [vmem:[%s6357_s14 + $0x10] sm:$0xff] }
 0x1f1   :  { %666 = vmatpush.msrb.mxu3 %v647_v54 }
 0x1f2   :  { %v452_v56 = vmul.f32 %v6599_v55, %v6599_v55 }
 0x1f4   :  { %v463_v57 = vsel %vm415_vm1, %v452_v56, 0.0 }
 0x1f5   :  { %v431_v58 = vpop.xlane.xlu2 %430  ;;  %464 = vadd.xlane.f32.xlu2 %v463_v57 }
 0x1f6   :  { %v443_v59 = vmul.f32 %v6574_v37, %v431_v58 }
 0x1f8   :  { %v6606_v60 = vsub.f32 %v6570_v29, %v443_v59  ;;  %v646_v59 = vld [vmem:[%s6357_s14 + $0x8] sm:$0xff] }
 0x1f9   :  { %667 = vmatpush.msrb.mxu3 %v646_v59 }
 0x1fa   :  { %v453_v61 = vmul.f32 %v6606_v60, %v6606_v60 }
 0x1fb   :  { %668 = vmatpush.msrb.mxu3 %v645_v3 }
 0x1fc   :  { %v466_v62 = vsel %vm428_vm2, %v453_v61, 0.0 }
 0x1fd   :  { %467 = vadd.xlane.f32.xlu0 %v466_v62 }
 0x250   :  { %v456_v9 = vpop.xlane.xlu2 %455 }
 0x251   :  { %v469_v10 = vmul.f32 %v456_v9, %v6574_v37 }
 0x253   :  { %v474_v12 = vadd.f32 1e-06, %v469_v10 }
 0x255   :  { %5667 = vrsqrt.f32 %v474_v12  ;;  %vm485_vm5 = vweird.f32 %v474_v12 }
 0x258   :  { %v459_v15 = vpop.xlane.xlu0 %458 }
 0x259   :  { %v470_v16 = vmul.f32 %v459_v15, %v6574_v37 }
 0x25b   :  { %v5668_v18 = vpop.eup %5667  ;;  %v475_v19 = vadd.f32 1e-06, %v470_v16 }
 0x25c   :  { %v480_v20 = vmul.f32 %v5668_v18, %v474_v12  ;;  %vm486_vm4 = vweird.f32 %v5668_v18 }
 0x25d   :  { %5669 = vrsqrt.f32 %v475_v19  ;;  %vm487_vm6 = vmor %vm485_vm5, %vm486_vm4  ;;  %vm495_vm8 = vweird.f32 %v475_v19  ;;  %vm685_vm5 = vcmask 64512  }
 0x25e   :  { %v481_v22 = vmul.f32 %v5668_v18, %v480_v20 }
 0x260   :  { %v482_v23 = vmul.f32 0.5, %v481_v22  ;;  %v462_v24 = vpop.xlane.xlu1 %461 }
 0x261   :  { %v471_v26 = vmul.f32 %v462_v24, %v6574_v37 }
 0x262   :  { %v483_v27 = vsub.f32 1.5, %v482_v23 }
 0x263   :  { %v5670_v28 = vpop.eup %5669  ;;  %v476_v30 = vadd.f32 1e-06, %v471_v26 }
 0x264   :  { %v484_v31 = vmul.f32 %v5668_v18, %v483_v27  ;;  %v490_v32 = vmul.f32 %v5670_v28, %v475_v19  ;;  %vm496_vm7 = vweird.f32 %v5670_v28 }
 0x265   :  { %5671 = vrsqrt.f32 %v476_v30  ;;  %vm497_vm9 = vmor %vm495_vm8, %vm496_vm7  ;;  %vm505_vm11 = vweird.f32 %v476_v30  ;;  %vm758_vm7 = vcmask 277504   ;;  %vm771_vm8 = vcmask 271360  }
 0x266   :  { %v488_v34 = vsel %vm487_vm6, %v5668_v18, %v484_v31  ;;  %v491_v35 = vmul.f32 %v5670_v28, %v490_v32  ;;  %v5132_v31 = vld [vmem:[%s6352_s19 + $0x30] sm:$0xff]  ;;  %v5130_v32 = vld [vmem:[%s6352_s19 + $0x20] sm:$0xff]  ;;  %vm830_vm6 = vcmask 1041408  }
 0x267   :  { %v529_v38 = vmul.f32 %v488_v34, %v6578_v40 }
 0x268   :  { %v492_v39 = vmul.f32 0.5, %v491_v35  ;;  %v465_v41 = vpop.xlane.xlu2 %464 }
 0x269   :  { %v537_v42 = vmul.f32 %v6627_v33, %v529_v38  ;;  %v472_v43 = vmul.f32 %v465_v41, %v6574_v37 }
 0x26a   :  { %v493_v44 = vsub.f32 1.5, %v492_v39  ;;  %v5619_v39 = vld [vmem:[%s6297_s12] ss:$0 sm:$0xff] }
 0x26b   :  { %v5672_v46 = vpop.eup %5671  ;;  %v6636_v47 = vadd.f32 %v6630_v36, %v537_v42  ;;  %v477_v48 = vadd.f32 1e-06, %v472_v43 }
 0x26c   :  { %v494_v49 = vmul.f32 %v5670_v28, %v493_v44  ;;  %v500_v51 = vmul.f32 %v5672_v46, %v476_v30  ;;  %vm506_vm10 = vweird.f32 %v5672_v46  ;;  %v5133_v30 = vld [vmem:[%s6352_s19 + $0x38] sm:$0xff] }
 0x26d   :  { %5673 = vrsqrt.f32 %v477_v48  ;;  %5099 = vmatmul.msk.f32.vlgmr.msrb.gmra.mxu0 %vm415_vm1, %v6636_v47  ;;  %5104 = vmatmul.msk.f32.vlgmr.msra.gmra.mxu2 %vm415_vm1, %v6636_v47  ;;  %vm507_vm12 = vmor %vm505_vm11, %vm506_vm10  ;;  %vm515_vm14 = vweird.f32 %v477_v48  ;;  %vm2059_vm10 = vcmask 31744  }
 0x26e   :  { %v498_v40 = vsel %vm497_vm9, %v5670_v28, %v494_v49  ;;  %v501_v52 = vmul.f32 %v5672_v46, %v500_v51  ;;  %vm2075_vm9 = vcmask 1043456  }
 0x26f   :  { %v530_v56 = vmul.f32 %v498_v40, %v6585_v45  ;;  %v5618_v40 = vld [vmem:[%s8093_s5] ss:$0 sm:$0xff] }
 0x270   :  { %v502_v57 = vmul.f32 0.5, %v501_v52  ;;  %v468_v58 = vpop.xlane.xlu0 %467 }
 0x271   :  { %v538_v61 = vmul.f32 %v6627_v33, %v530_v56  ;;  %v473_v62 = vmul.f32 %v468_v58, %v6574_v37  ;;  %v5153_v58 = vld [vmem:[%s6357_s14 + $0x38] sm:$0xff] }
 0x272   :  { %v503_v63 = vsub.f32 1.5, %v502_v57 }
 0x273   :  { %v5674_v0 = vpop.eup %5673  ;;  %v6649_v1 = vadd.f32 %v6630_v36, %v538_v61  ;;  %v478_v2 = vadd.f32 1e-06, %v473_v62  ;;  %v5152_v61 = vld [vmem:[%s6357_s14 + $0x30] sm:$0xff]  ;;  %v5151_v62 = vld [vmem:[%s6357_s14 + $0x28] sm:$0xff] }
 0x274   :  { %v504_v4 = vmul.f32 %v5672_v46, %v503_v63  ;;  %v510_v45 = vmul.f32 %v5674_v0, %v477_v48  ;;  %vm516_vm13 = vweird.f32 %v5674_v0 }
 0x275   :  { %5675 = vrsqrt.f32 %v478_v2  ;;  %5100 = vmatmul.msk.f32.vlgmr.msra.gmra.mxu1 %vm415_vm1, %v6649_v1  ;;  %5105 = vmatmul.msk.f32.gmra.mxu2 %vm415_vm1, %v6649_v1  ;;  %vm517_vm15 = vmor %vm515_vm14, %vm516_vm13  ;;  %vm525_vm3 = vweird.f32 %v478_v2 }
 0x276   :  { %v508_v5 = vsel %vm507_vm12, %v5672_v46, %v504_v4  ;;  %v511_v6 = vmul.f32 %v5674_v0, %v510_v45  ;;  %5145 = vmatmul.msk.f32.vlgmr.msra.gmra.mxu0 %vm415_vm1, %v6636_v47 }
 0x277   :  { %v531_v7 = vmul.f32 %v508_v5, %v6592_v50 }
 0x278   :  { %v512_v8 = vmul.f32 0.5, %v511_v6  ;;  %v5621_v6 = vld [vmem:[%s8094_s9] ss:$0 sm:$0xff] }
 0x279   :  { %v539_v9 = vmul.f32 %v6627_v33, %v531_v7 }
 0x27a   :  { %v513_v10 = vsub.f32 1.5, %v512_v8 }
 0x27b   :  { %v5676_v11 = vpop.eup %5675  ;;  %v6661_v12 = vadd.f32 %v6630_v36, %v539_v9 }
 0x27c   :  { %v514_v14 = vmul.f32 %v5674_v0, %v513_v10  ;;  %v520_v15 = vmul.f32 %v5676_v11, %v478_v2  ;;  %vm526_vm0 = vweird.f32 %v5676_v11  ;;  %v5150_v2 = vld [vmem:[%s6357_s14 + $0x20] sm:$0xff] }
 0x27d   :  { %5101 = vmatmul.msk.f32.gmra.mxu1 %vm415_vm1, %v6661_v12  ;;  %5106 = vmatmul.msk.f32.gmra.mxu2 %vm415_vm1, %v6661_v12  ;;  %vm527_vm4 = vmor %vm525_vm3, %vm526_vm0 }
 0x27e   :  { %v518_v50 = vsel %vm517_vm15, %v5674_v0, %v514_v14  ;;  %v521_v16 = vmul.f32 %v5676_v11, %v520_v15  ;;  %5146 = vmatmul.msk.f32.gmra.mxu0 %vm415_vm1, %v6649_v1 }
 0x27f   :  { %v532_v18 = vmul.f32 %v518_v50, %v6599_v55 }
 0x280   :  { %v522_v19 = vmul.f32 0.5, %v521_v16  ;;  %v5620_v16 = vld [vmem:[%s6297_s12 + $0x1] ss:$0 sm:$0xff] }
 0x281   :  { %v540_v20 = vmul.f32 %v6627_v33, %v532_v18 }
 0x282   :  { %v523_v22 = vsub.f32 1.5, %v522_v19 }
 0x283   :  { %v6672_v23 = vadd.f32 %v6630_v36, %v540_v20 }
 0x284   :  { %v524_v24 = vmul.f32 %v5676_v11, %v523_v22 }
 0x285   :  { %5102 = vmatmul.msk.f32.gmra.mxu1 %vm415_vm1, %v6672_v23  ;;  %5107 = vmatmul.msk.f32.gmra.mxu2 %vm415_vm1, %v6672_v23 }
 0x286   :  { %v528_v55 = vsel %vm527_vm4, %v5676_v11, %v524_v24  ;;  %5147 = vmatmul.msk.f32.gmra.mxu0 %vm415_vm1, %v6661_v12 }
 0x287   :  { %v533_v26 = vmul.f32 %v528_v55, %v6606_v60  ;;  %v5131_v60 = vld [vmem:[%s6352_s19 + $0x28] sm:$0xff] }
 0x289   :  { %v541_v27 = vmul.f32 %v6627_v33, %v533_v26 }
 0x28b   :  { %v6683_v28 = vadd.f32 %v6630_v36, %v541_v27 }
 0x28d   :  { %5103 = vmatmul.msk.f32.vlgmr.msra.gmra.mxu3 %vm415_vm1, %v6683_v28  ;;  %5108 = vmatmul.msk.f32.gmra.mxu2 %vm415_vm1, %v6683_v28 }
 0x28e   :  { %5148 = vmatmul.msk.f32.gmra.mxu0 %vm415_vm1, %v6672_v23  ;;  %889 = vmatpush.msra.mxu3 %v5133_v30  ;;  %v6752_v30 = vld [vmem:[%s8095_s13] sm:$0xff] }
 0x290   :  { %890 = vmatpush.msra.mxu3 %v5132_v31 }
 0x292   :  { %891 = vmatpush.msra.mxu3 %v5131_v60 }
 0x294   :  { %892 = vmatpush.msra.mxu3 %v5130_v32 }
 0x295   :  { %5109 = vmatmul.msk.f32.vlgmr.msrb.gmra.mxu3 %vm415_vm1, %v6636_v47 }
 0x296   :  { %5149 = vmatmul.msk.f32.gmra.mxu0 %vm415_vm1, %v6683_v28 }
 0x29d   :  { %5110 = vmatmul.msk.f32.gmra.mxu3 %vm415_vm1, %v6649_v1 }
 0x2a5   :  { %5111 = vmatmul.msk.f32.gmra.mxu3 %vm415_vm1, %v6661_v12 }
 0x2ad   :  { %5112 = vmatmul.msk.f32.gmra.mxu3 %vm415_vm1, %v6672_v23 }
 0x2b5   :  { %5113 = vmatmul.msk.f32.gmra.mxu3 %vm415_vm1, %v6683_v28 }
 0x2bd   :  { %5135 = vmatmul.msk.f32.vlgmr.msra.gmra.mxu3 %vm415_vm1, %v6636_v47 }
 0x2c5   :  { %5136 = vmatmul.msk.f32.gmra.mxu3 %vm415_vm1, %v6649_v1 }
 0x2cd   :  { %5137 = vmatmul.msk.f32.gmra.mxu3 %vm415_vm1, %v6661_v12 }
 0x2d5   :  { %5138 = vmatmul.msk.f32.gmra.mxu3 %vm415_vm1, %v6672_v23 }
 0x2dd   :  { %5139 = vmatmul.msk.f32.gmra.mxu3 %vm415_vm1, %v6683_v28 }
 0x2ea   :  { %v590_v38 = vpop.f32.mrf.mxu0 }
 0x2eb   :  { %v591_v56 = vadd.f32 %v5618_v40, %v590_v38 }
 0x2f0   :  { %v630_v33 = vpop.f32.mrf.mxu2 }
 0x2f1   :  { %v631_v53 = vadd.f32 %v5619_v39, %v630_v33 }
 0x2f2   :  { %v593_v57 = vpop.f32.mrf.mxu1 }
 0x2f3   :  { %v936_v46 = vpop.f32.mrf.mxu0  ;;  %v594_v0 = vadd.f32 %v5618_v40, %v593_v57 }
 0x2f4   :  { %v937_v26 = vadd.f32 %v5620_v16, %v936_v46 }
 0x2f8   :  { %v633_v34 = vpop.f32.mrf.mxu2 }
 0x2f9   :  { %v634_v51 = vadd.f32 %v5619_v39, %v633_v34  ;;  %v6757_v34 = vld [vmem:[%s8095_s13 + $0x8] sm:$0xff] }
 0x2fa   :  { %v596_v3 = vpop.f32.mrf.mxu1 }
 0x2fb   :  { %v939_v54 = vpop.f32.mrf.mxu0  ;;  %v597_v45 = vadd.f32 %v5618_v40, %v596_v3 }
 0x2fc   :  { %v940_v55 = vadd.f32 %v5620_v16, %v939_v54 }
 0x300   :  { %v636_v35 = vpop.f32.mrf.mxu2 }
 0x301   :  { %v637_v49 = vadd.f32 %v5619_v39, %v636_v35 }
 0x302   :  { %v599_v8 = vpop.f32.mrf.mxu1 }
 0x303   :  { %v942_v63 = vpop.f32.mrf.mxu0  ;;  %v600_v11 = vadd.f32 %v5618_v40, %v599_v8 }
 0x304   :  { %v943_v24 = vadd.f32 %v5620_v16, %v942_v63  ;;  %v5623_v63 = vld [vmem:[%s8094_s9 + $0x1] ss:$0 sm:$0xff] }
 0x308   :  { %v639_v36 = vpop.f32.mrf.mxu2 }
 0x309   :  { %v640_v44 = vadd.f32 %v5619_v39, %v639_v36 }
 0x30b   :  { %v945_v5 = vpop.f32.mrf.mxu0 }
 0x30c   :  { %v946_v22 = vadd.f32 %v5620_v16, %v945_v5 }
 0x310   :  { %v602_v41 = vpop.f32.mrf.mxu3  ;;  %v642_v42 = vpop.f32.mrf.mxu2 }
 0x311   :  { %v643_v43 = vadd.f32 %v5619_v39, %v642_v42  ;;  %v603_v20 = vadd.f32 %v5618_v40, %v602_v41  ;;  %v6762_v41 = vld [vmem:[%s8095_s13 + $0x10] sm:$0xff] }
 0x313   :  { %5114 = vmatpush.xpose.msk.msrb.mxu1 %vm685_vm5, %v643_v43  ;;  %v948_v15 = vpop.f32.mrf.mxu0 }
 0x314   :  { %v949_v19 = vadd.f32 %v5620_v16, %v948_v15 }
 0x317   :  { %5115 = vmatpush.xpose.msk.msrb.mxu1 %vm685_vm5, %v640_v44 }
 0x318   :  { %v670_v48 = vpop.f32.mrf.mxu3 }
 0x319   :  { %v671_v18 = vadd.f32 %v5621_v6, %v670_v48  ;;  %v6767_v48 = vld [vmem:[%s8095_s13 + $0x18] sm:$0xff] }
 0x31b   :  { %5116 = vmatpush.xpose.msk.msrb.mxu1 %vm685_vm5, %v637_v49 }
 0x31f   :  { %5117 = vmatpush.xpose.msk.msrb.mxu1 %vm685_vm5, %v634_v51 }
 0x320   :  { %v673_v52 = vpop.f32.mrf.mxu3 }
 0x321   :  { %v674_v50 = vadd.f32 %v5621_v6, %v673_v52 }
 0x323   :  { %5118 = vmatpush.xpose.msk.msrb.mxu1 %vm685_vm5, %v631_v53  ;;  %v6772_v53 = vld [vmem:[%s8095_s13 + $0x20] sm:$0x3] }
 0x326   :  { %5119 = vmatmul.msk.f32.vlgmr.msrb.gmra.mxu1 %vm685_vm5, %v591_v56 }
 0x327   :  { %973 = vmatpush.msra.mxu1 %v5153_v58 }
 0x328   :  { %v676_v59 = vpop.f32.mrf.mxu3 }
 0x329   :  { %974 = vmatpush.msra.mxu1 %v5152_v61  ;;  %v677_v14 = vadd.f32 %v5621_v6, %v676_v59 }
 0x32b   :  { %975 = vmatpush.msra.mxu1 %v5151_v62 }
 0x32d   :  { %976 = vmatpush.msra.mxu1 %v5150_v2 }
 0x32e   :  { %5120 = vmatmul.msk.f32.gmra.mxu1 %vm685_vm5, %v594_v0 }
 0x330   :  { %v679_v4 = vpop.f32.mrf.mxu3 }
 0x331   :  { %v680_v10 = vadd.f32 %v5621_v6, %v679_v4 }
 0x336   :  { %5121 = vmatmul.msk.f32.gmra.mxu1 %vm685_vm5, %v597_v45 }
 0x338   :  { %v682_v7 = vpop.f32.mrf.mxu3 }
 0x339   :  { %v683_v9 = vadd.f32 %v5621_v6, %v682_v7 }
 0x33b   :  { %5124 = vmatpush.msk.msrb.mxu2 %vm830_vm6, %v683_v9 }
 0x33d   :  { %846 = vmatpush.msrb.mxu2 %v680_v10 }
 0x33e   :  { %5122 = vmatmul.msk.f32.gmra.mxu1 %vm685_vm5, %v600_v11 }
 0x33f   :  { %847 = vmatpush.msrb.mxu2 %v677_v14 }
 0x341   :  { %848 = vmatpush.msrb.mxu2 %v674_v50 }
 0x343   :  { %849 = vmatpush.msrb.mxu2 %v671_v18 }
 0x345   :  { %5160 = vmatpush.xpose.msk.msra.mxu2 %vm685_vm5, %v949_v19 }
 0x346   :  { %5123 = vmatmul.msk.f32.gmra.mxu1 %vm685_vm5, %v603_v20 }
 0x349   :  { %5161 = vmatpush.xpose.msk.msra.mxu2 %vm685_vm5, %v946_v22 }
 0x34d   :  { %5162 = vmatpush.xpose.msk.msra.mxu2 %vm685_vm5, %v943_v24 }
 0x34e   :  { %5155 = vmatmul.msk.f32.vlgmr.msra.gmra.mxu1 %vm415_vm1, %v6636_v47 }
 0x351   :  { %5163 = vmatpush.xpose.msk.msra.mxu2 %vm685_vm5, %v940_v55 }
 0x355   :  { %5164 = vmatpush.xpose.msk.msra.mxu2 %vm685_vm5, %v937_v26 }
 0x356   :  { %5156 = vmatmul.msk.f32.gmra.mxu1 %vm415_vm1, %v6649_v1 }
 0x35e   :  { %5157 = vmatmul.msk.f32.gmra.mxu1 %vm415_vm1, %v6661_v12 }
 0x366   :  { %5158 = vmatmul.msk.f32.gmra.mxu1 %vm415_vm1, %v6672_v23 }
 0x36e   :  { %5159 = vmatmul.msk.f32.gmra.mxu1 %vm415_vm1, %v6683_v28 }
 0x3a3   :  { %v733_v27 = vpop.f32.mrf.mxu1 }
 0x3a4   :  { %v748_v31 = vmul.f32 0.35355338, %v733_v27 }
 0x3a6   :  { %v753_v60 = vadd.f32 %v748_v31, %v6752_v30 }
 0x3a8   :  { %v759_v32 = vsel %vm758_vm7, %v753_v60, -inf }
 0x3a9   :  { %760 = vmax.xlane.f32.xlu1 %v759_v32 }
 0x3ab   :  { %v736_v33 = vpop.f32.mrf.mxu1 }
 0x3ac   :  { %v749_v35 = vmul.f32 0.35355338, %v736_v33 }
 0x3ae   :  { %v754_v36 = vadd.f32 %v749_v35, %v6757_v34 }
 0x3b0   :  { %v762_v38 = vsel %vm758_vm7, %v754_v36, -inf }
 0x3b1   :  { %763 = vmax.xlane.f32.xlu2 %v762_v38 }
 0x3b3   :  { %v739_v39 = vpop.f32.mrf.mxu1 }
 0x3b4   :  { %v750_v42 = vmul.f32 0.35355338, %v739_v39 }
 0x3b6   :  { %v755_v43 = vadd.f32 %v750_v42, %v6762_v41 }
 0x3b8   :  { %v765_v44 = vsel %vm758_vm7, %v755_v43, -inf }
 0x3b9   :  { %766 = vmax.xlane.f32.xlu0 %v765_v44 }
 0x3bb   :  { %v742_v46 = vpop.f32.mrf.mxu1 }
 0x3bc   :  { %v751_v49 = vmul.f32 0.35355338, %v742_v46 }
 0x3be   :  { %v756_v51 = vadd.f32 %v751_v49, %v6767_v48 }
 0x3c0   :  { %v768_v40 = vsel %vm758_vm7, %v756_v51, -inf }
 0x3c1   :  { %769 = vmax.xlane.f32.xlu1 %v768_v40 }
 0x3c3   :  { %v745_v52 = vpop.f32.mrf.mxu1 }
 0x3c4   :  { %v752_v54 = vmul.f32 0.35355338, %v745_v52 }
 0x3c6   :  { %v757_v56 = vadd.f32 %v752_v54, %v6772_v53 }
 0x3c8   :  { %v772_v57 = vsel %vm771_vm8, %v757_v56, -inf }
 0x3c9   :  { %773 = vmax.xlane.f32.xlu2 %v772_v57 }
 0x3cb   :  { %v978_v58 = vpop.f32.mrf.mxu1 }
 0x3cc   :  { %v979_v5 = vadd.f32 %v5623_v63, %v978_v58 }
 0x3d3   :  { %v981_v59 = vpop.f32.mrf.mxu1 }
 0x3d4   :  { %v982_v45 = vadd.f32 %v5623_v63, %v981_v59  ;;  %v894_v59 = vpop.f32.mrf.mxu3 }
 0x3db   :  { %v984_v61 = vpop.f32.mrf.mxu1 }
 0x3dc   :  { %v985_v4 = vadd.f32 %v5623_v63, %v984_v61 }
 0x3e3   :  { %v987_v62 = vpop.f32.mrf.mxu1 }
 0x3e4   :  { %v988_v3 = vadd.f32 %v5623_v63, %v987_v62 }
 0x3eb   :  { %v990_v0 = vpop.f32.mrf.mxu1 }
 0x3ec   :  { %v991_v2 = vadd.f32 %v5623_v63, %v990_v0  ;;  %v5622_v63 = vld [vmem:[%s8093_s5 + $0x1] ss:$0 sm:$0xff]  ;;  %v897_v0 = vpop.f32.mrf.mxu3 }
 0x3ee   :  { %5170 = vmatpush.msk.msrb.mxu3 %vm830_vm6, %v991_v2  ;;  %v895_v2 = vadd.f32 %v5622_v63, %v894_v59 }
 0x3f0   :  { %1150 = vmatpush.msrb.mxu3 %v988_v3  ;;  %v898_v3 = vadd.f32 %v5622_v63, %v897_v0 }
 0x3f2   :  { %1151 = vmatpush.msrb.mxu3 %v985_v4 }
 0x3f4   :  { %1152 = vmatpush.msrb.mxu3 %v982_v45  ;;  %v900_v4 = vpop.f32.mrf.mxu3 }
 0x3f5   :  { %v901_v45 = vadd.f32 %v5622_v63, %v900_v4 }
 0x3f6   :  { %1153 = vmatpush.msrb.mxu3 %v979_v5 }
 0x3fc   :  { %v903_v5 = vpop.f32.mrf.mxu3 }
 0x41c   :  { %v761_v6 = vpop.xlane.xlu1 %760 }
 0x41d   :  { %v775_v7 = vsub.f32 %v753_v60, %v761_v6  ;;  %v904_v6 = vadd.f32 %v5622_v63, %v903_v5 }
 0x41f   :  { %v780_v8 = vmul.f32 1.442695, %v775_v7  ;;  %v906_v7 = vpop.f32.mrf.mxu3 }
 0x421   :  { %5677 = vpow2.f32 %v780_v8  ;;  %v907_v8 = vadd.f32 %v5622_v63, %v906_v7 }
 0x424   :  { %v764_v9 = vpop.xlane.xlu2 %763 }
 0x425   :  { %v776_v10 = vsub.f32 %v754_v36, %v764_v9  ;;  %v866_v9 = vld [vmem:[%s8096_s3] sm:$0xff] }
 0x426   :  { %1249 = vmatpush.msrb.mxu1 %v866_v9 }
 0x427   :  { %v5678_v11 = vpop.eup %5677  ;;  %v782_v14 = vmul.f32 1.442695, %v776_v10 }
 0x428   :  { %v790_v15 = vsel %vm758_vm7, %v5678_v11, 0.0 }
 0x429   :  { %5679 = vpow2.f32 %v782_v14  ;;  %791 = vadd.xlane.f32.xlu0 %v790_v15  ;;  %v5189_v14 = vld [vmem:[%s6352_s19 + $0x50] sm:$0xff]  ;;  %v5188_v15 = vld [vmem:[%s6352_s19 + $0x48] sm:$0xff] }
 0x42c   :  { %v767_v50 = vpop.xlane.xlu0 %766 }
 0x42d   :  { %v777_v16 = vsub.f32 %v755_v43, %v767_v50 }
 0x42f   :  { %v5680_v18 = vpop.eup %5679  ;;  %v784_v19 = vmul.f32 1.442695, %v777_v16  ;;  %v5187_v16 = vld [vmem:[%s6352_s19 + $0x40] sm:$0xff] }
 0x430   :  { %v793_v20 = vsel %vm758_vm7, %v5680_v18, 0.0 }
 0x431   :  { %5681 = vpow2.f32 %v784_v19  ;;  %794 = vadd.xlane.f32.xlu1 %v793_v20 }
 0x434   :  { %v770_v22 = vpop.xlane.xlu1 %769 }
 0x435   :  { %v778_v24 = vsub.f32 %v756_v51, %v770_v22 }
 0x437   :  { %v5682_v55 = vpop.eup %5681  ;;  %v786_v26 = vmul.f32 1.442695, %v778_v24 }
 0x438   :  { %v796_v27 = vsel %vm758_vm7, %v5682_v55, 0.0 }
 0x439   :  { %5683 = vpow2.f32 %v786_v26  ;;  %797 = vadd.xlane.f32.xlu2 %v796_v27 }
 0x43c   :  { %v774_v31 = vpop.xlane.xlu2 %773 }
 0x43d   :  { %v779_v60 = vsub.f32 %v757_v56, %v774_v31 }
 0x43f   :  { %v5684_v32 = vpop.eup %5683  ;;  %v788_v33 = vmul.f32 1.442695, %v779_v60 }
 0x440   :  { %v799_v35 = vsel %vm758_vm7, %v5684_v32, 0.0 }
 0x441   :  { %5685 = vpow2.f32 %v788_v33  ;;  %800 = vadd.xlane.f32.xlu0 %v799_v35 }
 0x447   :  { %v5686_v36 = vpop.eup %5685 }
 0x448   :  { %v802_v38 = vsel %vm771_vm8, %v5686_v36, 0.0 }
 0x449   :  { %803 = vadd.xlane.f32.xlu1 %v802_v38 }
 0x49c   :  { %v792_v39 = vpop.xlane.xlu0 %791 }
 0x49d   :  { %5687 = vrcp.f32 %v792_v39 }
 0x4a3   :  { %v5688_v42 = vpop.eup %5687 }
 0x4a4   :  { %v795_v43 = vpop.xlane.xlu1 %794  ;;  %v810_v44 = vmul.f32 %v5688_v42, %v5678_v11  ;;  %v5190_v11 = vld [vmem:[%s6352_s19 + $0x58] sm:$0xff] }
 0x4a5   :  { %5689 = vrcp.f32 %v795_v43 }
 0x4a6   :  { %5125 = vmatmul.msk.f32.vlgmr.msrb.gmra.mxu2 %vm758_vm7, %v810_v44 }
 0x4a7   :  { %5548 = vmatpush.msrb.mxu2 %v866_v9 }
 0x4ab   :  { %v5690_v46 = vpop.eup %5689 }
 0x4ac   :  { %v798_v49 = vpop.xlane.xlu2 %797  ;;  %v811_v51 = vmul.f32 %v5690_v46, %v5680_v18 }
 0x4ad   :  { %5691 = vrcp.f32 %v798_v49 }
 0x4ae   :  { %5126 = vmatmul.msk.f32.gmra.mxu2 %vm758_vm7, %v811_v51 }
 0x4b3   :  { %v5692_v40 = vpop.eup %5691 }
 0x4b4   :  { %v801_v52 = vpop.xlane.xlu0 %800  ;;  %v812_v54 = vmul.f32 %v5692_v40, %v5682_v55 }
 0x4b5   :  { %5693 = vrcp.f32 %v801_v52 }
 0x4b6   :  { %5127 = vmatmul.msk.f32.gmra.mxu2 %vm758_vm7, %v812_v54 }
 0x4bb   :  { %v5694_v56 = vpop.eup %5693 }
 0x4bc   :  { %v804_v57 = vpop.xlane.xlu1 %803  ;;  %v813_v58 = vmul.f32 %v5694_v56, %v5684_v32 }
 0x4bd   :  { %5695 = vrcp.f32 %v804_v57 }
 0x4be   :  { %5128 = vmatmul.msk.f32.gmra.mxu2 %vm758_vm7, %v813_v58 }
 0x4c3   :  { %v5696_v61 = vpop.eup %5695 }
 0x4c4   :  { %v814_v62 = vmul.f32 %v5696_v61, %v5686_v36 }
 0x4c6   :  { %5129 = vmatmul.msk.f32.gmra.mxu2 %vm758_vm7, %v814_v62 }
 0x4ce   :  { %5165 = vmatmul.msk.f32.vlgmr.msra.gmra.mxu2 %vm685_vm5, %v895_v2 }
 0x4cf   :  { %1288 = vmatpush.msra.mxu2 %v5190_v11 }
 0x4d1   :  { %1289 = vmatpush.msra.mxu2 %v5189_v14 }
 0x4d3   :  { %1290 = vmatpush.msra.mxu2 %v5188_v15 }
 0x4d5   :  { %1291 = vmatpush.msra.mxu2 %v5187_v16 }
 0x4d6   :  { %5166 = vmatmul.msk.f32.gmra.mxu2 %vm685_vm5, %v898_v3 }
 0x4de   :  { %5167 = vmatmul.msk.f32.gmra.mxu2 %vm685_vm5, %v901_v45 }
 0x4e6   :  { %5168 = vmatmul.msk.f32.gmra.mxu2 %vm685_vm5, %v904_v6 }
 0x4ee   :  { %5169 = vmatmul.msk.f32.gmra.mxu2 %vm685_vm5, %v907_v8 }
 0x529   :  { %v851_v10 = vpop.f32.mrf.mxu2 }
 0x52a   :  { %5182 = vmatmul.msk.f32.vlgmr.msrb.gmra.mxu1 %vm685_vm5, %v851_v10 }
 0x531   :  { %v854_v50 = vpop.f32.mrf.mxu2 }
 0x532   :  { %5183 = vmatmul.msk.f32.gmra.mxu1 %vm685_vm5, %v854_v50 }
 0x539   :  { %v857_v18 = vpop.f32.mrf.mxu2 }
 0x53a   :  { %5184 = vmatmul.msk.f32.gmra.mxu1 %vm685_vm5, %v857_v18 }
 0x541   :  { %v860_v19 = vpop.f32.mrf.mxu2 }
 0x542   :  { %5185 = vmatmul.msk.f32.gmra.mxu1 %vm685_vm5, %v860_v19  ;;  %v5200_v19 = vld [vmem:[%s6342_s24 + $0x58] sm:$0xff] }
 0x543   :  { %1330 = vmatpush.msra.mxu3 %v5200_v19  ;;  %v5252_v19 = vld [vmem:[%s6342_s24 + $0x78] sm:$0xff] }
 0x549   :  { %v863_v20 = vpop.f32.mrf.mxu2 }
 0x54a   :  { %5186 = vmatmul.msk.f32.vlgmr.msrb.gmra.mxu2 %vm685_vm5, %v863_v20 }
 0x551   :  { %v1040_v22 = vpop.f32.mrf.mxu2 }
 0x552   :  { %v1055_v24 = vmul.f32 0.35355338, %v1040_v22  ;;  %5192 = vmatmul.msk.f32.vlgmr.msra.gmra.mxu2 %vm415_vm1, %v6636_v47 }
 0x554   :  { %v1060_v55 = vadd.f32 %v1055_v24, %v6752_v30 }
 0x556   :  { %v1065_v26 = vsel %vm758_vm7, %v1060_v55, -inf }
 0x557   :  { %1066 = vmax.xlane.f32.xlu2 %v1065_v26  ;;  %v5198_v26 = vld [vmem:[%s6342_s24 + $0x48] sm:$0xff] }
 0x559   :  { %v1043_v27 = vpop.f32.mrf.mxu2 }
 0x55a   :  { %v1056_v31 = vmul.f32 0.35355338, %v1043_v27  ;;  %5193 = vmatmul.msk.f32.gmra.mxu2 %vm415_vm1, %v6649_v1  ;;  %v5197_v27 = vld [vmem:[%s6342_s24 + $0x40] sm:$0xff] }
 0x55c   :  { %v1061_v60 = vadd.f32 %v1056_v31, %v6757_v34 }
 0x55e   :  { %v1068_v32 = vsel %vm758_vm7, %v1061_v60, -inf }
 0x55f   :  { %1069 = vmax.xlane.f32.xlu0 %v1068_v32 }
 0x561   :  { %v1046_v33 = vpop.f32.mrf.mxu2 }
 0x562   :  { %v1057_v35 = vmul.f32 0.35355338, %v1046_v33  ;;  %5194 = vmatmul.msk.f32.gmra.mxu2 %vm415_vm1, %v6661_v12 }
 0x564   :  { %v1062_v36 = vadd.f32 %v1057_v35, %v6762_v41 }
 0x566   :  { %v1071_v38 = vsel %vm758_vm7, %v1062_v36, -inf }
 0x567   :  { %1072 = vmax.xlane.f32.xlu1 %v1071_v38 }
 0x569   :  { %v1049_v39 = vpop.f32.mrf.mxu2 }
 0x56a   :  { %v1058_v42 = vmul.f32 0.35355338, %v1049_v39  ;;  %5195 = vmatmul.msk.f32.gmra.mxu2 %vm415_vm1, %v6672_v23 }
 0x56c   :  { %v1063_v43 = vadd.f32 %v1058_v42, %v6767_v48 }
 0x56e   :  { %v1074_v44 = vsel %vm758_vm7, %v1063_v43, -inf }
 0x56f   :  { %1075 = vmax.xlane.f32.xlu2 %v1074_v44 }
 0x571   :  { %v1052_v46 = vpop.f32.mrf.mxu2 }
 0x572   :  { %v1059_v49 = vmul.f32 0.35355338, %v1052_v46  ;;  %5196 = vmatmul.msk.f32.gmra.mxu2 %vm415_vm1, %v6683_v28  ;;  %v5176_v46 = vld [vmem:[%s8096_s3 + $0x8] sm:$0xff] }
 0x573   :  { %1202 = vmatpush.msrb.mxu0 %v5176_v46 }
 0x574   :  { %v1064_v51 = vadd.f32 %v1059_v49, %v6772_v53 }
 0x576   :  { %v1077_v40 = vsel %vm771_vm8, %v1064_v51, -inf }
 0x577   :  { %1078 = vmax.xlane.f32.xlu0 %v1077_v40  ;;  %v5209_v40 = vld [vmem:[%s6357_s14 + $0x50] sm:$0xff] }
 0x5a7   :  { %v6920_v46 = vpop.f32.mrf.mxu1 }
 0x5ca   :  { %v1067_v52 = vpop.xlane.xlu2 %1066 }
 0x5cb   :  { %v1080_v54 = vsub.f32 %v1060_v55, %v1067_v52  ;;  %v5199_v55 = vld [vmem:[%s6342_s24 + $0x50] sm:$0xff]  ;;  %v5208_v52 = vld [vmem:[%s6357_s14 + $0x48] sm:$0xff] }
 0x5cc   :  { %1331 = vmatpush.msra.mxu3 %v5199_v55  ;;  %v5249_v55 = vld [vmem:[%s6342_s24 + $0x60] sm:$0xff] }
 0x5cd   :  { %v1085_v56 = vmul.f32 1.442695, %v1080_v54 }
 0x5ce   :  { %1332 = vmatpush.msra.mxu3 %v5198_v26 }
 0x5cf   :  { %5697 = vpow2.f32 %v1085_v56  ;;  %v5207_v56 = vld [vmem:[%s6357_s14 + $0x40] sm:$0xff] }
 0x5d0   :  { %1333 = vmatpush.msra.mxu3 %v5197_v27 }
 0x5d2   :  { %v1070_v57 = vpop.xlane.xlu0 %1069 }
 0x5d3   :  { %v1081_v58 = vsub.f32 %v1061_v60, %v1070_v57 }
 0x5d5   :  { %v5698_v59 = vpop.eup %5697  ;;  %v1087_v61 = vmul.f32 1.442695, %v1081_v58 }
 0x5d6   :  { %v1095_v62 = vsel %vm758_vm7, %v5698_v59, 0.0 }
 0x5d7   :  { %5699 = vpow2.f32 %v1087_v61  ;;  %1096 = vadd.xlane.f32.xlu1 %v1095_v62  ;;  %v5242_v62 = vld [vmem:[%s6352_s19 + $0x78] sm:$0xff] }
 0x5da   :  { %v1073_v63 = vpop.xlane.xlu1 %1072 }
 0x5db   :  { %v1082_v0 = vsub.f32 %v1062_v36, %v1073_v63  ;;  %v5241_v63 = vld [vmem:[%s6352_s19 + $0x70] sm:$0xff] }
 0x5dd   :  { %v5700_v2 = vpop.eup %5699  ;;  %v1089_v3 = vmul.f32 1.442695, %v1082_v0  ;;  %v5240_v0 = vld [vmem:[%s6352_s19 + $0x68] sm:$0xff] }
 0x5de   :  { %v1098_v4 = vsel %vm758_vm7, %v5700_v2, 0.0 }
 0x5df   :  { %5701 = vpow2.f32 %v1089_v3  ;;  %1099 = vadd.xlane.f32.xlu2 %v1098_v4 }
 0x5e2   :  { %v1076_v45 = vpop.xlane.xlu2 %1075 }
 0x5e3   :  { %v1083_v5 = vsub.f32 %v1063_v43, %v1076_v45 }
 0x5e5   :  { %v5702_v6 = vpop.eup %5701  ;;  %v1091_v7 = vmul.f32 1.442695, %v1083_v5  ;;  %v6870_v5 = vpop.f32.mrf.mxu2 }
 0x5e6   :  { %v1101_v8 = vsel %vm758_vm7, %v5702_v6, 0.0 }
 0x5e7   :  { %5703 = vpow2.f32 %v1091_v7  ;;  %1102 = vadd.xlane.f32.xlu0 %v1101_v8 }
 0x5ea   :  { %v1079_v9 = vpop.xlane.xlu0 %1078 }
 0x5eb   :  { %v1084_v10 = vsub.f32 %v1064_v51, %v1079_v9  ;;  %v5210_v51 = vld [vmem:[%s6357_s14 + $0x58] sm:$0xff] }
 0x5ec   :  { %1372 = vmatpush.msra.mxu0 %v5210_v51 }
 0x5ed   :  { %v5704_v11 = vpop.eup %5703  ;;  %v1093_v14 = vmul.f32 1.442695, %v1084_v10  ;;  %v1293_v10 = vpop.f32.mrf.mxu2 }
 0x5ee   :  { %v1104_v15 = vsel %vm758_vm7, %v5704_v11, 0.0  ;;  %1373 = vmatpush.msra.mxu0 %v5209_v40  ;;  %v6922_v40 = vpop.f32.mrf.mxu1 }
 0x5ef   :  { %5705 = vpow2.f32 %v1093_v14  ;;  %1105 = vadd.xlane.f32.xlu1 %v1104_v15  ;;  %v5624_v15 = vld [vmem:[%s8093_s5 + $0x2] ss:$0 sm:$0xff] }
 0x5f0   :  { %1374 = vmatpush.msra.mxu0 %v5208_v52  ;;  %v5626_v52 = vld [vmem:[%s8094_s9 + $0x2] ss:$0 sm:$0xff] }
 0x5f2   :  { %1375 = vmatpush.msra.mxu0 %v5207_v56 }
 0x5f5   :  { %v5706_v50 = vpop.eup %5705 }
 0x5f6   :  { %v1107_v16 = vsel %vm771_vm8, %v5706_v50, 0.0 }
 0x5f7   :  { %1108 = vadd.xlane.f32.xlu2 %v1107_v16  ;;  %v1296_v16 = vpop.f32.mrf.mxu2 }
 0x5ff   :  { %v1299_v26 = vpop.f32.mrf.mxu2 }
 0x600   :  { %v1300_v27 = vadd.f32 %v5624_v15, %v1299_v26 }
 0x64a   :  { %v1097_v18 = vpop.xlane.xlu1 %1096 }
 0x64b   :  { %5707 = vrcp.f32 %v1097_v18  ;;  %v1294_v18 = vadd.f32 %v5624_v15, %v1293_v10 }
 0x651   :  { %v5708_v20 = vpop.eup %5707 }
 0x652   :  { %v1115_v22 = vmul.f32 %v5708_v20, %v5698_v59  ;;  %v1100_v24 = vpop.xlane.xlu2 %1099  ;;  %v5251_v20 = vld [vmem:[%s6342_s24 + $0x70] sm:$0xff] }
 0x653   :  { %5709 = vrcp.f32 %v1100_v24  ;;  %v1297_v24 = vadd.f32 %v5624_v15, %v1296_v16 }
 0x654   :  { %5171 = vmatmul.msk.f32.vlgmr.msrb.gmra.mxu3 %vm758_vm7, %v1115_v22  ;;  %v5250_v22 = vld [vmem:[%s6342_s24 + $0x68] sm:$0xff]  ;;  %s8100_s24 = sld [smem:[#allocation24_spill]] }
 0x659   :  { %v5710_v31 = vpop.eup %5709 }
 0x65a   :  { %v1103_v60 = vpop.xlane.xlu0 %1102  ;;  %v1116_v32 = vmul.f32 %v5710_v31, %v5700_v2  ;;  %v5239_v2 = vld [vmem:[%s6352_s19 + $0x60] sm:$0xff]  ;;  %v1302_v31 = vpop.f32.mrf.mxu2  ;;  %s8099_s19 = sld [smem:[#allocation27_spill]] }
 0x65b   :  { %5711 = vrcp.f32 %v1103_v60  ;;  %v1303_v60 = vadd.f32 %v5624_v15, %v1302_v31 }
 0x65c   :  { %5172 = vmatmul.msk.f32.gmra.mxu3 %vm758_vm7, %v1116_v32 }
 0x661   :  { %v5712_v33 = vpop.eup %5711 }
 0x662   :  { %v1106_v35 = vpop.xlane.xlu1 %1105  ;;  %v1117_v36 = vmul.f32 %v5712_v33, %v5702_v6  ;;  %v5625_v6 = vld [vmem:[%s6297_s12 + $0x2] ss:$0 sm:$0xff]  ;;  %v1305_v32 = vpop.f32.mrf.mxu2 }
 0x663   :  { %5713 = vrcp.f32 %v1106_v35  ;;  %v1306_v33 = vadd.f32 %v5624_v15, %v1305_v32 }
 0x664   :  { %5173 = vmatmul.msk.f32.gmra.mxu3 %vm758_vm7, %v1117_v36 }
 0x669   :  { %v5714_v38 = vpop.eup %5713 }
 0x66a   :  { %v1109_v39 = vpop.xlane.xlu2 %1108  ;;  %v1118_v42 = vmul.f32 %v5714_v38, %v5704_v11 }
 0x66b   :  { %5715 = vrcp.f32 %v1109_v39 }
 0x66c   :  { %5174 = vmatmul.msk.f32.gmra.mxu3 %vm758_vm7, %v1118_v42 }
 0x671   :  { %v5716_v43 = vpop.eup %5715 }
 0x672   :  { %v1119_v44 = vmul.f32 %v5716_v43, %v5706_v50 }
 0x674   :  { %5175 = vmatmul.msk.f32.gmra.mxu3 %vm758_vm7, %v1119_v44 }
 0x67c   :  { %5202 = vmatmul.msk.f32.vlgmr.msra.gmra.mxu3 %vm415_vm1, %v6636_v47 }
 0x684   :  { %5203 = vmatmul.msk.f32.gmra.mxu3 %vm415_vm1, %v6649_v1 }
 0x68c   :  { %5204 = vmatmul.msk.f32.gmra.mxu3 %vm415_vm1, %v6661_v12 }
 0x694   :  { %5205 = vmatmul.msk.f32.gmra.mxu3 %vm415_vm1, %v6672_v23 }
 0x69c   :  { %5206 = vmatmul.msk.f32.gmra.mxu3 %vm415_vm1, %v6683_v28 }
 0x6d7   :  { %v1155_v49 = vpop.f32.mrf.mxu3 }
 0x6d8   :  { %5177 = vmatmul.msk.f32.vlgmr.msrb.gmra.mxu0 %vm685_vm5, %v1155_v49 }
 0x6d9   :  { %1645 = vmatpush.msrb.mxu0 %v5242_v62 }
 0x6db   :  { %1646 = vmatpush.msrb.mxu0 %v5241_v63 }
 0x6dd   :  { %1647 = vmatpush.msrb.mxu0 %v5240_v0 }
 0x6df   :  { %v1158_v54 = vpop.f32.mrf.mxu3  ;;  %1648 = vmatpush.msrb.mxu0 %v5239_v2 }
 0x6e0   :  { %5178 = vmatmul.msk.f32.gmra.mxu0 %vm685_vm5, %v1158_v54 }
 0x6e7   :  { %v1161_v57 = vpop.f32.mrf.mxu3 }
 0x6e8   :  { %5179 = vmatmul.msk.f32.gmra.mxu0 %vm685_vm5, %v1161_v57  ;;  %v6925_v57 = vpop.f32.mrf.mxu1 }
 0x6ef   :  { %v1164_v58 = vpop.f32.mrf.mxu3 }
 0x6f0   :  { %5180 = vmatmul.msk.f32.gmra.mxu0 %vm685_vm5, %v1164_v58  ;;  %v6928_v63 = vpop.f32.mrf.mxu1 }
 0x6f7   :  { %v1167_v59 = vpop.f32.mrf.mxu3 }
 0x6f8   :  { %5181 = vmatmul.msk.f32.gmra.mxu0 %vm685_vm5, %v1167_v59 }
 0x6ff   :  { %v1335_v61 = vpop.f32.mrf.mxu3 }
 0x700   :  { %5212 = vmatmul.msk.f32.vlgmr.msra.gmra.mxu0 %vm415_vm1, %v6636_v47  ;;  %v1336_v50 = vadd.f32 %v5625_v6, %v1335_v61 }
 0x707   :  { %v1338_v3 = vpop.f32.mrf.mxu3 }
 0x708   :  { %5213 = vmatmul.msk.f32.gmra.mxu0 %vm415_vm1, %v6649_v1  ;;  %v1339_v14 = vadd.f32 %v5625_v6, %v1338_v3 }
 0x70f   :  { %v1341_v4 = vpop.f32.mrf.mxu3 }
 0x710   :  { %5214 = vmatmul.msk.f32.gmra.mxu0 %vm415_vm1, %v6661_v12  ;;  %v1342_v11 = vadd.f32 %v5625_v6, %v1341_v4 }
 0x717   :  { %v1344_v45 = vpop.f32.mrf.mxu3 }
 0x718   :  { %5215 = vmatmul.msk.f32.gmra.mxu0 %vm415_vm1, %v6672_v23  ;;  %v1345_v9 = vadd.f32 %v5625_v6, %v1344_v45 }
 0x71f   :  { %v1347_v7 = vpop.f32.mrf.mxu3 }
 0x720   :  { %v1348_v8 = vadd.f32 %v5625_v6, %v1347_v7  ;;  %5216 = vmatmul.msk.f32.gmra.mxu0 %vm415_vm1, %v6683_v28 }
 0x722   :  { %5217 = vmatpush.xpose.msk.msra.mxu1 %vm685_vm5, %v1348_v8 }
 0x726   :  { %5218 = vmatpush.xpose.msk.msra.mxu1 %vm685_vm5, %v1345_v9 }
 0x728   :  { %5244 = vmatmul.msk.f32.vlgmr.msrb.gmra.mxu0 %vm415_vm1, %v6636_v47 }
 0x72a   :  { %5219 = vmatpush.xpose.msk.msra.mxu1 %vm685_vm5, %v1342_v11 }
 0x72e   :  { %5220 = vmatpush.xpose.msk.msra.mxu1 %vm685_vm5, %v1339_v14 }
 0x730   :  { %5245 = vmatmul.msk.f32.gmra.mxu0 %vm415_vm1, %v6649_v1 }
 0x732   :  { %5221 = vmatpush.xpose.msk.msra.mxu1 %vm685_vm5, %v1336_v50 }
 0x735   :  { %5222 = vmatmul.msk.f32.vlgmr.msra.gmra.mxu1 %vm685_vm5, %v1294_v18 }
 0x736   :  { %1687 = vmatpush.msrb.mxu1 %v5252_v19 }
 0x738   :  { %5246 = vmatmul.msk.f32.gmra.mxu0 %vm415_vm1, %v6661_v12  ;;  %1688 = vmatpush.msrb.mxu1 %v5251_v20 }
 0x73a   :  { %1689 = vmatpush.msrb.mxu1 %v5250_v22 }
 0x73c   :  { %1690 = vmatpush.msrb.mxu1 %v5249_v55 }
 0x73d   :  { %5223 = vmatmul.msk.f32.gmra.mxu1 %vm685_vm5, %v1297_v24 }
 0x740   :  { %5247 = vmatmul.msk.f32.gmra.mxu0 %vm415_vm1, %v6672_v23 }
 0x745   :  { %5224 = vmatmul.msk.f32.gmra.mxu1 %vm685_vm5, %v1300_v27  ;;  %v5628_v27 = vld [vmem:[%s6297_s12 + $0x3] ss:$0 sm:$0xff]  ;;  %s8101_s12 = sld [smem:[#allocation25_spill]] }
 0x748   :  { %5248 = vmatmul.msk.f32.gmra.mxu0 %vm415_vm1, %v6683_v28 }
 0x74d   :  { %5225 = vmatmul.msk.f32.gmra.mxu1 %vm685_vm5, %v1303_v60 }
 0x755   :  { %v6899_v35 = vpop.f32.mrf.mxu0  ;;  %5226 = vmatmul.msk.f32.gmra.mxu1 %vm685_vm5, %v1306_v33 }
 0x75d   :  { %v6902_v36 = vpop.f32.mrf.mxu0  ;;  %5254 = vmatmul.msk.f32.vlgmr.msrb.gmra.mxu1 %vm415_vm1, %v6636_v47 }
 0x765   :  { %v6906_v38 = vpop.f32.mrf.mxu0  ;;  %5255 = vmatmul.msk.f32.gmra.mxu1 %vm415_vm1, %v6649_v1 }
 0x76d   :  { %v6910_v39 = vpop.f32.mrf.mxu0  ;;  %5256 = vmatmul.msk.f32.gmra.mxu1 %vm415_vm1, %v6661_v12 }
 0x775   :  { %v6914_v42 = vpop.f32.mrf.mxu0  ;;  %5257 = vmatmul.msk.f32.gmra.mxu1 %vm415_vm1, %v6672_v23 }
 0x77d   :  { %v1377_v43 = vpop.f32.mrf.mxu0  ;;  %5258 = vmatmul.msk.f32.gmra.mxu1 %vm415_vm1, %v6683_v28 }
 0x77e   :  { %v1378_v62 = vadd.f32 %v5626_v52, %v1377_v43 }
 0x785   :  { %v1380_v44 = vpop.f32.mrf.mxu0 }
 0x786   :  { %v1381_v61 = vadd.f32 %v5626_v52, %v1380_v44 }
 0x78d   :  { %v1383_v49 = vpop.f32.mrf.mxu0 }
 0x78e   :  { %v1384_v59 = vadd.f32 %v5626_v52, %v1383_v49 }
 0x795   :  { %v1386_v51 = vpop.f32.mrf.mxu0 }
 0x796   :  { %v1387_v58 = vadd.f32 %v5626_v52, %v1386_v51 }
 0x79d   :  { %v1389_v54 = vpop.f32.mrf.mxu0 }
 0x79e   :  { %v1390_v56 = vadd.f32 %v5626_v52, %v1389_v54 }
 0x7a0   :  { %5227 = vmatpush.msk.msrb.mxu2 %vm830_vm6, %v1390_v56 }
 0x7a2   :  { %1549 = vmatpush.msrb.mxu2 %v1387_v58 }
 0x7a4   :  { %1550 = vmatpush.msrb.mxu2 %v1384_v59 }
 0x7a6   :  { %1551 = vmatpush.msrb.mxu2 %v1381_v61 }
 0x7a8   :  { %1552 = vmatpush.msrb.mxu2 %v1378_v62 }
 0x7b2   :  { %v1439_v0 = vpop.f32.mrf.mxu1 }
 0x7b3   :  { %v1454_v2 = vmul.f32 0.35355338, %v1439_v0 }
 0x7b5   :  { %v1459_v3 = vadd.f32 %v1454_v2, %v6752_v30 }
 0x7b7   :  { %v1464_v4 = vsel %vm758_vm7, %v1459_v3, -inf }
 0x7b8   :  { %1465 = vmax.xlane.f32.xlu0 %v1464_v4 }
 0x7ba   :  { %v1442_v45 = vpop.f32.mrf.mxu1 }
 0x7bb   :  { %v1455_v6 = vmul.f32 0.35355338, %v1442_v45 }
 0x7bd   :  { %v1460_v7 = vadd.f32 %v1455_v6, %v6757_v34 }
 0x7bf   :  { %v1467_v8 = vsel %vm758_vm7, %v1460_v7, -inf }
 0x7c0   :  { %1468 = vmax.xlane.f32.xlu1 %v1467_v8 }
 0x7c2   :  { %v1445_v9 = vpop.f32.mrf.mxu1 }
 0x7c3   :  { %v1456_v10 = vmul.f32 0.35355338, %v1445_v9 }
 0x7c5   :  { %v1461_v11 = vadd.f32 %v1456_v10, %v6762_v41  ;;  %v5233_v41 = vld [vmem:[%s8096_s3 + $0x10] sm:$0xff] }
 0x7c6   :  { %1601 = vmatpush.msrb.mxu3 %v5233_v41  ;;  %v5259_v41 = vld [vmem:[%s6357_s14 + $0x60] sm:$0xff] }
 0x7c7   :  { %v1470_v14 = vsel %vm758_vm7, %v1461_v11, -inf }
 0x7c8   :  { %1471 = vmax.xlane.f32.xlu2 %v1470_v14 }
 0x7ca   :  { %v1448_v15 = vpop.f32.mrf.mxu1 }
 0x7cb   :  { %v1457_v30 = vmul.f32 0.35355338, %v1448_v15 }
 0x7cd   :  { %v1462_v50 = vadd.f32 %v1457_v30, %v6767_v48 }
 0x7cf   :  { %v1473_v16 = vsel %vm758_vm7, %v1462_v50, -inf }
 0x7d0   :  { %1474 = vmax.xlane.f32.xlu0 %v1473_v16 }
 0x7d2   :  { %v1451_v34 = vpop.f32.mrf.mxu1 }
 0x7d3   :  { %v1458_v18 = vmul.f32 0.35355338, %v1451_v34 }
 0x7d5   :  { %v1463_v19 = vadd.f32 %v1458_v18, %v6772_v53 }
 0x7d7   :  { %v1476_v20 = vsel %vm771_vm8, %v1463_v19, -inf }
 0x7d8   :  { %1477 = vmax.xlane.f32.xlu1 %v1476_v20  ;;  %v5261_v20 = vld [vmem:[%s6357_s14 + $0x70] sm:$0xff] }
 0x7da   :  { %v1692_v22 = vpop.f32.mrf.mxu1 }
 0x7db   :  { %v1693_v33 = vadd.f32 %v5628_v27, %v1692_v22  ;;  %v5260_v22 = vld [vmem:[%s6357_s14 + $0x68] sm:$0xff] }
 0x7e2   :  { %v1695_v24 = vpop.f32.mrf.mxu1 }
 0x7e3   :  { %v1696_v53 = vadd.f32 %v5628_v27, %v1695_v24 }
 0x7ea   :  { %v1698_v55 = vpop.f32.mrf.mxu1 }
 0x7eb   :  { %v1699_v32 = vadd.f32 %v5628_v27, %v1698_v55 }
 0x7f2   :  { %v1701_v26 = vpop.f32.mrf.mxu1 }
 0x7f3   :  { %v1702_v48 = vadd.f32 %v5628_v27, %v1701_v26 }
 0x7fa   :  { %v1704_v31 = vpop.f32.mrf.mxu1 }
 0x7fb   :  { %v1705_v60 = vadd.f32 %v5628_v27, %v1704_v31 }
 0x7fd   :  { %5269 = vmatpush.xpose.msk.msra.mxu3 %vm685_vm5, %v1705_v60 }
 0x801   :  { %5270 = vmatpush.xpose.msk.msra.mxu3 %vm685_vm5, %v1702_v48 }
 0x805   :  { %5271 = vmatpush.xpose.msk.msra.mxu3 %vm685_vm5, %v1699_v32 }
 0x809   :  { %5272 = vmatpush.xpose.msk.msra.mxu3 %vm685_vm5, %v1696_v53 }
 0x80d   :  { %5273 = vmatpush.xpose.msk.msra.mxu3 %vm685_vm5, %v1693_v33 }
 0x82b   :  { %v1466_v43 = vpop.xlane.xlu0 %1465 }
 0x82c   :  { %v1479_v44 = vsub.f32 %v1459_v3, %v1466_v43 }
 0x82e   :  { %v1484_v49 = vmul.f32 1.442695, %v1479_v44 }
 0x830   :  { %5717 = vpow2.f32 %v1484_v49 }
 0x833   :  { %v1469_v51 = vpop.xlane.xlu1 %1468 }
 0x834   :  { %v1480_v52 = vsub.f32 %v1460_v7, %v1469_v51 }
 0x836   :  { %v5718_v54 = vpop.eup %5717  ;;  %v1486_v56 = vmul.f32 1.442695, %v1480_v52 }
 0x837   :  { %v1494_v58 = vsel %vm758_vm7, %v5718_v54, 0.0 }
 0x838   :  { %5719 = vpow2.f32 %v1486_v56  ;;  %1495 = vadd.xlane.f32.xlu2 %v1494_v58 }
 0x83b   :  { %v1472_v59 = vpop.xlane.xlu2 %1471 }
 0x83c   :  { %v1481_v61 = vsub.f32 %v1461_v11, %v1472_v59 }
 0x83e   :  { %v5720_v62 = vpop.eup %5719  ;;  %v1488_v0 = vmul.f32 1.442695, %v1481_v61 }
 0x83f   :  { %v1497_v2 = vsel %vm758_vm7, %v5720_v62, 0.0 }
 0x840   :  { %5721 = vpow2.f32 %v1488_v0  ;;  %1498 = vadd.xlane.f32.xlu0 %v1497_v2 }
 0x843   :  { %v1475_v4 = vpop.xlane.xlu0 %1474 }
 0x844   :  { %v1482_v3 = vsub.f32 %v1462_v50, %v1475_v4 }
 0x846   :  { %v5722_v45 = vpop.eup %5721  ;;  %v1490_v6 = vmul.f32 1.442695, %v1482_v3 }
 0x847   :  { %v1500_v7 = vsel %vm758_vm7, %v5722_v45, 0.0 }
 0x848   :  { %5723 = vpow2.f32 %v1490_v6  ;;  %1501 = vadd.xlane.f32.xlu1 %v1500_v7  ;;  %v5629_v6 = vld [vmem:[%s8094_s9 + $0x3] ss:$0 sm:$0xff]  ;;  %s8124_s9 = sld [smem:[#allocation56_spill]] }
 0x84b   :  { %v1478_v8 = vpop.xlane.xlu1 %1477 }
 0x84c   :  { %v1483_v9 = vsub.f32 %v1463_v19, %v1478_v8  ;;  %v5262_v19 = vld [vmem:[%s6357_s14 + $0x78] sm:$0xff]  ;;  %s8098_s14 = sld [smem:[#allocation34_spill]] }
 0x84d   :  { %1729 = vmatpush.msra.mxu2 %v5262_v19 }
 0x84e   :  { %v5724_v10 = vpop.eup %5723  ;;  %v1492_v11 = vmul.f32 1.442695, %v1483_v9 }
 0x84f   :  { %v1503_v14 = vsel %vm758_vm7, %v5724_v10, 0.0  ;;  %1730 = vmatpush.msra.mxu2 %v5261_v20  ;;  %v5909_v20 = vld [vmem:[%s8095_s13] sm:$0xff] }
 0x850   :  { %5725 = vpow2.f32 %v1492_v11  ;;  %1504 = vadd.xlane.f32.xlu2 %v1503_v14 }
 0x851   :  { %1731 = vmatpush.msra.mxu2 %v5260_v22 }
 0x853   :  { %1732 = vmatpush.msra.mxu2 %v5259_v41 }
 0x856   :  { %v5726_v15 = vpop.eup %5725 }
 0x857   :  { %v1506_v30 = vsel %vm771_vm8, %v5726_v15, 0.0 }
 0x858   :  { %1507 = vadd.xlane.f32.xlu0 %v1506_v30 }
 0x8ab   :  { %v1496_v50 = vpop.xlane.xlu2 %1495 }
 0x8ac   :  { %5727 = vrcp.f32 %v1496_v50 }
 0x8b2   :  { %v5728_v16 = vpop.eup %5727 }
 0x8b3   :  { %v1514_v34 = vmul.f32 %v5728_v16, %v5718_v54  ;;  %v1499_v18 = vpop.xlane.xlu0 %1498 }
 0x8b4   :  { %5729 = vrcp.f32 %v1499_v18 }
 0x8b5   :  { %5228 = vmatmul.msk.f32.vlgmr.msrb.gmra.mxu2 %vm758_vm7, %v1514_v34 }
 0x8ba   :  { %v5730_v24 = vpop.eup %5729 }
 0x8bb   :  { %v1502_v55 = vpop.xlane.xlu1 %1501  ;;  %v1515_v26 = vmul.f32 %v5730_v24, %v5720_v62 }
 0x8bc   :  { %5731 = vrcp.f32 %v1502_v55 }
 0x8bd   :  { %5229 = vmatmul.msk.f32.gmra.mxu2 %vm758_vm7, %v1515_v26  ;;  %v5910_v26 = vld [vmem:[%s8095_s13 + $0x8] sm:$0xff] }
 0x8c2   :  { %v5732_v27 = vpop.eup %5731 }
 0x8c3   :  { %v1505_v31 = vpop.xlane.xlu2 %1504  ;;  %v1516_v60 = vmul.f32 %v5732_v27, %v5722_v45 }
 0x8c4   :  { %5733 = vrcp.f32 %v1505_v31 }
 0x8c5   :  { %5230 = vmatmul.msk.f32.gmra.mxu2 %vm758_vm7, %v1516_v60 }
 0x8ca   :  { %v5734_v48 = vpop.eup %5733 }
 0x8cb   :  { %v1508_v32 = vpop.xlane.xlu0 %1507  ;;  %v1517_v53 = vmul.f32 %v5734_v48, %v5724_v10 }
 0x8cc   :  { %5735 = vrcp.f32 %v1508_v32  ;;  %v5911_v32 = vld [vmem:[%s8095_s13 + $0x10] sm:$0xff] }
 0x8cd   :  { %5231 = vmatmul.msk.f32.gmra.mxu2 %vm758_vm7, %v1517_v53 }
 0x8d2   :  { %v5736_v33 = vpop.eup %5735 }
 0x8d3   :  { %v1518_v43 = vmul.f32 %v5736_v33, %v5726_v15 }
 0x8d5   :  { %5232 = vmatmul.msk.f32.gmra.mxu2 %vm758_vm7, %v1518_v43 }
 0x8dd   :  { %5264 = vmatmul.msk.f32.vlgmr.msra.gmra.mxu2 %vm415_vm1, %v6636_v47 }
 0x8e5   :  { %5265 = vmatmul.msk.f32.gmra.mxu2 %vm415_vm1, %v6649_v1  ;;  %v1650_v1 = vpop.f32.mrf.mxu0 }
 0x8ed   :  { %5266 = vmatmul.msk.f32.gmra.mxu2 %vm415_vm1, %v6661_v12  ;;  %v1653_v52 = vpop.f32.mrf.mxu0 }
 0x8f5   :  { %5267 = vmatmul.msk.f32.gmra.mxu2 %vm415_vm1, %v6672_v23  ;;  %v5627_v23 = vld [vmem:[%s8093_s5 + $0x3] ss:$0 sm:$0xff]  ;;  %v1656_v58 = vpop.f32.mrf.mxu0  ;;  %s8123_s5 = sld [smem:[#allocation55_spill]] }
 0x8f6   :  { %v1651_v54 = vadd.f32 %v5627_v23, %v1650_v1  ;;  %v1654_v56 = vadd.f32 %v5627_v23, %v1653_v52  ;;  %v1657_v61 = vadd.f32 %v5627_v23, %v1656_v58 }
 0x8fd   :  { %5268 = vmatmul.msk.f32.gmra.mxu2 %vm415_vm1, %v6683_v28  ;;  %v1659_v0 = vpop.f32.mrf.mxu0 }
 0x8fe   :  { %v1660_v2 = vadd.f32 %v5627_v23, %v1659_v0 }
 0x905   :  { %v1662_v3 = vpop.f32.mrf.mxu0 }
 0x906   :  { %v1663_v45 = vadd.f32 %v5627_v23, %v1662_v3  ;;  %v5913_v23 = vld [vmem:[%s8095_s13 + $0x20] sm:$0x3] }
 0x938   :  { %v1554_v44 = vpop.f32.mrf.mxu2 }
 0x939   :  { %5234 = vmatmul.msk.f32.vlgmr.msrb.gmra.mxu3 %vm685_vm5, %v1554_v44 }
 0x940   :  { %v1557_v49 = vpop.f32.mrf.mxu2 }
 0x941   :  { %5235 = vmatmul.msk.f32.gmra.mxu3 %vm685_vm5, %v1557_v49  ;;  %v5912_v49 = vld [vmem:[%s8095_s13 + $0x18] sm:$0xff] }
 0x948   :  { %v1560_v47 = vpop.f32.mrf.mxu2 }
 0x949   :  { %5236 = vmatmul.msk.f32.gmra.mxu3 %vm685_vm5, %v1560_v47 }
 0x950   :  { %v1563_v51 = vpop.f32.mrf.mxu2 }
 0x951   :  { %5237 = vmatmul.msk.f32.gmra.mxu3 %vm685_vm5, %v1563_v51 }
 0x958   :  { %v1566_v12 = vpop.f32.mrf.mxu2 }
 0x959   :  { %5238 = vmatmul.msk.f32.gmra.mxu3 %vm685_vm5, %v1566_v12 }
 0x960   :  { %v1734_v28 = vpop.f32.mrf.mxu2 }
 0x961   :  { %5274 = vmatmul.msk.f32.vlgmr.msra.gmra.mxu3 %vm685_vm5, %v1651_v54  ;;  %v1735_v14 = vadd.f32 %v5629_v6, %v1734_v28 }
 0x968   :  { %v1737_v59 = vpop.f32.mrf.mxu2 }
 0x969   :  { %5275 = vmatmul.msk.f32.gmra.mxu3 %vm685_vm5, %v1654_v56  ;;  %v1738_v11 = vadd.f32 %v5629_v6, %v1737_v59 }
 0x970   :  { %v1740_v62 = vpop.f32.mrf.mxu2 }
 0x971   :  { %5276 = vmatmul.msk.f32.gmra.mxu3 %vm685_vm5, %v1657_v61  ;;  %v1741_v10 = vadd.f32 %v5629_v6, %v1740_v62 }
 0x978   :  { %v1743_v4 = vpop.f32.mrf.mxu2 }
 0x979   :  { %5277 = vmatmul.msk.f32.gmra.mxu3 %vm685_vm5, %v1660_v2  ;;  %v1744_v9 = vadd.f32 %v5629_v6, %v1743_v4 }
 0x980   :  { %v1746_v7 = vpop.f32.mrf.mxu2 }
 0x981   :  { %v1747_v8 = vadd.f32 %v5629_v6, %v1746_v7  ;;  %5278 = vmatmul.msk.f32.gmra.mxu3 %vm685_vm5, %v1663_v45 }
 0x983   :  { %5279 = vmatpush.msk.msra.mxu0 %vm830_vm6, %v1747_v8 }
 0x985   :  { %1906 = vmatpush.msra.mxu0 %v1744_v9 }
 0x987   :  { %1907 = vmatpush.msra.mxu0 %v1741_v10 }
 0x989   :  { %1908 = vmatpush.msra.mxu0 %v1738_v11 }
 0x98b   :  { %1909 = vmatpush.msra.mxu0 %v1735_v14 }
 0x9bc   :  { %v6984_v15 = vpop.f32.mrf.mxu3 }
 0x9c4   :  { %v6986_v30 = vpop.f32.mrf.mxu3 }
 0x9cc   :  { %v6988_v50 = vpop.f32.mrf.mxu3 }
 0x9d4   :  { %v6990_v16 = vpop.f32.mrf.mxu3 }
 0x9dc   :  { %v6992_v34 = vpop.f32.mrf.mxu3 }
 0x9e4   :  { %v1796_v18 = vpop.f32.mrf.mxu3 }
 0x9e5   :  { %v1811_v19 = vmul.f32 0.35355338, %v1796_v18 }
 0x9e7   :  { %v1816_v22 = vadd.f32 %v5909_v20, %v1811_v19 }
 0x9e9   :  { %v1821_v41 = vsel %vm758_vm7, %v1816_v22, -inf }
 0x9ea   :  { %1822 = vmax.xlane.f32.xlu1 %v1821_v41 }
 0x9ec   :  { %v1799_v24 = vpop.f32.mrf.mxu3 }
 0x9ed   :  { %v1812_v55 = vmul.f32 0.35355338, %v1799_v24 }
 0x9ef   :  { %v1817_v27 = vadd.f32 %v5910_v26, %v1812_v55 }
 0x9f1   :  { %v1824_v31 = vsel %vm758_vm7, %v1817_v27, -inf }
 0x9f2   :  { %1825 = vmax.xlane.f32.xlu2 %v1824_v31 }
 0x9f4   :  { %v1802_v60 = vpop.f32.mrf.mxu3 }
 0x9f5   :  { %v1813_v48 = vmul.f32 0.35355338, %v1802_v60 }
 0x9f7   :  { %v1818_v53 = vadd.f32 %v5911_v32, %v1813_v48  ;;  %v5285_v48 = vld [vmem:[%s8096_s3 + $0x18] sm:$0xff]  ;;  %s8128_s3 = sld [smem:[#allocation48_spill]] }
 0x9f8   :  { %1958 = vmatpush.msra.mxu1 %v5285_v48 }
 0x9f9   :  { %v1827_v33 = vsel %vm758_vm7, %v1818_v53, -inf }
 0x9fa   :  { %1828 = vmax.xlane.f32.xlu0 %v1827_v33 }
 0x9fc   :  { %v1805_v43 = vpop.f32.mrf.mxu3 }
 0x9fd   :  { %v1814_v44 = vmul.f32 0.35355338, %v1805_v43 }
 0x9ff   :  { %v1819_v47 = vadd.f32 %v5912_v49, %v1814_v44 }
 0xa01   :  { %v1830_v51 = vsel %vm758_vm7, %v1819_v47, -inf }
 0xa02   :  { %1831 = vmax.xlane.f32.xlu1 %v1830_v51 }
 0xa04   :  { %v1808_v1 = vpop.f32.mrf.mxu3 }
 0xa05   :  { %v1815_v12 = vmul.f32 0.35355338, %v1808_v1 }
 0xa07   :  { %v1820_v52 = vadd.f32 %v5913_v23, %v1815_v12 }
 0xa09   :  { %v1833_v54 = vsel %vm771_vm8, %v1820_v52, -inf }
 0xa0a   :  { %1834 = vmax.xlane.f32.xlu2 %v1833_v54  ;;  %v1992_v54 = vld [vmem:[%s8097_s8 + $0x18] sm:$0xff] }
 0xa0b   :  { %2024 = vmatpush.msrb.mxu2 %v1992_v54 }
 0xa5d   :  { %v1823_v28 = vpop.xlane.xlu1 %1822 }
 0xa5e   :  { %v1836_v56 = vsub.f32 %v1816_v22, %v1823_v28 }
 0xa60   :  { %v1841_v58 = vmul.f32 1.442695, %v1836_v56 }
 0xa62   :  { %5737 = vpow2.f32 %v1841_v58 }
 0xa65   :  { %v1826_v59 = vpop.xlane.xlu2 %1825 }
 0xa66   :  { %v1837_v61 = vsub.f32 %v1817_v27, %v1826_v59 }
 0xa68   :  { %v5738_v62 = vpop.eup %5737  ;;  %v1843_v0 = vmul.f32 1.442695, %v1837_v61  ;;  %v1991_v61 = vld [vmem:[%s8097_s8 + $0x10] sm:$0xff] }
 0xa69   :  { %v1851_v2 = vsel %vm758_vm7, %v5738_v62, 0.0  ;;  %2025 = vmatpush.msrb.mxu2 %v1991_v61 }
 0xa6a   :  { %5739 = vpow2.f32 %v1843_v0  ;;  %1852 = vadd.xlane.f32.xlu0 %v1851_v2  ;;  %v1989_v0 = vld [vmem:[%s8097_s8] sm:$0xff]  ;;  %v1252_v2 = vadd.f32 %v6920_v46, %v6899_v35  ;;  %v1258_v46 = vadd.f32 %v6925_v57, %v6906_v38  ;;  %v1264_v38 = vadd.f32 %v6870_v5, %v6914_v42 }
 0xa6c   :  { %v1622_v57 = vadd.f32 %v6992_v34, %v1264_v38 }
 0xa6d   :  { %v1829_v4 = vpop.xlane.xlu0 %1828 }
 0xa6e   :  { %v1838_v3 = vsub.f32 %v1818_v53, %v1829_v4  ;;  %v1618_v4 = vadd.f32 %v6984_v15, %v1252_v2  ;;  %v1620_v15 = vadd.f32 %v6988_v50, %v1258_v46 }
 0xa70   :  { %v5740_v45 = vpop.eup %5739  ;;  %v1845_v6 = vmul.f32 1.442695, %v1838_v3  ;;  %v5630_v3 = vld [vmem:[%s8098_s14] ss:$0 sm:$0xff]  ;;  %s8130_s14 = sld [smem:[#allocation49_spill]] }
 0xa71   :  { %v1854_v7 = vsel %vm758_vm7, %v5740_v45, 0.0 }
 0xa72   :  { %5741 = vpow2.f32 %v1845_v6  ;;  %1855 = vadd.xlane.f32.xlu1 %v1854_v7 }
 0xa75   :  { %v1832_v8 = vpop.xlane.xlu1 %1831 }
 0xa76   :  { %v1839_v9 = vsub.f32 %v1819_v47, %v1832_v8  ;;  %v1255_v8 = vadd.f32 %v6922_v40, %v6902_v36 }
 0xa78   :  { %v5742_v10 = vpop.eup %5741  ;;  %v1847_v11 = vmul.f32 1.442695, %v1839_v9  ;;  %v2054_v9 = vld [vmem:[%s8099_s19] sm:$0xf]  ;;  %s8131_s19 = sld [smem:[#allocation46_spill]] }
 0xa79   :  { %v1857_v14 = vsel %vm758_vm7, %v5742_v10, 0.0  ;;  %5296 = vmatpush.msk.msrb.mxu3 %vm2075_vm9, %v2054_v9 }
 0xa7a   :  { %5743 = vpow2.f32 %v1847_v11  ;;  %1858 = vadd.xlane.f32.xlu2 %v1857_v14 }
 0xa7d   :  { %v1835_v18 = vpop.xlane.xlu2 %1834 }
 0xa7e   :  { %v1840_v19 = vsub.f32 %v1820_v52, %v1835_v18 }
 0xa80   :  { %v5744_v20 = vpop.eup %5743  ;;  %v1849_v22 = vmul.f32 1.442695, %v1840_v19  ;;  %v1261_v19 = vadd.f32 %v6928_v63, %v6910_v39  ;;  %v5631_v39 = vld [vmem:[%s8100_s24] ss:$0 sm:$0xff]  ;;  %s8132_s24 = sld [smem:[#allocation47_spill]] }
 0xa81   :  { %v1860_v41 = vsel %vm758_vm7, %v5744_v20, 0.0 }
 0xa82   :  { %5745 = vpow2.f32 %v1849_v22  ;;  %1861 = vadd.xlane.f32.xlu0 %v1860_v41 }
 0xa88   :  { %v5746_v24 = vpop.eup %5745 }
 0xa89   :  { %v1863_v55 = vsel %vm771_vm8, %v5746_v24, 0.0 }
 0xa8a   :  { %1864 = vadd.xlane.f32.xlu1 %v1863_v55 }
 0xadd   :  { %v1853_v26 = vpop.xlane.xlu0 %1852 }
 0xade   :  { %5747 = vrcp.f32 %v1853_v26 }
 0xae4   :  { %v5748_v27 = vpop.eup %5747 }
 0xae5   :  { %v1871_v31 = vmul.f32 %v5748_v27, %v5738_v62  ;;  %v1856_v60 = vpop.xlane.xlu1 %1855  ;;  %v1990_v62 = vld [vmem:[%s8097_s8 + $0x8] sm:$0xff]  ;;  %s8129_s8 = sld [smem:[#allocation51_spill]] }
 0xae6   :  { %5749 = vrcp.f32 %v1856_v60  ;;  %2026 = vmatpush.msrb.mxu2 %v1990_v62 }
 0xae7   :  { %5280 = vmatmul.msk.f32.vlgmr.msra.gmra.mxu0 %vm758_vm7, %v1871_v31 }
 0xae8   :  { %2027 = vmatpush.msrb.mxu2 %v1989_v0 }
 0xaec   :  { %v5750_v32 = vpop.eup %5749 }
 0xaed   :  { %v1859_v53 = vpop.xlane.xlu2 %1858  ;;  %v1872_v33 = vmul.f32 %v5750_v32, %v5740_v45 }
 0xaee   :  { %5751 = vrcp.f32 %v1859_v53 }
 0xaef   :  { %5281 = vmatmul.msk.f32.gmra.mxu0 %vm758_vm7, %v1872_v33 }
 0xaf4   :  { %v5752_v43 = vpop.eup %5751 }
 0xaf5   :  { %v1862_v44 = vpop.xlane.xlu0 %1861  ;;  %v1873_v49 = vmul.f32 %v5752_v43, %v5742_v10  ;;  %v1619_v10 = vadd.f32 %v6986_v30, %v1255_v8  ;;  %v1621_v30 = vadd.f32 %v6990_v16, %v1261_v19 }
 0xaf6   :  { %5753 = vrcp.f32 %v1862_v44 }
 0xaf7   :  { %5282 = vmatmul.msk.f32.gmra.mxu0 %vm758_vm7, %v1873_v49  ;;  %v5632_v49 = vld [vmem:[%s8101_s12] ss:$0 sm:$0xff]  ;;  %s8133_s12 = sld [smem:[#allocation61_spill]] }
 0xafc   :  { %v5754_v47 = vpop.eup %5753 }
 0xafd   :  { %v1865_v51 = vpop.xlane.xlu1 %1864  ;;  %v1874_v1 = vmul.f32 %v5754_v47, %v5744_v20 }
 0xafe   :  { %5755 = vrcp.f32 %v1865_v51 }
 0xaff   :  { %5283 = vmatmul.msk.f32.gmra.mxu0 %vm758_vm7, %v1874_v1 }
 0xb04   :  { %v5756_v12 = vpop.eup %5755 }
 0xb05   :  { %v1875_v23 = vmul.f32 %v5756_v12, %v5746_v24 }
 0xb07   :  { %5284 = vmatmul.msk.f32.gmra.mxu0 %vm758_vm7, %v1875_v23 }
 0xb64   :  { %v1911_v52 = vpop.f32.mrf.mxu0 }
 0xb65   :  { %5286 = vmatmul.msk.f32.vlgmr.msra.gmra.mxu1 %vm685_vm5, %v1911_v52 }
 0xb6c   :  { %v1914_v28 = vpop.f32.mrf.mxu0 }
 0xb6d   :  { %5287 = vmatmul.msk.f32.gmra.mxu1 %vm685_vm5, %v1914_v28 }
 0xb74   :  { %v1917_v56 = vpop.f32.mrf.mxu0 }
 0xb75   :  { %5288 = vmatmul.msk.f32.gmra.mxu1 %vm685_vm5, %v1917_v56 }
 0xb7c   :  { %v1920_v58 = vpop.f32.mrf.mxu0 }
 0xb7d   :  { %5289 = vmatmul.msk.f32.gmra.mxu1 %vm685_vm5, %v1920_v58 }
 0xb84   :  { %v1923_v59 = vpop.f32.mrf.mxu0 }
 0xb85   :  { %5290 = vmatmul.msk.f32.gmra.mxu1 %vm685_vm5, %v1923_v59 }
 0xbe2   :  { %v1960_v45 = vpop.f32.mrf.mxu1 }
 0xbe3   :  { %v1975_v6 = vadd.f32 %v1960_v45, %v1618_v4 }
 0xbe5   :  { %v1984_v7 = vadd.f32 %v5630_v3, %v1975_v6 }
 0xbe7   :  { %5291 = vmatmul.msk.f32.vlgmr.msrb.gmra.mxu2 %vm415_vm1, %v1984_v7  ;;  %v2049_v51 = vadd.f32 %v1984_v7, %v6550_v13 }
 0xbea   :  { %v1963_v11 = vpop.f32.mrf.mxu1 }
 0xbeb   :  { %v1976_v14 = vadd.f32 %v1963_v11, %v1619_v10 }
 0xbed   :  { %v1985_v35 = vadd.f32 %v5630_v3, %v1976_v14 }
 0xbef   :  { %5292 = vmatmul.msk.f32.gmra.mxu2 %vm415_vm1, %v1985_v35  ;;  %v2050_v54 = vadd.f32 %v1985_v35, %v6555_v17 }
 0xbf2   :  { %v1966_v18 = vpop.f32.mrf.mxu1 }
 0xbf3   :  { %v1977_v36 = vadd.f32 %v1966_v18, %v1620_v15 }
 0xbf5   :  { %v1986_v40 = vadd.f32 %v5630_v3, %v1977_v36 }
 0xbf7   :  { %5293 = vmatmul.msk.f32.gmra.mxu2 %vm415_vm1, %v1986_v40  ;;  %v2051_v13 = vadd.f32 %v1986_v40, %v6560_v21 }
 0xbfa   :  { %v1969_v20 = vpop.f32.mrf.mxu1 }
 0xbfb   :  { %v1978_v22 = vadd.f32 %v1969_v20, %v1621_v30 }
 0xbfd   :  { %v1987_v41 = vadd.f32 %v5630_v3, %v1978_v22 }
 0xbff   :  { %5294 = vmatmul.msk.f32.gmra.mxu2 %vm415_vm1, %v1987_v41  ;;  %v2052_v17 = vadd.f32 %v1987_v41, %v6565_v25 }
 0xc02   :  { %v1972_v50 = vpop.f32.mrf.mxu1 }
 0xc03   :  { %v1979_v24 = vadd.f32 %v1972_v50, %v1622_v57 }
 0xc05   :  { %v1988_v55 = vadd.f32 %v5630_v3, %v1979_v24 }
 0xc07   :  { %5295 = vmatmul.msk.f32.gmra.mxu2 %vm415_vm1, %v1988_v55  ;;  %v2053_v21 = vadd.f32 %v1988_v55, %v6570_v29 }
 0xc6a   :  { %v2029_v63 = vpop.f32.mrf.mxu2 }
 0xc6b   :  { %v2030_v26 = vadd.f32 %v5631_v39, %v2029_v63 }
 0xc6d   :  { %v2044_v16 = vmax.f32 %v2030_v26, 0.0 }
 0xc6f   :  { %5297 = vmatmul.msk.f32.vlgmr.msrb.gmra.mxu3 %vm2059_vm10, %v2044_v16 }
 0xc72   :  { %v2032_v27 = vpop.f32.mrf.mxu2 }
 0xc73   :  { %v2033_v31 = vadd.f32 %v5631_v39, %v2032_v27  ;;  %v2247_v27 = vld [vmem:[%s8102_s20 + $0x18] sm:$0xff] }
 0xc74   :  { %2279 = vmatpush.msrb.mxu0 %v2247_v27 }
 0xc75   :  { %v2045_v5 = vmax.f32 %v2033_v31, 0.0  ;;  %v2246_v31 = vld [vmem:[%s8102_s20 + $0x10] sm:$0xff] }
 0xc76   :  { %2280 = vmatpush.msrb.mxu0 %v2246_v31 }
 0xc77   :  { %5298 = vmatmul.msk.f32.gmra.mxu3 %vm2059_vm10, %v2045_v5  ;;  %v2245_v5 = vld [vmem:[%s8102_s20 + $0x8] sm:$0xff] }
 0xc78   :  { %2281 = vmatpush.msrb.mxu0 %v2245_v5 }
 0xc7a   :  { %v2035_v42 = vpop.f32.mrf.mxu2 }
 0xc7b   :  { %v2036_v34 = vadd.f32 %v5631_v39, %v2035_v42  ;;  %v2244_v42 = vld [vmem:[%s8102_s20] sm:$0xff]  ;;  %s8134_s20 = sld [smem:[#allocation62_spill]] }
 0xc7c   :  { %2282 = vmatpush.msrb.mxu0 %v2244_v42 }
 0xc7d   :  { %v2046_v60 = vmax.f32 %v2036_v34, 0.0 }
 0xc7f   :  { %5299 = vmatmul.msk.f32.gmra.mxu3 %vm2059_vm10, %v2046_v60 }
 0xc82   :  { %v2038_v48 = vpop.f32.mrf.mxu2 }
 0xc83   :  { %v2039_v32 = vadd.f32 %v5631_v39, %v2038_v48 }
 0xc85   :  { %v2047_v53 = vmax.f32 %v2039_v32, 0.0 }
 0xc87   :  { %5300 = vmatmul.msk.f32.gmra.mxu3 %vm2059_vm10, %v2047_v53 }
 0xc8a   :  { %v2041_v33 = vpop.f32.mrf.mxu2 }
 0xc8b   :  { %v2042_v43 = vadd.f32 %v5631_v39, %v2041_v33 }
 0xc8d   :  { %v2048_v44 = vmax.f32 %v2042_v43, 0.0 }
 0xc8f   :  { %5301 = vmatmul.msk.f32.gmra.mxu3 %vm2059_vm10, %v2048_v44 }
 0xcf2   :  { %v2096_v47 = vpop.f32.mrf.mxu3 }
 0xcf3   :  { %v2097_v1 = vadd.f32 %v5632_v49, %v2096_v47 }
 0xcf5   :  { %v7055_v12 = vadd.f32 %v2097_v1, %v2049_v51 }
 0xcf7   :  { %v2118_v23 = vsel %vm415_vm1, %v7055_v12, 0.0 }
 0xcf8   :  { %2119 = vadd.xlane.f32.xlu2 %v2118_v23 }
 0xcfa   :  { %v2099_v52 = vpop.f32.mrf.mxu3 }
 0xcfb   :  { %v2100_v28 = vadd.f32 %v5632_v49, %v2099_v52 }
 0xcfd   :  { %v7060_v56 = vadd.f32 %v2100_v28, %v2050_v54 }
 0xcff   :  { %v2121_v58 = vsel %vm415_vm1, %v7060_v56, 0.0 }
 0xd00   :  { %2122 = vadd.xlane.f32.xlu0 %v2121_v58 }
 0xd02   :  { %v2102_v59 = vpop.f32.mrf.mxu3 }
 0xd03   :  { %v2103_v61 = vadd.f32 %v5632_v49, %v2102_v59  ;;  %v7122_v59 = vld [vmem:[%s8103_s4] ss:$0 sm:$0xff]  ;;  %s6218_s4 = smov [#allocation16]  }
 0xd05   :  { %v7065_v62 = vadd.f32 %v2103_v61, %v2051_v13 }
 0xd07   :  { %v2124_v0 = vsel %vm415_vm1, %v7065_v62, 0.0 }
 0xd08   :  { %2125 = vadd.xlane.f32.xlu1 %v2124_v0  ;;  %v7125_v0 = vld [vmem:[%s8104_s7] ss:$0 sm:$0xff]  ;;  %s5021_s7 = sshll.u32 %s6218_s4, 4  ;;  %s5022_s7 = int_to_ptr.vmem [resolvable:$true] %s5021_s7 }
 0xd0a   :  { %v2105_v2 = vpop.f32.mrf.mxu3 }
 0xd0b   :  { %v2106_v4 = vadd.f32 %v5632_v49, %v2105_v2 }
 0xd0d   :  { %v7070_v3 = vadd.f32 %v2106_v4, %v2052_v17 }
 0xd0f   :  { %v2127_v45 = vsel %vm415_vm1, %v7070_v3, 0.0 }
 0xd10   :  { %2128 = vadd.xlane.f32.xlu2 %v2127_v45 }
 0xd12   :  { %v2108_v6 = vpop.f32.mrf.mxu3 }
 0xd13   :  { %v2109_v7 = vadd.f32 %v5632_v49, %v2108_v6 }
 0xd15   :  { %v7075_v8 = vadd.f32 %v2109_v7, %v2053_v21 }
 0xd17   :  { %v2130_v9 = vsel %vm428_vm2, %v7075_v8, 0.0 }
 0xd18   :  { %2131 = vadd.xlane.f32.xlu0 %v2130_v9 }
 0xd6b   :  { %v2120_v10 = vpop.xlane.xlu2 %2119 }
 0xd6c   :  { %v2133_v25 = vmul.f32 %v2120_v10, %v6574_v37 }
 0xd6e   :  { %v7081_v11 = vsub.f32 %v7055_v12, %v2133_v25 }
 0xd70   :  { %v2143_v14 = vmul.f32 %v7081_v11, %v7081_v11 }
 0xd72   :  { %v2148_v35 = vsel %vm415_vm1, %v2143_v14, 0.0 }
 0xd73   :  { %v2123_v46 = vpop.xlane.xlu0 %2122  ;;  %2149 = vadd.xlane.f32.xlu1 %v2148_v35 }
 0xd74   :  { %v2134_v29 = vmul.f32 %v2123_v46, %v6574_v37 }
 0xd76   :  { %v7088_v15 = vsub.f32 %v7060_v56, %v2134_v29 }
 0xd78   :  { %v2144_v18 = vmul.f32 %v7088_v15, %v7088_v15 }
 0xd7a   :  { %v2151_v36 = vsel %vm415_vm1, %v2144_v18, 0.0 }
 0xd7b   :  { %v2126_v40 = vpop.xlane.xlu1 %2125  ;;  %2152 = vadd.xlane.f32.xlu2 %v2151_v36 }
 0xd7c   :  { %v2135_v19 = vmul.f32 %v2126_v40, %v6574_v37 }
 0xd7e   :  { %v7095_v30 = vsub.f32 %v7065_v62, %v2135_v19 }
 0xd80   :  { %v2145_v20 = vmul.f32 %v7095_v30, %v7095_v30 }
 0xd82   :  { %v2154_v22 = vsel %vm415_vm1, %v2145_v20, 0.0 }
 0xd83   :  { %v2129_v41 = vpop.xlane.xlu2 %2128  ;;  %2155 = vadd.xlane.f32.xlu0 %v2154_v22 }
 0xd84   :  { %v2136_v38 = vmul.f32 %v2129_v41, %v6574_v37 }
 0xd86   :  { %v7102_v57 = vsub.f32 %v7070_v3, %v2136_v38 }
 0xd88   :  { %v2146_v50 = vmul.f32 %v7102_v57, %v7102_v57 }
 0xd8a   :  { %v2157_v24 = vsel %vm415_vm1, %v2146_v50, 0.0 }
 0xd8b   :  { %2158 = vadd.xlane.f32.xlu1 %v2157_v24  ;;  %v2132_v55 = vpop.xlane.xlu0 %2131 }
 0xd8c   :  { %v2137_v39 = vmul.f32 %v2132_v55, %v6574_v37 }
 0xd8e   :  { %v7109_v63 = vsub.f32 %v7075_v8, %v2137_v39 }
 0xd90   :  { %v2147_v26 = vmul.f32 %v7109_v63, %v7109_v63 }
 0xd92   :  { %v2160_v16 = vsel %vm428_vm2, %v2147_v26, 0.0 }
 0xd93   :  { %2161 = vadd.xlane.f32.xlu2 %v2160_v16 }
 0xde6   :  { %v2150_v34 = vpop.xlane.xlu1 %2149 }
 0xde7   :  { %v2163_v60 = vmul.f32 %v2150_v34, %v6574_v37 }
 0xde9   :  { %v2168_v48 = vadd.f32 1e-06, %v2163_v60 }
 0xdeb   :  { %5757 = vrsqrt.f32 %v2168_v48  ;;  %vm2179_vm12 = vweird.f32 %v2168_v48 }
 0xdee   :  { %v2153_v32 = vpop.xlane.xlu2 %2152 }
 0xdef   :  { %v2164_v53 = vmul.f32 %v2153_v32, %v6574_v37 }
 0xdf1   :  { %v5758_v33 = vpop.eup %5757  ;;  %v2169_v43 = vadd.f32 1e-06, %v2164_v53 }
 0xdf2   :  { %v2174_v44 = vmul.f32 %v5758_v33, %v2168_v48  ;;  %vm2180_vm11 = vweird.f32 %v5758_v33 }
 0xdf3   :  { %5759 = vrsqrt.f32 %v2169_v43  ;;  %vm2181_vm13 = vmor %vm2179_vm12, %vm2180_vm11  ;;  %vm2189_vm15 = vweird.f32 %v2169_v43 }
 0xdf4   :  { %v2175_v49 = vmul.f32 %v5758_v33, %v2174_v44 }
 0xdf6   :  { %v2176_v47 = vmul.f32 0.5, %v2175_v49  ;;  %v2156_v51 = vpop.xlane.xlu0 %2155 }
 0xdf7   :  { %v2165_v1 = vmul.f32 %v2156_v51, %v6574_v37  ;;  %v2514_v51 = vld [vmem:[%s8105_s10 + $0x78] sm:$0xff] }
 0xdf8   :  { %v2177_v23 = vsub.f32 1.5, %v2176_v47  ;;  %2519 = vmatpush.msrb.mxu1 %v2514_v51 }
 0xdf9   :  { %v5760_v52 = vpop.eup %5759  ;;  %v2170_v54 = vadd.f32 1e-06, %v2165_v1  ;;  %v7151_v1 = vld [vmem:[%s8106_s17] ss:$0 sm:$0xff] }
 0xdfa   :  { %v2178_v28 = vmul.f32 %v5758_v33, %v2177_v23  ;;  %v2184_v58 = vmul.f32 %v5760_v52, %v2169_v43  ;;  %vm2190_vm14 = vweird.f32 %v5760_v52  ;;  %v2513_v23 = vld [vmem:[%s8105_s10 + $0x70] sm:$0xff] }
 0xdfb   :  { %5761 = vrsqrt.f32 %v2170_v54  ;;  %vm2191_vm0 = vmor %vm2189_vm15, %vm2190_vm14  ;;  %vm2199_vm4 = vweird.f32 %v2170_v54  ;;  %2520 = vmatpush.msrb.mxu1 %v2513_v23 }
 0xdfc   :  { %v2182_v13 = vsel %vm2181_vm13, %v5758_v33, %v2178_v28  ;;  %v2185_v61 = vmul.f32 %v5760_v52, %v2184_v58  ;;  %v2511_v28 = vld [vmem:[%s8105_s10 + $0x60] sm:$0xff] }
 0xdfd   :  { %v2223_v2 = vmul.f32 %v2182_v13, %v7081_v11 }
 0xdfe   :  { %v2186_v17 = vmul.f32 0.5, %v2185_v61  ;;  %v2159_v4 = vpop.xlane.xlu1 %2158  ;;  %v2509_v61 = vld [vmem:[%s8105_s10 + $0x50] sm:$0xff] }
 0xdff   :  { %v2231_v45 = vmul.f32 %v7122_v59, %v2223_v2  ;;  %v2166_v6 = vmul.f32 %v2159_v4, %v6574_v37  ;;  %v2508_v2 = vld [vmem:[%s8105_s10 + $0x48] sm:$0xff] }
 0xe00   :  { %v2187_v21 = vsub.f32 1.5, %v2186_v17 }
 0xe01   :  { %v5762_v7 = vpop.eup %5761  ;;  %v2239_v9 = vadd.f32 %v7125_v0, %v2231_v45  ;;  %v2171_v10 = vadd.f32 1e-06, %v2166_v6  ;;  %v2507_v6 = vld [vmem:[%s8105_s10 + $0x40] sm:$0xff] }
 0xe02   :  { %v2188_v25 = vmul.f32 %v5760_v52, %v2187_v21  ;;  %v2194_v14 = vmul.f32 %v5762_v7, %v2170_v54  ;;  %vm2200_vm3 = vweird.f32 %v5762_v7  ;;  %v2506_v21 = vld [vmem:[%s8105_s10 + $0x38] sm:$0xff] }
 0xe03   :  { %5763 = vrsqrt.f32 %v2171_v10  ;;  %5302 = vmatmul.msk.f32.vlgmr.msrb.gmra.mxu0 %vm415_vm1, %v2239_v9  ;;  %vm2201_vm11 = vmor %vm2199_vm4, %vm2200_vm3  ;;  %vm2209_vm13 = vweird.f32 %v2171_v10  ;;  %v2505_v9 = vld [vmem:[%s8105_s10 + $0x30] sm:$0xff] }
 0xe04   :  { %v2192_v11 = vsel %vm2191_vm0, %v5760_v52, %v2188_v25  ;;  %v2195_v35 = vmul.f32 %v5762_v7, %v2194_v14  ;;  %v2512_v52 = vld [vmem:[%s8105_s10 + $0x68] sm:$0xff] }
 0xe05   :  { %v2224_v46 = vmul.f32 %v2192_v11, %v7088_v15  ;;  %2521 = vmatpush.msrb.mxu1 %v2512_v52  ;;  %v2504_v25 = vld [vmem:[%s8105_s10 + $0x28] sm:$0xff] }
 0xe06   :  { %v2196_v29 = vmul.f32 0.5, %v2195_v35  ;;  %v2162_v18 = vpop.xlane.xlu2 %2161 }
 0xe07   :  { %v2167_v36 = vmul.f32 %v2162_v18, %v6574_v37  ;;  %v2232_v40 = vmul.f32 %v7122_v59, %v2224_v46  ;;  %2522 = vmatpush.msrb.mxu1 %v2511_v28 }
 0xe08   :  { %v2197_v19 = vsub.f32 1.5, %v2196_v29  ;;  %v2503_v29 = vld [vmem:[%s8105_s10 + $0x20] sm:$0xff] }
 0xe09   :  { %v5764_v20 = vpop.eup %5763  ;;  %v2172_v22 = vadd.f32 1e-06, %v2167_v36  ;;  %v2240_v41 = vadd.f32 %v7125_v0, %v2232_v40 }
 0xe0a   :  { %v2198_v38 = vmul.f32 %v5762_v7, %v2197_v19  ;;  %v2204_v50 = vmul.f32 %v5764_v20, %v2171_v10  ;;  %vm2210_vm12 = vweird.f32 %v5764_v20  ;;  %v2502_v19 = vld [vmem:[%s8105_s10 + $0x18] sm:$0xff] }
 0xe0b   :  { %5765 = vrsqrt.f32 %v2172_v22  ;;  %5303 = vmatmul.msk.f32.gmra.mxu0 %vm415_vm1, %v2240_v41  ;;  %vm2211_vm14 = vmor %vm2209_vm13, %vm2210_vm12  ;;  %vm2219_vm0 = vweird.f32 %v2172_v22 }
 0xe0c   :  { %v2202_v15 = vsel %vm2201_vm11, %v5762_v7, %v2198_v38  ;;  %v2205_v24 = vmul.f32 %v5764_v20, %v2204_v50  ;;  %v2501_v38 = vld [vmem:[%s8105_s10 + $0x10] sm:$0xff] }
 0xe0d   :  { %v2225_v55 = vmul.f32 %v2202_v15, %v7095_v30 }
 0xe0e   :  { %v2206_v39 = vmul.f32 0.5, %v2205_v24 }
 0xe0f   :  { %v2233_v26 = vmul.f32 %v7122_v59, %v2225_v55  ;;  %v2500_v55 = vld [vmem:[%s8105_s10 + $0x8] sm:$0xff] }
 0xe10   :  { %v2207_v16 = vsub.f32 1.5, %v2206_v39  ;;  %v2499_v39 = vld [vmem:[%s8105_s10] sm:$0xff] }
 0xe11   :  { %v5766_v27 = vpop.eup %5765  ;;  %v2241_v31 = vadd.f32 %v7125_v0, %v2233_v26 }
 0xe12   :  { %v2208_v5 = vmul.f32 %v5764_v20, %v2207_v16  ;;  %v2214_v42 = vmul.f32 %v5766_v27, %v2172_v22  ;;  %vm2220_vm15 = vweird.f32 %v5766_v27 }
 0xe13   :  { %5304 = vmatmul.msk.f32.gmra.mxu0 %vm415_vm1, %v2241_v31  ;;  %vm2221_vm3 = vmor %vm2219_vm0, %vm2220_vm15 }
 0xe14   :  { %v2212_v34 = vsel %vm2211_vm14, %v5764_v20, %v2208_v5  ;;  %v2215_v60 = vmul.f32 %v5766_v27, %v2214_v42 }
 0xe15   :  { %v2226_v48 = vmul.f32 %v2212_v34, %v7102_v57 }
 0xe16   :  { %v2216_v30 = vmul.f32 0.5, %v2215_v60 }
 0xe17   :  { %v2234_v32 = vmul.f32 %v7122_v59, %v2226_v48 }
 0xe18   :  { %v2217_v53 = vsub.f32 1.5, %v2216_v30 }
 0xe19   :  { %v2242_v33 = vadd.f32 %v7125_v0, %v2234_v32 }
 0xe1a   :  { %v2218_v43 = vmul.f32 %v5766_v27, %v2217_v53 }
 0xe1b   :  { %5305 = vmatmul.msk.f32.gmra.mxu0 %vm415_vm1, %v2242_v33 }
 0xe1c   :  { %v2222_v44 = vsel %vm2221_vm3, %v5766_v27, %v2218_v43 }
 0xe1d   :  { %v2227_v49 = vmul.f32 %v2222_v44, %v7109_v63 }
 0xe1f   :  { %v2235_v57 = vmul.f32 %v7122_v59, %v2227_v49  ;;  %v2510_v59 = vld [vmem:[%s8105_s10 + $0x58] sm:$0xff]  ;;  %s5023_s10 = sshll.u32 %s6512_s25, 4  ;;  %s5024_s10 = int_to_ptr.hbm [resolvable:$true] %s5023_s10 }
 0xe20   :  { %2523 = vmatpush.msrb.mxu1 %v2510_v59  ;;  %s6128_s17 = sshra.s32 %s5024_s10, 4  ;;  %s6129_s17 = int_to_ptr.hbm [resolvable:$true] %s6128_s17 }
 0xe21   :  { %v2243_v47 = vadd.f32 %v7125_v0, %v2235_v57  ;;  %p6133_p13 = scmp.lt.s32.totalorder %s6129_s17, %s6512_s25 }
 0xe22   :  { %2524 = vmatpush.msrb.mxu1 %v2509_v61 }
 0xe23   :  { %5306 = vmatmul.msk.f32.gmra.mxu0 %vm415_vm1, %v2243_v47 }
 0xe24   :  { %2525 = vmatpush.msrb.mxu1 %v2508_v2 }
 0xe26   :  { %2526 = vmatpush.msrb.mxu1 %v2507_v6 }
 0xe28   :  { %2527 = vmatpush.msrb.mxu1 %v2506_v21 }
 0xe2a   :  { %2528 = vmatpush.msrb.mxu1 %v2505_v9 }
 0xe2c   :  { %2529 = vmatpush.msrb.mxu1 %v2504_v25 }
 0xe2e   :  { %2530 = vmatpush.msrb.mxu1 %v2503_v29 }
 0xe30   :  { %2531 = vmatpush.msrb.mxu1 %v2502_v19 }
 0xe32   :  { %2532 = vmatpush.msrb.mxu1 %v2501_v38 }
 0xe34   :  { %2533 = vmatpush.msrb.mxu1 %v2500_v55 }
 0xe36   :  { %2534 = vmatpush.msrb.mxu1 %v2499_v39 }
 0xe80   :  { %v2284_v54 = vpop.f32.mrf.mxu0 }
 0xe81   :  { %v7156_v63 = vadd.f32 %v7151_v1, %v2284_v54 }
 0xe83   :  { %v7160_v58 = vmul.f32 0.70710677, %v7156_v63 }
 0xe85   :  { %v2309_v13 = vand.u32 2147483647, %v7160_v58  ;;  %v2444_v31 = vsub.f32 0.0, %v7160_v58 }
 0xe87   :  { %v2314_v0 = vmul.f32 0.3275911, %v2309_v13  ;;  %v2449_v33 = vmul.f32 %v2444_v31, %v7160_v58 }
 0xe88   :  { %v2287_v17 = vpop.f32.mrf.mxu0 }
 0xe89   :  { %v2319_v4 = vadd.f32 1.0, %v2314_v0  ;;  %v7167_v45 = vadd.f32 %v7151_v1, %v2287_v17  ;;  %v2454_v59 = vmul.f32 1.442695, %v2449_v33 }
 0xe8b   :  { %5767 = vrcp.f32 %v2319_v4  ;;  %v7172_v7 = vmul.f32 0.70710677, %v7167_v45  ;;  %v2335_v22 = vand.u32 2147483648, %v2319_v4  ;;  %v2333_v15 = vand.u32 2147483647, %v2319_v4 }
 0xe8c   :  { %vm2329_vm11 = vweird.f32 %v2319_v4 }
 0xe8d   :  { %v2310_v10 = vand.u32 2147483647, %v7172_v7  ;;  %v2336_v27 = vor.u32 1.1754944e-38, %v2335_v22  ;;  %vm2334_vm13 = vcmp.eq.f32.partialorder %v2333_v15, 8.507059e+37  ;;  %v2445_v6 = vsub.f32 0.0, %v7172_v7 }
 0xe8f   :  { %v2315_v14 = vmul.f32 0.3275911, %v2310_v10 }
 0xe90   :  { %v2290_v11 = vpop.f32.mrf.mxu0 }
 0xe91   :  { %v5768_v35 = vpop.eup %5767  ;;  %v7178_v46 = vadd.f32 %v7151_v1, %v2290_v11  ;;  %v2320_v36 = vadd.f32 1.0, %v2315_v14 }
 0xe92   :  { %v2325_v18 = vmul.f32 %v5768_v35, %v2319_v4  ;;  %vm2330_vm4 = vweird.f32 %v5768_v35 }
 0xe93   :  { %v7182_v40 = vmul.f32 0.70710677, %v7178_v46  ;;  %5769 = vrcp.f32 %v2320_v36  ;;  %vm2331_vm12 = vmor %vm2329_vm11, %vm2330_vm4  ;;  %v2350_v57 = vand.u32 2147483648, %v2320_v36  ;;  %v2348_v51 = vand.u32 2147483647, %v2320_v36 }
 0xe94   :  { %v2326_v20 = vsub.f32 1.0, %v2325_v18  ;;  %vm2344_vm15 = vweird.f32 %v2320_v36 }
 0xe95   :  { %v2311_v41 = vand.u32 2147483647, %v7182_v40  ;;  %v2351_v4 = vor.u32 1.1754944e-38, %v2350_v57  ;;  %vm2349_vm3 = vcmp.eq.f32.partialorder %v2348_v51, 8.507059e+37 }
 0xe96   :  { %v2327_v50 = vmul.f32 %v5768_v35, %v2326_v20 }
 0xe97   :  { %v2316_v24 = vmul.f32 0.3275911, %v2311_v41  ;;  %v2450_v41 = vmul.f32 %v2445_v6, %v7172_v7 }
 0xe98   :  { %v2328_v26 = vadd.f32 %v5768_v35, %v2327_v50  ;;  %v2293_v16 = vpop.f32.mrf.mxu0  ;;  %v2446_v50 = vsub.f32 0.0, %v7182_v40 }
 0xe99   :  { %v7190_v5 = vadd.f32 1.0, %v2316_v24  ;;  %v7193_v42 = vadd.f32 %v7151_v1, %v2293_v16  ;;  %v5770_v34 = vpop.eup %5769 }
 0xe9a   :  { %v2332_v60 = vsel %vm2331_vm12, %v5768_v35, %v2328_v26  ;;  %v2340_v30 = vmul.f32 %v5770_v34, %v2320_v36  ;;  %vm2345_vm14 = vweird.f32 %v5770_v34  ;;  %v2451_v33 = vmul.f32 %v2446_v50, %v7182_v40 }
 0xe9b   :  { %v2337_v48 = vsel %vm2334_vm13, %v2336_v27, %v2332_v60  ;;  %5771 = vrcp.f32 %v7190_v5  ;;  %v7197_v53 = vmul.f32 0.70710677, %v7193_v42  ;;  %vm2346_vm0 = vmor %vm2344_vm15, %vm2345_vm14  ;;  %v2365_v35 = vand.u32 2147483648, %v7190_v5 }
 0xe9c   :  { %v2399_v32 = vmul.f32 1.0614054, %v2337_v48  ;;  %v2341_v43 = vsub.f32 1.0, %v2340_v30  ;;  %v2363_v36 = vand.u32 2147483647, %v7190_v5  ;;  %vm2359_vm11 = vweird.f32 %v7190_v5 }
 0xe9d   :  { %v2312_v49 = vand.u32 2147483647, %v7197_v53  ;;  %v2366_v55 = vor.u32 1.1754944e-38, %v2365_v35  ;;  %v2456_v60 = vmul.f32 1.442695, %v2450_v41  ;;  %vm2474_vm15 = vcmp.lt.f32.partialorder %v7160_v58, 0.0 }
 0xe9e   :  { %v2404_v44 = vadd.f32 -1.4531521, %v2399_v32  ;;  %v2342_v47 = vmul.f32 %v5770_v34, %v2341_v43  ;;  %vm2364_vm13 = vcmp.eq.f32.partialorder %v2363_v36, 8.507059e+37 }
 0xe9f   :  { %v2317_v52 = vmul.f32 0.3275911, %v2312_v49  ;;  %v2299_v49 = vmul.f32 0.5, %v7156_v63 }
 0xea0   :  { %v2409_v23 = vmul.f32 %v2404_v44, %v2337_v48  ;;  %v2296_v54 = vpop.f32.mrf.mxu0  ;;  %v2343_v61 = vadd.f32 %v5770_v34, %v2342_v47 }
 0xea1   :  { %v5772_v28 = vpop.eup %5771  ;;  %v7202_v13 = vadd.f32 %v7151_v1, %v2296_v54  ;;  %v7205_v17 = vadd.f32 1.0, %v2317_v52 }
 0xea2   :  { %v2414_v0 = vadd.f32 1.4214138, %v2409_v23  ;;  %v2355_v2 = vmul.f32 %v5772_v28, %v7190_v5  ;;  %v2347_v9 = vsel %vm2346_vm0, %v5770_v34, %v2343_v61  ;;  %vm2360_vm4 = vweird.f32 %v5772_v28 }
 0xea3   :  { %v7209_v21 = vmul.f32 0.70710677, %v7202_v13  ;;  %5773 = vrcp.f32 %v7205_v17  ;;  %v7212_v1 = vsel %vm2349_vm3, %v2351_v4, %v2347_v9  ;;  %vm2361_vm12 = vmor %vm2359_vm11, %vm2360_vm4  ;;  %v2380_v51 = vand.u32 2147483648, %v7205_v17 }
 0xea4   :  { %v2419_v10 = vmul.f32 %v2414_v0, %v2337_v48  ;;  %v2356_v25 = vsub.f32 1.0, %v2355_v2  ;;  %v2400_v11 = vmul.f32 1.0614054, %v7212_v1  ;;  %5775 = vpow2.f32 %v2454_v59 }
 0xea5   :  { %v2313_v14 = vand.u32 2147483647, %v7209_v21  ;;  %v2458_v61 = vmul.f32 1.442695, %v2451_v33  ;;  %vm2374_vm0 = vweird.f32 %v7205_v17  ;;  %v2381_v9 = vor.u32 1.1754944e-38, %v2380_v51 }
 0xea6   :  { %v2424_v29 = vadd.f32 -0.28449672, %v2419_v10  ;;  %v2357_v18 = vmul.f32 %v5772_v28, %v2356_v25  ;;  %v2405_v20 = vadd.f32 -1.4531521, %v2400_v11  ;;  %v2447_v10 = vsub.f32 0.0, %v7197_v53 }
 0xea7   :  { %v2318_v19 = vmul.f32 0.3275911, %v2313_v14  ;;  %v2448_v33 = vsub.f32 0.0, %v7209_v21 }
 0xea8   :  { %v2429_v22 = vmul.f32 %v2424_v29, %v2337_v48  ;;  %v2358_v38 = vadd.f32 %v5772_v28, %v2357_v18  ;;  %v2410_v24 = vmul.f32 %v2405_v20, %v7212_v1 }
 0xea9   :  { %v7221_v15 = vadd.f32 1.0, %v2318_v19  ;;  %v5774_v39 = vpop.eup %5773 }
 0xeaa   :  { %v2434_v26 = vadd.f32 0.2548296, %v2429_v22  ;;  %v2362_v16 = vsel %vm2361_vm12, %v5772_v28, %v2358_v38  ;;  %v2370_v27 = vmul.f32 %v5774_v39, %v7205_v17  ;;  %v2415_v31 = vadd.f32 1.4214138, %v2410_v24  ;;  %v5776_v32 = vpop.eup %5775 }
 0xeab   :  { %5777 = vrcp.f32 %v7221_v15  ;;  %v7226_v34 = vsel %vm2364_vm13, %v2366_v55, %v2362_v16  ;;  %vm2375_vm14 = vweird.f32 %v5774_v39  ;;  %v2395_v20 = vand.u32 2147483648, %v7221_v15 }
 0xeac   :  { %v2439_v5 = vmul.f32 %v2434_v26, %v2337_v48  ;;  %v2401_v30 = vmul.f32 1.0614054, %v7226_v34  ;;  %v2371_v43 = vsub.f32 1.0, %v2370_v27  ;;  %v2420_v44 = vmul.f32 %v2415_v31, %v7212_v1  ;;  %vm2376_vm3 = vmor %vm2374_vm0, %vm2375_vm14 }
 0xead   :  { %v2378_v48 = vand.u32 2147483647, %v7205_v17  ;;  %5779 = vpow2.f32 %v2456_v60  ;;  %v2393_v50 = vand.u32 2147483647, %v7221_v15  ;;  %vm2389_vm12 = vweird.f32 %v7221_v15 }
 0xeae   :  { %v2464_v57 = vmul.f32 %v5776_v32, %v2439_v5  ;;  %v2406_v47 = vadd.f32 -1.4531521, %v2401_v30  ;;  %v2372_v23 = vmul.f32 %v5774_v39, %v2371_v43  ;;  %v2425_v52 = vadd.f32 -0.28449672, %v2420_v44  ;;  %v2554_v30 = vld [vmem:[%s8107_s6 + $0x18] sm:$0xff]  ;;  %v2553_v32 = vld [vmem:[%s8107_s6 + $0x10] sm:$0xff] }
 0xeaf   :  { %vm2379_vm4 = vcmp.eq.f32.partialorder %v2378_v48, 8.507059e+37  ;;  %5781 = vpow2.f32 %v2458_v61  ;;  %v2396_v31 = vor.u32 1.1754944e-38, %v2395_v20  ;;  %vm2394_vm14 = vcmp.eq.f32.partialorder %v2393_v50, 8.507059e+37  ;;  %2586 = vmatpush.msra.mxu2 %v2554_v30 }
 0xeb0   :  { %v2469_v54 = vsub.f32 1.0, %v2464_v57  ;;  %v2411_v28 = vmul.f32 %v2406_v47, %v7226_v34  ;;  %v2430_v0 = vmul.f32 %v2425_v52, %v7212_v1  ;;  %v2373_v63 = vadd.f32 %v5774_v39, %v2372_v23 }
 0xeb1   :  { %v5778_v59 = vpop.eup %5777  ;;  %2587 = vmatpush.msra.mxu2 %v2553_v32  ;;  %v2300_v48 = vmul.f32 0.5, %v7167_v45  ;;  %v2453_v61 = vmul.f32 %v2448_v33, %v7209_v21  ;;  %vm2476_vm0 = vcmp.lt.f32.partialorder %v7182_v40, 0.0  ;;  %v2616_v32 = vld [vmem:[%s8109_s16] sm:$0xf] }
 0xeb2   :  { %v2479_v2 = vsub.f32 0.0, %v2469_v54  ;;  %v2385_v4 = vmul.f32 %v5778_v59, %v7221_v15  ;;  %v2416_v6 = vadd.f32 1.4214138, %v2411_v28  ;;  %v2435_v25 = vadd.f32 0.2548296, %v2430_v0  ;;  %5312 = vmatpush.msk.msra.mxu3 %vm2075_vm9, %v2616_v32 }
 0xeb3   :  { %v2377_v14 = vsel %vm2376_vm3, %v5774_v39, %v2373_v63  ;;  %v5780_v22 = vpop.eup %5779  ;;  %vm2390_vm11 = vweird.f32 %v5778_v59  ;;  %v2452_v39 = vmul.f32 %v2447_v10, %v7197_v53  ;;  %vm2477_vm3 = vcmp.lt.f32.partialorder %v7197_v53, 0.0 }
 0xeb4   :  { %v2484_v11 = vsel %vm2474_vm15, %v2479_v2, %v2469_v54  ;;  %v2386_v35 = vsub.f32 1.0, %v2385_v4  ;;  %v2421_v29 = vmul.f32 %v2416_v6, %v7226_v34  ;;  %v2382_v18 = vsel %vm2379_vm4, %v2381_v9, %v2377_v14  ;;  %vm2391_vm13 = vmor %vm2389_vm12, %vm2390_vm11 }
 0xeb5   :  { %v2489_v36 = vadd.f32 1.0, %v2484_v11  ;;  %v2440_v17 = vmul.f32 %v2435_v25, %v7212_v1  ;;  %v2402_v19 = vmul.f32 1.0614054, %v2382_v18  ;;  %v2460_v57 = vmul.f32 1.442695, %v2452_v39  ;;  %v5782_v51 = vpop.eup %5781 }
 0xeb6   :  { %v2387_v41 = vmul.f32 %v5778_v59, %v2386_v35  ;;  %v2426_v38 = vadd.f32 -0.28449672, %v2421_v29  ;;  %vm2475_vm15 = vcmp.lt.f32.partialorder %v7172_v7, 0.0  ;;  %v2462_v9 = vmul.f32 1.442695, %v2453_v61 }
 0xeb7   :  { %v2494_v24 = vmul.f32 %v2489_v36, %v2299_v49  ;;  %v2465_v58 = vmul.f32 %v5780_v22, %v2440_v17  ;;  %v2407_v55 = vadd.f32 -1.4531521, %v2402_v19  ;;  %5783 = vpow2.f32 %v2460_v57 }
 0xeb8   :  { %v2431_v26 = vmul.f32 %v2426_v38, %v7226_v34  ;;  %v2388_v1 = vadd.f32 %v5778_v59, %v2387_v41  ;;  %v2301_v14 = vmul.f32 0.5, %v7178_v46  ;;  %5785 = vpow2.f32 %v2462_v9  ;;  %v5638_v9 = vld [vmem:[%s8111_s30] ss:$0 sm:$0xff] }
 0xeb9   :  { %2535 = vmatmul.f32.vlgmr.msrb.gmra.mxu1 %v2494_v24  ;;  %v2470_v16 = vsub.f32 1.0, %v2465_v58  ;;  %v2412_v27 = vmul.f32 %v2407_v55, %v2382_v18  ;;  %v2302_v46 = vmul.f32 0.5, %v7193_v42  ;;  %vm2478_vm4 = vcmp.lt.f32.partialorder %v7209_v21, 0.0  ;;  %v5636_v42 = vld [vmem:[%s8108_s11] ss:$0 sm:$0xff]  ;;  %s6132_s11 = scalar_lea.hbm %s6512_s25, 2 }
 0xeba   :  { %v2436_v5 = vadd.f32 0.2548296, %v2431_v26  ;;  %v2392_v60 = vsel %vm2391_vm13, %v5778_v59, %v2388_v1  ;;  %v2303_v53 = vmul.f32 0.5, %v7202_v13 }
 0xebb   :  { %v2480_v43 = vsub.f32 0.0, %v2470_v16  ;;  %v2417_v44 = vadd.f32 1.4214138, %v2412_v27  ;;  %v2397_v49 = vsel %vm2394_vm14, %v2396_v31, %v2392_v60  ;;  %v2552_v31 = vld [vmem:[%s8107_s6 + $0x8] sm:$0xff] }
 0xebc   :  { %v2441_v15 = vmul.f32 %v2436_v5, %v7226_v34  ;;  %v2403_v47 = vmul.f32 1.0614054, %v2397_v49  ;;  %v2551_v5 = vld [vmem:[%s8107_s6] sm:$0xff]  ;;  %2588 = vmatpush.msra.mxu2 %v2552_v31  ;;  %s6130_s6 = scalar_lea.hbm %s6129_s17, 2 }
 0xebd   :  { %v2485_v23 = vsel %vm2475_vm15, %v2480_v43, %v2470_v16  ;;  %v2422_v52 = vmul.f32 %v2417_v44, %v2382_v18  ;;  %v5784_v29 = vpop.eup %5783  ;;  %p6131_p12 = scmp.ne.s32.totalorder %s6129_s17, %s6130_s6  ;;  %p6134_p0 = scmp.lt.s32.totalorder %s6132_s11, %s6130_s6 }
 0xebe   :  { %v2490_v54 = vadd.f32 1.0, %v2485_v23  ;;  %v2466_v28 = vmul.f32 %v5782_v51, %v2441_v15  ;;  %v2408_v59 = vadd.f32 -1.4531521, %v2403_v47  ;;  %v5786_v50 = vpop.eup %5785  ;;  %2589 = vmatpush.msra.mxu2 %v2551_v5  ;;  %v5637_v47 = vld [vmem:[%s8110_s0] ss:$0 sm:$0xff] }
 0xebf   :  { %v2427_v0 = vadd.f32 -0.28449672, %v2422_v52  ;;  %p6135_p1 = por %p6134_p0, %p6133_p13 }
 0xec0   :  { %v2495_v63 = vmul.f32 %v2490_v54, %v2300_v48  ;;  %v2471_v2 = vsub.f32 1.0, %v2466_v28  ;;  %v2413_v4 = vmul.f32 %v2408_v59, %v2397_v49 }
 0xec1   :  { %v2432_v7 = vmul.f32 %v2427_v0, %v2382_v18  ;;  %p6136_p2 = pnand %p6135_p1, %p6131_p12 }
 0xec2   :  { %2538 = vmatmul.f32.gmra.mxu1 %v2495_v63  ;;  %v2481_v34 = vsub.f32 0.0, %v2471_v2  ;;  %v2418_v6 = vadd.f32 1.4214138, %v2413_v4 }
 0xec3   :  { %v2437_v10 = vadd.f32 0.2548296, %v2432_v7 }
 0xec4   :  { %v2486_v25 = vsel %vm2476_vm0, %v2481_v34, %v2471_v2  ;;  %v2423_v45 = vmul.f32 %v2418_v6, %v2397_v49 }
 0xec5   :  { %v2491_v11 = vadd.f32 1.0, %v2486_v25  ;;  %v2442_v35 = vmul.f32 %v2437_v10, %v2382_v18 }
 0xec6   :  { %v2428_v36 = vadd.f32 -0.28449672, %v2423_v45 }
 0xec7   :  { %v2496_v17 = vmul.f32 %v2491_v11, %v2301_v14  ;;  %v2467_v19 = vmul.f32 %v5784_v29, %v2442_v35 }
 0xec8   :  { %v2433_v20 = vmul.f32 %v2428_v36, %v2397_v49 }
 0xec9   :  { %v2472_v22 = vsub.f32 1.0, %v2467_v19 }
 0xeca   :  { %2541 = vmatmul.f32.gmra.mxu1 %v2496_v17  ;;  %v2438_v41 = vadd.f32 0.2548296, %v2433_v20 }
 0xecb   :  { %v2482_v38 = vsub.f32 0.0, %v2472_v22 }
 0xecc   :  { %v2443_v40 = vmul.f32 %v2438_v41, %v2397_v49 }
 0xecd   :  { %v2487_v24 = vsel %vm2477_vm3, %v2482_v38, %v2472_v22 }
 0xece   :  { %v2492_v18 = vadd.f32 1.0, %v2487_v24  ;;  %v2468_v58 = vmul.f32 %v5786_v50, %v2443_v40 }
 0xed0   :  { %v2497_v55 = vmul.f32 %v2492_v18, %v2302_v46  ;;  %v2473_v39 = vsub.f32 1.0, %v2468_v58 }
 0xed2   :  { %2544 = vmatmul.f32.gmra.mxu1 %v2497_v55  ;;  %v2483_v26 = vsub.f32 0.0, %v2473_v39 }
 0xed4   :  { %v2488_v1 = vsel %vm2478_vm4, %v2483_v26, %v2473_v39 }
 0xed5   :  { %v2493_v16 = vadd.f32 1.0, %v2488_v1 }
 0xed7   :  { %v2498_v27 = vmul.f32 %v2493_v16, %v2303_v53 }
 0xeda   :  { %2547 = vmatmul.f32.gmra.mxu1 %v2498_v27 }
 0xf36   :  { %v2536_v60 = vpop.f32.mrf.mxu1 }
 0xf37   :  { %v2537_v30 = vadd.f32 %v5636_v42, %v2536_v60 }
 0xf39   :  { %5307 = vmatmul.msk.f32.vlgmr.msra.gmra.mxu2 %vm415_vm1, %v2537_v30  ;;  %v2611_v25 = vadd.f32 %v2537_v30, %v7055_v12 }
 0xf3f   :  { %v2539_v21 = vpop.f32.mrf.mxu1 }
 0xf40   :  { %v2540_v33 = vadd.f32 %v5636_v42, %v2539_v21 }
 0xf42   :  { %5308 = vmatmul.msk.f32.gmra.mxu2 %vm415_vm1, %v2540_v33  ;;  %v2612_v29 = vadd.f32 %v2540_v33, %v7060_v56 }
 0xf47   :  { %v2542_v13 = vpop.f32.mrf.mxu1 }
 0xf48   :  { %v2543_v43 = vadd.f32 %v5636_v42, %v2542_v13 }
 0xf4a   :  { %5309 = vmatmul.msk.f32.gmra.mxu2 %vm415_vm1, %v2543_v43  ;;  %v2613_v12 = vadd.f32 %v2543_v43, %v7065_v62 }
 0xf4f   :  { %v2545_v44 = vpop.f32.mrf.mxu1 }
 0xf50   :  { %v2546_v49 = vadd.f32 %v5636_v42, %v2545_v44 }
 0xf52   :  { %5310 = vmatmul.msk.f32.gmra.mxu2 %vm415_vm1, %v2546_v49  ;;  %v2614_v56 = vadd.f32 %v2546_v49, %v7070_v3 }
 0xf57   :  { %v2548_v57 = vpop.f32.mrf.mxu1 }
 0xf58   :  { %v2549_v15 = vadd.f32 %v5636_v42, %v2548_v57 }
 0xf5a   :  { %5311 = vmatmul.msk.f32.gmra.mxu2 %vm415_vm1, %v2549_v15  ;;  %v2615_v62 = vadd.f32 %v2549_v15, %v7075_v8 }
 0xfbc   :  { %v2591_v51 = vpop.f32.mrf.mxu2 }
 0xfbd   :  { %v2592_v23 = vadd.f32 %v5637_v47, %v2591_v51 }
 0xfbf   :  { %v2606_v52 = vmax.f32 %v2592_v23, 0.0 }
 0xfc1   :  { %5313 = vmatmul.msk.f32.vlgmr.msra.gmra.mxu3 %vm2059_vm10, %v2606_v52 }
 0xfc5   :  { %v2594_v48 = vpop.f32.mrf.mxu2 }
 0xfc6   :  { %v2595_v54 = vadd.f32 %v5637_v47, %v2594_v48  ;;  %v2862_v48 = vld [vmem:[%s8112_s29 + $0x18] sm:$0xff] }
 0xfc7   :  { %2879 = vmatpush.msra.mxu1 %v2862_v48  ;;  %v5360_v48 = vld [vmem:[%s8112_s29 + $0x28] sm:$0xff] }
 0xfc8   :  { %v2607_v28 = vmax.f32 %v2595_v54, 0.0  ;;  %v2807_v54 = vld [vmem:[%s8113_s15 + $0x18] sm:$0xff] }
 0xfc9   :  { %2839 = vmatpush.msra.mxu0 %v2807_v54 }
 0xfca   :  { %5314 = vmatmul.msk.f32.gmra.mxu3 %vm2059_vm10, %v2607_v28  ;;  %v2902_v28 = vld [vmem:[%s8114_s18 + $0x18] sm:$0xff] }
 0xfcb   :  { %2919 = vmatpush.msrb.mxu2 %v2902_v28 }
 0xfcd   :  { %v2597_v59 = vpop.f32.mrf.mxu2 }
 0xfce   :  { %v2598_v61 = vadd.f32 %v5637_v47, %v2597_v59  ;;  %v2806_v59 = vld [vmem:[%s8113_s15 + $0x10] sm:$0xff] }
 0xfcf   :  { %2840 = vmatpush.msra.mxu0 %v2806_v59 }
 0xfd0   :  { %v2608_v0 = vmax.f32 %v2598_v61, 0.0  ;;  %v2861_v61 = vld [vmem:[%s8112_s29 + $0x10] sm:$0xff] }
 0xfd1   :  { %2880 = vmatpush.msra.mxu1 %v2861_v61 }
 0xfd2   :  { %5315 = vmatmul.msk.f32.gmra.mxu3 %vm2059_vm10, %v2608_v0  ;;  %v2901_v0 = vld [vmem:[%s8114_s18 + $0x10] sm:$0xff] }
 0xfd3   :  { %2920 = vmatpush.msrb.mxu2 %v2901_v0 }
 0xfd5   :  { %v2600_v63 = vpop.f32.mrf.mxu2 }
 0xfd6   :  { %v2601_v2 = vadd.f32 %v5637_v47, %v2600_v63  ;;  %v2805_v63 = vld [vmem:[%s8113_s15 + $0x8] sm:$0xff] }
 0xfd7   :  { %2841 = vmatpush.msra.mxu0 %v2805_v63  ;;  %v5349_v63 = vld [vmem:[%s8113_s15 + $0x20] sm:$0xff] }
 0xfd8   :  { %v2609_v4 = vmax.f32 %v2601_v2, 0.0  ;;  %v2860_v2 = vld [vmem:[%s8112_s29 + $0x8] sm:$0xff] }
 0xfd9   :  { %2881 = vmatpush.msra.mxu1 %v2860_v2 }
 0xfda   :  { %5316 = vmatmul.msk.f32.gmra.mxu3 %vm2059_vm10, %v2609_v4  ;;  %v2900_v4 = vld [vmem:[%s8114_s18 + $0x8] sm:$0xff] }
 0xfdb   :  { %2921 = vmatpush.msrb.mxu2 %v2900_v4 }
 0xfdd   :  { %v2603_v7 = vpop.f32.mrf.mxu2 }
 0xfde   :  { %v2604_v34 = vadd.f32 %v5637_v47, %v2603_v7  ;;  %v2804_v7 = vld [vmem:[%s8113_s15] sm:$0xff] }
 0xfdf   :  { %2842 = vmatpush.msra.mxu0 %v2804_v7  ;;  %v5359_v7 = vld [vmem:[%s8112_s29 + $0x20] sm:$0xff] }
 0xfe0   :  { %v2610_v6 = vmax.f32 %v2604_v34, 0.0  ;;  %v2859_v34 = vld [vmem:[%s8112_s29] sm:$0xff] }
 0xfe1   :  { %2882 = vmatpush.msra.mxu1 %v2859_v34 }
 0xfe2   :  { %5317 = vmatmul.msk.f32.gmra.mxu3 %vm2059_vm10, %v2610_v6  ;;  %v2899_v6 = vld [vmem:[%s8114_s18] sm:$0xff] }
 0xfe3   :  { %2922 = vmatpush.msrb.mxu2 %v2899_v6 }
0x1044   :  { %v2656_v10 = vpop.f32.mrf.mxu3 }
0x1045   :  { %v2657_v45 = vadd.f32 %v5638_v9, %v2656_v10 }
0x1047   :  { %v7280_v14 = vadd.f32 %v2657_v45, %v2611_v25 }
0x1049   :  { %v2678_v11 = vsel %vm415_vm1, %v7280_v14, 0.0 }
0x104a   :  { %2679 = vadd.xlane.f32.xlu0 %v2678_v11 }
0x104d   :  { %v2659_v35 = vpop.f32.mrf.mxu3 }
0x104e   :  { %v2660_v36 = vadd.f32 %v5638_v9, %v2659_v35 }
0x1050   :  { %v7285_v17 = vadd.f32 %v2660_v36, %v2612_v29 }
0x1052   :  { %v2681_v19 = vsel %vm415_vm1, %v7285_v17, 0.0 }
0x1053   :  { %2682 = vadd.xlane.f32.xlu1 %v2681_v19 }
0x1055   :  { %v2662_v20 = vpop.f32.mrf.mxu3 }
0x1056   :  { %v2663_v22 = vadd.f32 %v5638_v9, %v2662_v20 }
0x1058   :  { %v7290_v41 = vadd.f32 %v2663_v22, %v2613_v12 }
0x105a   :  { %v2684_v38 = vsel %vm415_vm1, %v7290_v41, 0.0 }
0x105b   :  { %2685 = vadd.xlane.f32.xlu2 %v2684_v38 }
0x105d   :  { %v2665_v40 = vpop.f32.mrf.mxu3 }
0x105e   :  { %v2666_v50 = vadd.f32 %v5638_v9, %v2665_v40 }
0x1060   :  { %v7295_v24 = vadd.f32 %v2666_v50, %v2614_v56 }
0x1062   :  { %v2687_v46 = vsel %vm415_vm1, %v7295_v24, 0.0 }
0x1063   :  { %2688 = vadd.xlane.f32.xlu0 %v2687_v46  ;;  %v7354_v46 = vld [vmem:[#allocation7] ss:$0 sm:$0xff] }
0x1065   :  { %v2668_v18 = vpop.f32.mrf.mxu3 }
0x1066   :  { %v2669_v58 = vadd.f32 %v5638_v9, %v2668_v18 }
0x1068   :  { %v7300_v55 = vadd.f32 %v2669_v58, %v2615_v62  ;;  %v7356_v58 = vld [vmem:[#allocation5] ss:$0 sm:$0xff] }
0x106a   :  { %v2690_v39 = vsel %vm428_vm2, %v7300_v55, 0.0 }
0x106b   :  { %2691 = vadd.xlane.f32.xlu1 %v2690_v39 }
0x10bd   :  { %v2680_v26 = vpop.xlane.xlu0 %2679 }
0x10be   :  { %v2693_v3 = vmul.f32 %v2680_v26, %v6574_v37 }
0x10c0   :  { %v7306_v1 = vsub.f32 %v7280_v14, %v2693_v3 }
0x10c2   :  { %v2703_v53 = vmul.f32 %v7306_v1, %v7306_v1 }
0x10c4   :  { %v2708_v16 = vsel %vm415_vm1, %v2703_v53, 0.0 }
0x10c5   :  { %2709 = vadd.xlane.f32.xlu2 %v2708_v16 }
0x10c6   :  { %v2683_v8 = vpop.xlane.xlu1 %2682 }
0x10c7   :  { %v2694_v27 = vmul.f32 %v2683_v8, %v6574_v37 }
0x10c9   :  { %v7313_v31 = vsub.f32 %v7285_v17, %v2694_v27 }
0x10cb   :  { %v2704_v5 = vmul.f32 %v7313_v31, %v7313_v31 }
0x10cd   :  { %v2711_v42 = vsel %vm415_vm1, %v2704_v5, 0.0 }
0x10ce   :  { %2712 = vadd.xlane.f32.xlu0 %v2711_v42  ;;  %v2686_v60 = vpop.xlane.xlu2 %2685 }
0x10cf   :  { %v2695_v30 = vmul.f32 %v2686_v60, %v6574_v37 }
0x10d1   :  { %v7320_v32 = vsub.f32 %v7290_v41, %v2695_v30 }
0x10d3   :  { %v2705_v21 = vmul.f32 %v7320_v32, %v7320_v32 }
0x10d5   :  { %v2714_v33 = vsel %vm415_vm1, %v2705_v21, 0.0 }
0x10d6   :  { %2715 = vadd.xlane.f32.xlu1 %v2714_v33  ;;  %v2689_v13 = vpop.xlane.xlu0 %2688 }
0x10d7   :  { %v2696_v43 = vmul.f32 %v2689_v13, %v6574_v37  ;;  %v5352_v13 = vld [vmem:[%s8113_s15 + $0x38] sm:$0xff] }
0x10d8   :  { %3139 = vmatpush.msrb.mxu1 %v5352_v13 }
0x10d9   :  { %v7327_v44 = vsub.f32 %v7295_v24, %v2696_v43  ;;  %v5362_v43 = vld [vmem:[%s8112_s29 + $0x38] sm:$0xff] }
0x10da   :  { %3181 = vmatpush.msra.mxu2 %v5362_v43 }
0x10db   :  { %v2706_v49 = vmul.f32 %v7327_v44, %v7327_v44 }
0x10dd   :  { %v2717_v57 = vsel %vm415_vm1, %v2706_v49, 0.0  ;;  %v5351_v49 = vld [vmem:[%s8113_s15 + $0x30] sm:$0xff] }
0x10de   :  { %v2692_v15 = vpop.xlane.xlu1 %2691  ;;  %2718 = vadd.xlane.f32.xlu2 %v2717_v57  ;;  %3140 = vmatpush.msrb.mxu1 %v5351_v49 }
0x10df   :  { %v2697_v47 = vmul.f32 %v2692_v15, %v6574_v37  ;;  %v5361_v15 = vld [vmem:[%s8112_s29 + $0x30] sm:$0xff] }
0x10e0   :  { %3182 = vmatpush.msra.mxu2 %v5361_v15 }
0x10e1   :  { %v7334_v51 = vsub.f32 %v7300_v55, %v2697_v47 }
0x10e2   :  { %3183 = vmatpush.msra.mxu2 %v5360_v48 }
0x10e3   :  { %v2707_v23 = vmul.f32 %v7334_v51, %v7334_v51 }
0x10e4   :  { %3184 = vmatpush.msra.mxu2 %v5359_v7 }
0x10e5   :  { %v2720_v52 = vsel %vm428_vm2, %v2707_v23, 0.0 }
0x10e6   :  { %2721 = vadd.xlane.f32.xlu0 %v2720_v52  ;;  %v5350_v52 = vld [vmem:[%s8113_s15 + $0x28] sm:$0xff] }
0x10e7   :  { %3141 = vmatpush.msrb.mxu1 %v5350_v52 }
0x10e9   :  { %3142 = vmatpush.msrb.mxu1 %v5349_v63  ;;  %v5370_v63 = vld [vmem:[%s8114_s18 + $0x28] sm:$0xff] }
0x1138   :  { %v2710_v9 = vpop.xlane.xlu2 %2709 }
0x1139   :  { %v2723_v10 = vmul.f32 %v2710_v9, %v6574_v37 }
0x113b   :  { %v2728_v25 = vadd.f32 1e-06, %v2723_v10 }
0x113d   :  { %5787 = vrsqrt.f32 %v2728_v25  ;;  %vm2739_vm12 = vweird.f32 %v2728_v25 }
0x1141   :  { %v2713_v45 = vpop.xlane.xlu0 %2712 }
0x1142   :  { %v2724_v11 = vmul.f32 %v2713_v45, %v6574_v37 }
0x1143   :  { %v5788_v35 = vpop.eup %5787 }
0x1144   :  { %v2734_v29 = vmul.f32 %v5788_v35, %v2728_v25  ;;  %v2729_v36 = vadd.f32 1e-06, %v2724_v11  ;;  %vm2740_vm11 = vweird.f32 %v5788_v35 }
0x1145   :  { %vm2741_vm13 = vmor %vm2739_vm12, %vm2740_vm11 }
0x1146   :  { %v2735_v19 = vmul.f32 %v5788_v35, %v2734_v29  ;;  %5789 = vrsqrt.f32 %v2729_v36  ;;  %vm2749_vm15 = vweird.f32 %v2729_v36 }
0x1148   :  { %v2736_v20 = vmul.f32 0.5, %v2735_v19 }
0x1149   :  { %v2716_v12 = vpop.xlane.xlu1 %2715 }
0x114a   :  { %v2737_v22 = vsub.f32 1.5, %v2736_v20  ;;  %v2725_v38 = vmul.f32 %v2716_v12, %v6574_v37 }
0x114c   :  { %v5790_v40 = vpop.eup %5789  ;;  %v2738_v56 = vmul.f32 %v5788_v35, %v2737_v22  ;;  %v2730_v50 = vadd.f32 1e-06, %v2725_v38 }
0x114d   :  { %v2744_v18 = vmul.f32 %v5790_v40, %v2729_v36  ;;  %vm2750_vm14 = vweird.f32 %v5790_v40 }
0x114e   :  { %v2742_v62 = vsel %vm2741_vm13, %v5788_v35, %v2738_v56  ;;  %5791 = vrsqrt.f32 %v2730_v50  ;;  %vm2751_vm0 = vmor %vm2749_vm15, %vm2750_vm14  ;;  %vm2759_vm4 = vweird.f32 %v2730_v50 }
0x114f   :  { %v2783_v39 = vmul.f32 %v2742_v62, %v7306_v1  ;;  %v2745_v26 = vmul.f32 %v5790_v40, %v2744_v18 }
0x1151   :  { %v2791_v3 = vmul.f32 %v7354_v46, %v2783_v39  ;;  %v2746_v53 = vmul.f32 0.5, %v2745_v26  ;;  %v2719_v16 = vpop.xlane.xlu2 %2718 }
0x1152   :  { %v2726_v8 = vmul.f32 %v2719_v16, %v6574_v37  ;;  %v5642_v16 = vld [vmem:[%s8115_s22] ss:$0 sm:$0xff] }
0x1153   :  { %v7362_v27 = vadd.f32 %v7356_v58, %v2791_v3  ;;  %v2747_v5 = vsub.f32 1.5, %v2746_v53 }
0x1154   :  { %v5792_v42 = vpop.eup %5791  ;;  %v2731_v60 = vadd.f32 1e-06, %v2726_v8 }
0x1155   :  { %v2748_v30 = vmul.f32 %v5790_v40, %v2747_v5  ;;  %v2754_v1 = vmul.f32 %v5792_v42, %v2730_v50  ;;  %5318 = vmatmul.msk.f32.vlgmr.msra.gmra.mxu0 %vm415_vm1, %v7362_v27  ;;  %5323 = vmatmul.msk.f32.vlgmr.msra.gmra.mxu1 %vm415_vm1, %v7362_v27  ;;  %vm2760_vm3 = vweird.f32 %v5792_v42 }
0x1156   :  { %5793 = vrsqrt.f32 %v2731_v60  ;;  %5328 = vmatmul.msk.f32.vlgmr.msrb.gmra.mxu2 %vm415_vm1, %v7362_v27  ;;  %vm2761_vm11 = vmor %vm2759_vm4, %vm2760_vm3  ;;  %vm2769_vm13 = vweird.f32 %v2731_v60 }
0x1157   :  { %v2752_v21 = vsel %vm2751_vm0, %v5790_v40, %v2748_v30  ;;  %v2755_v33 = vmul.f32 %v5792_v42, %v2754_v1  ;;  %v5643_v30 = vld [vmem:[%s8116_s23] ss:$0 sm:$0xff] }
0x1158   :  { %v2784_v57 = vmul.f32 %v2752_v21, %v7313_v31 }
0x1159   :  { %v2756_v47 = vmul.f32 0.5, %v2755_v33  ;;  %v2722_v23 = vpop.xlane.xlu0 %2721 }
0x115a   :  { %v2792_v54 = vmul.f32 %v7354_v46, %v2784_v57  ;;  %v2727_v28 = vmul.f32 %v2722_v23, %v6574_v37  ;;  %v5641_v23 = vld [vmem:[%s8117_s28] ss:$0 sm:$0xff] }
0x115b   :  { %v2757_v59 = vsub.f32 1.5, %v2756_v47 }
0x115c   :  { %v5794_v61 = vpop.eup %5793  ;;  %v7380_v31 = vadd.f32 %v7356_v58, %v2792_v54  ;;  %v2732_v0 = vadd.f32 1e-06, %v2727_v28 }
0x115d   :  { %v2758_v2 = vmul.f32 %v5792_v42, %v2757_v59  ;;  %v2764_v4 = vmul.f32 %v5794_v61, %v2731_v60  ;;  %vm2770_vm12 = vweird.f32 %v5794_v61  ;;  %v5372_v59 = vld [vmem:[%s8114_s18 + $0x38] sm:$0xff] }
0x115e   :  { %5795 = vrsqrt.f32 %v2732_v0  ;;  %5319 = vmatmul.msk.f32.gmra.mxu0 %vm415_vm1, %v7380_v31  ;;  %5324 = vmatmul.msk.f32.gmra.mxu1 %vm415_vm1, %v7380_v31  ;;  %vm2771_vm14 = vmor %vm2769_vm13, %vm2770_vm12  ;;  %vm2779_vm0 = vweird.f32 %v2732_v0 }
0x115f   :  { %v2762_v34 = vsel %vm2761_vm11, %v5792_v42, %v2758_v2  ;;  %v2765_v6 = vmul.f32 %v5794_v61, %v2764_v4  ;;  %5329 = vmatmul.msk.f32.gmra.mxu2 %vm415_vm1, %v7380_v31  ;;  %v5369_v2 = vld [vmem:[%s8114_s18 + $0x20] sm:$0xff] }
0x1160   :  { %v2785_v9 = vmul.f32 %v2762_v34, %v7320_v32 }
0x1161   :  { %v2766_v10 = vmul.f32 0.5, %v2765_v6 }
0x1162   :  { %v2793_v25 = vmul.f32 %v7354_v46, %v2785_v9 }
0x1163   :  { %v2767_v45 = vsub.f32 1.5, %v2766_v10 }
0x1164   :  { %v5796_v11 = vpop.eup %5795  ;;  %v7393_v35 = vadd.f32 %v7356_v58, %v2793_v25 }
0x1165   :  { %v2768_v29 = vmul.f32 %v5794_v61, %v2767_v45  ;;  %v2774_v36 = vmul.f32 %v5796_v11, %v2732_v0  ;;  %vm2780_vm15 = vweird.f32 %v5796_v11  ;;  %v5645_v45 = vld [vmem:[%s8115_s22 + $0x1] ss:$0 sm:$0xff] }
0x1166   :  { %5320 = vmatmul.msk.f32.gmra.mxu0 %vm415_vm1, %v7393_v35  ;;  %5325 = vmatmul.msk.f32.gmra.mxu1 %vm415_vm1, %v7393_v35  ;;  %vm2781_vm3 = vmor %vm2779_vm0, %vm2780_vm15 }
0x1167   :  { %v2772_v32 = vsel %vm2771_vm14, %v5794_v61, %v2768_v29  ;;  %v2775_v19 = vmul.f32 %v5796_v11, %v2774_v36  ;;  %5330 = vmatmul.msk.f32.gmra.mxu2 %vm415_vm1, %v7393_v35  ;;  %v5371_v61 = vld [vmem:[%s8114_s18 + $0x30] sm:$0xff] }
0x1168   :  { %v2786_v20 = vmul.f32 %v2772_v32, %v7327_v44 }
0x1169   :  { %v2776_v12 = vmul.f32 0.5, %v2775_v19 }
0x116a   :  { %v2794_v22 = vmul.f32 %v7354_v46, %v2786_v20 }
0x116b   :  { %v2777_v38 = vsub.f32 1.5, %v2776_v12 }
0x116c   :  { %v7404_v40 = vadd.f32 %v7356_v58, %v2794_v22 }
0x116d   :  { %v2778_v56 = vmul.f32 %v5796_v11, %v2777_v38 }
0x116e   :  { %5321 = vmatmul.msk.f32.gmra.mxu0 %vm415_vm1, %v7404_v40  ;;  %5326 = vmatmul.msk.f32.gmra.mxu1 %vm415_vm1, %v7404_v40 }
0x116f   :  { %v2782_v50 = vsel %vm2781_vm3, %v5796_v11, %v2778_v56  ;;  %5331 = vmatmul.msk.f32.gmra.mxu2 %vm415_vm1, %v7404_v40 }
0x1170   :  { %v2787_v44 = vmul.f32 %v2782_v50, %v7334_v51  ;;  %v7478_v50 = vld [vmem:[%s8095_s13] sm:$0xff] }
0x1172   :  { %v2795_v18 = vmul.f32 %v7354_v46, %v2787_v44 }
0x1174   :  { %v7415_v62 = vadd.f32 %v7356_v58, %v2795_v18 }
0x1176   :  { %5322 = vmatmul.msk.f32.gmra.mxu0 %vm415_vm1, %v7415_v62  ;;  %5327 = vmatmul.msk.f32.gmra.mxu1 %vm415_vm1, %v7415_v62 }
0x1177   :  { %5332 = vmatmul.msk.f32.gmra.mxu2 %vm415_vm1, %v7415_v62 }
0x117e   :  { %5354 = vmatmul.msk.f32.vlgmr.msrb.gmra.mxu1 %vm415_vm1, %v7362_v27 }
0x117f   :  { %5364 = vmatmul.msk.f32.vlgmr.msra.gmra.mxu2 %vm415_vm1, %v7362_v27 }
0x1186   :  { %5355 = vmatmul.msk.f32.gmra.mxu1 %vm415_vm1, %v7380_v31 }
0x1187   :  { %5365 = vmatmul.msk.f32.gmra.mxu2 %vm415_vm1, %v7380_v31 }
0x118e   :  { %5356 = vmatmul.msk.f32.gmra.mxu1 %vm415_vm1, %v7393_v35 }
0x118f   :  { %5366 = vmatmul.msk.f32.gmra.mxu2 %vm415_vm1, %v7393_v35 }
0x1196   :  { %5357 = vmatmul.msk.f32.gmra.mxu1 %vm415_vm1, %v7404_v40 }
0x1197   :  { %5367 = vmatmul.msk.f32.gmra.mxu2 %vm415_vm1, %v7404_v40 }
0x119e   :  { %5358 = vmatmul.msk.f32.gmra.mxu1 %vm415_vm1, %v7415_v62 }
0x119f   :  { %5368 = vmatmul.msk.f32.gmra.mxu2 %vm415_vm1, %v7415_v62 }
0x11d2   :  { %v2884_v51 = vpop.f32.mrf.mxu1  ;;  %v2844_v33 = vpop.f32.mrf.mxu0 }
0x11d3   :  { %v2885_v48 = vadd.f32 %v5642_v16, %v2884_v51  ;;  %v2845_v28 = vadd.f32 %v5641_v23, %v2844_v33 }
0x11d9   :  { %v2924_v46 = vpop.f32.mrf.mxu2 }
0x11da   :  { %v2925_v52 = vadd.f32 %v5643_v30, %v2924_v46 }
0x11db   :  { %v2887_v58 = vpop.f32.mrf.mxu1  ;;  %v2847_v54 = vpop.f32.mrf.mxu0 }
0x11dc   :  { %v2888_v57 = vadd.f32 %v5642_v16, %v2887_v58  ;;  %v2848_v4 = vadd.f32 %v5641_v23, %v2847_v54  ;;  %v7483_v58 = vld [vmem:[%s8095_s13 + $0x8] sm:$0xff] }
0x11e2   :  { %v2927_v39 = vpop.f32.mrf.mxu2 }
0x11e3   :  { %v2890_v26 = vpop.f32.mrf.mxu1  ;;  %v2928_v15 = vadd.f32 %v5643_v30, %v2927_v39  ;;  %v2850_v7 = vpop.f32.mrf.mxu0 }
0x11e4   :  { %v2891_v13 = vadd.f32 %v5642_v16, %v2890_v26  ;;  %v2851_v6 = vadd.f32 %v5641_v23, %v2850_v7 }
0x11ea   :  { %v2930_v3 = vpop.f32.mrf.mxu2 }
0x11eb   :  { %v2893_v53 = vpop.f32.mrf.mxu1  ;;  %v2931_v49 = vadd.f32 %v5643_v30, %v2930_v3  ;;  %v2853_v9 = vpop.f32.mrf.mxu0 }
0x11ec   :  { %v2894_v60 = vadd.f32 %v5642_v16, %v2893_v53  ;;  %v2854_v25 = vadd.f32 %v5641_v23, %v2853_v9 }
0x11f2   :  { %v2933_v8 = vpop.f32.mrf.mxu2 }
0x11f3   :  { %v2896_v5 = vpop.f32.mrf.mxu1  ;;  %v2934_v43 = vadd.f32 %v5643_v30, %v2933_v8  ;;  %v2856_v36 = vpop.f32.mrf.mxu0 }
0x11f4   :  { %v2897_v42 = vadd.f32 %v5642_v16, %v2896_v5  ;;  %v2857_v32 = vadd.f32 %v5641_v23, %v2856_v36  ;;  %v7488_v16 = vld [vmem:[%s8095_s13 + $0x10] sm:$0xff] }
0x11f6   :  { %5333 = vmatpush.xpose.msk.msrb.mxu3 %vm685_vm5, %v2897_v42 }
0x11fa   :  { %v2936_v1 = vpop.f32.mrf.mxu2  ;;  %5334 = vmatpush.xpose.msk.msrb.mxu3 %vm685_vm5, %v2894_v60 }
0x11fb   :  { %v2937_v21 = vadd.f32 %v5643_v30, %v2936_v1  ;;  %v7493_v30 = vld [vmem:[%s8095_s13 + $0x18] sm:$0xff] }
0x11fd   :  { %5343 = vmatpush.msk.msrb.mxu0 %vm830_vm6, %v2937_v21 }
0x11fe   :  { %5335 = vmatpush.xpose.msk.msrb.mxu3 %vm685_vm5, %v2891_v13 }
0x11ff   :  { %3096 = vmatpush.msrb.mxu0 %v2934_v43  ;;  %v7498_v43 = vld [vmem:[%s8095_s13 + $0x20] sm:$0x3] }
0x1201   :  { %3097 = vmatpush.msrb.mxu0 %v2931_v49 }
0x1202   :  { %v3186_v47 = vpop.f32.mrf.mxu2  ;;  %5336 = vmatpush.xpose.msk.msrb.mxu3 %vm685_vm5, %v2888_v57 }
0x1203   :  { %3098 = vmatpush.msrb.mxu0 %v2928_v15  ;;  %v3187_v22 = vadd.f32 %v5645_v45, %v3186_v47 }
0x1205   :  { %3099 = vmatpush.msrb.mxu0 %v2925_v52 }
0x1206   :  { %5337 = vmatpush.xpose.msk.msrb.mxu3 %vm685_vm5, %v2885_v48  ;;  %v5646_v48 = vld [vmem:[%s8116_s23 + $0x1] ss:$0 sm:$0xff] }
0x1209   :  { %5338 = vmatmul.msk.f32.vlgmr.msrb.gmra.mxu3 %vm685_vm5, %v2845_v28 }
0x120a   :  { %v3189_v0 = vpop.f32.mrf.mxu2  ;;  %3223 = vmatpush.msra.mxu3 %v5372_v59 }
0x120b   :  { %v3190_v12 = vadd.f32 %v5645_v45, %v3189_v0 }
0x120c   :  { %3224 = vmatpush.msra.mxu3 %v5371_v61 }
0x120e   :  { %3225 = vmatpush.msra.mxu3 %v5370_v63 }
0x1210   :  { %3226 = vmatpush.msra.mxu3 %v5369_v2 }
0x1211   :  { %5339 = vmatmul.msk.f32.gmra.mxu3 %vm685_vm5, %v2848_v4 }
0x1212   :  { %v3192_v34 = vpop.f32.mrf.mxu2 }
0x1213   :  { %v3193_v20 = vadd.f32 %v5645_v45, %v3192_v34 }
0x1219   :  { %5340 = vmatmul.msk.f32.gmra.mxu3 %vm685_vm5, %v2851_v6 }
0x121a   :  { %v3195_v10 = vpop.f32.mrf.mxu2 }
0x121b   :  { %v3196_v19 = vadd.f32 %v5645_v45, %v3195_v10 }
0x1221   :  { %5341 = vmatmul.msk.f32.gmra.mxu3 %vm685_vm5, %v2854_v25 }
0x1222   :  { %v3198_v11 = vpop.f32.mrf.mxu2 }
0x1223   :  { %v3199_v29 = vadd.f32 %v5645_v45, %v3198_v11 }
0x1225   :  { %5379 = vmatpush.xpose.msk.msra.mxu0 %vm685_vm5, %v3199_v29 }
0x1229   :  { %5380 = vmatpush.xpose.msk.msra.mxu0 %vm685_vm5, %v3196_v19  ;;  %5342 = vmatmul.msk.f32.gmra.mxu3 %vm685_vm5, %v2857_v32 }
0x122d   :  { %5381 = vmatpush.xpose.msk.msra.mxu0 %vm685_vm5, %v3193_v20 }
0x1231   :  { %5382 = vmatpush.xpose.msk.msra.mxu0 %vm685_vm5, %v3190_v12  ;;  %5374 = vmatmul.msk.f32.vlgmr.msra.gmra.mxu3 %vm415_vm1, %v7362_v27 }
0x1235   :  { %5383 = vmatpush.xpose.msk.msra.mxu0 %vm685_vm5, %v3187_v22 }
0x1239   :  { %5375 = vmatmul.msk.f32.gmra.mxu3 %vm415_vm1, %v7380_v31 }
0x1241   :  { %5376 = vmatmul.msk.f32.gmra.mxu3 %vm415_vm1, %v7393_v35 }
0x1249   :  { %5377 = vmatmul.msk.f32.gmra.mxu3 %vm415_vm1, %v7404_v40 }
0x1251   :  { %5378 = vmatmul.msk.f32.gmra.mxu3 %vm415_vm1, %v7415_v62 }
0x128c   :  { %v2986_v38 = vpop.f32.mrf.mxu3 }
0x128d   :  { %v3001_v56 = vmul.f32 0.35355338, %v2986_v38 }
0x128f   :  { %v3006_v44 = vadd.f32 %v7478_v50, %v3001_v56 }
0x1291   :  { %v3011_v18 = vsel %vm758_vm7, %v3006_v44, -inf }
0x1292   :  { %3012 = vmax.xlane.f32.xlu1 %v3011_v18 }
0x1294   :  { %v2989_v51 = vpop.f32.mrf.mxu3 }
0x1295   :  { %v3002_v46 = vmul.f32 0.35355338, %v2989_v51 }
0x1297   :  { %v3007_v39 = vadd.f32 %v7483_v58, %v3002_v46 }
0x1299   :  { %v3014_v26 = vsel %vm758_vm7, %v3007_v39, -inf }
0x129a   :  { %3015 = vmax.xlane.f32.xlu2 %v3014_v26 }
0x129c   :  { %v2992_v3 = vpop.f32.mrf.mxu3 }
0x129d   :  { %v3003_v53 = vmul.f32 0.35355338, %v2992_v3 }
0x129f   :  { %v3008_v8 = vadd.f32 %v7488_v16, %v3003_v53 }
0x12a1   :  { %v3017_v5 = vsel %vm758_vm7, %v3008_v8, -inf }
0x12a2   :  { %3018 = vmax.xlane.f32.xlu0 %v3017_v5 }
0x12a4   :  { %v2995_v42 = vpop.f32.mrf.mxu3 }
0x12a5   :  { %v3004_v60 = vmul.f32 0.35355338, %v2995_v42 }
0x12a7   :  { %v3009_v1 = vadd.f32 %v7493_v30, %v3004_v60 }
0x12a9   :  { %v3020_v21 = vsel %vm758_vm7, %v3009_v1, -inf }
0x12aa   :  { %3021 = vmax.xlane.f32.xlu1 %v3020_v21 }
0x12ac   :  { %v2998_v33 = vpop.f32.mrf.mxu3 }
0x12ad   :  { %v3005_v13 = vmul.f32 0.35355338, %v2998_v33 }
0x12af   :  { %v3010_v49 = vadd.f32 %v7498_v43, %v3005_v13 }
0x12b1   :  { %v3023_v57 = vsel %vm771_vm8, %v3010_v49, -inf }
0x12b2   :  { %3024 = vmax.xlane.f32.xlu2 %v3023_v57 }
0x12b4   :  { %v3228_v15 = vpop.f32.mrf.mxu3 }
0x12b5   :  { %v3229_v63 = vadd.f32 %v5646_v48, %v3228_v15 }
0x12bc   :  { %v3231_v47 = vpop.f32.mrf.mxu3 }
0x12bd   :  { %v3232_v0 = vadd.f32 %v5646_v48, %v3231_v47  ;;  %v3144_v47 = vpop.f32.mrf.mxu1 }
0x12c4   :  { %v3234_v23 = vpop.f32.mrf.mxu3 }
0x12c5   :  { %v3235_v61 = vadd.f32 %v5646_v48, %v3234_v23 }
0x12cc   :  { %v3237_v52 = vpop.f32.mrf.mxu3 }
0x12cd   :  { %v3238_v59 = vadd.f32 %v5646_v48, %v3237_v52 }
0x12d4   :  { %v3240_v54 = vpop.f32.mrf.mxu3 }
0x12d5   :  { %v3241_v28 = vadd.f32 %v5646_v48, %v3240_v54  ;;  %v5644_v48 = vld [vmem:[%s8117_s28 + $0x1] ss:$0 sm:$0xff]  ;;  %v3147_v54 = vpop.f32.mrf.mxu1 }
0x12d7   :  { %5389 = vmatpush.msk.msra.mxu1 %vm830_vm6, %v3241_v28  ;;  %v3145_v28 = vadd.f32 %v5644_v48, %v3144_v47 }
0x12d9   :  { %3400 = vmatpush.msra.mxu1 %v3238_v59  ;;  %v5409_v59 = vld [vmem:[%s8113_s15 + $0x58] sm:$0xff] }
0x12db   :  { %3401 = vmatpush.msra.mxu1 %v3235_v61  ;;  %v5408_v61 = vld [vmem:[%s8113_s15 + $0x50] sm:$0xff] }
0x12dd   :  { %3402 = vmatpush.msra.mxu1 %v3232_v0  ;;  %v5407_v0 = vld [vmem:[%s8113_s15 + $0x48] sm:$0xff] }
0x12df   :  { %3403 = vmatpush.msra.mxu1 %v3229_v63  ;;  %v5406_v63 = vld [vmem:[%s8113_s15 + $0x40] sm:$0xff] }
0x1305   :  { %v3013_v2 = vpop.xlane.xlu1 %3012 }
0x1306   :  { %v3026_v4 = vsub.f32 %v3006_v44, %v3013_v2  ;;  %v3148_v2 = vadd.f32 %v5644_v48, %v3147_v54 }
0x1308   :  { %v3031_v7 = vmul.f32 1.442695, %v3026_v4  ;;  %v3150_v4 = vpop.f32.mrf.mxu1 }
0x130a   :  { %5797 = vpow2.f32 %v3031_v7  ;;  %v3151_v7 = vadd.f32 %v5644_v48, %v3150_v4 }
0x130d   :  { %v3016_v34 = vpop.xlane.xlu2 %3015 }
0x130e   :  { %v3027_v6 = vsub.f32 %v3007_v39, %v3016_v34 }
0x1310   :  { %v5798_v9 = vpop.eup %5797  ;;  %v3033_v10 = vmul.f32 1.442695, %v3027_v6  ;;  %v3153_v34 = vpop.f32.mrf.mxu1 }
0x1311   :  { %v3041_v25 = vsel %vm758_vm7, %v5798_v9, 0.0  ;;  %v3154_v6 = vadd.f32 %v5644_v48, %v3153_v34 }
0x1312   :  { %5799 = vpow2.f32 %v3033_v10  ;;  %3042 = vadd.xlane.f32.xlu0 %v3041_v25  ;;  %v3116_v25 = vld [vmem:[%s8118_s21] sm:$0xff] }
0x1313   :  { %3499 = vmatpush.msrb.mxu3 %v3116_v25 }
0x1315   :  { %v3019_v45 = vpop.xlane.xlu0 %3018 }
0x1316   :  { %v3028_v11 = vsub.f32 %v3008_v8, %v3019_v45 }
0x1318   :  { %v5800_v29 = vpop.eup %5799  ;;  %v3035_v36 = vmul.f32 1.442695, %v3028_v11 }
0x1319   :  { %v3044_v32 = vsel %vm758_vm7, %v5800_v29, 0.0 }
0x131a   :  { %5801 = vpow2.f32 %v3035_v36  ;;  %3045 = vadd.xlane.f32.xlu1 %v3044_v32 }
0x131d   :  { %v3022_v19 = vpop.xlane.xlu1 %3021 }
0x131e   :  { %v3029_v20 = vsub.f32 %v3009_v1, %v3022_v19 }
0x1320   :  { %v5802_v12 = vpop.eup %5801  ;;  %v3037_v22 = vmul.f32 1.442695, %v3029_v20 }
0x1321   :  { %v3047_v38 = vsel %vm758_vm7, %v5802_v12, 0.0 }
0x1322   :  { %5803 = vpow2.f32 %v3037_v22  ;;  %3048 = vadd.xlane.f32.xlu2 %v3047_v38 }
0x1325   :  { %v3025_v56 = vpop.xlane.xlu2 %3024 }
0x1326   :  { %v3030_v44 = vsub.f32 %v3010_v49, %v3025_v56 }
0x1328   :  { %v5804_v18 = vpop.eup %5803  ;;  %v3039_v51 = vmul.f32 1.442695, %v3030_v44 }
0x1329   :  { %v3050_v46 = vsel %vm758_vm7, %v5804_v18, 0.0 }
0x132a   :  { %5805 = vpow2.f32 %v3039_v51  ;;  %3051 = vadd.xlane.f32.xlu0 %v3050_v46 }
0x1330   :  { %v5806_v39 = vpop.eup %5805 }
0x1331   :  { %v3053_v26 = vsel %vm771_vm8, %v5806_v39, 0.0 }
0x1332   :  { %3054 = vadd.xlane.f32.xlu1 %v3053_v26 }
0x1385   :  { %v3043_v3 = vpop.xlane.xlu0 %3042 }
0x1386   :  { %5807 = vrcp.f32 %v3043_v3 }
0x138c   :  { %v5808_v53 = vpop.eup %5807 }
0x138d   :  { %v3061_v8 = vmul.f32 %v5808_v53, %v5798_v9  ;;  %v3046_v5 = vpop.xlane.xlu1 %3045  ;;  %v3156_v9 = vpop.f32.mrf.mxu1 }
0x138e   :  { %5809 = vrcp.f32 %v3046_v5  ;;  %v3157_v10 = vadd.f32 %v5644_v48, %v3156_v9 }
0x138f   :  { %5344 = vmatmul.msk.f32.vlgmr.msrb.gmra.mxu0 %vm758_vm7, %v3061_v8 }
0x1390   :  { %3538 = vmatpush.msrb.mxu0 %v5409_v59 }
0x1392   :  { %3539 = vmatpush.msrb.mxu0 %v5408_v61 }
0x1394   :  { %v5810_v42 = vpop.eup %5809  ;;  %3540 = vmatpush.msrb.mxu0 %v5407_v0 }
0x1395   :  { %v3049_v60 = vpop.xlane.xlu2 %3048  ;;  %v3062_v1 = vmul.f32 %v5810_v42, %v5800_v29 }
0x1396   :  { %5811 = vrcp.f32 %v3049_v60  ;;  %3541 = vmatpush.msrb.mxu0 %v5406_v63 }
0x1397   :  { %5345 = vmatmul.msk.f32.gmra.mxu0 %vm758_vm7, %v3062_v1 }
0x139c   :  { %v5812_v21 = vpop.eup %5811 }
0x139d   :  { %v3052_v33 = vpop.xlane.xlu0 %3051  ;;  %v3063_v13 = vmul.f32 %v5812_v21, %v5802_v12 }
0x139e   :  { %5813 = vrcp.f32 %v3052_v33 }
0x139f   :  { %5346 = vmatmul.msk.f32.gmra.mxu0 %vm758_vm7, %v3063_v13 }
0x13a4   :  { %v5814_v49 = vpop.eup %5813 }
0x13a5   :  { %v3055_v57 = vpop.xlane.xlu1 %3054  ;;  %v3064_v15 = vmul.f32 %v5814_v49, %v5804_v18 }
0x13a6   :  { %5815 = vrcp.f32 %v3055_v57 }
0x13a7   :  { %5347 = vmatmul.msk.f32.gmra.mxu0 %vm758_vm7, %v3064_v15 }
0x13ac   :  { %v5816_v23 = vpop.eup %5815 }
0x13ad   :  { %v3065_v52 = vmul.f32 %v5816_v23, %v5806_v39 }
0x13af   :  { %5348 = vmatmul.msk.f32.gmra.mxu0 %vm758_vm7, %v3065_v52 }
0x13b7   :  { %5384 = vmatmul.msk.f32.vlgmr.msra.gmra.mxu0 %vm685_vm5, %v3145_v28 }
0x13bf   :  { %5385 = vmatmul.msk.f32.gmra.mxu0 %vm685_vm5, %v3148_v2 }
0x13c7   :  { %5386 = vmatmul.msk.f32.gmra.mxu0 %vm685_vm5, %v3151_v7 }
0x13cf   :  { %5387 = vmatmul.msk.f32.gmra.mxu0 %vm685_vm5, %v3154_v6 }
0x13d7   :  { %5388 = vmatmul.msk.f32.gmra.mxu0 %vm685_vm5, %v3157_v10 }
0x13df   :  { %5411 = vmatmul.msk.f32.vlgmr.msrb.gmra.mxu0 %vm415_vm1, %v7362_v27 }
0x13e7   :  { %5412 = vmatmul.msk.f32.gmra.mxu0 %vm415_vm1, %v7380_v31 }
0x13ef   :  { %5413 = vmatmul.msk.f32.gmra.mxu0 %vm415_vm1, %v7393_v35 }
0x13f7   :  { %5414 = vmatmul.msk.f32.gmra.mxu0 %vm415_vm1, %v7404_v40 }
0x13ff   :  { %5415 = vmatmul.msk.f32.gmra.mxu0 %vm415_vm1, %v7415_v62 }
0x140c   :  { %v3101_v45 = vpop.f32.mrf.mxu0 }
0x140d   :  { %5401 = vmatmul.msk.f32.vlgmr.msrb.gmra.mxu3 %vm685_vm5, %v3101_v45 }
0x1414   :  { %v3104_v11 = vpop.f32.mrf.mxu0 }
0x1415   :  { %5402 = vmatmul.msk.f32.gmra.mxu3 %vm685_vm5, %v3104_v11 }
0x141c   :  { %v3107_v29 = vpop.f32.mrf.mxu0 }
0x141d   :  { %5403 = vmatmul.msk.f32.gmra.mxu3 %vm685_vm5, %v3107_v29 }
0x1424   :  { %v3110_v36 = vpop.f32.mrf.mxu0 }
0x1425   :  { %5404 = vmatmul.msk.f32.gmra.mxu3 %vm685_vm5, %v3110_v36  ;;  %v5419_v36 = vld [vmem:[%s8112_s29 + $0x58] sm:$0xff] }
0x1426   :  { %3580 = vmatpush.msrb.mxu1 %v5419_v36  ;;  %v5470_v36 = vld [vmem:[%s8112_s29 + $0x70] sm:$0xff] }
0x142c   :  { %v3113_v32 = vpop.f32.mrf.mxu0 }
0x142d   :  { %5405 = vmatmul.msk.f32.gmra.mxu3 %vm685_vm5, %v3113_v32 }
0x1434   :  { %v3290_v19 = vpop.f32.mrf.mxu0 }
0x1435   :  { %v3305_v20 = vmul.f32 0.35355338, %v3290_v19 }
0x1437   :  { %v3310_v12 = vadd.f32 %v7478_v50, %v3305_v20 }
0x1439   :  { %v3315_v22 = vsel %vm758_vm7, %v3310_v12, -inf }
0x143a   :  { %3316 = vmax.xlane.f32.xlu2 %v3315_v22  ;;  %v5417_v22 = vld [vmem:[%s8112_s29 + $0x48] sm:$0xff] }
0x143c   :  { %v3293_v38 = vpop.f32.mrf.mxu0 }
0x143d   :  { %v3306_v56 = vmul.f32 0.35355338, %v3293_v38  ;;  %v5416_v38 = vld [vmem:[%s8112_s29 + $0x40] sm:$0xff] }
0x143f   :  { %v3311_v44 = vadd.f32 %v7483_v58, %v3306_v56 }
0x1441   :  { %v3318_v18 = vsel %vm758_vm7, %v3311_v44, -inf }
0x1442   :  { %3319 = vmax.xlane.f32.xlu0 %v3318_v18 }
0x1444   :  { %v3296_v51 = vpop.f32.mrf.mxu0 }
0x1445   :  { %v3307_v46 = vmul.f32 0.35355338, %v3296_v51 }
0x1447   :  { %v3312_v39 = vadd.f32 %v7488_v16, %v3307_v46 }
0x1449   :  { %v3321_v26 = vsel %vm758_vm7, %v3312_v39, -inf }
0x144a   :  { %3322 = vmax.xlane.f32.xlu1 %v3321_v26 }
0x144c   :  { %v3299_v3 = vpop.f32.mrf.mxu0 }
0x144d   :  { %v3308_v53 = vmul.f32 0.35355338, %v3299_v3 }
0x144f   :  { %v3313_v8 = vadd.f32 %v7493_v30, %v3308_v53 }
0x1451   :  { %v3324_v5 = vsel %vm758_vm7, %v3313_v8, -inf }
0x1452   :  { %3325 = vmax.xlane.f32.xlu2 %v3324_v5 }
0x1454   :  { %v3302_v42 = vpop.f32.mrf.mxu0 }
0x1455   :  { %v3309_v60 = vmul.f32 0.35355338, %v3302_v42  ;;  %v5395_v42 = vld [vmem:[%s8118_s21 + $0x8] sm:$0xff] }
0x1456   :  { %3452 = vmatpush.msrb.mxu2 %v5395_v42 }
0x1457   :  { %v3314_v1 = vadd.f32 %v7498_v43, %v3309_v60 }
0x1459   :  { %v3327_v21 = vsel %vm771_vm8, %v3314_v1, -inf }
0x145a   :  { %3328 = vmax.xlane.f32.xlu0 %v3327_v21  ;;  %v5428_v21 = vld [vmem:[%s8114_s18 + $0x50] sm:$0xff] }
0x14ad   :  { %v3317_v33 = vpop.xlane.xlu2 %3316 }
0x14ae   :  { %v3330_v13 = vsub.f32 %v3310_v12, %v3317_v33  ;;  %v5418_v12 = vld [vmem:[%s8112_s29 + $0x50] sm:$0xff]  ;;  %v5427_v33 = vld [vmem:[%s8114_s18 + $0x48] sm:$0xff] }
0x14af   :  { %3581 = vmatpush.msrb.mxu1 %v5418_v12  ;;  %v5468_v12 = vld [vmem:[%s8112_s29 + $0x60] sm:$0xff] }
0x14b0   :  { %v3335_v49 = vmul.f32 1.442695, %v3330_v13 }
0x14b1   :  { %3582 = vmatpush.msrb.mxu1 %v5417_v22 }
0x14b2   :  { %5817 = vpow2.f32 %v3335_v49  ;;  %v5426_v49 = vld [vmem:[%s8114_s18 + $0x40] sm:$0xff] }
0x14b3   :  { %3583 = vmatpush.msrb.mxu1 %v5416_v38 }
0x14b5   :  { %v3320_v57 = vpop.xlane.xlu0 %3319 }
0x14b6   :  { %v3331_v15 = vsub.f32 %v3311_v44, %v3320_v57 }
0x14b8   :  { %v5818_v47 = vpop.eup %5817  ;;  %v3337_v23 = vmul.f32 1.442695, %v3331_v15 }
0x14b9   :  { %v3345_v52 = vsel %vm758_vm7, %v5818_v47, 0.0 }
0x14ba   :  { %5819 = vpow2.f32 %v3337_v23  ;;  %3346 = vadd.xlane.f32.xlu1 %v3345_v52  ;;  %v5461_v52 = vld [vmem:[%s8113_s15 + $0x78] sm:$0xff] }
0x14bd   :  { %v3323_v48 = vpop.xlane.xlu1 %3322 }
0x14be   :  { %v3332_v54 = vsub.f32 %v3312_v39, %v3323_v48  ;;  %v5460_v48 = vld [vmem:[%s8113_s15 + $0x70] sm:$0xff] }
0x14c0   :  { %v5820_v28 = vpop.eup %5819  ;;  %v3339_v59 = vmul.f32 1.442695, %v3332_v54  ;;  %v5459_v54 = vld [vmem:[%s8113_s15 + $0x68] sm:$0xff] }
0x14c1   :  { %v3348_v61 = vsel %vm758_vm7, %v5820_v28, 0.0 }
0x14c2   :  { %5821 = vpow2.f32 %v3339_v59  ;;  %3349 = vadd.xlane.f32.xlu2 %v3348_v61 }
0x14c5   :  { %v3326_v0 = vpop.xlane.xlu2 %3325 }
0x14c6   :  { %v3333_v63 = vsub.f32 %v3313_v8, %v3326_v0 }
0x14c8   :  { %v5822_v2 = vpop.eup %5821  ;;  %v3341_v4 = vmul.f32 1.442695, %v3333_v63  ;;  %v5648_v63 = vld [vmem:[%s8115_s22 + $0x2] ss:$0 sm:$0xff] }
0x14c9   :  { %v3351_v7 = vsel %vm758_vm7, %v5822_v2, 0.0 }
0x14ca   :  { %5823 = vpow2.f32 %v3341_v4  ;;  %3352 = vadd.xlane.f32.xlu0 %v3351_v7 }
0x14cd   :  { %v3329_v34 = vpop.xlane.xlu0 %3328 }
0x14ce   :  { %v3334_v6 = vsub.f32 %v3314_v1, %v3329_v34  ;;  %v5429_v1 = vld [vmem:[%s8114_s18 + $0x58] sm:$0xff]  ;;  %v3543_v34 = vpop.f32.mrf.mxu0 }
0x14cf   :  { %3622 = vmatpush.msra.mxu2 %v5429_v1 }
0x14d0   :  { %v5824_v9 = vpop.eup %5823  ;;  %v3343_v10 = vmul.f32 1.442695, %v3334_v6 }
0x14d1   :  { %v3354_v25 = vsel %vm758_vm7, %v5824_v9, 0.0  ;;  %3623 = vmatpush.msra.mxu2 %v5428_v21 }
0x14d2   :  { %5825 = vpow2.f32 %v3343_v10  ;;  %3355 = vadd.xlane.f32.xlu1 %v3354_v25  ;;  %v5647_v10 = vld [vmem:[%s8117_s28 + $0x2] ss:$0 sm:$0xff] }
0x14d3   :  { %3624 = vmatpush.msra.mxu2 %v5427_v33 }
0x14d5   :  { %3625 = vmatpush.msra.mxu2 %v5426_v49 }
0x14d8   :  { %v5826_v45 = vpop.eup %5825 }
0x14d9   :  { %v3357_v11 = vsel %vm771_vm8, %v5826_v45, 0.0 }
0x14da   :  { %3358 = vadd.xlane.f32.xlu2 %v3357_v11  ;;  %v3544_v11 = vadd.f32 %v5647_v10, %v3543_v34 }
0x152d   :  { %v3347_v29 = vpop.xlane.xlu1 %3346 }
0x152e   :  { %5827 = vrcp.f32 %v3347_v29  ;;  %v5471_v29 = vld [vmem:[%s8112_s29 + $0x78] sm:$0xff] }
0x1534   :  { %v5828_v32 = vpop.eup %5827 }
0x1535   :  { %v3365_v19 = vmul.f32 %v5828_v32, %v5818_v47  ;;  %v3350_v20 = vpop.xlane.xlu2 %3349  ;;  %v5469_v32 = vld [vmem:[%s8112_s29 + $0x68] sm:$0xff] }
0x1536   :  { %5829 = vrcp.f32 %v3350_v20 }
0x1537   :  { %5390 = vmatmul.msk.f32.vlgmr.msra.gmra.mxu1 %vm758_vm7, %v3365_v19 }
0x153c   :  { %v5830_v56 = vpop.eup %5829 }
0x153d   :  { %v3353_v44 = vpop.xlane.xlu0 %3352  ;;  %v3366_v18 = vmul.f32 %v5830_v56, %v5820_v28  ;;  %v5458_v28 = vld [vmem:[%s8113_s15 + $0x60] sm:$0xff] }
0x153e   :  { %5831 = vrcp.f32 %v3353_v44 }
0x153f   :  { %5391 = vmatmul.msk.f32.gmra.mxu1 %vm758_vm7, %v3366_v18 }
0x1544   :  { %v5832_v51 = vpop.eup %5831 }
0x1545   :  { %v3356_v46 = vpop.xlane.xlu1 %3355  ;;  %v3367_v39 = vmul.f32 %v5832_v51, %v5822_v2  ;;  %v7623_v51 = vpop.f32.mrf.mxu3 }
0x1546   :  { %5833 = vrcp.f32 %v3356_v46 }
0x1547   :  { %5392 = vmatmul.msk.f32.gmra.mxu1 %vm758_vm7, %v3367_v39 }
0x154c   :  { %v5834_v26 = vpop.eup %5833 }
0x154d   :  { %v3359_v3 = vpop.xlane.xlu2 %3358  ;;  %v3368_v53 = vmul.f32 %v5834_v26, %v5824_v9  ;;  %v7628_v39 = vpop.f32.mrf.mxu3 }
0x154e   :  { %5835 = vrcp.f32 %v3359_v3 }
0x154f   :  { %5393 = vmatmul.msk.f32.gmra.mxu1 %vm758_vm7, %v3368_v53 }
0x1554   :  { %v5836_v8 = vpop.eup %5835 }
0x1555   :  { %v3369_v5 = vmul.f32 %v5836_v8, %v5826_v45  ;;  %v3546_v45 = vpop.f32.mrf.mxu0  ;;  %v7636_v3 = vpop.f32.mrf.mxu3 }
0x1556   :  { %v3547_v19 = vadd.f32 %v5647_v10, %v3546_v45 }
0x1557   :  { %5394 = vmatmul.msk.f32.gmra.mxu1 %vm758_vm7, %v3369_v5 }
0x155d   :  { %v3549_v20 = vpop.f32.mrf.mxu0  ;;  %v7642_v8 = vpop.f32.mrf.mxu3 }
0x155e   :  { %v3550_v22 = vadd.f32 %v5647_v10, %v3549_v20 }
0x155f   :  { %5421 = vmatmul.msk.f32.vlgmr.msrb.gmra.mxu1 %vm415_vm1, %v7362_v27 }
0x1565   :  { %v3552_v38 = vpop.f32.mrf.mxu0  ;;  %v3513_v42 = vpop.f32.mrf.mxu3 }
0x1566   :  { %v3553_v56 = vadd.f32 %v5647_v10, %v3552_v38  ;;  %v5651_v38 = vld [vmem:[%s8115_s22 + $0x3] ss:$0 sm:$0xff] }
0x1567   :  { %5422 = vmatmul.msk.f32.gmra.mxu1 %vm415_vm1, %v7380_v31 }
0x156d   :  { %v3555_v44 = vpop.f32.mrf.mxu0 }
0x156e   :  { %v3556_v18 = vadd.f32 %v5647_v10, %v3555_v44 }
0x156f   :  { %5423 = vmatmul.msk.f32.gmra.mxu1 %vm415_vm1, %v7393_v35 }
0x1577   :  { %5424 = vmatmul.msk.f32.gmra.mxu1 %vm415_vm1, %v7404_v40 }
0x157f   :  { %5425 = vmatmul.msk.f32.gmra.mxu1 %vm415_vm1, %v7415_v62 }
0x15b4   :  { %v3405_v60 = vpop.f32.mrf.mxu1 }
0x15b5   :  { %5396 = vmatmul.msk.f32.vlgmr.msrb.gmra.mxu2 %vm685_vm5, %v3405_v60 }
0x15b6   :  { %3895 = vmatpush.msrb.mxu2 %v5461_v52 }
0x15b8   :  { %3896 = vmatpush.msrb.mxu2 %v5460_v48 }
0x15ba   :  { %3897 = vmatpush.msrb.mxu2 %v5459_v54 }
0x15bc   :  { %v3408_v13 = vpop.f32.mrf.mxu1  ;;  %3898 = vmatpush.msrb.mxu2 %v5458_v28 }
0x15bd   :  { %5397 = vmatmul.msk.f32.gmra.mxu2 %vm685_vm5, %v3408_v13 }
0x15c4   :  { %v3411_v57 = vpop.f32.mrf.mxu1 }
0x15c5   :  { %5398 = vmatmul.msk.f32.gmra.mxu2 %vm685_vm5, %v3411_v57  ;;  %v5649_v57 = vld [vmem:[%s8116_s23 + $0x2] ss:$0 sm:$0xff] }
0x15cc   :  { %v3414_v15 = vpop.f32.mrf.mxu1 }
0x15cd   :  { %5399 = vmatmul.msk.f32.gmra.mxu2 %vm685_vm5, %v3414_v15 }
0x15d4   :  { %v3417_v47 = vpop.f32.mrf.mxu1 }
0x15d5   :  { %5400 = vmatmul.msk.f32.gmra.mxu2 %vm685_vm5, %v3417_v47 }
0x15dc   :  { %v3585_v23 = vpop.f32.mrf.mxu1 }
0x15dd   :  { %5431 = vmatmul.msk.f32.vlgmr.msra.gmra.mxu2 %vm415_vm1, %v7362_v27  ;;  %v3586_v25 = vadd.f32 %v5648_v63, %v3585_v23 }
0x15e4   :  { %v3588_v59 = vpop.f32.mrf.mxu1 }
0x15e5   :  { %5432 = vmatmul.msk.f32.gmra.mxu2 %vm415_vm1, %v7380_v31  ;;  %v3589_v9 = vadd.f32 %v5648_v63, %v3588_v59 }
0x15ec   :  { %v3591_v61 = vpop.f32.mrf.mxu1 }
0x15ed   :  { %5433 = vmatmul.msk.f32.gmra.mxu2 %vm415_vm1, %v7393_v35  ;;  %v3592_v6 = vadd.f32 %v5648_v63, %v3591_v61 }
0x15f4   :  { %v3594_v0 = vpop.f32.mrf.mxu1 }
0x15f5   :  { %5434 = vmatmul.msk.f32.gmra.mxu2 %vm415_vm1, %v7404_v40  ;;  %v3595_v7 = vadd.f32 %v5648_v63, %v3594_v0 }
0x15fc   :  { %v3597_v2 = vpop.f32.mrf.mxu1 }
0x15fd   :  { %v3598_v4 = vadd.f32 %v5648_v63, %v3597_v2  ;;  %5435 = vmatmul.msk.f32.gmra.mxu2 %vm415_vm1, %v7415_v62 }
0x15ff   :  { %5436 = vmatpush.xpose.msk.msra.mxu3 %vm685_vm5, %v3598_v4 }
0x1603   :  { %5437 = vmatpush.xpose.msk.msra.mxu3 %vm685_vm5, %v3595_v7 }
0x1605   :  { %5463 = vmatmul.msk.f32.vlgmr.msrb.gmra.mxu2 %vm415_vm1, %v7362_v27 }
0x1607   :  { %5438 = vmatpush.xpose.msk.msra.mxu3 %vm685_vm5, %v3592_v6 }
0x160b   :  { %5439 = vmatpush.xpose.msk.msra.mxu3 %vm685_vm5, %v3589_v9 }
0x160d   :  { %5464 = vmatmul.msk.f32.gmra.mxu2 %vm415_vm1, %v7380_v31 }
0x160f   :  { %5440 = vmatpush.xpose.msk.msra.mxu3 %vm685_vm5, %v3586_v25 }
0x1612   :  { %5441 = vmatmul.msk.f32.vlgmr.msra.gmra.mxu3 %vm685_vm5, %v3544_v11 }
0x1613   :  { %3937 = vmatpush.msrb.mxu3 %v5471_v29 }
0x1615   :  { %5465 = vmatmul.msk.f32.gmra.mxu2 %vm415_vm1, %v7393_v35  ;;  %3938 = vmatpush.msrb.mxu3 %v5470_v36 }
0x1617   :  { %3939 = vmatpush.msrb.mxu3 %v5469_v32 }
0x1619   :  { %3940 = vmatpush.msrb.mxu3 %v5468_v12 }
0x161a   :  { %5442 = vmatmul.msk.f32.gmra.mxu3 %vm685_vm5, %v3547_v19 }
0x161d   :  { %5466 = vmatmul.msk.f32.gmra.mxu2 %vm415_vm1, %v7404_v40 }
0x1622   :  { %5443 = vmatmul.msk.f32.gmra.mxu3 %vm685_vm5, %v3550_v22 }
0x1625   :  { %5467 = vmatmul.msk.f32.gmra.mxu2 %vm415_vm1, %v7415_v62 }
0x162a   :  { %5444 = vmatmul.msk.f32.gmra.mxu3 %vm685_vm5, %v3553_v56 }
0x1632   :  { %5445 = vmatmul.msk.f32.gmra.mxu3 %vm685_vm5, %v3556_v18 }
0x1638   :  { %v7626_v46 = vpop.f32.mrf.mxu2 }
0x163a   :  { %5473 = vmatmul.msk.f32.vlgmr.msrb.gmra.mxu3 %vm415_vm1, %v7362_v27 }
0x1640   :  { %v7632_v26 = vpop.f32.mrf.mxu2 }
0x1642   :  { %5474 = vmatmul.msk.f32.gmra.mxu3 %vm415_vm1, %v7380_v31 }
0x1648   :  { %v7638_v53 = vpop.f32.mrf.mxu2 }
0x164a   :  { %5475 = vmatmul.msk.f32.gmra.mxu3 %vm415_vm1, %v7393_v35 }
0x1650   :  { %v7644_v5 = vpop.f32.mrf.mxu2 }
0x1652   :  { %5476 = vmatmul.msk.f32.gmra.mxu3 %vm415_vm1, %v7404_v40 }
0x1658   :  { %v3466_v60 = vpop.f32.mrf.mxu2 }
0x1659   :  { %v7648_v1 = vadd.f32 %v3513_v42, %v3466_v60 }
0x165a   :  { %5477 = vmatmul.msk.f32.gmra.mxu3 %vm415_vm1, %v7415_v62 }
0x1660   :  { %v3627_v21 = vpop.f32.mrf.mxu2 }
0x1661   :  { %v3628_v54 = vadd.f32 %v5649_v57, %v3627_v21 }
0x1668   :  { %v3630_v33 = vpop.f32.mrf.mxu2 }
0x1669   :  { %v3631_v48 = vadd.f32 %v5649_v57, %v3630_v33 }
0x1670   :  { %v3633_v13 = vpop.f32.mrf.mxu2 }
0x1671   :  { %v3634_v52 = vadd.f32 %v5649_v57, %v3633_v13 }
0x1678   :  { %v3636_v49 = vpop.f32.mrf.mxu2 }
0x1679   :  { %v3637_v23 = vadd.f32 %v5649_v57, %v3636_v49 }
0x1680   :  { %v3639_v15 = vpop.f32.mrf.mxu2 }
0x1681   :  { %v3640_v47 = vadd.f32 %v5649_v57, %v3639_v15 }
0x1683   :  { %5446 = vmatpush.msk.msra.mxu0 %vm830_vm6, %v3640_v47 }
0x1685   :  { %3799 = vmatpush.msra.mxu0 %v3637_v23 }
0x1687   :  { %3800 = vmatpush.msra.mxu0 %v3634_v52 }
0x1689   :  { %3801 = vmatpush.msra.mxu0 %v3631_v48 }
0x168b   :  { %3802 = vmatpush.msra.mxu0 %v3628_v54 }
0x1695   :  { %v3689_v28 = vpop.f32.mrf.mxu3 }
0x1696   :  { %v3704_v59 = vmul.f32 0.35355338, %v3689_v28 }
0x1698   :  { %v3709_v61 = vadd.f32 %v7478_v50, %v3704_v59 }
0x169a   :  { %v3714_v0 = vsel %vm758_vm7, %v3709_v61, -inf }
0x169b   :  { %3715 = vmax.xlane.f32.xlu0 %v3714_v0 }
0x169d   :  { %v3692_v63 = vpop.f32.mrf.mxu3 }
0x169e   :  { %v3705_v2 = vmul.f32 0.35355338, %v3692_v63 }
0x16a0   :  { %v3710_v4 = vadd.f32 %v7483_v58, %v3705_v2 }
0x16a2   :  { %v3717_v7 = vsel %vm758_vm7, %v3710_v4, -inf }
0x16a3   :  { %3718 = vmax.xlane.f32.xlu1 %v3717_v7 }
0x16a5   :  { %v3695_v34 = vpop.f32.mrf.mxu3 }
0x16a6   :  { %v3706_v6 = vmul.f32 0.35355338, %v3695_v34 }
0x16a8   :  { %v3711_v9 = vadd.f32 %v7488_v16, %v3706_v6  ;;  %v5452_v16 = vld [vmem:[%s8118_s21 + $0x10] sm:$0xff] }
0x16a9   :  { %3851 = vmatpush.msra.mxu1 %v5452_v16 }
0x16aa   :  { %v3720_v10 = vsel %vm758_vm7, %v3711_v9, -inf }
0x16ab   :  { %3721 = vmax.xlane.f32.xlu2 %v3720_v10 }
0x16ad   :  { %v3698_v25 = vpop.f32.mrf.mxu3 }
0x16ae   :  { %v3707_v50 = vmul.f32 0.35355338, %v3698_v25 }
0x16b0   :  { %v3712_v45 = vadd.f32 %v7493_v30, %v3707_v50 }
0x16b2   :  { %v3723_v11 = vsel %vm758_vm7, %v3712_v45, -inf }
0x16b3   :  { %3724 = vmax.xlane.f32.xlu0 %v3723_v11 }
0x16b5   :  { %v3701_v58 = vpop.f32.mrf.mxu3 }
0x16b6   :  { %v3708_v29 = vmul.f32 0.35355338, %v3701_v58 }
0x16b8   :  { %v3713_v36 = vadd.f32 %v7498_v43, %v3708_v29  ;;  %v5481_v29 = vld [vmem:[%s8114_s18 + $0x78] sm:$0xff] }
0x16b9   :  { %3979 = vmatpush.msrb.mxu0 %v5481_v29 }
0x16ba   :  { %v3726_v32 = vsel %vm771_vm8, %v3713_v36, -inf }
0x16bb   :  { %3727 = vmax.xlane.f32.xlu1 %v3726_v32  ;;  %v5479_v32 = vld [vmem:[%s8114_s18 + $0x68] sm:$0xff] }
0x16bd   :  { %v3942_v19 = vpop.f32.mrf.mxu3 }
0x16be   :  { %v3943_v42 = vadd.f32 %v5651_v38, %v3942_v19  ;;  %v5478_v19 = vld [vmem:[%s8114_s18 + $0x60] sm:$0xff] }
0x16c5   :  { %v3945_v20 = vpop.f32.mrf.mxu3 }
0x16c6   :  { %v3946_v43 = vadd.f32 %v5651_v38, %v3945_v20 }
0x16cd   :  { %v3948_v12 = vpop.f32.mrf.mxu3 }
0x16ce   :  { %v3949_v18 = vadd.f32 %v5651_v38, %v3948_v12 }
0x16d5   :  { %v3951_v22 = vpop.f32.mrf.mxu3 }
0x16d6   :  { %v3952_v30 = vadd.f32 %v5651_v38, %v3951_v22 }
0x16dd   :  { %v3954_v56 = vpop.f32.mrf.mxu3 }
0x16de   :  { %v3955_v44 = vadd.f32 %v5651_v38, %v3954_v56 }
0x16e0   :  { %5488 = vmatpush.xpose.msk.msrb.mxu1 %vm685_vm5, %v3955_v44 }
0x16e4   :  { %5489 = vmatpush.xpose.msk.msrb.mxu1 %vm685_vm5, %v3952_v30 }
0x16e8   :  { %5490 = vmatpush.xpose.msk.msrb.mxu1 %vm685_vm5, %v3949_v18 }
0x16ec   :  { %5491 = vmatpush.xpose.msk.msrb.mxu1 %vm685_vm5, %v3946_v43 }
0x16f0   :  { %5492 = vmatpush.xpose.msk.msrb.mxu1 %vm685_vm5, %v3943_v42 }
0x170e   :  { %v3716_v60 = vpop.xlane.xlu0 %3715 }
0x170f   :  { %v3729_v21 = vsub.f32 %v3709_v61, %v3716_v60 }
0x1711   :  { %v3734_v33 = vmul.f32 1.442695, %v3729_v21 }
0x1713   :  { %5837 = vpow2.f32 %v3734_v33 }
0x1716   :  { %v3719_v13 = vpop.xlane.xlu1 %3718 }
0x1717   :  { %v3730_v49 = vsub.f32 %v3710_v4, %v3719_v13 }
0x1719   :  { %v5838_v57 = vpop.eup %5837  ;;  %v3736_v15 = vmul.f32 1.442695, %v3730_v49 }
0x171a   :  { %v3744_v47 = vsel %vm758_vm7, %v5838_v57, 0.0 }
0x171b   :  { %5839 = vpow2.f32 %v3736_v15  ;;  %3745 = vadd.xlane.f32.xlu2 %v3744_v47 }
0x171e   :  { %v3722_v23 = vpop.xlane.xlu2 %3721 }
0x171f   :  { %v3731_v52 = vsub.f32 %v3711_v9, %v3722_v23 }
0x1721   :  { %v5840_v48 = vpop.eup %5839  ;;  %v3738_v54 = vmul.f32 1.442695, %v3731_v52 }
0x1722   :  { %v3747_v28 = vsel %vm758_vm7, %v5840_v48, 0.0 }
0x1723   :  { %5841 = vpow2.f32 %v3738_v54  ;;  %3748 = vadd.xlane.f32.xlu0 %v3747_v28 }
0x1726   :  { %v3725_v59 = vpop.xlane.xlu0 %3724 }
0x1727   :  { %v3732_v61 = vsub.f32 %v3712_v45, %v3725_v59 }
0x1729   :  { %v5842_v0 = vpop.eup %5841  ;;  %v3740_v63 = vmul.f32 1.442695, %v3732_v61 }
0x172a   :  { %v3750_v2 = vsel %vm758_vm7, %v5842_v0, 0.0 }
0x172b   :  { %5843 = vpow2.f32 %v3740_v63  ;;  %3751 = vadd.xlane.f32.xlu1 %v3750_v2 }
0x172e   :  { %v3728_v4 = vpop.xlane.xlu1 %3727 }
0x172f   :  { %v3733_v7 = vsub.f32 %v3713_v36, %v3728_v4  ;;  %v5480_v36 = vld [vmem:[%s8114_s18 + $0x70] sm:$0xff] }
0x1730   :  { %3980 = vmatpush.msrb.mxu0 %v5480_v36 }
0x1731   :  { %v5844_v34 = vpop.eup %5843  ;;  %v3742_v6 = vmul.f32 1.442695, %v3733_v7 }
0x1732   :  { %v3753_v9 = vsel %vm758_vm7, %v5844_v34, 0.0  ;;  %3981 = vmatpush.msrb.mxu0 %v5479_v32 }
0x1733   :  { %5845 = vpow2.f32 %v3742_v6  ;;  %3754 = vadd.xlane.f32.xlu2 %v3753_v9 }
0x1734   :  { %3982 = vmatpush.msrb.mxu0 %v5478_v19 }
0x1739   :  { %v5846_v10 = vpop.eup %5845 }
0x173a   :  { %v3756_v25 = vsel %vm771_vm8, %v5846_v10, 0.0 }
0x173b   :  { %3757 = vadd.xlane.f32.xlu0 %v3756_v25  ;;  %v3508_v25 = vadd.f32 %v7636_v3, %v7638_v53 }
0x178e   :  { %v3746_v50 = vpop.xlane.xlu2 %3745 }
0x178f   :  { %5847 = vrcp.f32 %v3746_v50 }
0x1795   :  { %v5848_v45 = vpop.eup %5847 }
0x1796   :  { %v3764_v11 = vmul.f32 %v5848_v45, %v5838_v57  ;;  %v3749_v58 = vpop.xlane.xlu0 %3748 }
0x1797   :  { %5849 = vrcp.f32 %v3749_v58 }
0x1798   :  { %5447 = vmatmul.msk.f32.vlgmr.msra.gmra.mxu0 %vm758_vm7, %v3764_v11  ;;  %v3511_v11 = vadd.f32 %v7642_v8, %v7644_v5 }
0x179d   :  { %v5850_v16 = vpop.eup %5849 }
0x179e   :  { %v3752_v20 = vpop.xlane.xlu1 %3751  ;;  %v3765_v12 = vmul.f32 %v5850_v16, %v5840_v48 }
0x179f   :  { %5851 = vrcp.f32 %v3752_v20  ;;  %v5919_v20 = vld [vmem:[%s8095_s13] sm:$0xff] }
0x17a0   :  { %5448 = vmatmul.msk.f32.gmra.mxu0 %vm758_vm7, %v3765_v12 }
0x17a5   :  { %v5852_v22 = vpop.eup %5851 }
0x17a6   :  { %v3755_v38 = vpop.xlane.xlu2 %3754  ;;  %v3766_v56 = vmul.f32 %v5852_v22, %v5842_v0  ;;  %v5652_v0 = vld [vmem:[%s8116_s23 + $0x3] ss:$0 sm:$0xff] }
0x17a7   :  { %5853 = vrcp.f32 %v3755_v38  ;;  %v5920_v38 = vld [vmem:[%s8095_s13 + $0x8] sm:$0xff] }
0x17a8   :  { %5449 = vmatmul.msk.f32.gmra.mxu0 %vm758_vm7, %v3766_v56 }
0x17ad   :  { %v5854_v44 = vpop.eup %5853 }
0x17ae   :  { %v3758_v30 = vpop.xlane.xlu0 %3757  ;;  %v3767_v18 = vmul.f32 %v5854_v44, %v5844_v34 }
0x17af   :  { %5855 = vrcp.f32 %v3758_v30 }
0x17b0   :  { %5450 = vmatmul.msk.f32.gmra.mxu0 %vm758_vm7, %v3767_v18 }
0x17b5   :  { %v5856_v43 = vpop.eup %5855 }
0x17b6   :  { %v3768_v42 = vmul.f32 %v5856_v43, %v5846_v10 }
0x17b8   :  { %5451 = vmatmul.msk.f32.gmra.mxu0 %vm758_vm7, %v3768_v42 }
0x17c0   :  { %5483 = vmatmul.msk.f32.vlgmr.msrb.gmra.mxu0 %vm415_vm1, %v7362_v27 }
0x17c8   :  { %5484 = vmatmul.msk.f32.gmra.mxu0 %vm415_vm1, %v7380_v31  ;;  %v3900_v31 = vpop.f32.mrf.mxu2 }
0x17d0   :  { %5485 = vmatmul.msk.f32.gmra.mxu0 %vm415_vm1, %v7393_v35  ;;  %v3903_v13 = vpop.f32.mrf.mxu2 }
0x17d8   :  { %5486 = vmatmul.msk.f32.gmra.mxu0 %vm415_vm1, %v7404_v40  ;;  %v5650_v40 = vld [vmem:[%s8117_s28 + $0x3] ss:$0 sm:$0xff]  ;;  %v3906_v15 = vpop.f32.mrf.mxu2 }
0x17d9   :  { %v3901_v49 = vadd.f32 %v5650_v40, %v3900_v31  ;;  %v3904_v57 = vadd.f32 %v5650_v40, %v3903_v13  ;;  %v3907_v23 = vadd.f32 %v5650_v40, %v3906_v15 }
0x17e0   :  { %5487 = vmatmul.msk.f32.gmra.mxu0 %vm415_vm1, %v7415_v62  ;;  %v3909_v48 = vpop.f32.mrf.mxu2 }
0x17e1   :  { %v3910_v54 = vadd.f32 %v5650_v40, %v3909_v48 }
0x17e8   :  { %v3912_v59 = vpop.f32.mrf.mxu2 }
0x17e9   :  { %v3913_v61 = vadd.f32 %v5650_v40, %v3912_v59 }
0x1815   :  { %v3804_v60 = vpop.f32.mrf.mxu0 }
0x1816   :  { %5453 = vmatmul.msk.f32.vlgmr.msra.gmra.mxu1 %vm685_vm5, %v3804_v60  ;;  %v5922_v60 = vld [vmem:[%s8095_s13 + $0x18] sm:$0xff] }
0x181d   :  { %v3807_v21 = vpop.f32.mrf.mxu0 }
0x181e   :  { %5454 = vmatmul.msk.f32.gmra.mxu1 %vm685_vm5, %v3807_v21 }
0x1825   :  { %v3810_v27 = vpop.f32.mrf.mxu0 }
0x1826   :  { %5455 = vmatmul.msk.f32.gmra.mxu1 %vm685_vm5, %v3810_v27 }
0x182d   :  { %v3813_v33 = vpop.f32.mrf.mxu0 }
0x182e   :  { %5456 = vmatmul.msk.f32.gmra.mxu1 %vm685_vm5, %v3813_v33 }
0x1835   :  { %v3816_v35 = vpop.f32.mrf.mxu0 }
0x1836   :  { %5457 = vmatmul.msk.f32.gmra.mxu1 %vm685_vm5, %v3816_v35  ;;  %v5923_v35 = vld [vmem:[%s8095_s13 + $0x20] sm:$0x3] }
0x183d   :  { %v3984_v62 = vpop.f32.mrf.mxu0 }
0x183e   :  { %5493 = vmatmul.msk.f32.vlgmr.msrb.gmra.mxu1 %vm685_vm5, %v3901_v49  ;;  %v3985_v6 = vadd.f32 %v5652_v0, %v3984_v62 }
0x1845   :  { %v3987_v47 = vpop.f32.mrf.mxu0 }
0x1846   :  { %5494 = vmatmul.msk.f32.gmra.mxu1 %vm685_vm5, %v3904_v57  ;;  %v3988_v34 = vadd.f32 %v5652_v0, %v3987_v47 }
0x184d   :  { %v3990_v52 = vpop.f32.mrf.mxu0 }
0x184e   :  { %5495 = vmatmul.msk.f32.gmra.mxu1 %vm685_vm5, %v3907_v23  ;;  %v3991_v7 = vadd.f32 %v5652_v0, %v3990_v52 }
0x1855   :  { %v3993_v28 = vpop.f32.mrf.mxu0 }
0x1856   :  { %5496 = vmatmul.msk.f32.gmra.mxu1 %vm685_vm5, %v3910_v54  ;;  %v3994_v4 = vadd.f32 %v5652_v0, %v3993_v28 }
0x185d   :  { %v3996_v63 = vpop.f32.mrf.mxu0 }
0x185e   :  { %v3997_v2 = vadd.f32 %v5652_v0, %v3996_v63  ;;  %5497 = vmatmul.msk.f32.gmra.mxu1 %vm685_vm5, %v3913_v61 }
0x1860   :  { %5498 = vmatpush.msk.msra.mxu2 %vm830_vm6, %v3997_v2 }
0x1862   :  { %4156 = vmatpush.msra.mxu2 %v3994_v4 }
0x1864   :  { %4157 = vmatpush.msra.mxu2 %v3991_v7 }
0x1866   :  { %4158 = vmatpush.msra.mxu2 %v3988_v34 }
0x1868   :  { %4159 = vmatpush.msra.mxu2 %v3985_v6 }
0x1893   :  { %v7708_v9 = vpop.f32.mrf.mxu1 }
0x189b   :  { %v7710_v10 = vpop.f32.mrf.mxu1 }
0x18a3   :  { %v3859_v50 = vpop.f32.mrf.mxu1 }
0x18a4   :  { %v7714_v45 = vadd.f32 %v3859_v50, %v3508_v25 }
0x18ab   :  { %v3862_v58 = vpop.f32.mrf.mxu1 }
0x18ac   :  { %v7718_v29 = vadd.f32 %v3862_v58, %v3511_v11 }
0x18b3   :  { %v3865_v36 = vpop.f32.mrf.mxu1 }
0x18b4   :  { %v7721_v32 = vadd.f32 %v3865_v36, %v7648_v1  ;;  %v5921_v1 = vld [vmem:[%s8095_s13 + $0x10] sm:$0xff]  ;;  %s8125_s13 = sld [smem:[#allocation50_spill]] }
0x18bb   :  { %v4046_v19 = vpop.f32.mrf.mxu1 }
0x18bc   :  { %v4061_v16 = vmul.f32 0.35355338, %v4046_v19 }
0x18be   :  { %v4066_v12 = vadd.f32 %v5919_v20, %v4061_v16 }
0x18c0   :  { %v4071_v3 = vsel %vm758_vm7, %v4066_v12, -inf }
0x18c1   :  { %4072 = vmax.xlane.f32.xlu1 %v4071_v3 }
0x18c3   :  { %v4049_v53 = vpop.f32.mrf.mxu1 }
0x18c4   :  { %v4062_v22 = vmul.f32 0.35355338, %v4049_v53  ;;  %v5504_v53 = vld [vmem:[%s8118_s21 + $0x18] sm:$0xff] }
0x18c5   :  { %4208 = vmatpush.msra.mxu3 %v5504_v53  ;;  %v5655_v53 = vld [vmem:[%s8122_s2] ss:$0 sm:$0xff] }
0x18c6   :  { %v4067_v8 = vadd.f32 %v5920_v38, %v4062_v22 }
0x18c8   :  { %v4074_v5 = vsel %vm758_vm7, %v4067_v8, -inf }
0x18c9   :  { %4075 = vmax.xlane.f32.xlu2 %v4074_v5 }
0x18cb   :  { %v4052_v56 = vpop.f32.mrf.mxu1 }
0x18cc   :  { %v4063_v44 = vmul.f32 0.35355338, %v4052_v56 }
0x18ce   :  { %v4068_v30 = vadd.f32 %v5921_v1, %v4063_v44 }
0x18d0   :  { %v4077_v18 = vsel %vm758_vm7, %v4068_v30, -inf }
0x18d1   :  { %4078 = vmax.xlane.f32.xlu0 %v4077_v18 }
0x18d3   :  { %v4055_v43 = vpop.f32.mrf.mxu1 }
0x18d4   :  { %v4064_v42 = vmul.f32 0.35355338, %v4055_v43 }
0x18d6   :  { %v4069_v21 = vadd.f32 %v5922_v60, %v4064_v42 }
0x18d8   :  { %v4080_v27 = vsel %vm758_vm7, %v4069_v21, -inf }
0x18d9   :  { %4081 = vmax.xlane.f32.xlu1 %v4080_v27 }
0x18db   :  { %v4058_v33 = vpop.f32.mrf.mxu1 }
0x18dc   :  { %v4065_v31 = vmul.f32 0.35355338, %v4058_v33 }
0x18de   :  { %v4070_v40 = vadd.f32 %v5923_v35, %v4065_v31 }
0x18e0   :  { %v4083_v13 = vsel %vm771_vm8, %v4070_v40, -inf }
0x18e1   :  { %4084 = vmax.xlane.f32.xlu2 %v4083_v13  ;;  %v4240_v13 = vld [vmem:[%s8119_s27 + $0x8] sm:$0xff] }
0x1934   :  { %v4073_v49 = vpop.xlane.xlu1 %4072 }
0x1935   :  { %v4086_v62 = vsub.f32 %v4066_v12, %v4073_v49  ;;  %v4239_v49 = vld [vmem:[%s8119_s27] sm:$0xff] }
0x1937   :  { %v4091_v57 = vmul.f32 1.442695, %v4086_v62  ;;  %v3502_v62 = vadd.f32 %v7623_v51, %v7626_v46 }
0x1939   :  { %5857 = vpow2.f32 %v4091_v57  ;;  %v3868_v57 = vadd.f32 %v7708_v9, %v3502_v62 }
0x193c   :  { %v4076_v15 = vpop.xlane.xlu2 %4075 }
0x193d   :  { %v4087_v47 = vsub.f32 %v4067_v8, %v4076_v15  ;;  %v5653_v15 = vld [vmem:[#allocation2] ss:$0 sm:$0xff] }
0x193f   :  { %v5858_v23 = vpop.eup %5857  ;;  %v4093_v52 = vmul.f32 1.442695, %v4087_v47 }
0x1940   :  { %v4101_v48 = vsel %vm758_vm7, %v5858_v23, 0.0 }
0x1941   :  { %5859 = vpow2.f32 %v4093_v52  ;;  %4102 = vadd.xlane.f32.xlu0 %v4101_v48  ;;  %v3505_v48 = vadd.f32 %v7628_v39, %v7632_v26 }
0x1944   :  { %v4079_v54 = vpop.xlane.xlu0 %4078 }
0x1945   :  { %v4088_v28 = vsub.f32 %v4068_v30, %v4079_v54  ;;  %v4304_v54 = vld [vmem:[%s8120_s26] sm:$0xf] }
0x1946   :  { %5515 = vmatpush.msk.msra.mxu1 %vm2075_vm9, %v4304_v54 }
0x1947   :  { %v5860_v59 = vpop.eup %5859  ;;  %v4095_v61 = vmul.f32 1.442695, %v4088_v28  ;;  %v3869_v28 = vadd.f32 %v7710_v10, %v3505_v48 }
0x1948   :  { %v4104_v0 = vsel %vm758_vm7, %v5860_v59, 0.0 }
0x1949   :  { %5861 = vpow2.f32 %v4095_v61  ;;  %4105 = vadd.xlane.f32.xlu1 %v4104_v0 }
0x194c   :  { %v4082_v63 = vpop.xlane.xlu1 %4081 }
0x194d   :  { %v4089_v2 = vsub.f32 %v4069_v21, %v4082_v63  ;;  %v4242_v21 = vld [vmem:[%s8119_s27 + $0x18] sm:$0xff] }
0x194e   :  { %4274 = vmatpush.msra.mxu0 %v4242_v21 }
0x194f   :  { %v5862_v4 = vpop.eup %5861  ;;  %v4097_v7 = vmul.f32 1.442695, %v4089_v2 }
0x1950   :  { %v4107_v34 = vsel %vm758_vm7, %v5862_v4, 0.0 }
0x1951   :  { %5863 = vpow2.f32 %v4097_v7  ;;  %4108 = vadd.xlane.f32.xlu2 %v4107_v34  ;;  %v5654_v7 = vld [vmem:[%s8121_s1] ss:$0 sm:$0xff] }
0x1954   :  { %v4085_v6 = vpop.xlane.xlu2 %4084 }
0x1955   :  { %v4090_v25 = vsub.f32 %v4070_v40, %v4085_v6  ;;  %v4241_v40 = vld [vmem:[%s8119_s27 + $0x10] sm:$0xff] }
0x1956   :  { %4275 = vmatpush.msra.mxu0 %v4241_v40 }
0x1957   :  { %v5864_v50 = vpop.eup %5863  ;;  %v4099_v11 = vmul.f32 1.442695, %v4090_v25 }
0x1958   :  { %v4110_v58 = vsel %vm758_vm7, %v5864_v50, 0.0  ;;  %4276 = vmatpush.msra.mxu0 %v4240_v13 }
0x1959   :  { %5865 = vpow2.f32 %v4099_v11  ;;  %4111 = vadd.xlane.f32.xlu0 %v4110_v58 }
0x195a   :  { %4277 = vmatpush.msra.mxu0 %v4239_v49 }
0x195f   :  { %v5866_v36 = vpop.eup %5865 }
0x1960   :  { %v4113_v19 = vsel %vm771_vm8, %v5866_v36, 0.0 }
0x1961   :  { %4114 = vadd.xlane.f32.xlu1 %v4113_v19 }
0x19b4   :  { %v4103_v16 = vpop.xlane.xlu0 %4102 }
0x19b5   :  { %5867 = vrcp.f32 %v4103_v16 }
0x19bb   :  { %v5868_v20 = vpop.eup %5867 }
0x19bc   :  { %v4121_v12 = vmul.f32 %v5868_v20, %v5858_v23  ;;  %v4106_v3 = vpop.xlane.xlu1 %4105 }
0x19bd   :  { %5869 = vrcp.f32 %v4106_v3 }
0x19be   :  { %5499 = vmatmul.msk.f32.vlgmr.msra.gmra.mxu2 %vm758_vm7, %v4121_v12 }
0x19c3   :  { %v5870_v22 = vpop.eup %5869 }
0x19c4   :  { %v4109_v38 = vpop.xlane.xlu2 %4108  ;;  %v4122_v8 = vmul.f32 %v5870_v22, %v5860_v59 }
0x19c5   :  { %5871 = vrcp.f32 %v4109_v38 }
0x19c6   :  { %5500 = vmatmul.msk.f32.gmra.mxu2 %vm758_vm7, %v4122_v8 }
0x19cb   :  { %v5872_v5 = vpop.eup %5871 }
0x19cc   :  { %v4112_v56 = vpop.xlane.xlu0 %4111  ;;  %v4123_v44 = vmul.f32 %v5872_v5, %v5862_v4 }
0x19cd   :  { %5873 = vrcp.f32 %v4112_v56 }
0x19ce   :  { %5501 = vmatmul.msk.f32.gmra.mxu2 %vm758_vm7, %v4123_v44 }
0x19d3   :  { %v5874_v1 = vpop.eup %5873 }
0x19d4   :  { %v4115_v30 = vpop.xlane.xlu1 %4114  ;;  %v4124_v18 = vmul.f32 %v5874_v1, %v5864_v50 }
0x19d5   :  { %5875 = vrcp.f32 %v4115_v30 }
0x19d6   :  { %5502 = vmatmul.msk.f32.gmra.mxu2 %vm758_vm7, %v4124_v18 }
0x19db   :  { %v5876_v43 = vpop.eup %5875 }
0x19dc   :  { %v4125_v42 = vmul.f32 %v5876_v43, %v5866_v36 }
0x19de   :  { %5503 = vmatmul.msk.f32.gmra.mxu2 %vm758_vm7, %v4125_v42 }
0x1a41   :  { %v4161_v60 = vpop.f32.mrf.mxu2 }
0x1a42   :  { %5505 = vmatmul.msk.f32.vlgmr.msra.gmra.mxu3 %vm685_vm5, %v4161_v60 }
0x1a49   :  { %v4164_v27 = vpop.f32.mrf.mxu2 }
0x1a4a   :  { %5506 = vmatmul.msk.f32.gmra.mxu3 %vm685_vm5, %v4164_v27 }
0x1a51   :  { %v4167_v33 = vpop.f32.mrf.mxu2 }
0x1a52   :  { %5507 = vmatmul.msk.f32.gmra.mxu3 %vm685_vm5, %v4167_v33 }
0x1a59   :  { %v4170_v31 = vpop.f32.mrf.mxu2 }
0x1a5a   :  { %5508 = vmatmul.msk.f32.gmra.mxu3 %vm685_vm5, %v4170_v31 }
0x1a61   :  { %v4173_v35 = vpop.f32.mrf.mxu2 }
0x1a62   :  { %5509 = vmatmul.msk.f32.gmra.mxu3 %vm685_vm5, %v4173_v35 }
0x1ac5   :  { %v4210_v47 = vpop.f32.mrf.mxu3 }
0x1ac6   :  { %v4225_v23 = vadd.f32 %v4210_v47, %v3868_v57 }
0x1ac8   :  { %v4234_v52 = vadd.f32 %v5653_v15, %v4225_v23 }
0x1aca   :  { %5510 = vmatmul.msk.f32.vlgmr.msra.gmra.mxu0 %vm415_vm1, %v4234_v52  ;;  %v4299_v38 = vadd.f32 %v4234_v52, %v7280_v14 }
0x1acd   :  { %v4213_v59 = vpop.f32.mrf.mxu3 }
0x1ace   :  { %v4226_v61 = vadd.f32 %v4213_v59, %v3869_v28 }
0x1ad0   :  { %v4235_v51 = vadd.f32 %v5653_v15, %v4226_v61 }
0x1ad2   :  { %5511 = vmatmul.msk.f32.gmra.mxu0 %vm415_vm1, %v4235_v51  ;;  %v4300_v1 = vadd.f32 %v4235_v51, %v7285_v17 }
0x1ad5   :  { %v4216_v46 = vpop.f32.mrf.mxu3 }
0x1ad6   :  { %v4227_v9 = vadd.f32 %v4216_v46, %v7714_v45 }
0x1ad8   :  { %v4236_v0 = vadd.f32 %v5653_v15, %v4227_v9 }
0x1ada   :  { %5512 = vmatmul.msk.f32.gmra.mxu0 %vm415_vm1, %v4236_v0  ;;  %v4301_v14 = vadd.f32 %v4236_v0, %v7290_v41 }
0x1add   :  { %v4219_v39 = vpop.f32.mrf.mxu3 }
0x1ade   :  { %v4228_v26 = vadd.f32 %v4219_v39, %v7718_v29 }
0x1ae0   :  { %v4237_v63 = vadd.f32 %v5653_v15, %v4228_v26 }
0x1ae2   :  { %5513 = vmatmul.msk.f32.gmra.mxu0 %vm415_vm1, %v4237_v63  ;;  %v4302_v17 = vadd.f32 %v4237_v63, %v7295_v24 }
0x1ae5   :  { %v4222_v2 = vpop.f32.mrf.mxu3 }
0x1ae6   :  { %v4229_v10 = vadd.f32 %v4222_v2, %v7721_v32 }
0x1ae8   :  { %v4238_v4 = vadd.f32 %v5653_v15, %v4229_v10 }
0x1aea   :  { %5514 = vmatmul.msk.f32.gmra.mxu0 %vm415_vm1, %v4238_v4  ;;  %v4303_v41 = vadd.f32 %v4238_v4, %v7300_v55 }
0x1b47   :  { %v4279_v34 = vpop.f32.mrf.mxu0 }
0x1b48   :  { %v4280_v6 = vadd.f32 %v5654_v7, %v4279_v34 }
0x1b4a   :  { %v4294_v25 = vmax.f32 %v4280_v6, 0.0 }
0x1b4c   :  { %5516 = vmatmul.msk.f32.vlgmr.msra.gmra.mxu1 %vm2059_vm10, %v4294_v25 }
0x1b4f   :  { %v4282_v45 = vpop.f32.mrf.mxu0 }
0x1b50   :  { %v4283_v50 = vadd.f32 %v5654_v7, %v4282_v45  ;;  %v4495_v45 = vld [vmem:[%s8123_s5 + $0x18] sm:$0xff] }
0x1b51   :  { %4527 = vmatpush.msrb.mxu2 %v4495_v45 }
0x1b52   :  { %v4295_v11 = vmax.f32 %v4283_v50, 0.0  ;;  %v4494_v50 = vld [vmem:[%s8123_s5 + $0x10] sm:$0xff] }
0x1b53   :  { %4528 = vmatpush.msrb.mxu2 %v4494_v50 }
0x1b54   :  { %5517 = vmatmul.msk.f32.gmra.mxu1 %vm2059_vm10, %v4295_v11  ;;  %v4493_v11 = vld [vmem:[%s8123_s5 + $0x8] sm:$0xff] }
0x1b55   :  { %4529 = vmatpush.msrb.mxu2 %v4493_v11 }
0x1b57   :  { %v4285_v29 = vpop.f32.mrf.mxu0 }
0x1b58   :  { %v4286_v58 = vadd.f32 %v5654_v7, %v4285_v29  ;;  %v4492_v29 = vld [vmem:[%s8123_s5] sm:$0xff] }
0x1b59   :  { %4530 = vmatpush.msrb.mxu2 %v4492_v29 }
0x1b5a   :  { %v4296_v36 = vmax.f32 %v4286_v58, 0.0 }
0x1b5c   :  { %5518 = vmatmul.msk.f32.gmra.mxu1 %vm2059_vm10, %v4296_v36 }
0x1b5f   :  { %v4288_v32 = vpop.f32.mrf.mxu0 }
0x1b60   :  { %v4289_v19 = vadd.f32 %v5654_v7, %v4288_v32 }
0x1b62   :  { %v4297_v16 = vmax.f32 %v4289_v19, 0.0 }
0x1b64   :  { %5519 = vmatmul.msk.f32.gmra.mxu1 %vm2059_vm10, %v4297_v16 }
0x1b67   :  { %v4291_v20 = vpop.f32.mrf.mxu0 }
0x1b68   :  { %v4292_v12 = vadd.f32 %v5654_v7, %v4291_v20 }
0x1b6a   :  { %v4298_v3 = vmax.f32 %v4292_v12, 0.0 }
0x1b6c   :  { %5520 = vmatmul.msk.f32.gmra.mxu1 %vm2059_vm10, %v4298_v3 }
0x1bc9   :  { %v4344_v22 = vpop.f32.mrf.mxu1 }
0x1bca   :  { %v4345_v8 = vadd.f32 %v5655_v53, %v4344_v22 }
0x1bcc   :  { %v7777_v5 = vadd.f32 %v4345_v8, %v4299_v38 }
0x1bce   :  { %v4366_v56 = vsel %vm415_vm1, %v7777_v5, 0.0 }
0x1bcf   :  { %4367 = vadd.xlane.f32.xlu2 %v4366_v56 }
0x1bd1   :  { %v4347_v44 = vpop.f32.mrf.mxu1 }
0x1bd2   :  { %v4348_v30 = vadd.f32 %v5655_v53, %v4347_v44 }
0x1bd4   :  { %v7782_v18 = vadd.f32 %v4348_v30, %v4300_v1 }
0x1bd6   :  { %v4369_v43 = vsel %vm415_vm1, %v7782_v18, 0.0 }
0x1bd7   :  { %4370 = vadd.xlane.f32.xlu0 %v4369_v43 }
0x1bd9   :  { %v4350_v42 = vpop.f32.mrf.mxu1 }
0x1bda   :  { %v4351_v60 = vadd.f32 %v5655_v53, %v4350_v42  ;;  %v7843_v42 = vld [vmem:[#allocation10] ss:$0 sm:$0xff] }
0x1bdc   :  { %v7787_v21 = vadd.f32 %v4351_v60, %v4301_v14 }
0x1bde   :  { %v4372_v27 = vsel %vm415_vm1, %v7787_v21, 0.0 }
0x1bdf   :  { %4373 = vadd.xlane.f32.xlu1 %v4372_v27  ;;  %v7845_v27 = vld [vmem:[#allocation8] ss:$0 sm:$0xff] }
0x1be1   :  { %v4353_v33 = vpop.f32.mrf.mxu1 }
0x1be2   :  { %v4354_v31 = vadd.f32 %v5655_v53, %v4353_v33 }
0x1be4   :  { %v7792_v35 = vadd.f32 %v4354_v31, %v4302_v17 }
0x1be6   :  { %v4375_v40 = vsel %vm415_vm1, %v7792_v35, 0.0 }
0x1be7   :  { %4376 = vadd.xlane.f32.xlu2 %v4375_v40 }
0x1be9   :  { %v4356_v13 = vpop.f32.mrf.mxu1 }
0x1bea   :  { %v4357_v49 = vadd.f32 %v5655_v53, %v4356_v13 }
0x1bec   :  { %v7797_v62 = vadd.f32 %v4357_v49, %v4303_v41 }
0x1bee   :  { %v4378_v57 = vsel %vm428_vm2, %v7797_v62, 0.0 }
0x1bef   :  { %4379 = vadd.xlane.f32.xlu0 %v4378_v57 }
0x1c42   :  { %v4368_v15 = vpop.xlane.xlu2 %4367 }
0x1c43   :  { %v4381_v24 = vmul.f32 %v4368_v15, %v6574_v37 }
0x1c45   :  { %v7803_v47 = vsub.f32 %v7777_v5, %v4381_v24 }
0x1c47   :  { %v4391_v23 = vmul.f32 %v7803_v47, %v7803_v47 }
0x1c49   :  { %v4396_v52 = vsel %vm415_vm1, %v4391_v23, 0.0 }
0x1c4a   :  { %v4371_v48 = vpop.xlane.xlu0 %4370  ;;  %4397 = vadd.xlane.f32.xlu1 %v4396_v52 }
0x1c4b   :  { %v4382_v55 = vmul.f32 %v4371_v48, %v6574_v37 }
0x1c4d   :  { %v7810_v54 = vsub.f32 %v7782_v18, %v4382_v55 }
0x1c4f   :  { %v4392_v28 = vmul.f32 %v7810_v54, %v7810_v54 }
0x1c51   :  { %v4399_v59 = vsel %vm415_vm1, %v4392_v28, 0.0 }
0x1c52   :  { %v4374_v61 = vpop.xlane.xlu1 %4373  ;;  %4400 = vadd.xlane.f32.xlu2 %v4399_v59 }
0x1c53   :  { %v4383_v51 = vmul.f32 %v4374_v61, %v6574_v37 }
0x1c55   :  { %v7817_v46 = vsub.f32 %v7787_v21, %v4383_v51 }
0x1c57   :  { %v4393_v9 = vmul.f32 %v7817_v46, %v7817_v46 }
0x1c59   :  { %v4402_v0 = vsel %vm415_vm1, %v4393_v9, 0.0 }
0x1c5a   :  { %v4377_v39 = vpop.xlane.xlu2 %4376  ;;  %4403 = vadd.xlane.f32.xlu0 %v4402_v0 }
0x1c5b   :  { %v4384_v26 = vmul.f32 %v4377_v39, %v6574_v37 }
0x1c5d   :  { %v7824_v63 = vsub.f32 %v7792_v35, %v4384_v26 }
0x1c5f   :  { %v4394_v2 = vmul.f32 %v7824_v63, %v7824_v63 }
0x1c61   :  { %v4405_v10 = vsel %vm415_vm1, %v4394_v2, 0.0 }
0x1c62   :  { %4406 = vadd.xlane.f32.xlu1 %v4405_v10  ;;  %v4380_v4 = vpop.xlane.xlu0 %4379 }
0x1c63   :  { %v4385_v7 = vmul.f32 %v4380_v4, %v6574_v37 }
0x1c65   :  { %v7831_v34 = vsub.f32 %v7797_v62, %v4385_v7 }
0x1c67   :  { %v4395_v6 = vmul.f32 %v7831_v34, %v7831_v34 }
0x1c69   :  { %v4408_v25 = vsel %vm428_vm2, %v4395_v6, 0.0 }
0x1c6a   :  { %4409 = vadd.xlane.f32.xlu2 %v4408_v25 }
0x1cbd   :  { %v4398_v58 = vpop.xlane.xlu1 %4397 }
0x1cbe   :  { %v4411_v36 = vmul.f32 %v4398_v58, %v6574_v37 }
0x1cc0   :  { %v4416_v32 = vadd.f32 1e-06, %v4411_v36 }
0x1cc2   :  { %5877 = vrsqrt.f32 %v4416_v32  ;;  %vm4427_vm8 = vweird.f32 %v4416_v32 }
0x1cc5   :  { %v4401_v19 = vpop.xlane.xlu2 %4400 }
0x1cc6   :  { %v4412_v16 = vmul.f32 %v4401_v19, %v6574_v37 }
0x1cc8   :  { %v5878_v20 = vpop.eup %5877  ;;  %v4417_v12 = vadd.f32 1e-06, %v4412_v16 }
0x1cc9   :  { %v4422_v3 = vmul.f32 %v5878_v20, %v4416_v32  ;;  %vm4428_vm5 = vweird.f32 %v5878_v20 }
0x1cca   :  { %5879 = vrsqrt.f32 %v4417_v12  ;;  %vm4429_vm4 = vmor %vm4427_vm8, %vm4428_vm5  ;;  %vm4437_vm12 = vweird.f32 %v4417_v12 }
0x1ccb   :  { %v4423_v53 = vmul.f32 %v5878_v20, %v4422_v3 }
0x1ccd   :  { %v4424_v22 = vmul.f32 0.5, %v4423_v53  ;;  %v4404_v38 = vpop.xlane.xlu0 %4403 }
0x1cce   :  { %v4413_v8 = vmul.f32 %v4404_v38, %v6574_v37  ;;  %v4762_v38 = vld [vmem:[%s8124_s9 + $0x78] sm:$0xff] }
0x1ccf   :  { %v4425_v56 = vsub.f32 1.5, %v4424_v22  ;;  %4767 = vmatpush.msrb.mxu3 %v4762_v38 }
0x1cd0   :  { %v5880_v44 = vpop.eup %5879  ;;  %v4418_v1 = vadd.f32 1e-06, %v4413_v8  ;;  %v7871_v8 = vld [vmem:[%s8125_s13] ss:$0 sm:$0xff] }
0x1cd1   :  { %v4426_v30 = vmul.f32 %v5878_v20, %v4425_v56  ;;  %v4432_v43 = vmul.f32 %v5880_v44, %v4417_v12  ;;  %vm4438_vm11 = vweird.f32 %v5880_v44  ;;  %v4761_v56 = vld [vmem:[%s8124_s9 + $0x70] sm:$0xff] }
0x1cd2   :  { %5881 = vrsqrt.f32 %v4418_v1  ;;  %vm4439_vm13 = vmor %vm4437_vm12, %vm4438_vm11  ;;  %vm4447_vm15 = vweird.f32 %v4418_v1  ;;  %4768 = vmatpush.msrb.mxu3 %v4761_v56 }
0x1cd3   :  { %v4430_v14 = vsel %vm4429_vm4, %v5878_v20, %v4426_v30  ;;  %v4433_v60 = vmul.f32 %v5880_v44, %v4432_v43 }
0x1cd4   :  { %v4471_v33 = vmul.f32 %v4430_v14, %v7803_v47 }
0x1cd5   :  { %v4434_v17 = vmul.f32 0.5, %v4433_v60  ;;  %v4407_v31 = vpop.xlane.xlu1 %4406  ;;  %v4757_v60 = vld [vmem:[%s8124_s9 + $0x50] sm:$0xff] }
0x1cd6   :  { %v4479_v40 = vmul.f32 %v7843_v42, %v4471_v33  ;;  %v4414_v13 = vmul.f32 %v4407_v31, %v6574_v37 }
0x1cd7   :  { %v4435_v41 = vsub.f32 1.5, %v4434_v17  ;;  %v4756_v17 = vld [vmem:[%s8124_s9 + $0x48] sm:$0xff] }
0x1cd8   :  { %v5882_v49 = vpop.eup %5881  ;;  %v4487_v57 = vadd.f32 %v7845_v27, %v4479_v40  ;;  %v4419_v15 = vadd.f32 1e-06, %v4414_v13  ;;  %v4755_v13 = vld [vmem:[%s8124_s9 + $0x40] sm:$0xff] }
0x1cd9   :  { %v4436_v24 = vmul.f32 %v5880_v44, %v4435_v41  ;;  %v4442_v23 = vmul.f32 %v5882_v49, %v4418_v1  ;;  %vm4448_vm14 = vweird.f32 %v5882_v49  ;;  %v4760_v1 = vld [vmem:[%s8124_s9 + $0x68] sm:$0xff] }
0x1cda   :  { %5883 = vrsqrt.f32 %v4419_v15  ;;  %5521 = vmatmul.msk.f32.vlgmr.msrb.gmra.mxu2 %vm415_vm1, %v4487_v57  ;;  %vm4449_vm0 = vmor %vm4447_vm15, %vm4448_vm14  ;;  %vm4457_vm5 = vweird.f32 %v4419_v15  ;;  %4769 = vmatpush.msrb.mxu3 %v4760_v1 }
0x1cdb   :  { %v4440_v47 = vsel %vm4439_vm13, %v5880_v44, %v4436_v24  ;;  %v4443_v52 = vmul.f32 %v5882_v49, %v4442_v23 }
0x1cdc   :  { %v4472_v48 = vmul.f32 %v4440_v47, %v7810_v54  ;;  %v4752_v47 = vld [vmem:[%s8124_s9 + $0x28] sm:$0xff] }
0x1cdd   :  { %v4444_v55 = vmul.f32 0.5, %v4443_v52  ;;  %v4410_v28 = vpop.xlane.xlu2 %4409 }
0x1cde   :  { %v4415_v59 = vmul.f32 %v4410_v28, %v6574_v37  ;;  %v4480_v61 = vmul.f32 %v7843_v42, %v4472_v48 }
0x1cdf   :  { %v4445_v51 = vsub.f32 1.5, %v4444_v55 }
0x1ce0   :  { %v5884_v9 = vpop.eup %5883  ;;  %v4420_v0 = vadd.f32 1e-06, %v4415_v59  ;;  %v4488_v39 = vadd.f32 %v7845_v27, %v4480_v61  ;;  %v4751_v59 = vld [vmem:[%s8124_s9 + $0x20] sm:$0xff] }
0x1ce1   :  { %v4446_v26 = vmul.f32 %v5882_v49, %v4445_v51  ;;  %v4452_v2 = vmul.f32 %v5884_v9, %v4419_v15  ;;  %vm4458_vm3 = vweird.f32 %v5884_v9  ;;  %v4753_v15 = vld [vmem:[%s8124_s9 + $0x30] sm:$0xff] }
0x1ce2   :  { %5885 = vrsqrt.f32 %v4420_v0  ;;  %5522 = vmatmul.msk.f32.gmra.mxu2 %vm415_vm1, %v4488_v39  ;;  %vm4459_vm8 = vmor %vm4457_vm5, %vm4458_vm3  ;;  %vm4467_vm11 = vweird.f32 %v4420_v0 }
0x1ce3   :  { %v4450_v54 = vsel %vm4449_vm0, %v5882_v49, %v4446_v26  ;;  %v4453_v10 = vmul.f32 %v5884_v9, %v4452_v2  ;;  %v4754_v49 = vld [vmem:[%s8124_s9 + $0x38] sm:$0xff] }
0x1ce4   :  { %v4473_v4 = vmul.f32 %v4450_v54, %v7817_v46  ;;  %v4749_v54 = vld [vmem:[%s8124_s9 + $0x10] sm:$0xff] }
0x1ce5   :  { %v4454_v7 = vmul.f32 0.5, %v4453_v10 }
0x1ce6   :  { %v4481_v6 = vmul.f32 %v7843_v42, %v4473_v4  ;;  %v4748_v4 = vld [vmem:[%s8124_s9 + $0x8] sm:$0xff] }
0x1ce7   :  { %v4455_v25 = vsub.f32 1.5, %v4454_v7 }
0x1ce8   :  { %v5886_v45 = vpop.eup %5885  ;;  %v4489_v50 = vadd.f32 %v7845_v27, %v4481_v6 }
0x1ce9   :  { %v4456_v11 = vmul.f32 %v5884_v9, %v4455_v25  ;;  %v4462_v29 = vmul.f32 %v5886_v45, %v4420_v0  ;;  %vm4468_vm4 = vweird.f32 %v5886_v45  ;;  %v4747_v25 = vld [vmem:[%s8124_s9] sm:$0xff] }
0x1cea   :  { %5523 = vmatmul.msk.f32.gmra.mxu2 %vm415_vm1, %v4489_v50  ;;  %vm4469_vm12 = vmor %vm4467_vm11, %vm4468_vm4 }
0x1ceb   :  { %v4460_v58 = vsel %vm4459_vm8, %v5884_v9, %v4456_v11  ;;  %v4463_v36 = vmul.f32 %v5886_v45, %v4462_v29  ;;  %v4750_v9 = vld [vmem:[%s8124_s9 + $0x18] sm:$0xff] }
0x1cec   :  { %v4474_v32 = vmul.f32 %v4460_v58, %v7824_v63 }
0x1ced   :  { %v4464_v46 = vmul.f32 0.5, %v4463_v36 }
0x1cee   :  { %v4482_v19 = vmul.f32 %v7843_v42, %v4474_v32 }
0x1cef   :  { %v4465_v16 = vsub.f32 1.5, %v4464_v46 }
0x1cf0   :  { %v4490_v20 = vadd.f32 %v7845_v27, %v4482_v19 }
0x1cf1   :  { %v4466_v12 = vmul.f32 %v5886_v45, %v4465_v16 }
0x1cf2   :  { %5524 = vmatmul.msk.f32.gmra.mxu2 %vm415_vm1, %v4490_v20 }
0x1cf3   :  { %v4470_v3 = vsel %vm4469_vm12, %v5886_v45, %v4466_v12 }
0x1cf4   :  { %v4475_v53 = vmul.f32 %v4470_v3, %v7831_v34  ;;  %v4759_v34 = vld [vmem:[%s8124_s9 + $0x60] sm:$0xff] }
0x1cf5   :  { %4770 = vmatpush.msrb.mxu3 %v4759_v34 }
0x1cf6   :  { %v4483_v63 = vmul.f32 %v7843_v42, %v4475_v53  ;;  %v4758_v42 = vld [vmem:[%s8124_s9 + $0x58] sm:$0xff] }
0x1cf7   :  { %4771 = vmatpush.msrb.mxu3 %v4758_v42 }
0x1cf8   :  { %v4491_v22 = vadd.f32 %v7845_v27, %v4483_v63 }
0x1cf9   :  { %4772 = vmatpush.msrb.mxu3 %v4757_v60 }
0x1cfa   :  { %5525 = vmatmul.msk.f32.gmra.mxu2 %vm415_vm1, %v4491_v22 }
0x1cfb   :  { %4773 = vmatpush.msrb.mxu3 %v4756_v17 }
0x1cfd   :  { %4774 = vmatpush.msrb.mxu3 %v4755_v13 }
0x1cff   :  { %4775 = vmatpush.msrb.mxu3 %v4754_v49 }
0x1d01   :  { %4776 = vmatpush.msrb.mxu3 %v4753_v15 }
0x1d03   :  { %4777 = vmatpush.msrb.mxu3 %v4752_v47 }
0x1d05   :  { %4778 = vmatpush.msrb.mxu3 %v4751_v59 }
0x1d07   :  { %4779 = vmatpush.msrb.mxu3 %v4750_v9 }
0x1d09   :  { %4780 = vmatpush.msrb.mxu3 %v4749_v54 }
0x1d0b   :  { %4781 = vmatpush.msrb.mxu3 %v4748_v4 }
0x1d0d   :  { %4782 = vmatpush.msrb.mxu3 %v4747_v25 }
0x1d5d   :  { %v4532_v44 = vpop.f32.mrf.mxu2 }
0x1d5e   :  { %v7876_v30 = vadd.f32 %v7871_v8, %v4532_v44 }
0x1d60   :  { %v7880_v43 = vmul.f32 0.70710677, %v7876_v30 }
0x1d62   :  { %v4557_v14 = vand.u32 2147483647, %v7880_v43  ;;  %v4692_v32 = vsub.f32 0.0, %v7880_v43 }
0x1d64   :  { %v4562_v27 = vmul.f32 0.3275911, %v4557_v14  ;;  %v4697_v3 = vmul.f32 %v4692_v32, %v7880_v43 }
0x1d65   :  { %v4535_v33 = vpop.f32.mrf.mxu2 }
0x1d66   :  { %v4567_v31 = vadd.f32 1.0, %v4562_v27  ;;  %v7887_v40 = vadd.f32 %v7871_v8, %v4535_v33  ;;  %v4702_v33 = vmul.f32 1.442695, %v4697_v3 }
0x1d68   :  { %5887 = vrcp.f32 %v4567_v31  ;;  %v7891_v41 = vmul.f32 0.70710677, %v7887_v40  ;;  %v4583_v0 = vand.u32 2147483648, %v4567_v31  ;;  %v4581_v2 = vand.u32 2147483647, %v4567_v31 }
0x1d69   :  { %vm4577_vm14 = vweird.f32 %v4567_v31 }
0x1d6a   :  { %v4558_v57 = vand.u32 2147483647, %v7891_v41  ;;  %v4584_v45 = vor.u32 1.1754944e-38, %v4583_v0  ;;  %vm4582_vm0 = vcmp.eq.f32.partialorder %v4581_v2, 8.507059e+37  ;;  %v4693_v17 = vsub.f32 0.0, %v7891_v41 }
0x1d6c   :  { %v4563_v24 = vmul.f32 0.3275911, %v4558_v57  ;;  %v4698_v59 = vmul.f32 %v4693_v17, %v7891_v41 }
0x1d6d   :  { %v4538_v23 = vpop.f32.mrf.mxu2 }
0x1d6e   :  { %v5888_v52 = vpop.eup %5887  ;;  %v7898_v48 = vadd.f32 %v7871_v8, %v4538_v23  ;;  %v7900_v28 = vadd.f32 1.0, %v4563_v24 }
0x1d6f   :  { %v4573_v55 = vmul.f32 %v5888_v52, %v4567_v31  ;;  %vm4578_vm13 = vweird.f32 %v5888_v52 }
0x1d70   :  { %v7904_v61 = vmul.f32 0.70710677, %v7898_v48  ;;  %5889 = vrcp.f32 %v7900_v28  ;;  %vm4579_vm15 = vmor %vm4577_vm14, %vm4578_vm13  ;;  %v4598_v38 = vand.u32 2147483648, %v7900_v28  ;;  %v4596_v14 = vand.u32 2147483647, %v7900_v28 }
0x1d71   :  { %v4574_v51 = vsub.f32 1.0, %v4573_v55  ;;  %vm4592_vm5 = vweird.f32 %v7900_v28 }
0x1d72   :  { %v4559_v39 = vand.u32 2147483647, %v7904_v61  ;;  %v4599_v24 = vor.u32 1.1754944e-38, %v4598_v38  ;;  %vm4597_vm4 = vcmp.eq.f32.partialorder %v4596_v14, 8.507059e+37  ;;  %v4694_v2 = vsub.f32 0.0, %v7904_v61 }
0x1d73   :  { %v4575_v26 = vmul.f32 %v5888_v52, %v4574_v51 }
0x1d74   :  { %v4564_v10 = vmul.f32 0.3275911, %v4559_v39 }
0x1d75   :  { %v4576_v7 = vadd.f32 %v5888_v52, %v4575_v26  ;;  %v4541_v6 = vpop.f32.mrf.mxu2 }
0x1d76   :  { %v7912_v50 = vadd.f32 1.0, %v4564_v10  ;;  %v7915_v11 = vadd.f32 %v7871_v8, %v4541_v6  ;;  %v5890_v29 = vpop.eup %5889 }
0x1d77   :  { %v4580_v58 = vsel %vm4579_vm15, %v5888_v52, %v4576_v7  ;;  %v4588_v46 = vmul.f32 %v5890_v29, %v7900_v28  ;;  %vm4593_vm3 = vweird.f32 %v5890_v29  ;;  %vm4722_vm15 = vcmp.lt.f32.partialorder %v7880_v43, 0.0 }
0x1d78   :  { %v4585_v36 = vsel %vm4582_vm0, %v4584_v45, %v4580_v58  ;;  %5891 = vrcp.f32 %v7912_v50  ;;  %v7921_v20 = vmul.f32 0.70710677, %v7915_v11  ;;  %vm7938_vm8 = vmor %vm4592_vm5, %vm4593_vm3  ;;  %v4613_v23 = vand.u32 2147483648, %v7912_v50 }
0x1d79   :  { %v4647_v19 = vmul.f32 1.0614054, %v4585_v36  ;;  %v4589_v16 = vsub.f32 1.0, %v4588_v46  ;;  %v4611_v28 = vand.u32 2147483647, %v7912_v50  ;;  %vm4607_vm12 = vweird.f32 %v7912_v50 }
0x1d7a   :  { %v4560_v63 = vand.u32 2147483647, %v7921_v20  ;;  %v4614_v10 = vor.u32 1.1754944e-38, %v4613_v23  ;;  %v4704_v45 = vmul.f32 1.442695, %v4698_v59  ;;  %v4695_v14 = vsub.f32 0.0, %v7921_v20 }
0x1d7b   :  { %v4652_v12 = vadd.f32 -1.4531521, %v4647_v19  ;;  %v4590_v53 = vmul.f32 %v5890_v29, %v4589_v16  ;;  %vm4612_vm14 = vcmp.eq.f32.partialorder %v4611_v28, 8.507059e+37  ;;  %v4547_v19 = vmul.f32 0.5, %v7876_v30 }
0x1d7c   :  { %v4565_v1 = vmul.f32 0.3275911, %v4560_v63  ;;  %v4699_v16 = vmul.f32 %v4694_v2, %v7904_v61 }
0x1d7d   :  { %v4657_v22 = vmul.f32 %v4652_v12, %v4585_v36  ;;  %v4544_v56 = vpop.f32.mrf.mxu2  ;;  %v4591_v42 = vadd.f32 %v5890_v29, %v4590_v53 }
0x1d7e   :  { %v5892_v44 = vpop.eup %5891  ;;  %v7927_v34 = vadd.f32 %v7871_v8, %v4544_v56  ;;  %v7933_v31 = vadd.f32 1.0, %v4565_v1 }
0x1d7f   :  { %v4662_v60 = vadd.f32 1.4214138, %v4657_v22  ;;  %v4603_v27 = vmul.f32 %v5892_v44, %v7912_v50  ;;  %v4595_v15 = vsel %vm7938_vm8, %v5890_v29, %v4591_v42  ;;  %vm4608_vm11 = vweird.f32 %v5892_v44 }
0x1d80   :  { %v7936_v13 = vmul.f32 0.70710677, %v7927_v34  ;;  %5893 = vrcp.f32 %v7933_v31  ;;  %v7949_v9 = vsel %vm4597_vm4, %v4599_v24, %v4595_v15  ;;  %vm4609_vm13 = vmor %vm4607_vm12, %vm4608_vm11  ;;  %v4628_v22 = vand.u32 2147483648, %v7933_v31 }
0x1d81   :  { %v4667_v8 = vmul.f32 %v4662_v60, %v4585_v36  ;;  %v4604_v57 = vsub.f32 1.0, %v4603_v27  ;;  %5895 = vpow2.f32 %v4702_v33  ;;  %v4648_v39 = vmul.f32 1.0614054, %v7949_v9 }
0x1d82   :  { %v4561_v47 = vand.u32 2147483647, %v7936_v13  ;;  %v4626_v38 = vand.u32 2147483647, %v7933_v31  ;;  %v4706_v42 = vmul.f32 1.442695, %v4699_v16  ;;  %vm4622_vm3 = vweird.f32 %v7933_v31 }
0x1d83   :  { %v4672_v52 = vadd.f32 -0.28449672, %v4667_v8  ;;  %v4605_v55 = vmul.f32 %v5892_v44, %v4604_v57  ;;  %v4653_v7 = vadd.f32 -1.4531521, %v4648_v39  ;;  %v4629_v15 = vor.u32 1.1754944e-38, %v4628_v22  ;;  %v4802_v22 = vld [vmem:[%s8128_s3 + $0x18] sm:$0xff] }
0x1d84   :  { %v4566_v51 = vmul.f32 0.3275911, %v4561_v47  ;;  %vm4627_vm8 = vcmp.eq.f32.partialorder %v4626_v38, 8.507059e+37  ;;  %4834 = vmatpush.msrb.mxu0 %v4802_v22 }
0x1d85   :  { %v4677_v0 = vmul.f32 %v4672_v52, %v4585_v36  ;;  %v4606_v26 = vadd.f32 %v5892_v44, %v4605_v55  ;;  %v4658_v32 = vmul.f32 %v4653_v7, %v7949_v9 }
0x1d86   :  { %v7954_v54 = vadd.f32 1.0, %v4566_v51  ;;  %v5894_v25 = vpop.eup %5893 }
0x1d87   :  { %v4682_v4 = vadd.f32 0.2548296, %v4677_v0  ;;  %v4610_v6 = vsel %vm4609_vm13, %v5892_v44, %v4606_v26  ;;  %v4618_v58 = vmul.f32 %v5894_v25, %v7933_v31  ;;  %v5896_v46 = vpop.eup %5895  ;;  %v4663_v63 = vadd.f32 1.4214138, %v4658_v32 }
0x1d88   :  { %5897 = vrcp.f32 %v7954_v54  ;;  %v7957_v29 = vsel %vm4612_vm14, %v4614_v10, %v4610_v6  ;;  %vm4623_vm0 = vweird.f32 %v5894_v25  ;;  %v4643_v8 = vand.u32 2147483648, %v7954_v54 }
0x1d89   :  { %v4687_v50 = vmul.f32 %v4682_v4, %v4585_v36  ;;  %v4649_v12 = vmul.f32 1.0614054, %v7957_v29  ;;  %v4619_v53 = vsub.f32 1.0, %v4618_v58  ;;  %5899 = vpow2.f32 %v4704_v45  ;;  %vm4624_vm5 = vmor %vm4622_vm3, %vm4623_vm0 }
0x1d8a   :  { %v4668_v1 = vmul.f32 %v4663_v63, %v7949_v9  ;;  %v4641_v51 = vand.u32 2147483647, %v7954_v54  ;;  %5901 = vpow2.f32 %v4706_v42  ;;  %vm4637_vm11 = vweird.f32 %v7954_v54 }
0x1d8b   :  { %v4712_v3 = vmul.f32 %v5896_v46, %v4687_v50  ;;  %v4654_v36 = vadd.f32 -1.4531521, %v4649_v12  ;;  %v4620_v44 = vmul.f32 %v5894_v25, %v4619_v53  ;;  %v4700_v6 = vmul.f32 %v4695_v14, %v7921_v20 }
0x1d8c   :  { %v4673_v17 = vadd.f32 -0.28449672, %v4668_v1  ;;  %v4644_v45 = vor.u32 1.1754944e-38, %v4643_v8  ;;  %vm4642_vm13 = vcmp.eq.f32.partialorder %v4641_v51, 8.507059e+37  ;;  %v4696_v46 = vsub.f32 0.0, %v7936_v13 }
0x1d8d   :  { %v4717_v56 = vsub.f32 1.0, %v4712_v3  ;;  %v4659_v60 = vmul.f32 %v4654_v36, %v7957_v29  ;;  %v4621_v49 = vadd.f32 %v5894_v25, %v4620_v44  ;;  %v4708_v53 = vmul.f32 1.442695, %v4700_v6  ;;  %v4801_v36 = vld [vmem:[%s8128_s3 + $0x10] sm:$0xff] }
0x1d8e   :  { %v5898_v30 = vpop.eup %5897  ;;  %v4678_v31 = vmul.f32 %v4673_v17, %v7949_v9  ;;  %v4701_v1 = vmul.f32 %v4696_v46, %v7936_v13  ;;  %vm4723_vm14 = vcmp.lt.f32.partialorder %v7891_v41, 0.0  ;;  %4835 = vmatpush.msrb.mxu0 %v4801_v36  ;;  %vm4725_vm0 = vcmp.lt.f32.partialorder %v7921_v20, 0.0  ;;  %v4800_v20 = vld [vmem:[%s8128_s3 + $0x8] sm:$0xff]  ;;  %v4799_v46 = vld [vmem:[%s8128_s3] sm:$0xff] }
0x1d8f   :  { %v4727_v27 = vsub.f32 0.0, %v4717_v56  ;;  %v4633_v33 = vmul.f32 %v5898_v30, %v7954_v54  ;;  %v4664_v57 = vadd.f32 1.4214138, %v4659_v60  ;;  %v4625_v47 = vsel %vm4624_vm5, %v5894_v25, %v4621_v49  ;;  %v5900_v52 = vpop.eup %5899  ;;  %v5660_v36 = vld [vmem:[%s8131_s19] ss:$0 sm:$0xff] }
0x1d90   :  { %v4630_v59 = vsel %vm4627_vm8, %v4629_v15, %v4625_v47  ;;  %v4683_v39 = vadd.f32 0.2548296, %v4678_v31  ;;  %vm4638_vm4 = vweird.f32 %v5898_v30  ;;  %v5902_v3 = vpop.eup %5901  ;;  %5903 = vpow2.f32 %v4708_v53  ;;  %4836 = vmatpush.msrb.mxu0 %v4800_v20 }
0x1d91   :  { %v4732_v24 = vsel %vm4722_vm15, %v4727_v27, %v4717_v56  ;;  %v4634_v23 = vsub.f32 1.0, %v4633_v33  ;;  %v4669_v28 = vmul.f32 %v4664_v57, %v7957_v29  ;;  %v4650_v26 = vmul.f32 1.0614054, %v4630_v59  ;;  %vm4639_vm12 = vmor %vm4637_vm11, %vm4638_vm4 }
0x1d92   :  { %v4737_v55 = vadd.f32 1.0, %v4732_v24  ;;  %v4688_v43 = vmul.f32 %v4683_v39, %v7949_v9  ;;  %v4548_v27 = vmul.f32 0.5, %v7887_v40  ;;  %v4710_v8 = vmul.f32 1.442695, %v4701_v1  ;;  %4837 = vmatpush.msrb.mxu0 %v4799_v46 }
0x1d93   :  { %v4635_v0 = vmul.f32 %v5898_v30, %v4634_v23  ;;  %v4674_v10 = vadd.f32 -0.28449672, %v4669_v28  ;;  %v4655_v4 = vadd.f32 -1.4531521, %v4650_v26  ;;  %vm4724_vm15 = vcmp.lt.f32.partialorder %v7904_v61, 0.0 }
0x1d94   :  { %v4742_v2 = vmul.f32 %v4737_v55, %v4547_v19  ;;  %v4713_v50 = vmul.f32 %v5900_v52, %v4688_v43  ;;  %v4549_v40 = vmul.f32 0.5, %v7898_v48  ;;  %5905 = vpow2.f32 %v4710_v8 }
0x1d95   :  { %v4636_v7 = vadd.f32 %v5898_v30, %v4635_v0  ;;  %v4679_v25 = vmul.f32 %v4674_v10, %v7957_v29  ;;  %v4660_v58 = vmul.f32 %v4655_v4, %v4630_v59  ;;  %v4550_v4 = vmul.f32 0.5, %v7915_v11  ;;  %v5659_v11 = vld [vmem:[%s8129_s8] ss:$0 sm:$0xff] }
0x1d96   :  { %4783 = vmatmul.f32.vlgmr.msrb.gmra.mxu3 %v4742_v2  ;;  %v4718_v9 = vsub.f32 1.0, %v4713_v50  ;;  %v5904_v55 = vpop.eup %5903  ;;  %vm4726_vm3 = vcmp.lt.f32.partialorder %v7936_v13, 0.0 }
0x1d97   :  { %v4640_v32 = vsel %vm4639_vm12, %v5898_v30, %v4636_v7  ;;  %v4684_v54 = vadd.f32 0.2548296, %v4679_v25  ;;  %v4665_v16 = vadd.f32 1.4214138, %v4660_v58  ;;  %v4551_v58 = vmul.f32 0.5, %v7927_v34 }
0x1d98   :  { %v4645_v19 = vsel %vm4642_vm13, %v4644_v45, %v4640_v32  ;;  %v4728_v38 = vsub.f32 0.0, %v4718_v9 }
0x1d99   :  { %v4651_v12 = vmul.f32 1.0614054, %v4645_v19  ;;  %v4689_v63 = vmul.f32 %v4684_v54, %v7957_v29  ;;  %v4670_v56 = vmul.f32 %v4665_v16, %v4630_v59 }
0x1d9a   :  { %v4733_v42 = vsel %vm4723_vm14, %v4728_v38, %v4718_v9  ;;  %v5906_v43 = vpop.eup %5905  ;;  %v4864_v9 = vld [vmem:[%s8130_s14] sm:$0xf] }
0x1d9b   :  { %v4656_v44 = vadd.f32 -1.4531521, %v4651_v12  ;;  %v4714_v30 = vmul.f32 %v5902_v3, %v4689_v63  ;;  %v4675_v14 = vadd.f32 -0.28449672, %v4670_v56  ;;  %v4738_v33 = vadd.f32 1.0, %v4733_v42  ;;  %5531 = vmatpush.msk.msrb.mxu1 %vm2075_vm9, %v4864_v9 }
0x1d9c   :  { %vm5014_vm9 = vcmask 74752  }
0x1d9d   :  { %v4661_v60 = vmul.f32 %v4656_v44, %v4645_v19  ;;  %v4719_v29 = vsub.f32 1.0, %v4714_v30  ;;  %v4680_v17 = vmul.f32 %v4675_v14, %v4630_v59  ;;  %v4743_v57 = vmul.f32 %v4738_v33, %v4548_v27 }
0x1d9f   :  { %v4666_v49 = vadd.f32 1.4214138, %v4661_v60  ;;  %v4729_v15 = vsub.f32 0.0, %v4719_v29  ;;  %v4685_v24 = vadd.f32 0.2548296, %v4680_v17  ;;  %4786 = vmatmul.f32.gmra.mxu3 %v4743_v57 }
0x1da1   :  { %v4671_v23 = vmul.f32 %v4666_v49, %v4645_v19  ;;  %v4734_v41 = vsel %vm4724_vm15, %v4729_v15, %v4719_v29  ;;  %v4690_v47 = vmul.f32 %v4685_v24, %v4630_v59 }
0x1da2   :  { %v4739_v31 = vadd.f32 1.0, %v4734_v41 }
0x1da3   :  { %v4676_v52 = vadd.f32 -0.28449672, %v4671_v23  ;;  %v4715_v28 = vmul.f32 %v5904_v55, %v4690_v47 }
0x1da4   :  { %v4744_v0 = vmul.f32 %v4739_v31, %v4549_v40  ;;  %v5661_v31 = vld [vmem:[%s8132_s24] ss:$0 sm:$0xff] }
0x1da5   :  { %v4681_v51 = vmul.f32 %v4676_v52, %v4645_v19  ;;  %v4720_v39 = vsub.f32 1.0, %v4715_v28 }
0x1da7   :  { %v4686_v26 = vadd.f32 0.2548296, %v4681_v51  ;;  %v4730_v2 = vsub.f32 0.0, %v4720_v39  ;;  %4789 = vmatmul.f32.gmra.mxu3 %v4744_v0 }
0x1da9   :  { %v4691_v10 = vmul.f32 %v4686_v26, %v4645_v19  ;;  %v4735_v61 = vsel %vm4725_vm0, %v4730_v2, %v4720_v39 }
0x1daa   :  { %v4740_v48 = vadd.f32 1.0, %v4735_v61 }
0x1dab   :  { %v4716_v59 = vmul.f32 %v5906_v43, %v4691_v10 }
0x1dac   :  { %v4745_v6 = vmul.f32 %v4740_v48, %v4550_v4  ;;  %v4924_v4 = vld [vmem:[%s8133_s12] sm:$0x3] }
0x1dad   :  { %v4721_v7 = vsub.f32 1.0, %v4716_v59 }
0x1daf   :  { %v4731_v25 = vsub.f32 0.0, %v4721_v7  ;;  %4792 = vmatmul.f32.gmra.mxu3 %v4745_v6 }
0x1db1   :  { %v4736_v45 = vsel %vm4726_vm3, %v4731_v25, %v4721_v7 }
0x1db2   :  { %v4741_v50 = vadd.f32 1.0, %v4736_v45  ;;  %v4986_v45 = vld [vmem:[%s8134_s20 + $0x18] sm:$0xff] }
0x1db3   :  { %5006 = vmatpush.msra.mxu3 %v4986_v45 }
0x1db4   :  { %v4746_v32 = vmul.f32 %v4741_v50, %v4551_v58  ;;  %v4985_v50 = vld [vmem:[%s8134_s20 + $0x10] sm:$0xff]  ;;  %v4984_v58 = vld [vmem:[%s8134_s20 + $0x8] sm:$0xff] }
0x1db5   :  { %5007 = vmatpush.msra.mxu3 %v4985_v50 }
0x1db7   :  { %4795 = vmatmul.f32.gmra.mxu3 %v4746_v32  ;;  %v4983_v32 = vld [vmem:[%s8134_s20] sm:$0xff] }
0x1db8   :  { %5008 = vmatpush.msra.mxu3 %v4984_v58 }
0x1dba   :  { %5009 = vmatpush.msra.mxu3 %v4983_v32 }
0x1e19   :  { %v4784_v54 = vpop.f32.mrf.mxu3 }
0x1e1a   :  { %v4785_v19 = vadd.f32 %v5659_v11, %v4784_v54 }
0x1e1c   :  { %5526 = vmatmul.msk.f32.vlgmr.msrb.gmra.mxu0 %vm415_vm1, %v4785_v19 }
0x1e22   :  { %v4787_v13 = vpop.f32.mrf.mxu3 }
0x1e23   :  { %v4788_v16 = vadd.f32 %v5659_v11, %v4787_v13 }
0x1e25   :  { %5527 = vmatmul.msk.f32.gmra.mxu0 %vm415_vm1, %v4788_v16  ;;  %v4860_v10 = vadd.f32 %v4788_v16, %v7782_v18 }
0x1e2a   :  { %v4790_v34 = vpop.f32.mrf.mxu3 }
0x1e2b   :  { %v4791_v12 = vadd.f32 %v5659_v11, %v4790_v34 }
0x1e2d   :  { %5528 = vmatmul.msk.f32.gmra.mxu0 %vm415_vm1, %v4791_v12  ;;  %v4861_v39 = vadd.f32 %v4791_v12, %v7787_v21  ;;  %v5662_v12 = vld [vmem:[#allocation14] ss:$0 sm:$0xff] }
0x1e32   :  { %v4793_v3 = vpop.f32.mrf.mxu3 }
0x1e33   :  { %v4794_v53 = vadd.f32 %v5659_v11, %v4793_v3 }
0x1e35   :  { %5529 = vmatmul.msk.f32.gmra.mxu0 %vm415_vm1, %v4794_v53  ;;  %v4862_v28 = vadd.f32 %v4794_v53, %v7792_v35  ;;  %v5663_v53 = vld [vmem:[#allocation13] ss:$0 sm:$0xff] }
0x1e3a   :  { %v4796_v63 = vpop.f32.mrf.mxu3 }
0x1e3b   :  { %v4797_v22 = vadd.f32 %v5659_v11, %v4796_v63 }
0x1e3d   :  { %5530 = vmatmul.msk.f32.gmra.mxu0 %vm415_vm1, %v4797_v22  ;;  %v4863_v52 = vadd.f32 %v4797_v22, %v7797_v62  ;;  %v4859_v62 = vadd.f32 %v4785_v19, %v7777_v5 }
0x1e99   :  { %v4839_v38 = vpop.f32.mrf.mxu0 }
0x1e9a   :  { %v4840_v56 = vadd.f32 %v5660_v36, %v4839_v38 }
0x1e9c   :  { %v4854_v44 = vmax.f32 %v4840_v56, 0.0 }
0x1e9e   :  { %5532 = vmatmul.msk.f32.vlgmr.msrb.gmra.mxu1 %vm2059_vm10, %v4854_v44 }
0x1ea2   :  { %v4842_v1 = vpop.f32.mrf.mxu0 }
0x1ea3   :  { %v4843_v30 = vadd.f32 %v5660_v36, %v4842_v1 }
0x1ea5   :  { %v4855_v42 = vmax.f32 %v4843_v30, 0.0 }
0x1ea7   :  { %5533 = vmatmul.msk.f32.gmra.mxu1 %vm2059_vm10, %v4855_v42 }
0x1eaa   :  { %v4845_v14 = vpop.f32.mrf.mxu0 }
0x1eab   :  { %v4846_v60 = vadd.f32 %v5660_v36, %v4845_v14 }
0x1ead   :  { %v4856_v27 = vmax.f32 %v4846_v60, 0.0 }
0x1eaf   :  { %5534 = vmatmul.msk.f32.gmra.mxu1 %vm2059_vm10, %v4856_v27 }
0x1eb2   :  { %v4848_v33 = vpop.f32.mrf.mxu0 }
0x1eb3   :  { %v4849_v29 = vadd.f32 %v5660_v36, %v4848_v33 }
0x1eb5   :  { %v4857_v17 = vmax.f32 %v4849_v29, 0.0 }
0x1eb7   :  { %5535 = vmatmul.msk.f32.gmra.mxu1 %vm2059_vm10, %v4857_v17 }
0x1eba   :  { %v4851_v49 = vpop.f32.mrf.mxu0 }
0x1ebb   :  { %v4852_v8 = vadd.f32 %v5660_v36, %v4851_v49 }
0x1ebd   :  { %v4858_v57 = vmax.f32 %v4852_v8, 0.0 }
0x1ebf   :  { %5536 = vmatmul.msk.f32.gmra.mxu1 %vm2059_vm10, %v4858_v57 }
0x1f1b   :  { %v4904_v15 = vpop.f32.mrf.mxu1 }
0x1f1c   :  { %v4905_v43 = vadd.f32 %v5661_v31, %v4904_v15 }
0x1f1e   :  { %v4919_v35 = vadd.f32 %v4905_v43, %v4859_v62 }
0x1f24   :  { %v4907_v24 = vpop.f32.mrf.mxu1 }
0x1f25   :  { %v4908_v26 = vadd.f32 %v5661_v31, %v4907_v24 }
0x1f27   :  { %v4920_v59 = vadd.f32 %v4908_v26, %v4860_v10 }
0x1f2c   :  { %v4910_v23 = vpop.f32.mrf.mxu1 }
0x1f2d   :  { %v4911_v51 = vadd.f32 %v5661_v31, %v4910_v23 }
0x1f2f   :  { %v4921_v61 = vadd.f32 %v4911_v51, %v4861_v39 }
0x1f34   :  { %v4913_v41 = vpop.f32.mrf.mxu1 }
0x1f35   :  { %v4914_v55 = vadd.f32 %v5661_v31, %v4913_v41 }
0x1f37   :  { %v4922_v2 = vadd.f32 %v4914_v55, %v4862_v28 }
0x1f3c   :  { %v4916_v47 = vpop.f32.mrf.mxu1 }
0x1f3d   :  { %v4917_v40 = vadd.f32 %v5661_v31, %v4916_v47 }
0x1f3f   :  { %v4923_v0 = vadd.f32 %v4917_v40, %v4863_v52 }
0x1f41   :  { %5537 = vmatpush.msk.msra.mxu2 %vm830_vm6, %v4923_v0 }
0x1f43   :  { %4943 = vmatpush.msra.mxu2 %v4922_v2 }
0x1f45   :  { %4944 = vmatpush.msra.mxu2 %v4921_v61 }
0x1f47   :  { %4945 = vmatpush.msra.mxu2 %v4920_v59 }
0x1f49   :  { %4946 = vmatpush.msra.mxu2 %v4919_v35 }
0x1f4a   :  { %5538 = vmatmul.msk.f32.vlgmr.msra.gmra.mxu2 %vm758_vm7, %v4924_v4 }
0x1fcd   :  { %v4948_v21 = vpop.f32.mrf.mxu2 }
0x1fce   :  { %v4953_v18 = vsel %vm428_vm2, %v4948_v21, 0.0 }
0x1fcf   :  { %4954 = vadd.xlane.f32.xlu0 %v4953_v18 }
0x2042   :  { %v4955_v48 = vpop.xlane.xlu0 %4954 }
0x2043   :  { %v4956_v7 = vmul.f32 %v4955_v48, %v6574_v37 }
0x2045   :  { %v4957_v5 = vsub.f32 %v4948_v21, %v4956_v7 }
0x2047   :  { %v4958_v6 = vmul.f32 %v4957_v5, %v4957_v5 }
0x2049   :  { %v4959_v25 = vsel %vm428_vm2, %v4958_v6, 0.0 }
0x204a   :  { %4960 = vadd.xlane.f32.xlu1 %v4959_v25 }
0x20bd   :  { %v4961_v20 = vpop.xlane.xlu1 %4960 }
0x20be   :  { %v4962_v46 = vmul.f32 %v4961_v20, %v6574_v37  ;;  %v5664_v37 = vld [vmem:[#allocation11] ss:$0 sm:$0xff] }
0x20c0   :  { %v4963_v11 = vadd.f32 1e-06, %v4962_v46 }
0x20c2   :  { %5907 = vrsqrt.f32 %v4963_v11  ;;  %vm4970_vm6 = vweird.f32 %v4963_v11 }
0x20c8   :  { %v5908_v54 = vpop.eup %5907 }
0x20c9   :  { %v4965_v19 = vmul.f32 %v5908_v54, %v4963_v11  ;;  %vm4971_vm2 = vweird.f32 %v5908_v54 }
0x20ca   :  { %vm4972_vm7 = vmor %vm4970_vm6, %vm4971_vm2 }
0x20cb   :  { %v4966_v9 = vmul.f32 %v5908_v54, %v4965_v19 }
0x20cd   :  { %v4967_v13 = vmul.f32 0.5, %v4966_v9 }
0x20cf   :  { %v4968_v16 = vsub.f32 1.5, %v4967_v13 }
0x20d1   :  { %v4969_v34 = vmul.f32 %v5908_v54, %v4968_v16 }
0x20d3   :  { %v4973_v3 = vsel %vm4972_vm7, %v5908_v54, %v4969_v34 }
0x20d4   :  { %v4974_v63 = vmul.f32 %v4973_v3, %v4957_v5 }
0x20d6   :  { %v4978_v22 = vmul.f32 %v5662_v12, %v4974_v63 }
0x20d8   :  { %v4982_v36 = vadd.f32 %v5663_v53, %v4978_v22 }
0x20da   :  { %5539 = vmatmul.msk.f32.vlgmr.msra.gmra.mxu3 %vm415_vm1, %v4982_v36 }
0x215d   :  { %v5011_v38 = vpop.f32.mrf.mxu3 }
0x215e   :  { %v5012_v56 = vadd.f32 %v5664_v37, %v5011_v38 }
0x2160   :  { %5015 = vst.msk [vmem:[#allocation16] sm:$0x3] %vm5014_vm9, %v5012_v56 }
0x2161   :  { %6139 = shalt.err (!%p6136_p2)
}
0x2162   :  { %5026 = dma.vmem_to_hbm [thread:$0]  %s5022_s7, 32, %s5024_s10, [#allocation4]  }
0x2163   :  { %6150 = dma.done.wait [#allocation4], 32  }
0x2164   :  { %6151 = vsyncadd [#allocation4], 4294967264 }
0x2165   :  { %5031 = vsyncpa [#allocation3], 1 }
0x2166   :  { %5032 = vsyncpa [#allocation6], 1 }
0x2167   :  { %5033 = vsyncpa [#allocation9], 1 }
0x2168   :  { %5034 = vsyncpa [#allocation12], 1 }
0x2169   :  { %5035 = vsyncpa [#allocation15], 1 }
0x216a   :  { %5036 = vsyncpa [#allocation4], 1 }

</bundles_post_ra>
